<compile_context>
chip_gen: v7x
topology: tpu7x:2x2x1
jax: 0.10.0
libtpu: 0.0.40
codegen_flags: <defaults>
</compile_context>

<pallas_src>
import jax
import jax.numpy as jnp
import numpy as np
from jax.experimental import pallas as pl
from jax.experimental.pallas import tpu as pltpu


# ------------------------------ fused kernel ---------------------------------

def energy_predictor_kernel(
        x_ref,
        w1_ref, b1_ref,
        w2_ref, b2_ref,
        w3_ref, b3_ref,
        fw1_ref, fb1_ref, fw2_ref, fb2_ref,
        o_ref,
        pad1, pad2, pad3):
    """Whole EnergyPredictor forward pass for one batch block (VMEM resident).

    x_ref:   (B, 8, 8, 1)  NHWC input block (f32)
    w1_ref:  (9, 16)       f32 conv1 weights (tap-major, BN scale folded)
    w2_ref:  (144, 32), w3_ref: (288, 64)  bf16 im2col conv weights (BN folded)
    bN_ref:  (1, Cout)     folded eval-mode BN bias (f32)
    fw1_ref: (1024, 256)   bf16, rows ordered (pool_h, pool_w, channel)
    fb1_ref: (1, 256), fw2_ref: (1, 256), fb2_ref: (1, 1)   (f32)
    o_ref:   (B, 1)
    scratch: pad1 (B,10,10,1) f32, pad2 (B,10,10,16) bf16, pad3 (B,10,10,32) bf16
    """
    B, H, W, _ = x_ref.shape
    M = B * H * W
    c1 = b1_ref.shape[-1]
    c2 = b2_ref.shape[-1]
    c3 = b3_ref.shape[-1]

    def zero_halo(pad_ref):
        # Only the 1-pixel halo needs zeroing; the interior is fully overwritten
        # right after.  Zeroed every grid step (NOT under pl.when(pid==0)) so it
        # stays correct when the parallel grid axis is split across TensorCores
        # (the second core never executes grid step 0, but scratch is per-core).
        cpad = pad_ref.shape[-1]
        pad_ref[:, 0:1, :, :] = jnp.zeros((B, 1, W + 2, cpad), pad_ref.dtype)
        pad_ref[:, H + 1:H + 2, :, :] = jnp.zeros((B, 1, W + 2, cpad),
                                                  pad_ref.dtype)
        pad_ref[:, :, 0:1, :] = jnp.zeros((B, H + 2, 1, cpad), pad_ref.dtype)
        pad_ref[:, :, W + 1:W + 2, :] = jnp.zeros((B, H + 2, 1, cpad),
                                                  pad_ref.dtype)

    # ---- conv1 + BN + ReLU on the VPU (cin=1: 9 broadcast FMAs in f32) ------
    zero_halo(pad1)
    pad1[:, pl.ds(1, H), pl.ds(1, W), :] = x_ref[...]
    y = jnp.zeros((M, c1), jnp.float32)
    for kh in range(3):
        for kw in range(3):
            t = kh * 3 + kw
            win = pad1[:, pl.ds(kh, H), pl.ds(kw, W), :].reshape(M, 1)
            y = y + win * w1_ref[t:t + 1, :]
    y1 = jnp.maximum(y + b1_ref[...], 0.0)                     # (M, 16) f32

    # ---- conv2 / conv3: im2col built as a value -> one MXU matmul each ------
    def conv_bn_relu(act, pad_ref, w_ref, b_ref):
        cin = pad_ref.shape[-1]
        zero_halo(pad_ref)
        # Interior cast to bf16 once, right after the previous ReLU.
        pad_ref[:, pl.ds(1, H), pl.ds(1, W), :] = (
            act.reshape(B, H, W, cin).astype(pad_ref.dtype))
        # im2col as a lane concat of the 9 shifted windows (no scratch stores).
        cols = []
        for kh in range(3):
            for kw in range(3):
                cols.append(
                    pad_ref[:, pl.ds(kh, H), pl.ds(kw, W), :].reshape(M, cin))
        col = jnp.concatenate(cols, axis=-1)                    # (M, 9*cin) bf16
        yv = jnp.dot(col, w_ref[...], preferred_element_type=jnp.float32)
        return jnp.maximum(yv + b_ref[...], 0.0)                # f32 epilogue

    y2 = conv_bn_relu(y1, pad2, w2_ref, b2_ref)                 # (M, 32)
    y3 = conv_bn_relu(y2, pad3, w3_ref, b3_ref)                 # (M, 64)

    # ---- 2x2 max-pool (stride 2) + flatten in (ph, pw, c) order as values ----
    y3r = y3.reshape(B, H // 2, 2, W, c3)                       # leading split
    a = jnp.maximum(y3r[:, :, 0, :, :], y3r[:, :, 1, :, :])     # (B, 4, 8, 64)
    cells = []
    for ph in range(H // 2):
        for pw in range(W // 2):
            cells.append(
                jnp.maximum(a[:, ph, 2 * pw, :], a[:, ph, 2 * pw + 1, :]))
    feat = jnp.concatenate(cells, axis=-1).astype(jnp.bfloat16)  # (B, 1024)

    # ---- fc1 + ReLU: single K=1024 MXU matmul, f32 accumulation --------------
    h = jnp.dot(feat, fw1_ref[...], preferred_element_type=jnp.float32)
    h = jnp.maximum(h + fb1_ref[...], 0.0)                      # (B, 256)

    # ---- fc2 (256 -> 1): VPU multiply + lane reduction -----------------------
    out = jnp.sum(h * fw2_ref[...], axis=-1, keepdims=True) + fb2_ref[...]
    o_ref[...] = out.astype(o_ref.dtype)


# -------------------------------- wrapper -------------------------------------

def energy_predictor_forward(x_nhwc, params):
    (w1, b1), (w2, b2), (w3, b3), fw1, fb1, fw2, fb2 = params
    B, H, W, _ = x_nhwc.shape
    c1, c2, c3 = b1.shape[-1], b2.shape[-1], b3.shape[-1]

    # Batch block: 8 images when B is a multiple of 8 (keeps M>=512 per block
    # and lets the ("parallel",) grid feed both v7x TensorCores); otherwise the
    # whole batch in one block so block shapes stay (8,128)-legal.
    block_b = 8 if (B % 8 == 0 and B > 8) else B
    grid = (B // block_b,)

    # Kernel-ready weight layouts (BN scale already folded into w in f32).
    w1k = w1.reshape(9, c1).astype(jnp.float32)    # conv1 stays f32 (VPU path)
    w2k = w2.reshape(9 * c1, c2)                   # (144, 32) bf16 im2col
    w3k = w3.reshape(9 * c2, c3)                   # (288, 64) bf16 im2col
    weights = (w1k, b1, w2k, b2, w3k, b3, fw1, fb1, fw2, fb2)

    def const_spec(arr):
        # Full-array block with a constant index_map -> stays VMEM-resident,
        # no re-DMA per batch block.
        return pl.BlockSpec(arr.shape, lambda i, _nd=arr.ndim: (0,) * _nd)

    return pl.pallas_call(
        energy_predictor_kernel,
        out_shape=jax.ShapeDtypeStruct((B, 1), jnp.float32),
        grid=grid,
        in_specs=[pl.BlockSpec((block_b, H, W, 1), lambda i: (i, 0, 0, 0))]
                 + [const_spec(a) for a in weights],
        out_specs=pl.BlockSpec((block_b, 1), lambda i: (i, 0)),
        scratch_shapes=[
            pltpu.VMEM((block_b, H + 2, W + 2, 1), jnp.float32),    # pad1
            pltpu.VMEM((block_b, H + 2, W + 2, c1), jnp.bfloat16),  # pad2
            pltpu.VMEM((block_b, H + 2, W + 2, c2), jnp.bfloat16),  # pad3
        ],
        compiler_params=pltpu.CompilerParams(
            dimension_semantics=("parallel",),
            vmem_limit_bytes=64 * 1024 * 1024),
    )(x_nhwc, *weights)


# -------------------------- parameter construction ---------------------------

def init_params(key):
    keys = iter(jax.random.split(key, 24))
    eps = 1e-5

    def conv_bn(cin, cout, to_bf16):
        w = jax.random.normal(next(keys), (3, 3, cin, cout), jnp.float32) * (
            0.3 / np.sqrt(9 * cin))
        b = 0.05 * jax.random.normal(next(keys), (cout,), jnp.float32)
        gamma = 1.0 + 0.1 * jax.random.normal(next(keys), (cout,), jnp.float32)
        beta = 0.1 * jax.random.normal(next(keys), (cout,), jnp.float32)
        rmean = 0.05 * jax.random.normal(next(keys), (cout,), jnp.float32)
        rvar = 1.0 + 0.5 * jax.random.uniform(next(keys), (cout,), jnp.float32)
        scale = gamma / jnp.sqrt(rvar + eps)
        # Fold the eval-mode BN scale into the conv weight IN F32, BEFORE any
        # bf16 cast (single rounding step, removes a VPU mul from the kernel).
        w_folded = w * scale.reshape(1, 1, 1, cout)
        bias = beta + scale * (b - rmean)
        if to_bf16:
            w_folded = w_folded.astype(jnp.bfloat16)     # MXU operand
        return w_folded, bias.reshape(1, cout)

    c1 = conv_bn(1, 16, to_bf16=False)     # conv1 runs on the VPU in f32
    c2 = conv_bn(16, 32, to_bf16=True)
    c3 = conv_bn(32, 64, to_bf16=True)
    # fc1 weight rows ordered (pool_h, pool_w, channel) to match the kernel/ref
    # flatten; equivalent to PyTorch weights up to a fixed row permutation.
    fw1 = (jax.random.normal(next(keys), (1024, 256), jnp.float32) *
           (1.0 / np.sqrt(1024))).astype(jnp.bfloat16)
    fb1 = 0.05 * jax.random.normal(next(keys), (1, 256), jnp.float32)
    fw2 = jax.random.normal(next(keys), (1, 256), jnp.float32) * (
        1.0 / np.sqrt(256))
    fb2 = 0.05 * jax.random.normal(next(keys), (1, 1), jnp.float32)
    return c1, c2, c3, fw1, fb1, fw2, fb2


# ---------------------------- plain-JAX reference ----------------------------

def reference_forward(x_nhwc, params):
    (w1, b1), (w2, b2), (w3, b3), fw1, fb1, fw2, fb2 = params

    def conv(x, w, b):
        y = jax.lax.conv_general_dilated(
            x, w.astype(jnp.float32), window_strides=(1, 1), padding="SAME",
            dimension_numbers=("NHWC", "HWIO", "NHWC"), precision="highest")
        return jnp.maximum(y + b.reshape(1, 1, 1, -1), 0.0)

    x = conv(x_nhwc, w1, b1)
    x = conv(x, w2, b2)
    x = conv(x, w3, b3)
    B, H, W, C = x.shape
    x = x.reshape(B, H // 2, 2, W // 2, 2, C).max(axis=(2, 4))    # 2x2 max-pool
    feat = x.reshape(B, -1)                                       # (ph, pw, c)
    h = jnp.maximum(
        jnp.dot(feat, fw1.astype(jnp.float32), precision="highest") + fb1, 0.0)
    return jnp.dot(h, fw2.T, precision="highest") + fb2


# ---------------------------------- main --------------------------------------

if __name__ == "__main__":
    key = jax.random.PRNGKey(0)
    kx, kp = jax.random.split(key)

    # PyTorch input would be NCHW (2, 1, 8, 8); kernel layout is NHWC (2, 8, 8, 1).
    x_nchw = jax.random.normal(kx, (2, 1, 8, 8), jnp.float32)
    x_nhwc = jnp.transpose(x_nchw, (0, 2, 3, 1))

    params = init_params(kp)

    fwd = jax.jit(energy_predictor_forward)
    out = jax.block_until_ready(fwd(x_nhwc, params))
    assert out.shape == (2, 1), out.shape

    ref = reference_forward(x_nhwc, params)
    # Kernel uses bf16 matmul operands (conv2/3, fc1) with f32 accumulation;
    # reference is f32 throughout -> loosened tolerances (intentional).
    if not jnp.allclose(out, ref, rtol=5e-2, atol=3e-2):
        raise AssertionError("Pallas output does not match JAX reference")

    print("KERNEL_OK")
</pallas_src>

<mosaic_0001>
module attributes {stable_mosaic.version = 11 : i64} {
  func.func @energy_predictor_kernel(%arg0: i32, %arg1: memref<2x8x8x1xf32, #tpu.memory_space<vmem>>, %arg2: memref<9x16xf32, #tpu.memory_space<vmem>>, %arg3: memref<1x16xf32, #tpu.memory_space<vmem>>, %arg4: memref<144x32xbf16, #tpu.memory_space<vmem>>, %arg5: memref<1x32xf32, #tpu.memory_space<vmem>>, %arg6: memref<288x64xbf16, #tpu.memory_space<vmem>>, %arg7: memref<1x64xf32, #tpu.memory_space<vmem>>, %arg8: memref<1024x256xbf16, #tpu.memory_space<vmem>>, %arg9: memref<1x256xf32, #tpu.memory_space<vmem>>, %arg10: memref<1x256xf32, #tpu.memory_space<vmem>>, %arg11: memref<1x1xf32, #tpu.memory_space<vmem>>, %arg12: memref<2x1xf32, #tpu.memory_space<vmem>>, %arg13: memref<2x10x10x1xf32, #tpu.memory_space<vmem>>, %arg14: memref<2x10x10x16xbf16, #tpu.memory_space<vmem>>, %arg15: memref<2x10x10x32xbf16, #tpu.memory_space<vmem>>) attributes {dimension_semantics = [#tpu.dimension_semantics<parallel>], iteration_bounds = array<i64: 1>, scalar_prefetch = 0 : i64, scratch_operands = 3 : i64, tpu.core_type = #tpu.core_type<tc>, window_params = [{transform_indices = @transform_0, window_bounds = array<i64: 2, 8, 8, 1>}, {pipeline_mode = #tpu.pipeline_mode<synchronous>, transform_indices = @transform_1, window_bounds = array<i64: 9, 16>}, {pipeline_mode = #tpu.pipeline_mode<synchronous>, transform_indices = @transform_2, window_bounds = array<i64: 1, 16>}, {pipeline_mode = #tpu.pipeline_mode<synchronous>, transform_indices = @transform_3, window_bounds = array<i64: 144, 32>}, {pipeline_mode = #tpu.pipeline_mode<synchronous>, transform_indices = @transform_4, window_bounds = array<i64: 1, 32>}, {pipeline_mode = #tpu.pipeline_mode<synchronous>, transform_indices = @transform_5, window_bounds = array<i64: 288, 64>}, {pipeline_mode = #tpu.pipeline_mode<synchronous>, transform_indices = @transform_6, window_bounds = array<i64: 1, 64>}, {pipeline_mode = #tpu.pipeline_mode<synchronous>, transform_indices = @transform_7, window_bounds = array<i64: 1024, 256>}, {pipeline_mode = #tpu.pipeline_mode<synchronous>, transform_indices = @transform_8, window_bounds = array<i64: 1, 256>}, {pipeline_mode = #tpu.pipeline_mode<synchronous>, transform_indices = @transform_9, window_bounds = array<i64: 1, 256>}, {pipeline_mode = #tpu.pipeline_mode<synchronous>, transform_indices = @transform_10, window_bounds = array<i64: 1, 1>}, {transform_indices = @transform_11, window_bounds = array<i64: 2, 1>}]} {
    %cst = arith.constant 0.000000e+00 : f32
    %0 = vector.broadcast %cst : f32 to vector<2x1x10x1xf32>
    %c0 = arith.constant 0 : index
    %c0_0 = arith.constant 0 : index
    %c0_1 = arith.constant 0 : index
    %c0_2 = arith.constant 0 : index
    %1 = vector.load %arg13[%c0, %c0_0, %c0_1, %c0_2] : memref<2x10x10x1xf32, #tpu.memory_space<vmem>>, vector<2x1x10x1xf32>
    tpu.vector_store %arg13[%c0, %c0_0, %c0_1, %c0_2], %0 {strides = array<i32>} : memref<2x10x10x1xf32, #tpu.memory_space<vmem>>, vector<2x1x10x1xf32>,
    %cst_3 = arith.constant 0.000000e+00 : f32
    %2 = vector.broadcast %cst_3 : f32 to vector<2x1x10x1xf32>
    %c0_4 = arith.constant 0 : index
    %c9 = arith.constant 9 : index
    %c0_5 = arith.constant 0 : index
    %c0_6 = arith.constant 0 : index
    %3 = vector.load %arg13[%c0_4, %c9, %c0_5, %c0_6] : memref<2x10x10x1xf32, #tpu.memory_space<vmem>>, vector<2x1x10x1xf32>
    tpu.vector_store %arg13[%c0_4, %c9, %c0_5, %c0_6], %2 {strides = array<i32>} : memref<2x10x10x1xf32, #tpu.memory_space<vmem>>, vector<2x1x10x1xf32>,
    %cst_7 = arith.constant 0.000000e+00 : f32
    %4 = vector.broadcast %cst_7 : f32 to vector<2x10x1x1xf32>
    %c0_8 = arith.constant 0 : index
    %c0_9 = arith.constant 0 : index
    %c0_10 = arith.constant 0 : index
    %c0_11 = arith.constant 0 : index
    %5 = vector.load %arg13[%c0_8, %c0_9, %c0_10, %c0_11] : memref<2x10x10x1xf32, #tpu.memory_space<vmem>>, vector<2x10x1x1xf32>
    tpu.vector_store %arg13[%c0_8, %c0_9, %c0_10, %c0_11], %4 {strides = array<i32>} : memref<2x10x10x1xf32, #tpu.memory_space<vmem>>, vector<2x10x1x1xf32>,
    %cst_12 = arith.constant 0.000000e+00 : f32
    %6 = vector.broadcast %cst_12 : f32 to vector<2x10x1x1xf32>
    %c0_13 = arith.constant 0 : index
    %c0_14 = arith.constant 0 : index
    %c9_15 = arith.constant 9 : index
    %c0_16 = arith.constant 0 : index
    %7 = vector.load %arg13[%c0_13, %c0_14, %c9_15, %c0_16] : memref<2x10x10x1xf32, #tpu.memory_space<vmem>>, vector<2x10x1x1xf32>
    tpu.vector_store %arg13[%c0_13, %c0_14, %c9_15, %c0_16], %6 {strides = array<i32>} : memref<2x10x10x1xf32, #tpu.memory_space<vmem>>, vector<2x10x1x1xf32>,
    %c0_17 = arith.constant 0 : index
    %c0_18 = arith.constant 0 : index
    %c0_19 = arith.constant 0 : index
    %c0_20 = arith.constant 0 : index
    %8 = vector.load %arg1[%c0_17, %c0_18, %c0_19, %c0_20] : memref<2x8x8x1xf32, #tpu.memory_space<vmem>>, vector<2x8x8x1xf32>
    %c0_21 = arith.constant 0 : index
    %c1 = arith.constant 1 : index
    %c1_22 = arith.constant 1 : index
    %c0_23 = arith.constant 0 : index
    %9 = vector.load %arg13[%c0_21, %c1, %c1_22, %c0_23] : memref<2x10x10x1xf32, #tpu.memory_space<vmem>>, vector<2x8x8x1xf32>
    tpu.vector_store %arg13[%c0_21, %c1, %c1_22, %c0_23], %8 {strides = array<i32>} : memref<2x10x10x1xf32, #tpu.memory_space<vmem>>, vector<2x8x8x1xf32>,
    %cst_24 = arith.constant 0.000000e+00 : f32
    %10 = vector.broadcast %cst_24 : f32 to vector<128x16xf32>
    %c0_25 = arith.constant 0 : index
    %c0_26 = arith.constant 0 : index
    %c0_27 = arith.constant 0 : index
    %c0_28 = arith.constant 0 : index
    %11 = vector.load %arg13[%c0_25, %c0_26, %c0_27, %c0_28] : memref<2x10x10x1xf32, #tpu.memory_space<vmem>>, vector<2x8x8x1xf32>
    %12 = vector.shape_cast %11 : vector<2x8x8x1xf32> to vector<128x1xf32>
    %c0_29 = arith.constant 0 : index
    %c0_30 = arith.constant 0 : index
    %13 = vector.load %arg2[%c0_29, %c0_30] : memref<9x16xf32, #tpu.memory_space<vmem>>, vector<1x16xf32>
    %14 = vector.broadcast %12 : vector<128x1xf32> to vector<128x16xf32>
    %15 = vector.broadcast %13 : vector<1x16xf32> to vector<128x16xf32>
    %16 = arith.mulf %14, %15 : vector<128x16xf32>
    %17 = arith.addf %10, %16 : vector<128x16xf32>
    %c0_31 = arith.constant 0 : index
    %c0_32 = arith.constant 0 : index
    %c1_33 = arith.constant 1 : index
    %c0_34 = arith.constant 0 : index
    %18 = vector.load %arg13[%c0_31, %c0_32, %c1_33, %c0_34] : memref<2x10x10x1xf32, #tpu.memory_space<vmem>>, vector<2x8x8x1xf32>
    %19 = vector.shape_cast %18 : vector<2x8x8x1xf32> to vector<128x1xf32>
    %c1_35 = arith.constant 1 : index
    %c0_36 = arith.constant 0 : index
    %20 = vector.load %arg2[%c1_35, %c0_36] : memref<9x16xf32, #tpu.memory_space<vmem>>, vector<1x16xf32>
    %21 = vector.broadcast %19 : vector<128x1xf32> to vector<128x16xf32>
    %22 = vector.broadcast %20 : vector<1x16xf32> to vector<128x16xf32>
    %23 = arith.mulf %21, %22 : vector<128x16xf32>
    %24 = arith.addf %17, %23 : vector<128x16xf32>
    %c0_37 = arith.constant 0 : index
    %c0_38 = arith.constant 0 : index
    %c2 = arith.constant 2 : index
    %c0_39 = arith.constant 0 : index
    %25 = vector.load %arg13[%c0_37, %c0_38, %c2, %c0_39] : memref<2x10x10x1xf32, #tpu.memory_space<vmem>>, vector<2x8x8x1xf32>
    %26 = vector.shape_cast %25 : vector<2x8x8x1xf32> to vector<128x1xf32>
    %c2_40 = arith.constant 2 : index
    %c0_41 = arith.constant 0 : index
    %27 = vector.load %arg2[%c2_40, %c0_41] : memref<9x16xf32, #tpu.memory_space<vmem>>, vector<1x16xf32>
    %28 = vector.broadcast %26 : vector<128x1xf32> to vector<128x16xf32>
    %29 = vector.broadcast %27 : vector<1x16xf32> to vector<128x16xf32>
    %30 = arith.mulf %28, %29 : vector<128x16xf32>
    %31 = arith.addf %24, %30 : vector<128x16xf32>
    %c0_42 = arith.constant 0 : index
    %c1_43 = arith.constant 1 : index
    %c0_44 = arith.constant 0 : index
    %c0_45 = arith.constant 0 : index
    %32 = vector.load %arg13[%c0_42, %c1_43, %c0_44, %c0_45] : memref<2x10x10x1xf32, #tpu.memory_space<vmem>>, vector<2x8x8x1xf32>
    %33 = vector.shape_cast %32 : vector<2x8x8x1xf32> to vector<128x1xf32>
    %c3 = arith.constant 3 : index
    %c0_46 = arith.constant 0 : index
    %34 = vector.load %arg2[%c3, %c0_46] : memref<9x16xf32, #tpu.memory_space<vmem>>, vector<1x16xf32>
    %35 = vector.broadcast %33 : vector<128x1xf32> to vector<128x16xf32>
    %36 = vector.broadcast %34 : vector<1x16xf32> to vector<128x16xf32>
    %37 = arith.mulf %35, %36 : vector<128x16xf32>
    %38 = arith.addf %31, %37 : vector<128x16xf32>
    %c0_47 = arith.constant 0 : index
    %c1_48 = arith.constant 1 : index
    %c1_49 = arith.constant 1 : index
    %c0_50 = arith.constant 0 : index
    %39 = vector.load %arg13[%c0_47, %c1_48, %c1_49, %c0_50] : memref<2x10x10x1xf32, #tpu.memory_space<vmem>>, vector<2x8x8x1xf32>
    %40 = vector.shape_cast %39 : vector<2x8x8x1xf32> to vector<128x1xf32>
    %c4 = arith.constant 4 : index
    %c0_51 = arith.constant 0 : index
    %41 = vector.load %arg2[%c4, %c0_51] : memref<9x16xf32, #tpu.memory_space<vmem>>, vector<1x16xf32>
    %42 = vector.broadcast %40 : vector<128x1xf32> to vector<128x16xf32>
    %43 = vector.broadcast %41 : vector<1x16xf32> to vector<128x16xf32>
    %44 = arith.mulf %42, %43 : vector<128x16xf32>
    %45 = arith.addf %38, %44 : vector<128x16xf32>
    %c0_52 = arith.constant 0 : index
    %c1_53 = arith.constant 1 : index
    %c2_54 = arith.constant 2 : index
    %c0_55 = arith.constant 0 : index
    %46 = vector.load %arg13[%c0_52, %c1_53, %c2_54, %c0_55] : memref<2x10x10x1xf32, #tpu.memory_space<vmem>>, vector<2x8x8x1xf32>
    %47 = vector.shape_cast %46 : vector<2x8x8x1xf32> to vector<128x1xf32>
    %c5 = arith.constant 5 : index
    %c0_56 = arith.constant 0 : index
    %48 = vector.load %arg2[%c5, %c0_56] : memref<9x16xf32, #tpu.memory_space<vmem>>, vector<1x16xf32>
    %49 = vector.broadcast %47 : vector<128x1xf32> to vector<128x16xf32>
    %50 = vector.broadcast %48 : vector<1x16xf32> to vector<128x16xf32>
    %51 = arith.mulf %49, %50 : vector<128x16xf32>
    %52 = arith.addf %45, %51 : vector<128x16xf32>
    %c0_57 = arith.constant 0 : index
    %c2_58 = arith.constant 2 : index
    %c0_59 = arith.constant 0 : index
    %c0_60 = arith.constant 0 : index
    %53 = vector.load %arg13[%c0_57, %c2_58, %c0_59, %c0_60] : memref<2x10x10x1xf32, #tpu.memory_space<vmem>>, vector<2x8x8x1xf32>
    %54 = vector.shape_cast %53 : vector<2x8x8x1xf32> to vector<128x1xf32>
    %c6 = arith.constant 6 : index
    %c0_61 = arith.constant 0 : index
    %55 = vector.load %arg2[%c6, %c0_61] : memref<9x16xf32, #tpu.memory_space<vmem>>, vector<1x16xf32>
    %56 = vector.broadcast %54 : vector<128x1xf32> to vector<128x16xf32>
    %57 = vector.broadcast %55 : vector<1x16xf32> to vector<128x16xf32>
    %58 = arith.mulf %56, %57 : vector<128x16xf32>
    %59 = arith.addf %52, %58 : vector<128x16xf32>
    %c0_62 = arith.constant 0 : index
    %c2_63 = arith.constant 2 : index
    %c1_64 = arith.constant 1 : index
    %c0_65 = arith.constant 0 : index
    %60 = vector.load %arg13[%c0_62, %c2_63, %c1_64, %c0_65] : memref<2x10x10x1xf32, #tpu.memory_space<vmem>>, vector<2x8x8x1xf32>
    %61 = vector.shape_cast %60 : vector<2x8x8x1xf32> to vector<128x1xf32>
    %c7 = arith.constant 7 : index
    %c0_66 = arith.constant 0 : index
    %62 = vector.load %arg2[%c7, %c0_66] : memref<9x16xf32, #tpu.memory_space<vmem>>, vector<1x16xf32>
    %63 = vector.broadcast %61 : vector<128x1xf32> to vector<128x16xf32>
    %64 = vector.broadcast %62 : vector<1x16xf32> to vector<128x16xf32>
    %65 = arith.mulf %63, %64 : vector<128x16xf32>
    %66 = arith.addf %59, %65 : vector<128x16xf32>
    %c0_67 = arith.constant 0 : index
    %c2_68 = arith.constant 2 : index
    %c2_69 = arith.constant 2 : index
    %c0_70 = arith.constant 0 : index
    %67 = vector.load %arg13[%c0_67, %c2_68, %c2_69, %c0_70] : memref<2x10x10x1xf32, #tpu.memory_space<vmem>>, vector<2x8x8x1xf32>
    %68 = vector.shape_cast %67 : vector<2x8x8x1xf32> to vector<128x1xf32>
    %c8 = arith.constant 8 : index
    %c0_71 = arith.constant 0 : index
    %69 = vector.load %arg2[%c8, %c0_71] : memref<9x16xf32, #tpu.memory_space<vmem>>, vector<1x16xf32>
    %70 = vector.broadcast %68 : vector<128x1xf32> to vector<128x16xf32>
    %71 = vector.broadcast %69 : vector<1x16xf32> to vector<128x16xf32>
    %72 = arith.mulf %70, %71 : vector<128x16xf32>
    %73 = arith.addf %66, %72 : vector<128x16xf32>
    %c0_72 = arith.constant 0 : index
    %c0_73 = arith.constant 0 : index
    %74 = vector.load %arg3[%c0_72, %c0_73] : memref<1x16xf32, #tpu.memory_space<vmem>>, vector<1x16xf32>
    %75 = vector.broadcast %74 : vector<1x16xf32> to vector<128x16xf32>
    %76 = arith.addf %73, %75 : vector<128x16xf32>
    %cst_74 = arith.constant 0.000000e+00 : f32
    %77 = vector.broadcast %cst_74 : f32 to vector<128x16xf32>
    %78 = arith.maximumf %76, %77 : vector<128x16xf32>
    %cst_75 = arith.constant 0.000000e+00 : bf16
    %79 = vector.broadcast %cst_75 : bf16 to vector<2x1x10x16xbf16>
    %c0_76 = arith.constant 0 : index
    %c0_77 = arith.constant 0 : index
    %c0_78 = arith.constant 0 : index
    %c0_79 = arith.constant 0 : index
    %80 = vector.load %arg14[%c0_76, %c0_77, %c0_78, %c0_79] : memref<2x10x10x16xbf16, #tpu.memory_space<vmem>>, vector<2x1x10x16xbf16>
    tpu.vector_store %arg14[%c0_76, %c0_77, %c0_78, %c0_79], %79 {strides = array<i32>} : memref<2x10x10x16xbf16, #tpu.memory_space<vmem>>, vector<2x1x10x16xbf16>,
    %cst_80 = arith.constant 0.000000e+00 : bf16
    %81 = vector.broadcast %cst_80 : bf16 to vector<2x1x10x16xbf16>
    %c0_81 = arith.constant 0 : index
    %c9_82 = arith.constant 9 : index
    %c0_83 = arith.constant 0 : index
    %c0_84 = arith.constant 0 : index
    %82 = vector.load %arg14[%c0_81, %c9_82, %c0_83, %c0_84] : memref<2x10x10x16xbf16, #tpu.memory_space<vmem>>, vector<2x1x10x16xbf16>
    tpu.vector_store %arg14[%c0_81, %c9_82, %c0_83, %c0_84], %81 {strides = array<i32>} : memref<2x10x10x16xbf16, #tpu.memory_space<vmem>>, vector<2x1x10x16xbf16>,
    %cst_85 = arith.constant 0.000000e+00 : bf16
    %83 = vector.broadcast %cst_85 : bf16 to vector<2x10x1x16xbf16>
    %c0_86 = arith.constant 0 : index
    %c0_87 = arith.constant 0 : index
    %c0_88 = arith.constant 0 : index
    %c0_89 = arith.constant 0 : index
    %84 = vector.load %arg14[%c0_86, %c0_87, %c0_88, %c0_89] : memref<2x10x10x16xbf16, #tpu.memory_space<vmem>>, vector<2x10x1x16xbf16>
    tpu.vector_store %arg14[%c0_86, %c0_87, %c0_88, %c0_89], %83 {strides = array<i32>} : memref<2x10x10x16xbf16, #tpu.memory_space<vmem>>, vector<2x10x1x16xbf16>,
    %cst_90 = arith.constant 0.000000e+00 : bf16
    %85 = vector.broadcast %cst_90 : bf16 to vector<2x10x1x16xbf16>
    %c0_91 = arith.constant 0 : index
    %c0_92 = arith.constant 0 : index
    %c9_93 = arith.constant 9 : index
    %c0_94 = arith.constant 0 : index
    %86 = vector.load %arg14[%c0_91, %c0_92, %c9_93, %c0_94] : memref<2x10x10x16xbf16, #tpu.memory_space<vmem>>, vector<2x10x1x16xbf16>
    tpu.vector_store %arg14[%c0_91, %c0_92, %c9_93, %c0_94], %85 {strides = array<i32>} : memref<2x10x10x16xbf16, #tpu.memory_space<vmem>>, vector<2x10x1x16xbf16>,
    %87 = vector.shape_cast %78 : vector<128x16xf32> to vector<2x8x8x16xf32>
    %88 = arith.truncf %87 : vector<2x8x8x16xf32> to vector<2x8x8x16xbf16>
    %c0_95 = arith.constant 0 : index
    %c1_96 = arith.constant 1 : index
    %c1_97 = arith.constant 1 : index
    %c0_98 = arith.constant 0 : index
    %89 = vector.load %arg14[%c0_95, %c1_96, %c1_97, %c0_98] : memref<2x10x10x16xbf16, #tpu.memory_space<vmem>>, vector<2x8x8x16xbf16>
    tpu.vector_store %arg14[%c0_95, %c1_96, %c1_97, %c0_98], %88 {strides = array<i32>} : memref<2x10x10x16xbf16, #tpu.memory_space<vmem>>, vector<2x8x8x16xbf16>,
    %c0_99 = arith.constant 0 : index
    %c0_100 = arith.constant 0 : index
    %c0_101 = arith.constant 0 : index
    %c0_102 = arith.constant 0 : index
    %90 = vector.load %arg14[%c0_99, %c0_100, %c0_101, %c0_102] : memref<2x10x10x16xbf16, #tpu.memory_space<vmem>>, vector<2x8x8x16xbf16>
    %91 = vector.shape_cast %90 : vector<2x8x8x16xbf16> to vector<128x16xbf16>
    %c0_103 = arith.constant 0 : index
    %c0_104 = arith.constant 0 : index
    %c1_105 = arith.constant 1 : index
    %c0_106 = arith.constant 0 : index
    %92 = vector.load %arg14[%c0_103, %c0_104, %c1_105, %c0_106] : memref<2x10x10x16xbf16, #tpu.memory_space<vmem>>, vector<2x8x8x16xbf16>
    %93 = vector.shape_cast %92 : vector<2x8x8x16xbf16> to vector<128x16xbf16>
    %c0_107 = arith.constant 0 : index
    %c0_108 = arith.constant 0 : index
    %c2_109 = arith.constant 2 : index
    %c0_110 = arith.constant 0 : index
    %94 = vector.load %arg14[%c0_107, %c0_108, %c2_109, %c0_110] : memref<2x10x10x16xbf16, #tpu.memory_space<vmem>>, vector<2x8x8x16xbf16>
    %95 = vector.shape_cast %94 : vector<2x8x8x16xbf16> to vector<128x16xbf16>
    %c0_111 = arith.constant 0 : index
    %c1_112 = arith.constant 1 : index
    %c0_113 = arith.constant 0 : index
    %c0_114 = arith.constant 0 : index
    %96 = vector.load %arg14[%c0_111, %c1_112, %c0_113, %c0_114] : memref<2x10x10x16xbf16, #tpu.memory_space<vmem>>, vector<2x8x8x16xbf16>
    %97 = vector.shape_cast %96 : vector<2x8x8x16xbf16> to vector<128x16xbf16>
    %c0_115 = arith.constant 0 : index
    %c1_116 = arith.constant 1 : index
    %c1_117 = arith.constant 1 : index
    %c0_118 = arith.constant 0 : index
    %98 = vector.load %arg14[%c0_115, %c1_116, %c1_117, %c0_118] : memref<2x10x10x16xbf16, #tpu.memory_space<vmem>>, vector<2x8x8x16xbf16>
    %99 = vector.shape_cast %98 : vector<2x8x8x16xbf16> to vector<128x16xbf16>
    %c0_119 = arith.constant 0 : index
    %c1_120 = arith.constant 1 : index
    %c2_121 = arith.constant 2 : index
    %c0_122 = arith.constant 0 : index
    %100 = vector.load %arg14[%c0_119, %c1_120, %c2_121, %c0_122] : memref<2x10x10x16xbf16, #tpu.memory_space<vmem>>, vector<2x8x8x16xbf16>
    %101 = vector.shape_cast %100 : vector<2x8x8x16xbf16> to vector<128x16xbf16>
    %c0_123 = arith.constant 0 : index
    %c2_124 = arith.constant 2 : index
    %c0_125 = arith.constant 0 : index
    %c0_126 = arith.constant 0 : index
    %102 = vector.load %arg14[%c0_123, %c2_124, %c0_125, %c0_126] : memref<2x10x10x16xbf16, #tpu.memory_space<vmem>>, vector<2x8x8x16xbf16>
    %103 = vector.shape_cast %102 : vector<2x8x8x16xbf16> to vector<128x16xbf16>
    %c0_127 = arith.constant 0 : index
    %c2_128 = arith.constant 2 : index
    %c1_129 = arith.constant 1 : index
    %c0_130 = arith.constant 0 : index
    %104 = vector.load %arg14[%c0_127, %c2_128, %c1_129, %c0_130] : memref<2x10x10x16xbf16, #tpu.memory_space<vmem>>, vector<2x8x8x16xbf16>
    %105 = vector.shape_cast %104 : vector<2x8x8x16xbf16> to vector<128x16xbf16>
    %c0_131 = arith.constant 0 : index
    %c2_132 = arith.constant 2 : index
    %c2_133 = arith.constant 2 : index
    %c0_134 = arith.constant 0 : index
    %106 = vector.load %arg14[%c0_131, %c2_132, %c2_133, %c0_134] : memref<2x10x10x16xbf16, #tpu.memory_space<vmem>>, vector<2x8x8x16xbf16>
    %107 = vector.shape_cast %106 : vector<2x8x8x16xbf16> to vector<128x16xbf16>
    %108 = tpu.concatenate %91, %93, %95, %97, %99, %101, %103, %105, %107 in 1 : vector<128x16xbf16>, vector<128x16xbf16>, vector<128x16xbf16>, vector<128x16xbf16>, vector<128x16xbf16>, vector<128x16xbf16>, vector<128x16xbf16>, vector<128x16xbf16>, vector<128x16xbf16> -> vector<128x144xbf16>
    %c0_135 = arith.constant 0 : index
    %c0_136 = arith.constant 0 : index
    %109 = vector.load %arg4[%c0_135, %c0_136] : memref<144x32xbf16, #tpu.memory_space<vmem>>, vector<144x32xbf16>
    %cst_137 = arith.constant dense<0.000000e+00> : vector<128x32xf32>
    %110 = tpu.matmul %108, %109, %cst_137 {dimension_numbers = #tpu.dot_dimension_numbers<[1], [0], [0], [1], [0, 0, 1, 1], [], []>} : vector<128x144xbf16>, vector<144x32xbf16>, vector<128x32xf32> -> vector<128x32xf32>
    %c0_138 = arith.constant 0 : index
    %c0_139 = arith.constant 0 : index
    %111 = vector.load %arg5[%c0_138, %c0_139] : memref<1x32xf32, #tpu.memory_space<vmem>>, vector<1x32xf32>
    %112 = vector.broadcast %111 : vector<1x32xf32> to vector<128x32xf32>
    %113 = arith.addf %110, %112 : vector<128x32xf32>
    %cst_140 = arith.constant 0.000000e+00 : f32
    %114 = vector.broadcast %cst_140 : f32 to vector<128x32xf32>
    %115 = arith.maximumf %113, %114 : vector<128x32xf32>
    %cst_141 = arith.constant 0.000000e+00 : bf16
    %116 = vector.broadcast %cst_141 : bf16 to vector<2x1x10x32xbf16>
    %c0_142 = arith.constant 0 : index
    %c0_143 = arith.constant 0 : index
    %c0_144 = arith.constant 0 : index
    %c0_145 = arith.constant 0 : index
    %117 = vector.load %arg15[%c0_142, %c0_143, %c0_144, %c0_145] : memref<2x10x10x32xbf16, #tpu.memory_space<vmem>>, vector<2x1x10x32xbf16>
    tpu.vector_store %arg15[%c0_142, %c0_143, %c0_144, %c0_145], %116 {strides = array<i32>} : memref<2x10x10x32xbf16, #tpu.memory_space<vmem>>, vector<2x1x10x32xbf16>,
    %cst_146 = arith.constant 0.000000e+00 : bf16
    %118 = vector.broadcast %cst_146 : bf16 to vector<2x1x10x32xbf16>
    %c0_147 = arith.constant 0 : index
    %c9_148 = arith.constant 9 : index
    %c0_149 = arith.constant 0 : index
    %c0_150 = arith.constant 0 : index
    %119 = vector.load %arg15[%c0_147, %c9_148, %c0_149, %c0_150] : memref<2x10x10x32xbf16, #tpu.memory_space<vmem>>, vector<2x1x10x32xbf16>
    tpu.vector_store %arg15[%c0_147, %c9_148, %c0_149, %c0_150], %118 {strides = array<i32>} : memref<2x10x10x32xbf16, #tpu.memory_space<vmem>>, vector<2x1x10x32xbf16>,
    %cst_151 = arith.constant 0.000000e+00 : bf16
    %120 = vector.broadcast %cst_151 : bf16 to vector<2x10x1x32xbf16>
    %c0_152 = arith.constant 0 : index
    %c0_153 = arith.constant 0 : index
    %c0_154 = arith.constant 0 : index
    %c0_155 = arith.constant 0 : index
    %121 = vector.load %arg15[%c0_152, %c0_153, %c0_154, %c0_155] : memref<2x10x10x32xbf16, #tpu.memory_space<vmem>>, vector<2x10x1x32xbf16>
    tpu.vector_store %arg15[%c0_152, %c0_153, %c0_154, %c0_155], %120 {strides = array<i32>} : memref<2x10x10x32xbf16, #tpu.memory_space<vmem>>, vector<2x10x1x32xbf16>,
    %cst_156 = arith.constant 0.000000e+00 : bf16
    %122 = vector.broadcast %cst_156 : bf16 to vector<2x10x1x32xbf16>
    %c0_157 = arith.constant 0 : index
    %c0_158 = arith.constant 0 : index
    %c9_159 = arith.constant 9 : index
    %c0_160 = arith.constant 0 : index
    %123 = vector.load %arg15[%c0_157, %c0_158, %c9_159, %c0_160] : memref<2x10x10x32xbf16, #tpu.memory_space<vmem>>, vector<2x10x1x32xbf16>
    tpu.vector_store %arg15[%c0_157, %c0_158, %c9_159, %c0_160], %122 {strides = array<i32>} : memref<2x10x10x32xbf16, #tpu.memory_space<vmem>>, vector<2x10x1x32xbf16>,
    %124 = vector.shape_cast %115 : vector<128x32xf32> to vector<2x8x8x32xf32>
    %125 = arith.truncf %124 : vector<2x8x8x32xf32> to vector<2x8x8x32xbf16>
    %c0_161 = arith.constant 0 : index
    %c1_162 = arith.constant 1 : index
    %c1_163 = arith.constant 1 : index
    %c0_164 = arith.constant 0 : index
    %126 = vector.load %arg15[%c0_161, %c1_162, %c1_163, %c0_164] : memref<2x10x10x32xbf16, #tpu.memory_space<vmem>>, vector<2x8x8x32xbf16>
    tpu.vector_store %arg15[%c0_161, %c1_162, %c1_163, %c0_164], %125 {strides = array<i32>} : memref<2x10x10x32xbf16, #tpu.memory_space<vmem>>, vector<2x8x8x32xbf16>,
    %c0_165 = arith.constant 0 : index
    %c0_166 = arith.constant 0 : index
    %c0_167 = arith.constant 0 : index
    %c0_168 = arith.constant 0 : index
    %127 = vector.load %arg15[%c0_165, %c0_166, %c0_167, %c0_168] : memref<2x10x10x32xbf16, #tpu.memory_space<vmem>>, vector<2x8x8x32xbf16>
    %128 = vector.shape_cast %127 : vector<2x8x8x32xbf16> to vector<128x32xbf16>
    %c0_169 = arith.constant 0 : index
    %c0_170 = arith.constant 0 : index
    %c1_171 = arith.constant 1 : index
    %c0_172 = arith.constant 0 : index
    %129 = vector.load %arg15[%c0_169, %c0_170, %c1_171, %c0_172] : memref<2x10x10x32xbf16, #tpu.memory_space<vmem>>, vector<2x8x8x32xbf16>
    %130 = vector.shape_cast %129 : vector<2x8x8x32xbf16> to vector<128x32xbf16>
    %c0_173 = arith.constant 0 : index
    %c0_174 = arith.constant 0 : index
    %c2_175 = arith.constant 2 : index
    %c0_176 = arith.constant 0 : index
    %131 = vector.load %arg15[%c0_173, %c0_174, %c2_175, %c0_176] : memref<2x10x10x32xbf16, #tpu.memory_space<vmem>>, vector<2x8x8x32xbf16>
    %132 = vector.shape_cast %131 : vector<2x8x8x32xbf16> to vector<128x32xbf16>
    %c0_177 = arith.constant 0 : index
    %c1_178 = arith.constant 1 : index
    %c0_179 = arith.constant 0 : index
    %c0_180 = arith.constant 0 : index
    %133 = vector.load %arg15[%c0_177, %c1_178, %c0_179, %c0_180] : memref<2x10x10x32xbf16, #tpu.memory_space<vmem>>, vector<2x8x8x32xbf16>
    %134 = vector.shape_cast %133 : vector<2x8x8x32xbf16> to vector<128x32xbf16>
    %c0_181 = arith.constant 0 : index
    %c1_182 = arith.constant 1 : index
    %c1_183 = arith.constant 1 : index
    %c0_184 = arith.constant 0 : index
    %135 = vector.load %arg15[%c0_181, %c1_182, %c1_183, %c0_184] : memref<2x10x10x32xbf16, #tpu.memory_space<vmem>>, vector<2x8x8x32xbf16>
    %136 = vector.shape_cast %135 : vector<2x8x8x32xbf16> to vector<128x32xbf16>
    %c0_185 = arith.constant 0 : index
    %c1_186 = arith.constant 1 : index
    %c2_187 = arith.constant 2 : index
    %c0_188 = arith.constant 0 : index
    %137 = vector.load %arg15[%c0_185, %c1_186, %c2_187, %c0_188] : memref<2x10x10x32xbf16, #tpu.memory_space<vmem>>, vector<2x8x8x32xbf16>
    %138 = vector.shape_cast %137 : vector<2x8x8x32xbf16> to vector<128x32xbf16>
    %c0_189 = arith.constant 0 : index
    %c2_190 = arith.constant 2 : index
    %c0_191 = arith.constant 0 : index
    %c0_192 = arith.constant 0 : index
    %139 = vector.load %arg15[%c0_189, %c2_190, %c0_191, %c0_192] : memref<2x10x10x32xbf16, #tpu.memory_space<vmem>>, vector<2x8x8x32xbf16>
    %140 = vector.shape_cast %139 : vector<2x8x8x32xbf16> to vector<128x32xbf16>
    %c0_193 = arith.constant 0 : index
    %c2_194 = arith.constant 2 : index
    %c1_195 = arith.constant 1 : index
    %c0_196 = arith.constant 0 : index
    %141 = vector.load %arg15[%c0_193, %c2_194, %c1_195, %c0_196] : memref<2x10x10x32xbf16, #tpu.memory_space<vmem>>, vector<2x8x8x32xbf16>
    %142 = vector.shape_cast %141 : vector<2x8x8x32xbf16> to vector<128x32xbf16>
    %c0_197 = arith.constant 0 : index
    %c2_198 = arith.constant 2 : index
    %c2_199 = arith.constant 2 : index
    %c0_200 = arith.constant 0 : index
    %143 = vector.load %arg15[%c0_197, %c2_198, %c2_199, %c0_200] : memref<2x10x10x32xbf16, #tpu.memory_space<vmem>>, vector<2x8x8x32xbf16>
    %144 = vector.shape_cast %143 : vector<2x8x8x32xbf16> to vector<128x32xbf16>
    %145 = tpu.concatenate %128, %130, %132, %134, %136, %138, %140, %142, %144 in 1 : vector<128x32xbf16>, vector<128x32xbf16>, vector<128x32xbf16>, vector<128x32xbf16>, vector<128x32xbf16>, vector<128x32xbf16>, vector<128x32xbf16>, vector<128x32xbf16>, vector<128x32xbf16> -> vector<128x288xbf16>
    %c0_201 = arith.constant 0 : index
    %c0_202 = arith.constant 0 : index
    %146 = vector.load %arg6[%c0_201, %c0_202] : memref<288x64xbf16, #tpu.memory_space<vmem>>, vector<288x64xbf16>
    %cst_203 = arith.constant dense<0.000000e+00> : vector<128x64xf32>
    %147 = tpu.matmul %145, %146, %cst_203 {dimension_numbers = #tpu.dot_dimension_numbers<[1], [0], [0], [1], [0, 0, 1, 1], [], []>} : vector<128x288xbf16>, vector<288x64xbf16>, vector<128x64xf32> -> vector<128x64xf32>
    %c0_204 = arith.constant 0 : index
    %c0_205 = arith.constant 0 : index
    %148 = vector.load %arg7[%c0_204, %c0_205] : memref<1x64xf32, #tpu.memory_space<vmem>>, vector<1x64xf32>
    %149 = vector.broadcast %148 : vector<1x64xf32> to vector<128x64xf32>
    %150 = arith.addf %147, %149 : vector<128x64xf32>
    %cst_206 = arith.constant 0.000000e+00 : f32
    %151 = vector.broadcast %cst_206 : f32 to vector<128x64xf32>
    %152 = arith.maximumf %150, %151 : vector<128x64xf32>
    %153 = vector.shape_cast %152 : vector<128x64xf32> to vector<2x4x2x8x64xf32>
    %154 = vector.extract_strided_slice %153 {offsets = [0, 0, 0, 0, 0], sizes = [2, 4, 1, 8, 64], strides = [1, 1, 1, 1, 1]} : vector<2x4x2x8x64xf32> to vector<2x4x1x8x64xf32>
    %155 = vector.shape_cast %154 : vector<2x4x1x8x64xf32> to vector<2x4x8x64xf32>
    %156 = vector.extract_strided_slice %153 {offsets = [0, 0, 1, 0, 0], sizes = [2, 4, 1, 8, 64], strides = [1, 1, 1, 1, 1]} : vector<2x4x2x8x64xf32> to vector<2x4x1x8x64xf32>
    %157 = vector.shape_cast %156 : vector<2x4x1x8x64xf32> to vector<2x4x8x64xf32>
    %158 = arith.maximumf %155, %157 : vector<2x4x8x64xf32>
    %159 = vector.extract_strided_slice %158 {offsets = [0, 0, 0, 0], sizes = [2, 1, 1, 64], strides = [1, 1, 1, 1]} : vector<2x4x8x64xf32> to vector<2x1x1x64xf32>
    %160 = vector.shape_cast %159 : vector<2x1x1x64xf32> to vector<2x64xf32>
    %161 = vector.extract_strided_slice %158 {offsets = [0, 0, 1, 0], sizes = [2, 1, 1, 64], strides = [1, 1, 1, 1]} : vector<2x4x8x64xf32> to vector<2x1x1x64xf32>
    %162 = vector.shape_cast %161 : vector<2x1x1x64xf32> to vector<2x64xf32>
    %163 = arith.maximumf %160, %162 : vector<2x64xf32>
    %164 = vector.extract_strided_slice %158 {offsets = [0, 0, 2, 0], sizes = [2, 1, 1, 64], strides = [1, 1, 1, 1]} : vector<2x4x8x64xf32> to vector<2x1x1x64xf32>
    %165 = vector.shape_cast %164 : vector<2x1x1x64xf32> to vector<2x64xf32>
    %166 = vector.extract_strided_slice %158 {offsets = [0, 0, 3, 0], sizes = [2, 1, 1, 64], strides = [1, 1, 1, 1]} : vector<2x4x8x64xf32> to vector<2x1x1x64xf32>
    %167 = vector.shape_cast %166 : vector<2x1x1x64xf32> to vector<2x64xf32>
    %168 = arith.maximumf %165, %167 : vector<2x64xf32>
    %169 = vector.extract_strided_slice %158 {offsets = [0, 0, 4, 0], sizes = [2, 1, 1, 64], strides = [1, 1, 1, 1]} : vector<2x4x8x64xf32> to vector<2x1x1x64xf32>
    %170 = vector.shape_cast %169 : vector<2x1x1x64xf32> to vector<2x64xf32>
    %171 = vector.extract_strided_slice %158 {offsets = [0, 0, 5, 0], sizes = [2, 1, 1, 64], strides = [1, 1, 1, 1]} : vector<2x4x8x64xf32> to vector<2x1x1x64xf32>
    %172 = vector.shape_cast %171 : vector<2x1x1x64xf32> to vector<2x64xf32>
    %173 = arith.maximumf %170, %172 : vector<2x64xf32>
    %174 = vector.extract_strided_slice %158 {offsets = [0, 0, 6, 0], sizes = [2, 1, 1, 64], strides = [1, 1, 1, 1]} : vector<2x4x8x64xf32> to vector<2x1x1x64xf32>
    %175 = vector.shape_cast %174 : vector<2x1x1x64xf32> to vector<2x64xf32>
    %176 = vector.extract_strided_slice %158 {offsets = [0, 0, 7, 0], sizes = [2, 1, 1, 64], strides = [1, 1, 1, 1]} : vector<2x4x8x64xf32> to vector<2x1x1x64xf32>
    %177 = vector.shape_cast %176 : vector<2x1x1x64xf32> to vector<2x64xf32>
    %178 = arith.maximumf %175, %177 : vector<2x64xf32>
    %179 = vector.extract_strided_slice %158 {offsets = [0, 1, 0, 0], sizes = [2, 1, 1, 64], strides = [1, 1, 1, 1]} : vector<2x4x8x64xf32> to vector<2x1x1x64xf32>
    %180 = vector.shape_cast %179 : vector<2x1x1x64xf32> to vector<2x64xf32>
    %181 = vector.extract_strided_slice %158 {offsets = [0, 1, 1, 0], sizes = [2, 1, 1, 64], strides = [1, 1, 1, 1]} : vector<2x4x8x64xf32> to vector<2x1x1x64xf32>
    %182 = vector.shape_cast %181 : vector<2x1x1x64xf32> to vector<2x64xf32>
    %183 = arith.maximumf %180, %182 : vector<2x64xf32>
    %184 = vector.extract_strided_slice %158 {offsets = [0, 1, 2, 0], sizes = [2, 1, 1, 64], strides = [1, 1, 1, 1]} : vector<2x4x8x64xf32> to vector<2x1x1x64xf32>
    %185 = vector.shape_cast %184 : vector<2x1x1x64xf32> to vector<2x64xf32>
    %186 = vector.extract_strided_slice %158 {offsets = [0, 1, 3, 0], sizes = [2, 1, 1, 64], strides = [1, 1, 1, 1]} : vector<2x4x8x64xf32> to vector<2x1x1x64xf32>
    %187 = vector.shape_cast %186 : vector<2x1x1x64xf32> to vector<2x64xf32>
    %188 = arith.maximumf %185, %187 : vector<2x64xf32>
    %189 = vector.extract_strided_slice %158 {offsets = [0, 1, 4, 0], sizes = [2, 1, 1, 64], strides = [1, 1, 1, 1]} : vector<2x4x8x64xf32> to vector<2x1x1x64xf32>
    %190 = vector.shape_cast %189 : vector<2x1x1x64xf32> to vector<2x64xf32>
    %191 = vector.extract_strided_slice %158 {offsets = [0, 1, 5, 0], sizes = [2, 1, 1, 64], strides = [1, 1, 1, 1]} : vector<2x4x8x64xf32> to vector<2x1x1x64xf32>
    %192 = vector.shape_cast %191 : vector<2x1x1x64xf32> to vector<2x64xf32>
    %193 = arith.maximumf %190, %192 : vector<2x64xf32>
    %194 = vector.extract_strided_slice %158 {offsets = [0, 1, 6, 0], sizes = [2, 1, 1, 64], strides = [1, 1, 1, 1]} : vector<2x4x8x64xf32> to vector<2x1x1x64xf32>
    %195 = vector.shape_cast %194 : vector<2x1x1x64xf32> to vector<2x64xf32>
    %196 = vector.extract_strided_slice %158 {offsets = [0, 1, 7, 0], sizes = [2, 1, 1, 64], strides = [1, 1, 1, 1]} : vector<2x4x8x64xf32> to vector<2x1x1x64xf32>
    %197 = vector.shape_cast %196 : vector<2x1x1x64xf32> to vector<2x64xf32>
    %198 = arith.maximumf %195, %197 : vector<2x64xf32>
    %199 = vector.extract_strided_slice %158 {offsets = [0, 2, 0, 0], sizes = [2, 1, 1, 64], strides = [1, 1, 1, 1]} : vector<2x4x8x64xf32> to vector<2x1x1x64xf32>
    %200 = vector.shape_cast %199 : vector<2x1x1x64xf32> to vector<2x64xf32>
    %201 = vector.extract_strided_slice %158 {offsets = [0, 2, 1, 0], sizes = [2, 1, 1, 64], strides = [1, 1, 1, 1]} : vector<2x4x8x64xf32> to vector<2x1x1x64xf32>
    %202 = vector.shape_cast %201 : vector<2x1x1x64xf32> to vector<2x64xf32>
    %203 = arith.maximumf %200, %202 : vector<2x64xf32>
    %204 = vector.extract_strided_slice %158 {offsets = [0, 2, 2, 0], sizes = [2, 1, 1, 64], strides = [1, 1, 1, 1]} : vector<2x4x8x64xf32> to vector<2x1x1x64xf32>
    %205 = vector.shape_cast %204 : vector<2x1x1x64xf32> to vector<2x64xf32>
    %206 = vector.extract_strided_slice %158 {offsets = [0, 2, 3, 0], sizes = [2, 1, 1, 64], strides = [1, 1, 1, 1]} : vector<2x4x8x64xf32> to vector<2x1x1x64xf32>
    %207 = vector.shape_cast %206 : vector<2x1x1x64xf32> to vector<2x64xf32>
    %208 = arith.maximumf %205, %207 : vector<2x64xf32>
    %209 = vector.extract_strided_slice %158 {offsets = [0, 2, 4, 0], sizes = [2, 1, 1, 64], strides = [1, 1, 1, 1]} : vector<2x4x8x64xf32> to vector<2x1x1x64xf32>
    %210 = vector.shape_cast %209 : vector<2x1x1x64xf32> to vector<2x64xf32>
    %211 = vector.extract_strided_slice %158 {offsets = [0, 2, 5, 0], sizes = [2, 1, 1, 64], strides = [1, 1, 1, 1]} : vector<2x4x8x64xf32> to vector<2x1x1x64xf32>
    %212 = vector.shape_cast %211 : vector<2x1x1x64xf32> to vector<2x64xf32>
    %213 = arith.maximumf %210, %212 : vector<2x64xf32>
    %214 = vector.extract_strided_slice %158 {offsets = [0, 2, 6, 0], sizes = [2, 1, 1, 64], strides = [1, 1, 1, 1]} : vector<2x4x8x64xf32> to vector<2x1x1x64xf32>
    %215 = vector.shape_cast %214 : vector<2x1x1x64xf32> to vector<2x64xf32>
    %216 = vector.extract_strided_slice %158 {offsets = [0, 2, 7, 0], sizes = [2, 1, 1, 64], strides = [1, 1, 1, 1]} : vector<2x4x8x64xf32> to vector<2x1x1x64xf32>
    %217 = vector.shape_cast %216 : vector<2x1x1x64xf32> to vector<2x64xf32>
    %218 = arith.maximumf %215, %217 : vector<2x64xf32>
    %219 = vector.extract_strided_slice %158 {offsets = [0, 3, 0, 0], sizes = [2, 1, 1, 64], strides = [1, 1, 1, 1]} : vector<2x4x8x64xf32> to vector<2x1x1x64xf32>
    %220 = vector.shape_cast %219 : vector<2x1x1x64xf32> to vector<2x64xf32>
    %221 = vector.extract_strided_slice %158 {offsets = [0, 3, 1, 0], sizes = [2, 1, 1, 64], strides = [1, 1, 1, 1]} : vector<2x4x8x64xf32> to vector<2x1x1x64xf32>
    %222 = vector.shape_cast %221 : vector<2x1x1x64xf32> to vector<2x64xf32>
    %223 = arith.maximumf %220, %222 : vector<2x64xf32>
    %224 = vector.extract_strided_slice %158 {offsets = [0, 3, 2, 0], sizes = [2, 1, 1, 64], strides = [1, 1, 1, 1]} : vector<2x4x8x64xf32> to vector<2x1x1x64xf32>
    %225 = vector.shape_cast %224 : vector<2x1x1x64xf32> to vector<2x64xf32>
    %226 = vector.extract_strided_slice %158 {offsets = [0, 3, 3, 0], sizes = [2, 1, 1, 64], strides = [1, 1, 1, 1]} : vector<2x4x8x64xf32> to vector<2x1x1x64xf32>
    %227 = vector.shape_cast %226 : vector<2x1x1x64xf32> to vector<2x64xf32>
    %228 = arith.maximumf %225, %227 : vector<2x64xf32>
    %229 = vector.extract_strided_slice %158 {offsets = [0, 3, 4, 0], sizes = [2, 1, 1, 64], strides = [1, 1, 1, 1]} : vector<2x4x8x64xf32> to vector<2x1x1x64xf32>
    %230 = vector.shape_cast %229 : vector<2x1x1x64xf32> to vector<2x64xf32>
    %231 = vector.extract_strided_slice %158 {offsets = [0, 3, 5, 0], sizes = [2, 1, 1, 64], strides = [1, 1, 1, 1]} : vector<2x4x8x64xf32> to vector<2x1x1x64xf32>
    %232 = vector.shape_cast %231 : vector<2x1x1x64xf32> to vector<2x64xf32>
    %233 = arith.maximumf %230, %232 : vector<2x64xf32>
    %234 = vector.extract_strided_slice %158 {offsets = [0, 3, 6, 0], sizes = [2, 1, 1, 64], strides = [1, 1, 1, 1]} : vector<2x4x8x64xf32> to vector<2x1x1x64xf32>
    %235 = vector.shape_cast %234 : vector<2x1x1x64xf32> to vector<2x64xf32>
    %236 = vector.extract_strided_slice %158 {offsets = [0, 3, 7, 0], sizes = [2, 1, 1, 64], strides = [1, 1, 1, 1]} : vector<2x4x8x64xf32> to vector<2x1x1x64xf32>
    %237 = vector.shape_cast %236 : vector<2x1x1x64xf32> to vector<2x64xf32>
    %238 = arith.maximumf %235, %237 : vector<2x64xf32>
    %239 = tpu.concatenate %163, %168, %173, %178, %183, %188, %193, %198, %203, %208, %213, %218, %223, %228, %233, %238 in 1 : vector<2x64xf32>, vector<2x64xf32>, vector<2x64xf32>, vector<2x64xf32>, vector<2x64xf32>, vector<2x64xf32>, vector<2x64xf32>, vector<2x64xf32>, vector<2x64xf32>, vector<2x64xf32>, vector<2x64xf32>, vector<2x64xf32>, vector<2x64xf32>, vector<2x64xf32>, vector<2x64xf32>, vector<2x64xf32> -> vector<2x1024xf32>
    %240 = arith.truncf %239 : vector<2x1024xf32> to vector<2x1024xbf16>
    %c0_207 = arith.constant 0 : index
    %c0_208 = arith.constant 0 : index
    %241 = vector.load %arg8[%c0_207, %c0_208] : memref<1024x256xbf16, #tpu.memory_space<vmem>>, vector<1024x256xbf16>
    %cst_209 = arith.constant dense<0.000000e+00> : vector<2x256xf32>
    %242 = tpu.matmul %240, %241, %cst_209 {dimension_numbers = #tpu.dot_dimension_numbers<[1], [0], [0], [1], [0, 0, 1, 1], [], []>} : vector<2x1024xbf16>, vector<1024x256xbf16>, vector<2x256xf32> -> vector<2x256xf32>
    %c0_210 = arith.constant 0 : index
    %c0_211 = arith.constant 0 : index
    %243 = vector.load %arg9[%c0_210, %c0_211] : memref<1x256xf32, #tpu.memory_space<vmem>>, vector<1x256xf32>
    %244 = vector.broadcast %243 : vector<1x256xf32> to vector<2x256xf32>
    %245 = arith.addf %242, %244 : vector<2x256xf32>
    %cst_212 = arith.constant 0.000000e+00 : f32
    %246 = vector.broadcast %cst_212 : f32 to vector<2x256xf32>
    %247 = arith.maximumf %245, %246 : vector<2x256xf32>
    %c0_213 = arith.constant 0 : index
    %c0_214 = arith.constant 0 : index
    %248 = vector.load %arg10[%c0_213, %c0_214] : memref<1x256xf32, #tpu.memory_space<vmem>>, vector<1x256xf32>
    %249 = vector.broadcast %248 : vector<1x256xf32> to vector<2x256xf32>
    %250 = arith.mulf %247, %249 : vector<2x256xf32>
    %cst_215 = arith.constant dense<0.000000e+00> : vector<2xf32>
    %251 = vector.multi_reduction <add>, %250, %cst_215 [1] : vector<2x256xf32> to vector<2xf32>
    %252 = vector.shape_cast %251 : vector<2xf32> to vector<2x1xf32>
    %c0_216 = arith.constant 0 : index
    %c0_217 = arith.constant 0 : index
    %253 = vector.load %arg11[%c0_216, %c0_217] : memref<1x1xf32, #tpu.memory_space<vmem>>, vector<1x1xf32>
    %254 = vector.broadcast %253 : vector<1x1xf32> to vector<2x1xf32>
    %255 = arith.addf %252, %254 : vector<2x1xf32>
    %c0_218 = arith.constant 0 : index
    %c0_219 = arith.constant 0 : index
    %256 = vector.load %arg12[%c0_218, %c0_219] : memref<2x1xf32, #tpu.memory_space<vmem>>, vector<2x1xf32>
    tpu.vector_store %arg12[%c0_218, %c0_219], %255 {strides = array<i32>} : memref<2x1xf32, #tpu.memory_space<vmem>>, vector<2x1xf32>,
    return
  }
  func.func @transform_0(%arg0: i32) -> (i32, i32, i32, i32) {
    %c0_i32 = arith.constant 0 : i32
    %c0_i32_0 = arith.constant 0 : i32
    %c0_i32_1 = arith.constant 0 : i32
    %c0_i32_2 = arith.constant 0 : i32
    return %arg0, %c0_i32, %c0_i32_0, %c0_i32_1 : i32, i32, i32, i32
  }
  func.func @transform_1(%arg0: i32) -> (i32, i32) {
    %c0_i32 = arith.constant 0 : i32
    %c0_i32_0 = arith.constant 0 : i32
    %c0_i32_1 = arith.constant 0 : i32
    return %c0_i32, %c0_i32_0 : i32, i32
  }
  func.func @transform_2(%arg0: i32) -> (i32, i32) {
    %c0_i32 = arith.constant 0 : i32
    %c0_i32_0 = arith.constant 0 : i32
    %c0_i32_1 = arith.constant 0 : i32
    return %c0_i32, %c0_i32_0 : i32, i32
  }
  func.func @transform_3(%arg0: i32) -> (i32, i32) {
    %c0_i32 = arith.constant 0 : i32
    %c0_i32_0 = arith.constant 0 : i32
    %c0_i32_1 = arith.constant 0 : i32
    return %c0_i32, %c0_i32_0 : i32, i32
  }
  func.func @transform_4(%arg0: i32) -> (i32, i32) {
    %c0_i32 = arith.constant 0 : i32
    %c0_i32_0 = arith.constant 0 : i32
    %c0_i32_1 = arith.constant 0 : i32
    return %c0_i32, %c0_i32_0 : i32, i32
  }
  func.func @transform_5(%arg0: i32) -> (i32, i32) {
    %c0_i32 = arith.constant 0 : i32
    %c0_i32_0 = arith.constant 0 : i32
    %c0_i32_1 = arith.constant 0 : i32
    return %c0_i32, %c0_i32_0 : i32, i32
  }
  func.func @transform_6(%arg0: i32) -> (i32, i32) {
    %c0_i32 = arith.constant 0 : i32
    %c0_i32_0 = arith.constant 0 : i32
    %c0_i32_1 = arith.constant 0 : i32
    return %c0_i32, %c0_i32_0 : i32, i32
  }
  func.func @transform_7(%arg0: i32) -> (i32, i32) {
    %c0_i32 = arith.constant 0 : i32
    %c0_i32_0 = arith.constant 0 : i32
    %c0_i32_1 = arith.constant 0 : i32
    return %c0_i32, %c0_i32_0 : i32, i32
  }
  func.func @transform_8(%arg0: i32) -> (i32, i32) {
    %c0_i32 = arith.constant 0 : i32
    %c0_i32_0 = arith.constant 0 : i32
    %c0_i32_1 = arith.constant 0 : i32
    return %c0_i32, %c0_i32_0 : i32, i32
  }
  func.func @transform_9(%arg0: i32) -> (i32, i32) {
    %c0_i32 = arith.constant 0 : i32
    %c0_i32_0 = arith.constant 0 : i32
    %c0_i32_1 = arith.constant 0 : i32
    return %c0_i32, %c0_i32_0 : i32, i32
  }
  func.func @transform_10(%arg0: i32) -> (i32, i32) {
    %c0_i32 = arith.constant 0 : i32
    %c0_i32_0 = arith.constant 0 : i32
    %c0_i32_1 = arith.constant 0 : i32
    return %c0_i32, %c0_i32_0 : i32, i32
  }
  func.func @transform_11(%arg0: i32) -> (i32, i32) {
    %c0_i32 = arith.constant 0 : i32
    %c0_i32_0 = arith.constant 0 : i32
    return %arg0, %c0_i32 : i32, i32
  }
}

</mosaic_0001>

<bundles_post_ra>
// kernel: energy_predictor_forward.1
= control target key start
LH: loop header
LB: loop body
LE: loop exit
PB: predicated region body
PF: predicated region fallthrough
CT: control target
= control target key end

     0   :  { %s11829_s0 = inlined_call_operand.hbm [shape: f32[2,8,8,1], index: 0, kind: input, shape index: {}]   ;;  %s11830_s1 = inlined_call_operand.hbm [shape: f32[9,16], index: 1, kind: input, shape index: {}]   ;;  %s11831_s2 = inlined_call_operand.hbm [shape: f32[1,16], index: 2, kind: input, shape index: {}]   ;;  %s11832_s3 = inlined_call_operand.hbm [shape: bf16[144,32], index: 3, kind: input, shape index: {}]   ;;  %s11833_s4 = inlined_call_operand.hbm [shape: f32[1,32], index: 4, kind: input, shape index: {}]   ;;  %s11834_s5 = inlined_call_operand.hbm [shape: bf16[288,64], index: 5, kind: input, shape index: {}]   ;;  %s11835_s6 = inlined_call_operand.hbm [shape: f32[1,64], index: 6, kind: input, shape index: {}]   ;;  %s11836_s7 = inlined_call_operand.hbm [shape: bf16[1024,256], index: 7, kind: input, shape index: {}]   ;;  %s11837_s8 = inlined_call_operand.hbm [shape: f32[1,256], index: 8, kind: input, shape index: {}]   ;;  %s11838_s9 = inlined_call_operand.hbm [shape: f32[1,256], index: 9, kind: input, shape index: {}]   ;;  %s11839_s10 = inlined_call_operand.<no memory space> [shape: f32[1,1], index: 10, kind: input, shape index: {}]   ;;  %s11840_s11 = inlined_call_operand.hbm [shape: f32[2,1], index: 11, kind: output, shape index: {}]  }
   0x1   :  { %v16_v0 = vstv %s11839_s10 }
   0x2   :  { %17 = vst [vmem:[#allocation5] sm:$0x1] %v16_v0 }
   0x3   :  { %18 = vsyncpa [#allocation7], 0 }
   0x4   :  { %19 = vsyncpa [#allocation10], 0 }
   0x5   :  { %20 = vsyncpa [#allocation13], 0 }
   0x6   :  { %21 = vsyncpa [#allocation16], 0 }
   0x7   :  { %22 = vsyncpa [#allocation19], 0 }
   0x8   :  { %23 = vsyncpa [#allocation22], 0 }
   0x9   :  { %24 = vsyncpa [#allocation8], 0  ;;  %s8557_s19 = smov [#allocation9]   ;;  %s8558_s21 = smov [#allocation12]  }
   0xa   :  { %s42_s20 = sshll.u32 %s8557_s19, 4  ;;  %s64_s22 = sshll.u32 %s8558_s21, 4  ;;  %s43_s20 = int_to_ptr.vmem [resolvable:$true] %s42_s20  ;;  %s8643_s22 = int_to_ptr.vmem [resolvable:$true] %s64_s22 }
   0xb   :  { %s8301_s25 = scalar_lea.hbm %s11830_s1, 256 }
   0xc   :  { %p8302_p0 = scmp.ne.s32.totalorder %s11830_s1, %s8301_s25  ;;  %p8305_p1 = scmp.lt.u32.totalorder %s8301_s25, %s11830_s1 }
   0xe   :  { %p8307_p2 = pnand %p8305_p1, %p8302_p0 }
  0x10   :  { %8310 = shalt.err (!%p8307_p2)
}
  0x11   :  { %s8311_s29 = scalar_lea.vmem %s43_s20, 256  ;;  %p8316_p4 = scmp.lt.s32.totalorder %s43_s20, %s43_s20 }
  0x12   :  { %p8312_p3 = scmp.ne.s32.totalorder %s43_s20, %s8311_s29  ;;  %p8317_p5 = scmp.lt.s32.totalorder %s8311_s29, %s8311_s29 }
  0x14   :  { %p8318_p6 = por %p8317_p5, %p8316_p4 }
  0x16   :  { %p8319_p7 = pnand %p8318_p6, %p8312_p3 }
  0x18   :  { %8322 = shalt.err (!%p8319_p7)
}
  0x19   :  { %s8559_s30 = smov 128   ;;  %s8560_s12 = smov 8  }
  0x1a   :  { %48 = dma.hbm_to_vmem [thread:$0]  %s11830_s1, 256, %s43_s20, [#allocation10], %s8559_s30, %s8559_s30, %s8560_s12  }
  0x1b   :  { %s8323_s17 = scalar_lea.hbm %s11832_s3, 1152 }
  0x1c   :  { %p8324_p8 = scmp.ne.s32.totalorder %s11832_s3, %s8323_s17  ;;  %p8327_p9 = scmp.lt.u32.totalorder %s8323_s17, %s11832_s3 }
  0x1e   :  { %p8329_p10 = pnand %p8327_p9, %p8324_p8 }
  0x20   :  { %8332 = shalt.err (!%p8329_p10)
}
  0x21   :  { %s8333_s24 = scalar_lea.vmem %s8643_s22, 1152  ;;  %p8338_p12 = scmp.lt.s32.totalorder %s8643_s22, %s8643_s22 }
  0x22   :  { %p8334_p11 = scmp.ne.s32.totalorder %s8643_s22, %s8333_s24  ;;  %p8339_p13 = scmp.lt.s32.totalorder %s8333_s24, %s8333_s24 }
  0x24   :  { %p8340_p0 = por %p8339_p13, %p8338_p12 }
  0x26   :  { %p8341_p1 = pnand %p8340_p0, %p8334_p11 }
  0x28   :  { %8344 = shalt.err (!%p8341_p1)
}
  0x29   :  { %s8561_s1 = smov 64   ;;  %s8562_s20 = smov 4  }
  0x2a   :  { %70 = dma.hbm_to_vmem [thread:$0]  %s11832_s3, 1152, %s8643_s22, [#allocation13], %s8561_s1, %s8561_s1, %s8562_s20  }
  0x2b   :  { %s8563_s26 = smov [#allocation15]   ;;  %s8564_s28 = smov [#allocation18]  }
  0x2c   :  { %s86_s27 = sshll.u32 %s8563_s26, 4  ;;  %s108_s29 = sshll.u32 %s8564_s28, 4  ;;  %s87_s27 = int_to_ptr.vmem [resolvable:$true] %s86_s27  ;;  %s8679_s29 = int_to_ptr.vmem [resolvable:$true] %s108_s29 }
  0x2d   :  { %s8345_s15 = scalar_lea.hbm %s11834_s5, 2304 }
  0x2e   :  { %p8346_p2 = scmp.ne.s32.totalorder %s11834_s5, %s8345_s15  ;;  %p8349_p3 = scmp.lt.u32.totalorder %s8345_s15, %s11834_s5 }
  0x30   :  { %p8351_p4 = pnand %p8349_p3, %p8346_p2 }
  0x32   :  { %8354 = shalt.err (!%p8351_p4)
}
  0x33   :  { %s8355_s3 = scalar_lea.vmem %s87_s27, 2304  ;;  %p8360_p6 = scmp.lt.s32.totalorder %s87_s27, %s87_s27 }
  0x34   :  { %p8356_p5 = scmp.ne.s32.totalorder %s87_s27, %s8355_s3  ;;  %p8361_p7 = scmp.lt.s32.totalorder %s8355_s3, %s8355_s3 }
  0x36   :  { %p8362_p8 = por %p8361_p7, %p8360_p6 }
  0x38   :  { %p8363_p9 = pnand %p8362_p8, %p8356_p5 }
  0x3a   :  { %8366 = shalt.err (!%p8363_p9)
}
  0x3b   :  { %92 = dma.hbm_to_vmem [thread:$0]  %s11834_s5, 2304, %s87_s27, [#allocation16], %s8561_s1, %s8561_s1, %s8562_s20  }
  0x3c   :  { %s8367_s25 = scalar_lea.hbm %s11836_s7, 16384 }
  0x3d   :  { %p8368_p10 = scmp.ne.s32.totalorder %s11836_s7, %s8367_s25  ;;  %p8371_p11 = scmp.lt.u32.totalorder %s8367_s25, %s11836_s7 }
  0x3f   :  { %p8373_p12 = pnand %p8371_p11, %p8368_p10 }
  0x41   :  { %8376 = shalt.err (!%p8373_p12)
}
  0x42   :  { %s8377_s14 = scalar_lea.vmem %s8679_s29, 16384  ;;  %p8382_p0 = scmp.lt.s32.totalorder %s8679_s29, %s8679_s29 }
  0x43   :  { %p8378_p13 = scmp.ne.s32.totalorder %s8679_s29, %s8377_s14  ;;  %p8383_p1 = scmp.lt.s32.totalorder %s8377_s14, %s8377_s14 }
  0x45   :  { %p8384_p2 = por %p8383_p1, %p8382_p0 }
  0x47   :  { %p8385_p3 = pnand %p8384_p2, %p8378_p13 }
  0x49   :  { %8388 = shalt.err (!%p8385_p3)
}
  0x4a   :  { %114 = dma.hbm_to_vmem [thread:$0]  %s11836_s7, 16384, %s8679_s29, [#allocation19], %s8559_s30, %s8559_s30, %s8560_s12  }
  0x4b   :  { %s8565_s27 = smov [#allocation6]   ;;  %s8566_s16 = smov [#allocation11]  }
  0x4c   :  { %s30_s15 = sshll.u32 %s8565_s27, 4  ;;  %s55_s17 = sshll.u32 %s8566_s16, 4  ;;  %s31_s15 = int_to_ptr.vmem [resolvable:$true] %s30_s15  ;;  %s56_s17 = int_to_ptr.vmem [resolvable:$true] %s55_s17 }
  0x4d   :  { %s8389_s3 = scalar_lea.hbm %s11829_s0, 2048 }
  0x4e   :  { %p8390_p4 = scmp.ne.s32.totalorder %s11829_s0, %s8389_s3  ;;  %p8393_p5 = scmp.lt.u32.totalorder %s8389_s3, %s11829_s0 }
  0x50   :  { %p8395_p6 = pnand %p8393_p5, %p8390_p4 }
  0x52   :  { %8398 = shalt.err (!%p8395_p6)
}
  0x53   :  { %s8399_s7 = scalar_lea.vmem %s31_s15, 2048  ;;  %p8404_p8 = scmp.lt.s32.totalorder %s31_s15, %s31_s15 }
  0x54   :  { %p8400_p7 = scmp.ne.s32.totalorder %s31_s15, %s8399_s7  ;;  %p8405_p9 = scmp.lt.s32.totalorder %s8399_s7, %s8399_s7 }
  0x56   :  { %p8406_p10 = por %p8405_p9, %p8404_p8 }
  0x58   :  { %p8407_p11 = pnand %p8406_p10, %p8400_p7 }
  0x5a   :  { %8410 = shalt.err (!%p8407_p11)
}
  0x5b   :  { %36 = dma.hbm_to_vmem [thread:$0]  %s11829_s0, 2048, %s31_s15, [#allocation7], %s8559_s30, %s8559_s30, %s8560_s12  }
  0x5c   :  { %s8411_s28 = scalar_lea.hbm %s11831_s2, 16 }
  0x5d   :  { %p8412_p12 = scmp.ne.s32.totalorder %s11831_s2, %s8411_s28  ;;  %p8415_p13 = scmp.lt.u32.totalorder %s8411_s28, %s11831_s2 }
  0x5f   :  { %p8417_p0 = pnand %p8415_p13, %p8412_p12 }
  0x61   :  { %8420 = shalt.err (!%p8417_p0)
}
  0x62   :  { %s8421_s27 = scalar_lea.vmem %s56_s17, 16  ;;  %s8425_s16 = scalar_lea.vmem %s56_s17, 32 }
  0x63   :  { %p8422_p1 = scmp.ne.s32.totalorder %s56_s17, %s8421_s27  ;;  %p8426_p2 = scmp.lt.s32.totalorder %s56_s17, %s56_s17 }
  0x64   :  { %p8427_p3 = scmp.lt.s32.totalorder %s8425_s16, %s8421_s27 }
  0x66   :  { %p8428_p4 = por %p8427_p3, %p8426_p2 }
  0x68   :  { %p8429_p5 = pnand %p8428_p4, %p8422_p1 }
  0x6a   :  { %8432 = shalt.err (!%p8429_p5)
}
  0x6b   :  { %58 = dma.hbm_to_vmem [thread:$0]  %s11831_s2, 16, %s56_s17, [#allocation10]  }
  0x6c   :  { %s8567_s12 = smov [#allocation14]   ;;  %s8568_s18 = smov [#allocation17]  }
  0x6d   :  { %s77_s15 = sshll.u32 %s8567_s12, 4  ;;  %s99_s19 = sshll.u32 %s8568_s18, 4  ;;  %s78_s15 = int_to_ptr.vmem [resolvable:$true] %s77_s15  ;;  %s100_s19 = int_to_ptr.vmem [resolvable:$true] %s99_s19 }
  0x6e   :  { %s8433_s21 = scalar_lea.hbm %s11833_s4, 16 }
  0x6f   :  { %p8434_p6 = scmp.ne.s32.totalorder %s11833_s4, %s8433_s21  ;;  %p8437_p7 = scmp.lt.u32.totalorder %s8433_s21, %s11833_s4 }
  0x71   :  { %p8439_p8 = pnand %p8437_p7, %p8434_p6 }
  0x73   :  { %8442 = shalt.err (!%p8439_p8)
}
  0x74   :  { %s8443_s2 = scalar_lea.vmem %s78_s15, 16  ;;  %s8447_s17 = scalar_lea.vmem %s78_s15, 32 }
  0x75   :  { %p8444_p9 = scmp.ne.s32.totalorder %s78_s15, %s8443_s2  ;;  %p8448_p10 = scmp.lt.s32.totalorder %s78_s15, %s78_s15 }
  0x76   :  { %p8449_p11 = scmp.lt.s32.totalorder %s8447_s17, %s8443_s2 }
  0x78   :  { %p8450_p12 = por %p8449_p11, %p8448_p10 }
  0x7a   :  { %p8451_p13 = pnand %p8450_p12, %p8444_p9 }
  0x7c   :  { %8454 = shalt.err (!%p8451_p13)
}
  0x7d   :  { %80 = dma.hbm_to_vmem [thread:$0]  %s11833_s4, 16, %s78_s15, [#allocation13]  }
  0x7e   :  { %s8455_s13 = scalar_lea.hbm %s11835_s6, 16 }
  0x7f   :  { %p8456_p0 = scmp.ne.s32.totalorder %s11835_s6, %s8455_s13  ;;  %p8459_p1 = scmp.lt.u32.totalorder %s8455_s13, %s11835_s6 }
  0x81   :  { %p8461_p2 = pnand %p8459_p1, %p8456_p0 }
  0x83   :  { %8464 = shalt.err (!%p8461_p2)
}
  0x84   :  { %s8465_s16 = scalar_lea.vmem %s100_s19, 16  ;;  %s8469_s0 = scalar_lea.vmem %s100_s19, 32 }
  0x85   :  { %p8466_p3 = scmp.ne.s32.totalorder %s100_s19, %s8465_s16  ;;  %p8470_p4 = scmp.lt.s32.totalorder %s100_s19, %s100_s19 }
  0x86   :  { %p8471_p5 = scmp.lt.s32.totalorder %s8469_s0, %s8465_s16 }
  0x88   :  { %p8472_p6 = por %p8471_p5, %p8470_p4 }
  0x8a   :  { %p8473_p7 = pnand %p8472_p6, %p8466_p3 }
  0x8c   :  { %8476 = shalt.err (!%p8473_p7)
}
  0x8d   :  { %102 = dma.hbm_to_vmem [thread:$0]  %s11835_s6, 16, %s100_s19, [#allocation16]  }
  0x8e   :  { %s8569_s12 = smov [#allocation20]   ;;  %s8570_s18 = smov [#allocation21]  }
  0x8f   :  { %s121_s15 = sshll.u32 %s8569_s12, 4  ;;  %s131_s3 = sshll.u32 %s8570_s18, 4  ;;  %s122_s15 = int_to_ptr.vmem [resolvable:$true] %s121_s15  ;;  %s132_s3 = int_to_ptr.vmem [resolvable:$true] %s131_s3 }
  0x90   :  { %s8477_s23 = scalar_lea.hbm %s11837_s8, 32 }
  0x91   :  { %p8478_p8 = scmp.ne.s32.totalorder %s11837_s8, %s8477_s23  ;;  %p8481_p9 = scmp.lt.u32.totalorder %s8477_s23, %s11837_s8 }
  0x93   :  { %p8483_p10 = pnand %p8481_p9, %p8478_p8 }
  0x95   :  { %8486 = shalt.err (!%p8483_p10)
}
  0x96   :  { %s8487_s6 = scalar_lea.vmem %s122_s15, 32  ;;  %p8492_p12 = scmp.lt.s32.totalorder %s122_s15, %s122_s15 }
  0x97   :  { %p8488_p11 = scmp.ne.s32.totalorder %s122_s15, %s8487_s6  ;;  %p8493_p13 = scmp.lt.s32.totalorder %s8487_s6, %s8487_s6 }
  0x99   :  { %p8494_p0 = por %p8493_p13, %p8492_p12 }
  0x9b   :  { %p8495_p1 = pnand %p8494_p0, %p8488_p11 }
  0x9d   :  { %8498 = shalt.err (!%p8495_p1)
}
  0x9e   :  { %124 = dma.hbm_to_vmem [thread:$0]  %s11837_s8, 32, %s122_s15, [#allocation19]  }
  0x9f   :  { %s8499_s26 = scalar_lea.hbm %s11838_s9, 32 }
  0xa0   :  { %p8500_p2 = scmp.ne.s32.totalorder %s11838_s9, %s8499_s26  ;;  %p8503_p3 = scmp.lt.u32.totalorder %s8499_s26, %s11838_s9 }
  0xa2   :  { %p8505_p4 = pnand %p8503_p3, %p8500_p2 }
  0xa4   :  { %8508 = shalt.err (!%p8505_p4)
}
  0xa5   :  { %s8509_s20 = scalar_lea.vmem %s132_s3, 32  ;;  %p8514_p6 = scmp.lt.s32.totalorder %s132_s3, %s132_s3 }
  0xa6   :  { %p8510_p5 = scmp.ne.s32.totalorder %s132_s3, %s8509_s20  ;;  %p8515_p7 = scmp.lt.s32.totalorder %s8509_s20, %s8509_s20 }
  0xa8   :  { %p8516_p8 = por %p8515_p7, %p8514_p6 }
  0xaa   :  { %p8517_p9 = pnand %p8516_p8, %p8510_p5 }
  0xac   :  { %8520 = shalt.err (!%p8517_p9)
}
  0xad   :  { %134 = dma.hbm_to_vmem [thread:$0]  %s11838_s9, 32, %s132_s3, [#allocation22]  }
  0xae   :  { %8543 = dma.done.wait [#allocation7], 2048  }
  0xaf   :  { %8544 = vsyncadd [#allocation7], 4294965248 }
  0xb0   :  { %8545 = dma.done.wait [#allocation10], 272  }
  0xb1   :  { %8546 = vsyncadd [#allocation10], 4294967024 }
  0xb2   :  { %8547 = dma.done.wait [#allocation13], 1168  }
  0xb3   :  { %8548 = vsyncadd [#allocation13], 4294966128 }
  0xb4   :  { %8549 = dma.done.wait [#allocation16], 2320  }
  0xb5   :  { %8550 = vsyncadd [#allocation16], 4294964976 }
  0xb6   :  { %8551 = dma.done.wait [#allocation19], 16416  }
  0xb7   :  { %8552 = vsyncadd [#allocation19], 4294950880 }
  0xb8   :  { %8553 = dma.done.wait [#allocation22], 32  }
  0xb9   :  { %8554 = vsyncadd [#allocation22], 4294967264  ;;  %vm168_vm0 = vcmask 7168   ;;  %vm170_vm1 = vcmask 1024   ;;  %v11841_v1 = vmov 0   ;;  %v8572_v2 = vmov 0.0  }
  0xba   :  { %7975 = vset.pattern.permute.xlu0 %v11841_v1  ;;  %169 = vst.msk [vmem:[#allocation2] sm:$0xff] %vm168_vm0, %v8572_v2  ;;  %172 = vst.msk [vmem:[#allocation2 + $0xa0] sm:$0xff] %vm168_vm0, %v8572_v2  ;;  %7976 = vset.pattern.permute.xlu1 %v11841_v1  ;;  %vm179_vm2 = vcmask 0   ;;  %v220_v3 = vld [vmem:[#allocation6] sm:$0xff]  ;;  %v221_v4 = vld [vmem:[#allocation6 + $0x8] sm:$0xff]  ;;  %vm1490_vm3 = vcmask 125952  }
  0xbb   :  { %171 = vst.msk [vmem:[#allocation2 + $0x8] sm:$0x3] %vm170_vm1, %v8572_v2  ;;  %173 = vst.msk [vmem:[#allocation2 + $0xa8] sm:$0x3] %vm170_vm1, %v8572_v2  ;;  %3674 = vmatprep.subr.bf16.mxu0 %v11841_v1  ;;  %v222_v5 = vld [vmem:[#allocation6 + $0x10] sm:$0xff]  ;;  %v223_v7 = vld [vmem:[#allocation6 + $0x18] sm:$0xff] }
  0xbc   :  { %175 = vst.msk [vmem:[#allocation2 + $0x90] sm:$0xff] %vm168_vm0, %v8572_v2  ;;  %177 = vst.msk [vmem:[#allocation2 + $0x130] sm:$0xff] %vm168_vm0, %v8572_v2  ;;  %v224_v8 = vld [vmem:[#allocation6 + $0x20] sm:$0xff]  ;;  %v225_v10 = vld [vmem:[#allocation6 + $0x28] sm:$0xff]  ;;  %vm1492_vm4 = vcmask 122880   ;;  %vm3789_vm9 = vcmask 253952  }
  0xbd   :  { %176 = vst.msk [vmem:[#allocation2 + $0x98] sm:$0x3] %vm170_vm1, %v8572_v2  ;;  %178 = vst.msk [vmem:[#allocation2 + $0x138] sm:$0x3] %vm170_vm1, %v8572_v2  ;;  %v226_v12 = vld [vmem:[#allocation6 + $0x30] sm:$0xff]  ;;  %v227_v13 = vld [vmem:[#allocation6 + $0x38] sm:$0xff] }
  0xbe   :  { %200 = vst.msk [vmem:[#allocation2 + $0x9] sm:$0x1] %vm179_vm2, %v8572_v2  ;;  %180 = vst.msk [vmem:[#allocation2] sm:$0x1] %vm179_vm2, %v8572_v2  ;;  %v228_v14 = vld [vmem:[#allocation6 + $0x40] sm:$0xff]  ;;  %v229_v21 = vld [vmem:[#allocation6 + $0x48] sm:$0xff] }
  0xbf   :  { %181 = vst.msk [vmem:[#allocation2 + $0x10] sm:$0x1] %vm179_vm2, %v8572_v2  ;;  %182 = vst.msk [vmem:[#allocation2 + $0x20] sm:$0x1] %vm179_vm2, %v8572_v2  ;;  %v230_v24 = vld [vmem:[#allocation6 + $0x50] sm:$0xff]  ;;  %v231_v33 = vld [vmem:[#allocation6 + $0x58] sm:$0xff] }
  0xc0   :  { %183 = vst.msk [vmem:[#allocation2 + $0x30] sm:$0x1] %vm179_vm2, %v8572_v2  ;;  %184 = vst.msk [vmem:[#allocation2 + $0x40] sm:$0x1] %vm179_vm2, %v8572_v2  ;;  %vm1502_vm5 = vsmask.f32 256 }
  0xc1   :  { %185 = vst.msk [vmem:[#allocation2 + $0x50] sm:$0x1] %vm179_vm2, %v8572_v2  ;;  %186 = vst.msk [vmem:[#allocation2 + $0x60] sm:$0x1] %vm179_vm2, %v8572_v2  ;;  %v1507_v29 = vld [vmem:[#allocation3 + $0x8] sm:$0x1] }
  0xc2   :  { %187 = vst.msk [vmem:[#allocation2 + $0x70] sm:$0x1] %vm179_vm2, %v8572_v2  ;;  %188 = vst.msk [vmem:[#allocation2 + $0x80] sm:$0x1] %vm179_vm2, %v8572_v2  ;;  %v386_v6 = vld [vmem:[#allocation2 + $0x1] sm:$0xff]  ;;  %v233_v54 = vld [vmem:[#allocation6 + $0x68] sm:$0xff] }
  0xc3   :  { %189 = vst.msk [vmem:[#allocation2 + $0x90] sm:$0x1] %vm179_vm2, %v8572_v2  ;;  %190 = vst.msk [vmem:[#allocation2 + $0xa0] sm:$0x1] %vm179_vm2, %v8572_v2  ;;  %405 = vperm.xlu0 %7975, %v386_v6   ;;  %vm1564_vm7 = vsmask.f32 7938 }
  0xc4   :  { %191 = vst.msk [vmem:[#allocation2 + $0xb0] sm:$0x1] %vm179_vm2, %v8572_v2  ;;  %192 = vst.msk [vmem:[#allocation2 + $0xc0] sm:$0x1] %vm179_vm2, %v8572_v2  ;;  %v1569_v30 = vld [vmem:[#allocation3 + $0xc] sm:$0x1] }
  0xc5   :  { %193 = vst.msk [vmem:[#allocation2 + $0xd0] sm:$0x1] %vm179_vm2, %v8572_v2  ;;  %194 = vst.msk [vmem:[#allocation2 + $0xe0] sm:$0x1] %vm179_vm2, %v8572_v2  ;;  %v519_v9 = vld [vmem:[#allocation2 + $0x2] sm:$0xff]  ;;  %v234_v62 = vld [vmem:[#allocation6 + $0x70] sm:$0xff] }
  0xc6   :  { %195 = vst.msk [vmem:[#allocation2 + $0xf0] sm:$0x1] %vm179_vm2, %v8572_v2  ;;  %196 = vst.msk [vmem:[#allocation2 + $0x100] sm:$0x1] %vm179_vm2, %v8572_v2  ;;  %538 = vperm.xlu1 %7976, %v519_v9   ;;  %v253_v11 = vld [vmem:[#allocation2] sm:$0xff]  ;;  %vm2256_vm11 = vcmask 1042432  }
  0xc7   :  { %197 = vst.msk [vmem:[#allocation2 + $0x110] sm:$0x1] %vm179_vm2, %v8572_v2  ;;  %198 = vst.msk [vmem:[#allocation2 + $0x120] sm:$0x1] %vm179_vm2, %v8572_v2  ;;  %272 = vperm.xlu0 %7975, %v253_v11   ;;  %v1510_v40 = vld [vmem:[#allocation3 + $0x10] sm:$0x1] }
  0xc8   :  { %199 = vst.msk [vmem:[#allocation2 + $0x130] sm:$0x1] %vm179_vm2, %v8572_v2  ;;  %201 = vst.msk [vmem:[#allocation2 + $0x19] sm:$0x1] %vm179_vm2, %v8572_v2  ;;  %v1572_v41 = vld [vmem:[#allocation3 + $0x14] sm:$0x1] }
  0xc9   :  { %202 = vst.msk [vmem:[#allocation2 + $0x29] sm:$0x1] %vm179_vm2, %v8572_v2  ;;  %203 = vst.msk [vmem:[#allocation2 + $0x39] sm:$0x1] %vm179_vm2, %v8572_v2  ;;  %v232_v46 = vld [vmem:[#allocation6 + $0x60] sm:$0xff]  ;;  %vm2257_vm12 = vcmask 1046532  }
  0xca   :  { %204 = vst.msk [vmem:[#allocation2 + $0x49] sm:$0x1] %vm179_vm2, %v8572_v2  ;;  %205 = vst.msk [vmem:[#allocation2 + $0x59] sm:$0x1] %vm179_vm2, %v8572_v2  ;;  %v1513_v49 = vld [vmem:[#allocation3 + $0x18] sm:$0x1] }
  0xcb   :  { %206 = vst.msk [vmem:[#allocation2 + $0x69] sm:$0x1] %vm179_vm2, %v8572_v2  ;;  %207 = vst.msk [vmem:[#allocation2 + $0x79] sm:$0x1] %vm179_vm2, %v8572_v2  ;;  %v1575_v50 = vld [vmem:[#allocation3 + $0x1c] sm:$0x1] }
  0xcc   :  { %208 = vst.msk [vmem:[#allocation2 + $0x89] sm:$0x1] %vm179_vm2, %v8572_v2  ;;  %209 = vst.msk [vmem:[#allocation2 + $0x99] sm:$0x1] %vm179_vm2, %v8572_v2  ;;  %v1516_v57 = vld [vmem:[#allocation3 + $0x20] sm:$0x1] }
  0xcd   :  { %210 = vst.msk [vmem:[#allocation2 + $0xa9] sm:$0x1] %vm179_vm2, %v8572_v2  ;;  %211 = vst.msk [vmem:[#allocation2 + $0xb9] sm:$0x1] %vm179_vm2, %v8572_v2  ;;  %v1578_v58 = vld [vmem:[#allocation3 + $0x24] sm:$0x1] }
  0xce   :  { %212 = vst.msk [vmem:[#allocation2 + $0xc9] sm:$0x1] %vm179_vm2, %v8572_v2  ;;  %213 = vst.msk [vmem:[#allocation2 + $0xd9] sm:$0x1] %vm179_vm2, %v8572_v2  ;;  %v1519_v0 = vld [vmem:[#allocation3 + $0x28] sm:$0x1] }
  0xcf   :  { %214 = vst.msk [vmem:[#allocation2 + $0xe9] sm:$0x1] %vm179_vm2, %v8572_v2  ;;  %215 = vst.msk [vmem:[#allocation2 + $0xf9] sm:$0x1] %vm179_vm2, %v8572_v2  ;;  %v261_v6 = vld [vmem:[#allocation2 + $0xa0] sm:$0xff]  ;;  %s8573_s9 = smov 16  }
  0xd0   :  { %216 = vst.msk [vmem:[#allocation2 + $0x109] sm:$0x1] %vm179_vm2, %v8572_v2  ;;  %217 = vst.msk [vmem:[#allocation2 + $0x119] sm:$0x1] %vm179_vm2, %v8572_v2  ;;  %vm1981_vm14 = vsmask.f32 3328 }
  0xd1   :  { %218 = vst.msk [vmem:[#allocation2 + $0x129] sm:$0x1] %vm179_vm2, %v8572_v2  ;;  %219 = vst.msk [vmem:[#allocation2 + $0x139] sm:$0x1] %vm179_vm2, %v8572_v2  ;;  %v1581_v2 = vld [vmem:[#allocation3 + $0x2c] sm:$0x1] }
  0xd2   :  { %237 = vst.msk [vmem:[#allocation2 + $0x11] sm:$0xff] %vm168_vm0, %v220_v3  ;;  %238 = vst.msk [vmem:[#allocation2 + $0x21] sm:$0xff] %vm168_vm0, %v221_v4  ;;  %vm1982_vm15 = vsmask.f32 7440  ;;  %vm3436_vm2 = vcmask 130048   ;;  %s8574_s16 = smov 32  }
  0xd3   :  { %239 = vst.msk [vmem:[#allocation2 + $0x31] sm:$0xff] %vm168_vm0, %v222_v5  ;;  %240 = vst.msk [vmem:[#allocation2 + $0x41] sm:$0xff] %vm168_vm0, %v223_v7  ;;  %v394_v7 = vld [vmem:[#allocation2 + $0xa1] sm:$0xff]  ;;  %s8575_s0 = smov 48   ;;  %s8576_s4 = smov 80  }
  0xd4   :  { %241 = vst.msk [vmem:[#allocation2 + $0x51] sm:$0xff] %vm168_vm0, %v224_v8  ;;  %242 = vst.msk [vmem:[#allocation2 + $0x61] sm:$0xff] %vm168_vm0, %v225_v10  ;;  %s8577_s30 = smov 96   ;;  %s8578_s12 = smov 112  }
  0xd5   :  { %243 = vst.msk [vmem:[#allocation2 + $0x71] sm:$0xff] %vm168_vm0, %v226_v12  ;;  %244 = vst.msk [vmem:[#allocation2 + $0x81] sm:$0xff] %vm168_vm0, %v227_v13  ;;  %v235_v12 = vld [vmem:[#allocation6 + $0x78] sm:$0xff]  ;;  %v527_v13 = vld [vmem:[#allocation2 + $0xa2] sm:$0xff] }
  0xd6   :  { %245 = vst.msk [vmem:[#allocation2 + $0xb1] sm:$0xff] %vm168_vm0, %v228_v14  ;;  %246 = vst.msk [vmem:[#allocation2 + $0xc1] sm:$0xff] %vm168_vm0, %v229_v21 }
  0xd7   :  { %247 = vst.msk [vmem:[#allocation2 + $0xd1] sm:$0xff] %vm168_vm0, %v230_v24  ;;  %vm8854_vm6 = vmand %vm1492_vm4, %vm1502_vm5 }
  0xd8   :  { %1491 = vst.msk [vmem:[#allocation3] sm:$0xf] %vm1490_vm3, %v11841_v1  ;;  %1494 = vst.msk [vmem:[#allocation3 + $0x50] sm:$0xf] %vm1490_vm3, %v11841_v1  ;;  %v1508_v31 = vsel %vm8854_vm6, 0, %v1507_v29  ;;  %v1511_v44 = vsel %vm8854_vm6, 0, %v1510_v40 }
  0xd9   :  { %v254_v15 = vld [vmem:[#allocation2 + $0x10] sm:$0xff]  ;;  %v255_v18 = vld [vmem:[#allocation2 + $0x20] sm:$0xff]  ;;  %1493 = vst.msk [vmem:[#allocation3 + $0x4] sm:$0x1] %vm1492_vm4, %v11841_v1  ;;  %1495 = vst.msk [vmem:[#allocation3 + $0x54] sm:$0x1] %vm1492_vm4, %v11841_v1 }
  0xda   :  { %v387_v16 = vld [vmem:[#allocation2 + $0x11] sm:$0xff]  ;;  %277 = vperm.xlu1 %7976, %v254_v15   ;;  %v388_v19 = vld [vmem:[#allocation2 + $0x21] sm:$0xff]  ;;  %1497 = vst.msk [vmem:[#allocation3 + $0x48] sm:$0xf] %vm1490_vm3, %v11841_v1  ;;  %1499 = vst.msk [vmem:[#allocation3 + $0x98] sm:$0xf] %vm1490_vm3, %v11841_v1 }
  0xdb   :  { %410 = vperm.xlu0 %7975, %v387_v16   ;;  %v520_v17 = vld [vmem:[#allocation2 + $0x12] sm:$0xff]  ;;  %v521_v20 = vld [vmem:[#allocation2 + $0x22] sm:$0xff]  ;;  %1498 = vst.msk [vmem:[#allocation3 + $0x4c] sm:$0x1] %vm1492_vm4, %v11841_v1  ;;  %1500 = vst.msk [vmem:[#allocation3 + $0x9c] sm:$0x1] %vm1492_vm4, %v11841_v1 }
  0xdc   :  { %v654_v22 = vld [vmem:[#allocation2 + $0x30] sm:$0xff]  ;;  %v257_v26 = vld [vmem:[#allocation2 + $0x40] sm:$0xff]  ;;  %vm8878_vm8 = vmand %vm1492_vm4, %vm1564_vm7  ;;  %1509 = vst [vmem:[#allocation3 + $0x8] sm:$0x1] %v1508_v31  ;;  %v1514_v51 = vsel %vm8854_vm6, 0, %v1513_v49  ;;  %v1517_v59 = vsel %vm8854_vm6, 0, %v1516_v57 }
  0xdd   :  { %v389_v23 = vld [vmem:[#allocation2 + $0x31] sm:$0xff]  ;;  %v390_v27 = vld [vmem:[#allocation2 + $0x41] sm:$0xff]  ;;  %v1570_v35 = vsel %vm8878_vm8, 0, %v1569_v30  ;;  %3790 = vst.msk [vmem:[#allocation4 + $0x4] sm:$0x1] %vm3789_vm9, %v11841_v1  ;;  %v1573_v45 = vsel %vm8878_vm8, 0, %v1572_v41  ;;  %vm9053_vm10 = vmand %vm1490_vm3, %vm1564_vm7 }
  0xde   :  { %671 = vperm.xlu1 %7976, %v254_v15   ;;  %v522_v25 = vld [vmem:[#allocation2 + $0x32] sm:$0xff]  ;;  %v523_v34 = vld [vmem:[#allocation2 + $0x42] sm:$0xff]  ;;  %3792 = vst.msk [vmem:[#allocation4 + $0x54] sm:$0x1] %vm3789_vm9, %v11841_v1  ;;  %3795 = vst.msk [vmem:[#allocation4 + $0x4c] sm:$0x1] %vm3789_vm9, %v11841_v1 }
  0xdf   :  { %543 = vperm.xlu0 %7975, %v520_v17   ;;  %3797 = vst.msk [vmem:[#allocation4 + $0x9c] sm:$0x1] %vm3789_vm9, %v11841_v1  ;;  %1571 = vst [vmem:[#allocation3 + $0xc] sm:$0x1] %v1570_v35  ;;  %v656_v36 = vld [vmem:[#allocation2 + $0x50] sm:$0xff]  ;;  %v259_v48 = vld [vmem:[#allocation2 + $0x60] sm:$0xff] }
  0xe0   :  { %248 = vst.msk [vmem:[#allocation2 + $0xe1] sm:$0xff] %vm168_vm0, %v231_v33  ;;  %v391_v37 = vld [vmem:[#allocation2 + $0x51] sm:$0xff]  ;;  %v1504_v38 = vld [vmem:[#allocation3] sm:$0x1]  ;;  %v1566_v39 = vld [vmem:[#allocation3 + $0x4] sm:$0x1] }
  0xe1   :  { %v1505_v42 = vsel %vm8854_vm6, 0, %v1504_v38  ;;  %v1567_v43 = vsel %vm8878_vm8, 0, %v1566_v39  ;;  %1512 = vst [vmem:[#allocation3 + $0x10] sm:$0x1] %v1511_v44  ;;  %1574 = vst [vmem:[#allocation3 + $0x14] sm:$0x1] %v1573_v45 }
  0xe2   :  { %282 = vperm.xlu1 %7976, %v255_v18   ;;  %1506 = vst [vmem:[#allocation3] sm:$0x1] %v1505_v42  ;;  %1568 = vst [vmem:[#allocation3 + $0x4] sm:$0x1] %v1567_v43  ;;  %v524_v47 = vld [vmem:[#allocation2 + $0x52] sm:$0xff]  ;;  %v1576_v52 = vsel %vm8878_vm8, 0, %v1575_v50 }
  0xe3   :  { %415 = vperm.xlu0 %7975, %v388_v19   ;;  %249 = vst.msk [vmem:[#allocation2 + $0xf1] sm:$0xff] %vm168_vm0, %v232_v46  ;;  %1515 = vst [vmem:[#allocation3 + $0x18] sm:$0x1] %v1514_v51  ;;  %v392_v53 = vld [vmem:[#allocation2 + $0x61] sm:$0xff]  ;;  %v658_v56 = vld [vmem:[#allocation2 + $0x70] sm:$0xff]  ;;  %v1579_v60 = vsel %vm8878_vm8, 0, %v1578_v58 }
  0xe4   :  { %1577 = vst [vmem:[#allocation3 + $0x1c] sm:$0x1] %v1576_v52  ;;  %v525_v55 = vld [vmem:[#allocation2 + $0x62] sm:$0xff]  ;;  %250 = vst.msk [vmem:[#allocation2 + $0x101] sm:$0xff] %vm168_vm0, %v233_v54  ;;  %v393_v61 = vld [vmem:[#allocation2 + $0x71] sm:$0xff]  ;;  %v1520_v3 = vsel %vm8854_vm6, 0, %v1519_v0 }
  0xe5   :  { %1518 = vst [vmem:[#allocation3 + $0x20] sm:$0x1] %v1517_v59  ;;  %1580 = vst [vmem:[#allocation3 + $0x24] sm:$0x1] %v1579_v60  ;;  %v526_v63 = vld [vmem:[#allocation2 + $0x72] sm:$0xff]  ;;  %v1582_v4 = vsel %vm8878_vm8, 0, %v1581_v2 }
  0xe6   :  { %804 = vperm.xlu1 %7976, %v387_v16   ;;  %251 = vst.msk [vmem:[#allocation2 + $0x111] sm:$0xff] %vm168_vm0, %v234_v62  ;;  %1521 = vst [vmem:[#allocation3 + $0x28] sm:$0x1] %v1520_v3  ;;  %v659_v5 = vld [vmem:[#allocation2 + $0x80] sm:$0xff]  ;;  %v1522_v15 = vld [vmem:[#allocation3 + $0x30] sm:$0x1] }
  0xe7   :  { %676 = vperm.xlu0 %7975, %v255_v18   ;;  %1583 = vst [vmem:[#allocation3 + $0x2c] sm:$0x1] %v1582_v4  ;;  %v792_v10 = vld [vmem:[#allocation2 + $0x81] sm:$0xff]  ;;  %252 = vst.msk [vmem:[#allocation2 + $0x121] sm:$0xff] %vm168_vm0, %v235_v12  ;;  %v1584_v16 = vld [vmem:[#allocation3 + $0x34] sm:$0x1] }
  0xe8   :  { %v925_v24 = vld [vmem:[#allocation2 + $0x82] sm:$0xff]  ;;  %v528_v30 = vld [vmem:[#allocation2 + $0xb2] sm:$0xff]  ;;  %v8950_v44 = vld [vmem:[#allocation9] ss:$0 sm:$0xff]  ;;  %vm3461_vm3 = vcmask 261120   ;;  %vm3478_vm4 = vcmask 392192  }
  0xe9   :  { %v1059_v31 = vld [vmem:[#allocation2 + $0x90] sm:$0xff]  ;;  %v263_v35 = vld [vmem:[#allocation2 + $0xc0] sm:$0xff]  ;;  %v8988_v12 = vld [vmem:[#allocation9 + $0x7] ss:$0 sm:$0xff] }
  0xea   :  { %548 = vperm.xlu1 %7976, %v521_v20   ;;  %v8939_v38 = vld [vmem:[#allocation2 + $0xc1] sm:$0xff]  ;;  %v1192_v46 = vld [vmem:[#allocation2 + $0x91] sm:$0xff]  ;;  %v1528_v4 = vld [vmem:[#allocation3 + $0x40] sm:$0x1] }
  0xeb   :  { %937 = vperm.xlu0 %7975, %v520_v17   ;;  %v8966_v54 = vld [vmem:[#allocation9 + $0x3] ss:$0 sm:$0xff]  ;;  %v8970_v57 = vld [vmem:[#allocation9 + $0x4] ss:$0 sm:$0xff]  ;;  %v8976_v62 = vld [vmem:[#allocation9 + $0x5] ss:$0 sm:$0xff] }
  0xec   :  { %vm9077_vm13 = vmor %vm2256_vm11, %vm2257_vm12  ;;  %vm3512_vm11 = vcmask 654336   ;;  %vm3529_vm12 = vcmask 785408  }
  0xed   :  { %vm9131_vm0 = vmor %vm1981_vm14, %vm1982_vm15  ;;  %vm3546_vm14 = vcmask 916480  }
  0xee   :  { %809 = vperm.xlu1 %7976, %v388_v19   ;;  %vm10456_vm15 = vmand %vm3789_vm9, %vm1502_vm5 }
  0xef   :  { %681 = vperm.xlu0 %7975, %v654_v22  }
  0xf2   :  { %1071 = vperm.xlu1 %7976, %v255_v18   ;;  %v1523_v18 = vsel %vm8854_vm6, 0, %v1522_v15 }
  0xf3   :  { %287 = vperm.xlu0 %7975, %v654_v22   ;;  %1524 = vst [vmem:[#allocation3 + $0x30] sm:$0x1] %v1523_v18 }
  0xf6   :  { %420 = vperm.xlu1 %7976, %v389_v23  }
  0xf7   :  { %942 = vperm.xlu0 %7975, %v521_v20  }
  0xfa   :  { %814 = vperm.xlu1 %7976, %v389_v23  }
  0xfb   :  { %1204 = vperm.xlu0 %7975, %v388_v19   ;;  %v1585_v19 = vsel %vm8878_vm8, 0, %v1584_v16 }
  0xfc   :  { %1586 = vst [vmem:[#allocation3 + $0x34] sm:$0x1] %v1585_v19 }
  0xfe   :  { %553 = vperm.xlu1 %7976, %v522_v25  }
  0xff   :  { %1076 = vperm.xlu0 %7975, %v654_v22  }
 0x102   :  { %292 = vperm.xlu1 %7976, %v257_v26  }
 0x103   :  { %425 = vperm.xlu0 %7975, %v390_v27  }
 0x106   :  { %947 = vperm.xlu1 %7976, %v522_v25  }
 0x107   :  { %1337 = vperm.xlu0 %7975, %v521_v20   ;;  %v262_v20 = vld [vmem:[#allocation2 + $0xb0] sm:$0xff] }
 0x10a   :  { %686 = vperm.xlu1 %7976, %v257_v26  }
 0x10b   :  { %1209 = vperm.xlu0 %7975, %v389_v23   ;;  %v395_v23 = vld [vmem:[#allocation2 + $0xb1] sm:$0xff] }
 0x10e   :  { %558 = vperm.xlu1 %7976, %v523_v34  }
 0x10f   :  { %1081 = vperm.xlu0 %7975, %v257_v26  }
 0x112   :  { %819 = vperm.xlu1 %7976, %v390_v27  }
 0x113   :  { %1342 = vperm.xlu0 %7975, %v522_v25  }
 0x116   :  { %691 = vperm.xlu1 %7976, %v656_v36  }
 0x117   :  { %1214 = vperm.xlu0 %7975, %v390_v27  }
 0x11a   :  { %297 = vperm.xlu1 %7976, %v656_v36  }
 0x11b   :  { %430 = vperm.xlu0 %7975, %v391_v37  }
 0x11e   :  { %952 = vperm.xlu1 %7976, %v523_v34  }
 0x11f   :  { %824 = vperm.xlu0 %7975, %v391_v37  }
 0x122   :  { %1347 = vperm.xlu1 %7976, %v523_v34  }
 0x123   :  { %563 = vperm.xlu0 %7975, %v524_v47  }
 0x126   :  { %1086 = vperm.xlu1 %7976, %v656_v36   ;;  %v1525_v36 = vld [vmem:[#allocation3 + $0x38] sm:$0x1] }
 0x127   :  { %302 = vperm.xlu0 %7975, %v259_v48   ;;  %v1526_v39 = vsel %vm8854_vm6, 0, %v1525_v36 }
 0x128   :  { %1527 = vst [vmem:[#allocation3 + $0x38] sm:$0x1] %v1526_v39  ;;  %v9013_v39 = vld [vmem:[#allocation11] ss:$0 sm:$0xff] }
 0x12a   :  { %435 = vperm.xlu1 %7976, %v392_v53  }
 0x12b   :  { %957 = vperm.xlu0 %7975, %v524_v47  }
 0x12e   :  { %696 = vperm.xlu1 %7976, %v259_v48  }
 0x12f   :  { %1219 = vperm.xlu0 %7975, %v391_v37   ;;  %v1587_v37 = vld [vmem:[#allocation3 + $0x3c] sm:$0x1] }
 0x130   :  { %v1588_v40 = vsel %vm8878_vm8, 0, %v1587_v37 }
 0x131   :  { %1589 = vst [vmem:[#allocation3 + $0x3c] sm:$0x1] %v1588_v40 }
 0x132   :  { %568 = vperm.xlu1 %7976, %v525_v55  }
 0x133   :  { %1091 = vperm.xlu0 %7975, %v259_v48   ;;  %v8956_v48 = vld [vmem:[#allocation2 + $0xc2] sm:$0xff] }
 0x136   :  { %829 = vperm.xlu1 %7976, %v392_v53  }
 0x137   :  { %1352 = vperm.xlu0 %7975, %v524_v47   ;;  %v8954_v47 = vld [vmem:[#allocation9 + $0x1] ss:$0 sm:$0xff] }
 0x13a   :  { %701 = vperm.xlu1 %7976, %v658_v56  }
 0x13b   :  { %1224 = vperm.xlu0 %7975, %v392_v53   ;;  %v8964_v53 = vld [vmem:[#allocation9 + $0x2] ss:$0 sm:$0xff] }
 0x13e   :  { %307 = vperm.xlu1 %7976, %v658_v56  }
 0x13f   :  { %440 = vperm.xlu0 %7975, %v393_v61  }
 0x142   :  { %962 = vperm.xlu1 %7976, %v525_v55   ;;  %v8916_v8 = vpop.permute.xlu0 %405 }
 0x143   :  { %834 = vperm.xlu0 %7975, %v393_v61   ;;  %v487_v52 = vmul.f32 %v8954_v47, %v8916_v8  ;;  %v1529_v8 = vsel %vm8854_vm6, 0, %v1528_v4 }
 0x144   :  { %1530 = vst [vmem:[#allocation3 + $0x40] sm:$0x1] %v1529_v8  ;;  %v9036_v8 = vld [vmem:[#allocation2 + $0xe1] sm:$0xff] }
 0x145   :  { %v8918_v9 = vpop.permute.xlu1 %538 }
 0x146   :  { %1357 = vperm.xlu1 %7976, %v525_v55   ;;  %v273_v11 = vpop.permute.xlu0 %272  ;;  %v620_v59 = vmul.f32 %v8964_v53, %v8918_v9 }
 0x147   :  { %573 = vperm.xlu0 %7975, %v526_v63   ;;  %v354_v49 = vmul.f32 %v8950_v44, %v273_v11 }
 0x149   :  { %v503_v55 = vadd.f32 %v487_v52, %v354_v49 }
 0x14a   :  { %1096 = vperm.xlu1 %7976, %v658_v56  }
 0x14b   :  { %967 = vperm.xlu0 %7975, %v526_v63   ;;  %v636_v0 = vadd.f32 %v620_v59, %v503_v55 }
 0x14e   :  { %706 = vperm.xlu1 %7976, %v659_v5  }
 0x14f   :  { %1229 = vperm.xlu0 %7975, %v393_v61   ;;  %v1325_v61 = vld [vmem:[#allocation2 + $0x92] sm:$0xff] }
 0x152   :  { %312 = vperm.xlu1 %7976, %v261_v6   ;;  %v8981_v6 = vld [vmem:[#allocation9 + $0x6] ss:$0 sm:$0xff] }
 0x153   :  { %445 = vperm.xlu0 %7975, %v394_v7  }
 0x156   :  { %1101 = vperm.xlu1 %7976, %v659_v5   ;;  %v1590_v5 = vld [vmem:[#allocation3 + $0x44] sm:$0x1] }
 0x157   :  { %839 = vperm.xlu0 %7975, %v792_v10   ;;  %v1591_v9 = vsel %vm8878_vm8, 0, %v1590_v5  ;;  %v9032_v5 = vld [vmem:[#allocation2 + $0xe0] sm:$0xff] }
 0x158   :  { %1592 = vst [vmem:[#allocation3 + $0x44] sm:$0x1] %v1591_v9 }
 0x159   :  { %v8921_v14 = vpop.permute.xlu1 %277 }
 0x15a   :  { %1362 = vperm.xlu1 %7976, %v526_v63   ;;  %v8923_v17 = vpop.permute.xlu0 %410  ;;  %v662_v63 = vld [vmem:[#allocation2 + $0xd0] sm:$0xff]  ;;  %v355_v19 = vmul.f32 %v8950_v44, %v8921_v14 }
 0x15b   :  { %578 = vperm.xlu0 %7975, %v527_v13  }
 0x15d   :  { %v672_v21 = vpop.permute.xlu1 %671 }
 0x15e   :  { %1234 = vperm.xlu1 %7976, %v792_v10   ;;  %v8929_v22 = vpop.permute.xlu0 %543  ;;  %v753_v60 = vmul.f32 %v8966_v54, %v672_v21 }
 0x15f   :  { %317 = vperm.xlu0 %7975, %v262_v20  }
 0x160   :  { %v769_v10 = vadd.f32 %v753_v60, %v636_v0 }
 0x161   :  { %v8931_v25 = vpop.permute.xlu1 %282 }
 0x162   :  { %450 = vperm.xlu1 %7976, %v395_v23   ;;  %v8933_v26 = vpop.permute.xlu0 %415 }
 0x163   :  { %972 = vperm.xlu0 %7975, %v925_v24  }
 0x165   :  { %v805_v27 = vpop.permute.xlu1 %804 }
 0x166   :  { %711 = vperm.xlu1 %7976, %v262_v20   ;;  %v8935_v29 = vpop.permute.xlu0 %676  ;;  %v886_v2 = vmul.f32 %v8970_v57, %v805_v27  ;;  %v488_v20 = vmul.f32 %v8954_v47, %v8923_v17  ;;  %v9002_v27 = vld [vmem:[#allocation9 + $0x8] ss:$0 sm:$0xff] }
 0x167   :  { %1367 = vperm.xlu0 %7975, %v925_v24   ;;  %v9000_v24 = vld [vmem:[#allocation2 + $0xd1] sm:$0xff]  ;;  %v754_v17 = vmul.f32 %v8966_v54, %v8935_v29 }
 0x168   :  { %v902_v13 = vadd.f32 %v886_v2, %v769_v10 }
 0x169   :  { %v8937_v33 = vpop.permute.xlu1 %548 }
 0x16a   :  { %583 = vperm.xlu1 %7976, %v528_v30   ;;  %v938_v34 = vpop.permute.xlu0 %937 }
 0x16b   :  { %1106 = vperm.xlu0 %7975, %v1059_v31   ;;  %v1019_v11 = vmul.f32 %v8976_v62, %v938_v34 }
 0x16d   :  { %v8945_v41 = vpop.permute.xlu1 %809  ;;  %v1035_v21 = vadd.f32 %v1019_v11, %v902_v13  ;;  %v356_v11 = vmul.f32 %v8950_v44, %v8931_v25  ;;  %v489_v13 = vmul.f32 %v8954_v47, %v8933_v26  ;;  %v622_v25 = vmul.f32 %v8964_v53, %v8937_v33 }
 0x16e   :  { %322 = vperm.xlu1 %7976, %v263_v35   ;;  %v8947_v42 = vpop.permute.xlu0 %681 }
 0x16f   :  { %455 = vperm.xlu0 %7975, %v8939_v38   ;;  %v755_v33 = vmul.f32 %v8966_v54, %v8947_v42 }
 0x171   :  { %v1072_v43 = vpop.permute.xlu1 %1071 }
 0x172   :  { %844 = vperm.xlu1 %7976, %v395_v23   ;;  %v8952_v45 = vpop.permute.xlu0 %287  ;;  %v1153_v15 = vmul.f32 %v8981_v6, %v1072_v43 }
 0x173   :  { %716 = vperm.xlu0 %7975, %v263_v35  }
 0x174   :  { %v1169_v31 = vadd.f32 %v1153_v15, %v1035_v21 }
 0x175   :  { %v8959_v50 = vpop.permute.xlu1 %420 }
 0x176   :  { %1239 = vperm.xlu1 %7976, %v1192_v46   ;;  %v943_v51 = vpop.permute.xlu0 %942 }
 0x177   :  { %588 = vperm.xlu0 %7975, %v8956_v48   ;;  %v1020_v29 = vmul.f32 %v8976_v62, %v943_v51 }
 0x179   :  { %v8968_v56 = vpop.permute.xlu1 %814 }
 0x17a   :  { %977 = vperm.xlu1 %7976, %v528_v30   ;;  %v1205_v58 = vpop.permute.xlu0 %1204  ;;  %v621_v30 = vmul.f32 %v8964_v53, %v8929_v22  ;;  %v887_v22 = vmul.f32 %v8970_v57, %v8945_v41 }
 0x17b   :  { %849 = vperm.xlu0 %7975, %v8939_v38   ;;  %v1286_v23 = vmul.f32 %v8988_v12, %v1205_v58  ;;  %v9023_v58 = vld [vmem:[#allocation2 + $0xd2] sm:$0xff] }
 0x17d   :  { %v8979_v3 = vpop.permute.xlu1 %553  ;;  %v1302_v36 = vadd.f32 %v1286_v23, %v1169_v31  ;;  %v1853_v31 = vld [vmem:[#allocation3 + $0x8] sm:$0xf] }
 0x17e   :  { %1372 = vperm.xlu1 %7976, %v1325_v61   ;;  %v1077_v7 = vpop.permute.xlu0 %1076 }
 0x17f   :  { %721 = vperm.xlu0 %7975, %v662_v63   ;;  %v1154_v60 = vmul.f32 %v8981_v6, %v1077_v7 }
 0x181   :  { %v8991_v16 = vpop.permute.xlu1 %292 }
 0x182   :  { %1111 = vperm.xlu1 %7976, %v263_v35   ;;  %v8993_v18 = vpop.permute.xlu0 %425  ;;  %v504_v35 = vadd.f32 %v488_v20, %v355_v19 }
 0x183   :  { %327 = vperm.xlu0 %7975, %v662_v63  }
 0x184   :  { %v637_v40 = vadd.f32 %v621_v30, %v504_v35 }
 0x185   :  { %v9006_v34 = vpop.permute.xlu1 %947 }
 0x186   :  { %460 = vperm.xlu1 %7976, %v9000_v24   ;;  %v1338_v14 = vpop.permute.xlu0 %1337  ;;  %v770_v52 = vadd.f32 %v754_v17, %v637_v40  ;;  %v9059_v40 = vld [vmem:[#allocation3 + $0x4] sm:$0x1] }
 0x187   :  { %v1419_v37 = vmul.f32 %v9002_v27, %v1338_v14  ;;  %982 = vperm.xlu0 %7975, %v8956_v48   ;;  %v1856_v14 = vld [vmem:[#allocation3 + $0xc] sm:$0x1] }
 0x188   :  { %v903_v59 = vadd.f32 %v887_v22, %v770_v52  ;;  %v2208_v22 = vld [vmem:[#allocation3] sm:$0xe] }
 0x189   :  { %v1435_v43 = vadd.f32 %v1419_v37, %v1302_v36  ;;  %v9017_v46 = vpop.permute.xlu1 %686  ;;  %v7384_v42 = vrot.slane %v2208_v22, 9 }
 0x18a   :  { %854 = vperm.xlu1 %7976, %v9000_v24   ;;  %v1210_v49 = vpop.permute.xlu0 %1209  ;;  %v1036_v2 = vadd.f32 %v1020_v29, %v903_v59 }
 0x18b   :  { %v1458_v55 = vadd.f32 %v9013_v39, %v1435_v43  ;;  %1244 = vperm.xlu0 %7975, %v8939_v38   ;;  %v1287_v51 = vmul.f32 %v8988_v12, %v1210_v49  ;;  %v9034_v38 = vld [vmem:[#allocation3] sm:$0xf]  ;;  %v505_v43 = vadd.f32 %v489_v13, %v356_v11 }
 0x18c   :  { %11891 = vst [vmem:[#allocation31_spill] sm:$0xff] %v9034_v38  ;;  %v1170_v9 = vadd.f32 %v1154_v60, %v1036_v2  ;;  %v1988_v19 = vshll.u32 %v9034_v38, 16  ;;  %v888_v2 = vmul.f32 %v8970_v57, %v8968_v56 }
 0x18d   :  { %v1474_v61 = vmax.f32 %v1458_v55, 0.0  ;;  %v9026_v41 = vpop.permute.xlu1 %558 }
 0x18e   :  { %593 = vperm.xlu1 %7976, %v9023_v58   ;;  %v9029_v0 = vpop.permute.xlu0 %1081  ;;  %v1303_v23 = vadd.f32 %v1287_v51, %v1170_v9  ;;  %v1990_v29 = vrot.slane %v1988_v19, 5  ;;  %v1537_v51 = vld [vmem:[#allocation3 + $0x58] sm:$0x1]  ;;  %v1599_v9 = vld [vmem:[#allocation3 + $0x5c] sm:$0x1] }
 0x18f   :  { %v7814_v4 = vpack.c.bf16 %v1474_v61, %v1474_v61  ;;  %1116 = vperm.xlu0 %7975, %v662_v63   ;;  %v1985_v63 = vshrl.u32 %v9034_v38, 16  ;;  %v638_v61 = vadd.f32 %v622_v25, %v505_v43  ;;  %v1600_v56 = vsel %vm8878_vm8, 0, %v1599_v9 }
 0x190   :  { %1601 = vst [vmem:[#allocation3 + $0x5c] sm:$0x1] %v1600_v56  ;;  %v624_v9 = vmul.f32 %v8964_v53, %v9026_v41  ;;  %v9127_v56 = vld [vmem:[#allocation2 + $0xf0] sm:$0xff] }
 0x191   :  { %v1691_v7 = vshrl.u32 %v7814_v4, 16  ;;  %v9038_v10 = vpop.permute.xlu1 %819  ;;  %v1694_v21 = vshll.u32 %v7814_v4, 16  ;;  %v1987_v52 = vrot.slane %v1985_v63, 4  ;;  %v2261_v4 = vrot.slane %v9059_v40, 5 }
 0x192   :  { %332 = vperm.xlu1 %7976, %v9032_v5   ;;  %v1343_v15 = vpop.permute.xlu0 %1342  ;;  %v1021_v63 = vmul.f32 %v8976_v62, %v9006_v34  ;;  %v1994_v34 = vshll.u32 %v9059_v40, 16 }
 0x193   :  { %v1693_v20 = vrot.slane %v1691_v7, 7  ;;  %v1420_v30 = vmul.f32 %v9002_v27, %v1343_v15  ;;  %465 = vperm.xlu0 %7975, %v9036_v8   ;;  %v771_v15 = vadd.f32 %v755_v33, %v638_v61  ;;  %v358_v33 = vmul.f32 %v8950_v44, %v8991_v16 }
 0x195   :  { %v1696_v35 = vor.u32 %v1694_v21, %v1693_v20  ;;  %v1697_v17 = vrot.slane %v1693_v20, 4  ;;  %v1436_v36 = vadd.f32 %v1420_v30, %v1303_v23  ;;  %v9057_v37 = vpop.permute.xlu1 %691  ;;  %v1991_v20 = vor.u32 %v1990_v29, %v1987_v52  ;;  %v9093_v30 = vld [vmem:[#allocation2 + $0xe2] sm:$0xff] }
 0x196   :  { %987 = vperm.xlu1 %7976, %v9023_v58   ;;  %v1215_v49 = vpop.permute.xlu0 %1214  ;;  %v490_v21 = vmul.f32 %v8954_v47, %v8959_v50  ;;  %v904_v25 = vadd.f32 %v888_v2, %v771_v15  ;;  %v756_v2 = vmul.f32 %v8966_v54, %v9017_v46 }
 0x197   :  { %v1854_v55 = vsel %vm9053_vm10, %v1696_v35, %v1853_v31  ;;  %v1857_v59 = vsel %vm8854_vm6, %v1697_v17, %v1856_v14  ;;  %v1459_v60 = vadd.f32 %v9013_v39, %v1436_v36  ;;  %1377 = vperm.xlu0 %7975, %v8956_v48   ;;  %v1538_v48 = vsel %vm8854_vm6, 0, %v1537_v51 }
 0x198   :  { %1855 = vst [vmem:[#allocation3 + $0x8] sm:$0xf] %v1854_v55  ;;  %1858 = vst [vmem:[#allocation3 + $0xc] sm:$0x1] %v1857_v59  ;;  %v1155_v31 = vmul.f32 %v8981_v6, %v9029_v0  ;;  %v9100_v14 = vsel %vm9077_vm13, %v7384_v42, %v2261_v4  ;;  %v357_v35 = vmul.f32 %v8950_v44, %v8952_v45  ;;  %v9108_v40 = vrot.slane %v1991_v20, 4 }
 0x199   :  { %v1475_v7 = vmax.f32 %v1459_v60, 0.0  ;;  %v9073_v11 = vpop.permute.xlu1 %297  ;;  %1539 = vst [vmem:[#allocation3 + $0x58] sm:$0x1] %v1538_v48  ;;  %v1037_v36 = vadd.f32 %v1021_v63, %v904_v25  ;;  %v1288_v22 = vmul.f32 %v8988_v12, %v1215_v49  ;;  %v1859_v49 = vld [vmem:[#allocation3 + $0x10] sm:$0xf]  ;;  %v9121_v51 = vrot.slane %v1994_v34, 5 }
 0x19a   :  { %726 = vperm.xlu1 %7976, %v9032_v5   ;;  %v9088_v19 = vpop.permute.xlu0 %430  ;;  %v506_v43 = vadd.f32 %v490_v21, %v357_v35  ;;  %v1862_v59 = vld [vmem:[#allocation3 + $0x14] sm:$0x1]  ;;  %v757_v34 = vmul.f32 %v8966_v54, %v9057_v37 }
 0x19b   :  { %v7815_v23 = vpack.c.bf16 %v1475_v7, %v1475_v7  ;;  %1249 = vperm.xlu0 %7975, %v9000_v24   ;;  %v623_v24 = vmul.f32 %v8964_v53, %v8979_v3  ;;  %v491_v3 = vmul.f32 %v8954_v47, %v8993_v18  ;;  %v1171_v55 = vadd.f32 %v1155_v31, %v1037_v36 }
 0x19c   :  { %v889_v31 = vmul.f32 %v8970_v57, %v9038_v10 }
 0x19d   :  { %v1699_v17 = vshrl.u32 %v7815_v23, 16  ;;  %v953_v50 = vpop.permute.xlu1 %952  ;;  %v1702_v52 = vshll.u32 %v7815_v23, 16  ;;  %v1304_v18 = vadd.f32 %v1288_v22, %v1171_v55  ;;  %v507_v25 = vadd.f32 %v491_v3, %v358_v33 }
 0x19e   :  { %598 = vperm.xlu1 %7976, %v9093_v30   ;;  %v825_v0 = vpop.permute.xlu0 %824 }
 0x19f   :  { %v1701_v45 = vrot.slane %v1699_v17, 7  ;;  %1121 = vperm.xlu0 %7975, %v9032_v5   ;;  %v9113_v29 = vld [vmem:[#allocation3 + $0x8] sm:$0xf]  ;;  %v639_v5 = vadd.f32 %v623_v24, %v506_v43  ;;  %v1966_v63 = vld [vmem:[#allocation3 + $0xc] sm:$0x1]  ;;  %v359_v24 = vmul.f32 %v8950_v44, %v9073_v11  ;;  %v640_v10 = vadd.f32 %v624_v9, %v507_v25 }
 0x1a0   :  { %11896 = vst [vmem:[#allocation32_spill] sm:$0xff] %v9113_v29  ;;  %v1999_v60 = vshrl.u32 %v9113_v29, 16  ;;  %v2002_v61 = vshll.u32 %v9113_v29, 16  ;;  %v2209_v23 = vld [vmem:[#allocation3 + $0x8] sm:$0xe]  ;;  %v1022_v11 = vmul.f32 %v8976_v62, %v953_v50  ;;  %v2008_v55 = vshll.u32 %v1966_v63, 16 }
 0x1a1   :  { %v1704_v16 = vor.u32 %v1702_v52, %v1701_v45  ;;  %v1705_v42 = vrot.slane %v1701_v45, 4  ;;  %v1348_v4 = vpop.permute.xlu1 %1347  ;;  %v772_v17 = vadd.f32 %v756_v2, %v639_v5  ;;  %v7385_v33 = vrot.slane %v2209_v23, 9  ;;  %v9154_v52 = vld [vmem:[#allocation3 + $0x8] sm:$0xf] }
 0x1a2   :  { %v1421_v7 = vmul.f32 %v9002_v27, %v1348_v4  ;;  %859 = vperm.xlu1 %7976, %v9036_v8   ;;  %v564_v48 = vpop.permute.xlu0 %563  ;;  %v2001_v20 = vrot.slane %v1999_v60, 4  ;;  %v2004_v21 = vrot.slane %v2002_v61, 5  ;;  %v2265_v45 = vrot.slane %v1966_v63, 5  ;;  %v1602_v4 = vld [vmem:[#allocation3 + $0x64] sm:$0x1] }
 0x1a3   :  { %v1860_v15 = vsel %vm9053_vm10, %v1704_v16, %v1859_v49  ;;  %v1863_v41 = vsel %vm8854_vm6, %v1705_v42, %v1862_v59  ;;  %1382 = vperm.xlu0 %7975, %v9023_v58   ;;  %v492_v58 = vmul.f32 %v8954_v47, %v9088_v19  ;;  %v890_v19 = vmul.f32 %v8970_v57, %v825_v0  ;;  %v1531_v49 = vld [vmem:[#allocation3 + $0x48] sm:$0x1]  ;;  %v9160_v16 = vld [vmem:[#allocation2 + $0xf1] sm:$0xff]  ;;  %v1540_v42 = vld [vmem:[#allocation3 + $0x60] sm:$0x1] }
 0x1a4   :  { %1861 = vst [vmem:[#allocation3 + $0x10] sm:$0xf] %v1860_v15  ;;  %1864 = vst [vmem:[#allocation3 + $0x14] sm:$0x1] %v1863_v41  ;;  %v1437_v35 = vadd.f32 %v1421_v7, %v1304_v18  ;;  %v2005_v3 = vor.u32 %v2004_v21, %v2001_v20  ;;  %v905_v59 = vadd.f32 %v889_v31, %v772_v17  ;;  %v2356_v50 = vshrl.u32 %v9154_v52, 16 }
 0x1a5   :  { %v1087_v36 = vpop.permute.xlu1 %1086  ;;  %v773_v60 = vadd.f32 %v757_v34, %v640_v10  ;;  %v625_v2 = vmul.f32 %v8964_v53, %v564_v48  ;;  %v508_v5 = vadd.f32 %v492_v58, %v359_v24  ;;  %v9163_v18 = vld [vmem:[#allocation3 + $0xc] sm:$0x1]  ;;  %v1603_v0 = vsel %vm8878_vm8, 0, %v1602_v4  ;;  %v2579_v58 = vld [vmem:[#allocation3 + $0x8] sm:$0xe] }
 0x1a6   :  { %v1460_v43 = vadd.f32 %v9013_v39, %v1437_v35  ;;  %731 = vperm.xlu1 %7976, %v9127_v56   ;;  %v303_v37 = vpop.permute.xlu0 %302  ;;  %v9172_v15 = vsel %vm9077_vm13, %v7385_v33, %v2265_v45  ;;  %v2359_v41 = vshll.u32 %v9154_v52, 16  ;;  %1604 = vst [vmem:[#allocation3 + $0x64] sm:$0x1] %v1603_v0  ;;  %v1532_v63 = vsel %vm8854_vm6, 0, %v1531_v49 }
 0x1a7   :  { %1254 = vperm.xlu0 %7975, %v9036_v8   ;;  %v1541_v8 = vsel %vm8854_vm6, 0, %v1540_v42  ;;  %v1038_v20 = vadd.f32 %v1022_v11, %v905_v59  ;;  %v906_v21 = vadd.f32 %v890_v19, %v773_v60  ;;  %v2006_v23 = vrot.slane %v2005_v3, 4  ;;  %1533 = vst [vmem:[#allocation3 + $0x48] sm:$0x1] %v1532_v63  ;;  %v1868_v42 = vld [vmem:[#allocation3 + $0x1c] sm:$0x1] }
 0x1a8   :  { %v1476_v61 = vmax.f32 %v1460_v43, 0.0  ;;  %1542 = vst [vmem:[#allocation3 + $0x60] sm:$0x1] %v1541_v8  ;;  %v2010_v25 = vrot.slane %v2008_v55, 5  ;;  %v9180_v35 = vadd.f32 %v625_v2, %v508_v5  ;;  %v2365_v17 = vshll.u32 %v9163_v18, 16 }
 0x1a9   :  { %v436_v9 = vpop.permute.xlu1 %435  ;;  %v2629_v24 = vrot.slane %v9163_v18, 5  ;;  %v1156_v10 = vmul.f32 %v8981_v6, %v1087_v36  ;;  %v2358_v19 = vrot.slane %v2356_v50, 4  ;;  %v1865_v2 = vld [vmem:[#allocation3 + $0x18] sm:$0xf]  ;;  %v360_v36 = vmul.f32 %v8950_v44, %v303_v37 }
 0x1aa   :  { %v7816_v7 = vpack.c.bf16 %v1476_v61, %v1476_v61  ;;  %337 = vperm.xlu1 %7976, %v9127_v56   ;;  %v958_v48 = vpop.permute.xlu0 %957  ;;  %v2361_v61 = vrot.slane %v2359_v41, 5  ;;  %v493_v4 = vmul.f32 %v8954_v47, %v436_v9  ;;  %v2011_v5 = vsel %vm9131_vm0, %v2006_v23, %v2010_v25 }
 0x1ab   :  { %470 = vperm.xlu0 %7975, %v9160_v16   ;;  %v9178_v31 = vld [vmem:[#allocation3 + $0x10] sm:$0xf]  ;;  %v2708_v33 = vld [vmem:[#allocation3 + $0x14] sm:$0x1]  ;;  %v7400_v50 = vrot.slane %v2579_v58, 9  ;;  %v1023_v0 = vmul.f32 %v8976_v62, %v958_v48 }
 0x1ac   :  { %v1707_v34 = vshrl.u32 %v7816_v7, 16  ;;  %v2370_v11 = vshrl.u32 %v9178_v31, 16  ;;  %v1710_v55 = vshll.u32 %v7816_v7, 16  ;;  %v2948_v59 = vld [vmem:[#allocation3 + $0x10] sm:$0xe]  ;;  %v2373_v60 = vshll.u32 %v9178_v31, 16 }
 0x1ad   :  { %v697_v43 = vpop.permute.xlu1 %696  ;;  %v9196_v7 = vld [vmem:[#allocation2 + $0xf2] sm:$0xff]  ;;  %v7416_v45 = vrot.slane %v2948_v59, 9  ;;  %v2998_v1 = vrot.slane %v2708_v33, 5  ;;  %v2362_v58 = vor.u32 %v2361_v61, %v2358_v19 }
 0x1ae   :  { %v1709_v3 = vrot.slane %v1707_v34, 7  ;;  %992 = vperm.xlu1 %7976, %v9093_v30   ;;  %v1220_v49 = vpop.permute.xlu0 %1219  ;;  %v2372_v63 = vrot.slane %v2370_v11, 4  ;;  %v2734_v34 = vshll.u32 %v2708_v33, 16  ;;  %v2375_v37 = vrot.slane %v2373_v60, 5  ;;  %v2340_v48 = vld [vmem:[#allocation3 + $0x14] sm:$0x1] }
 0x1af   :  { %864 = vperm.xlu0 %7975, %v9160_v16   ;;  %v1289_v23 = vmul.f32 %v8988_v12, %v1220_v49  ;;  %v1172_v11 = vadd.f32 %v1156_v10, %v1038_v20  ;;  %v11899_v33 = vsel %vm9131_vm0, %v9108_v40, %v9121_v51  ;;  %v509_v49 = vadd.f32 %v493_v4, %v360_v36  ;;  %v2580_v10 = vld [vmem:[#allocation3 + $0x10] sm:$0xe] }
 0x1b0   :  { %v1712_v18 = vor.u32 %v1710_v55, %v1709_v3  ;;  %v1713_v8 = vrot.slane %v1709_v3, 4  ;;  %v9210_v3 = vcombine.low %v11899_v33, %v2011_v5  ;;  %v9212_v55 = vrot.slane %v2365_v17, 5  ;;  %v9221_v59 = vld [vmem:[#allocation3 + $0x10] sm:$0xf] }
 0x1b1   :  { %v569_v41 = vpop.permute.xlu1 %568  ;;  %v758_v19 = vmul.f32 %v8966_v54, %v697_v43  ;;  %v2376_v20 = vor.u32 %v2375_v37, %v2372_v63  ;;  %v1039_v51 = vadd.f32 %v1023_v0, %v906_v21  ;;  %v9225_v17 = vrot.slane %v2734_v34, 5  ;;  %v9234_v5 = vld [vmem:[#allocation3 + $0x10] sm:$0xf] }
 0x1b2   :  { %v1866_v9 = vsel %vm9053_vm10, %v1712_v18, %v1865_v2  ;;  %v1869_v22 = vsel %vm8854_vm6, %v1713_v8, %v1868_v42  ;;  %1387 = vperm.xlu1 %7976, %v9093_v30   ;;  %v1092_v25 = vpop.permute.xlu0 %1091  ;;  %v9216_v30 = vsel %vm9077_vm13, %v7400_v50, %v2629_v24  ;;  %v9229_v24 = vsel %vm9077_vm13, %v7416_v45, %v2998_v1  ;;  %v9238_v50 = vld [vmem:[#allocation2 + $0x101] sm:$0xff] }
 0x1b3   :  { %1867 = vst [vmem:[#allocation3 + $0x18] sm:$0xf] %v1866_v9  ;;  %1870 = vst [vmem:[#allocation3 + $0x1c] sm:$0x1] %v1869_v22  ;;  %603 = vperm.xlu0 %7975, %v9196_v7   ;;  %v9219_v22 = vld [vmem:[#allocation2 + $0x100] sm:$0xff]  ;;  %v2379_v61 = vshll.u32 %v2340_v48, 16  ;;  %v1305_v2 = vadd.f32 %v1289_v23, %v1172_v11  ;;  %v626_v43 = vmul.f32 %v8964_v53, %v569_v41 }
 0x1b4   :  { %11900 = vst [vmem:[#allocation33_spill] sm:$0xff] %v9216_v30  ;;  %v1157_v42 = vmul.f32 %v8981_v6, %v1092_v25  ;;  %v2363_v4 = vrot.slane %v2362_v58, 4  ;;  %11901 = vst [vmem:[#allocation34_spill] sm:$0xff] %v9234_v5  ;;  %v2633_v1 = vrot.slane %v2340_v48, 5  ;;  %v7401_v45 = vrot.slane %v2580_v10, 9 }
 0x1b5   :  { %v830_v60 = vpop.permute.xlu1 %829  ;;  %v2725_v18 = vshrl.u32 %v9221_v59, 16  ;;  %v774_v8 = vadd.f32 %v758_v19, %v9180_v35  ;;  %v2377_v0 = vrot.slane %v2376_v20, 4  ;;  %v2728_v63 = vshll.u32 %v9221_v59, 16 }
 0x1b6   :  { %1126 = vperm.xlu1 %7976, %v9127_v56   ;;  %v1353_v36 = vpop.permute.xlu0 %1352  ;;  %v2381_v37 = vrot.slane %v2379_v61, 5  ;;  %v2013_v9 = vshrl.u32 %v9234_v5, 16  ;;  %v2016_v23 = vshll.u32 %v9234_v5, 16  ;;  %v642_v25 = vadd.f32 %v626_v43, %v509_v49 }
 0x1b7   :  { %v1422_v21 = vmul.f32 %v9002_v27, %v1353_v36  ;;  %342 = vperm.xlu0 %7975, %v9219_v22   ;;  %v1173_v48 = vadd.f32 %v1157_v42, %v1039_v51  ;;  %v891_v58 = vmul.f32 %v8970_v57, %v830_v60  ;;  %v2368_v19 = vsel %vm9131_vm0, %v2363_v4, %v9212_v55 }
 0x1b8   :  { %v9260_v51 = vsel %vm9077_vm13, %v7401_v45, %v2633_v1  ;;  %v2727_v60 = vrot.slane %v2725_v18, 4  ;;  %v2730_v43 = vrot.slane %v2728_v63, 5  ;;  %v9276_v63 = vld [vmem:[#allocation3 + $0x14] sm:$0x1] }
 0x1b9   :  { %v1438_v41 = vadd.f32 %v1422_v21, %v1305_v2  ;;  %v702_v34 = vpop.permute.xlu1 %701  ;;  %11902 = vst [vmem:[#allocation35_spill] sm:$0xff] %v9260_v51  ;;  %v2382_v2 = vsel %vm9131_vm0, %v2377_v0, %v2381_v37  ;;  %v9269_v40 = vadd.f32 %v891_v58, %v774_v8  ;;  %v9278_v37 = vld [vmem:[#allocation3 + $0x10] sm:$0xe] }
 0x1ba   :  { %475 = vperm.xlu1 %7976, %v9238_v50   ;;  %v1225_v35 = vpop.permute.xlu0 %1224  ;;  %v9249_v11 = vld [vmem:[#allocation3 + $0x1c] sm:$0x1]  ;;  %v2949_v33 = vld [vmem:[#allocation3 + $0x18] sm:$0xe]  ;;  %v2731_v18 = vor.u32 %v2730_v43, %v2727_v60 }
 0x1bb   :  { %v9254_v20 = vld [vmem:[#allocation3 + $0x18] sm:$0xf]  ;;  %v1461_v10 = vadd.f32 %v9013_v39, %v1438_v41  ;;  %997 = vperm.xlu0 %7975, %v9196_v7   ;;  %v7417_v49 = vrot.slane %v2949_v33, 9  ;;  %v3002_v61 = vrot.slane %v9249_v11, 5  ;;  %v2015_v41 = vrot.slane %v2013_v9, 4 }
 0x1bc   :  { %v2739_v55 = vshrl.u32 %v9254_v20, 16  ;;  %v2742_v4 = vshll.u32 %v9254_v20, 16  ;;  %v9267_v21 = vld [vmem:[#allocation3 + $0x18] sm:$0xf]  ;;  %v2018_v33 = vrot.slane %v2016_v23, 5  ;;  %v759_v9 = vmul.f32 %v8966_v54, %v702_v34  ;;  %v9283_v23 = vld [vmem:[#allocation2 + $0x102] sm:$0xff] }
 0x1bd   :  { %v1477_v42 = vmax.f32 %v1461_v10, 0.0  ;;  %v308_v36 = vpop.permute.xlu1 %307  ;;  %11903 = vst [vmem:[#allocation36_spill] sm:$0xff] %v9267_v21  ;;  %v3003_v45 = vsel %vm9077_vm13, %v7417_v49, %v3002_v61  ;;  %v1290_v49 = vmul.f32 %v8988_v12, %v1225_v35  ;;  %v9286_v61 = vcombine.low %v2368_v19, %v2382_v2 }
 0x1be   :  { %736 = vperm.xlu1 %7976, %v9219_v22   ;;  %v441_v1 = vpop.permute.xlu0 %440  ;;  %v2741_v0 = vrot.slane %v2739_v55, 4  ;;  %v7496_v8 = vcombine.low %v9229_v24, %v3003_v45  ;;  %v2744_v58 = vrot.slane %v2742_v4, 5  ;;  %v2027_v55 = vshrl.u32 %v9267_v21, 16 }
 0x1bf   :  { %v7817_v10 = vpack.c.bf16 %v1477_v42, %v1477_v42  ;;  %1259 = vperm.xlu0 %7975, %v9160_v16   ;;  %v2019_v29 = vor.u32 %v2018_v33, %v2015_v41  ;;  %v2022_v34 = vshll.u32 %v9276_v63, 16  ;;  %v2030_v35 = vshll.u32 %v9267_v21, 16  ;;  %v1871_v41 = vld [vmem:[#allocation3 + $0x20] sm:$0xf]  ;;  %v1874_v33 = vld [vmem:[#allocation3 + $0x24] sm:$0x1] }
 0x1c0   :  { %7514 = vmatprep.mubr.msk.bf16.mxu0 %vm3436_vm2, %v7496_v8  ;;  %v2745_v4 = vor.u32 %v2744_v58, %v2741_v0  ;;  %v2029_v45 = vrot.slane %v2027_v55, 4  ;;  %v2269_v19 = vrot.slane %v9276_v63, 5  ;;  %v775_v43 = vadd.f32 %v759_v9, %v642_v25  ;;  %v1968_v25 = vld [vmem:[#allocation3 + $0x1c] sm:$0x1] }
 0x1c1   :  { %v1715_v56 = vshrl.u32 %v7817_v10, 16  ;;  %v963_v42 = vpop.permute.xlu1 %962  ;;  %v1718_v2 = vshll.u32 %v7817_v10, 16  ;;  %v2748_v8 = vshll.u32 %v9249_v11, 16  ;;  %v1306_v38 = vadd.f32 %v1290_v49, %v1173_v48  ;;  %v2211_v49 = vld [vmem:[#allocation3 + $0x18] sm:$0xe] }
 0x1c2   :  { %608 = vperm.xlu1 %7976, %v9283_v23   ;;  %v835_v24 = vpop.permute.xlu0 %834  ;;  %v2732_v51 = vrot.slane %v2731_v18, 4  ;;  %v2032_v0 = vrot.slane %v2030_v35, 5  ;;  %v361_v30 = vmul.f32 %v8950_v44, %v308_v36  ;;  %v2746_v10 = vrot.slane %v2745_v4, 4 }
 0x1c3   :  { %v1717_v60 = vrot.slane %v1715_v56, 7  ;;  %1131 = vperm.xlu0 %7975, %v9219_v22   ;;  %v494_v56 = vmul.f32 %v8954_v47, %v441_v1  ;;  %v9303_v48 = vrot.slane %v2019_v29, 4  ;;  %v2750_v36 = vrot.slane %v2748_v8, 5  ;;  %v9311_v1 = vld [vmem:[#allocation2 + $0x110] sm:$0xff] }
 0x1c4   :  { %v2033_v9 = vor.u32 %v2032_v0, %v2029_v45  ;;  %v1024_v47 = vmul.f32 %v8976_v62, %v963_v42  ;;  %v2737_v29 = vsel %vm9131_vm0, %v2732_v51, %v9225_v17  ;;  %v2024_v45 = vrot.slane %v2022_v34, 5 }
 0x1c5   :  { %v1720_v58 = vor.u32 %v1718_v2, %v1717_v60  ;;  %v1721_v55 = vrot.slane %v1717_v60, 4  ;;  %v1358_v63 = vpop.permute.xlu1 %1357  ;;  %v2036_v35 = vshll.u32 %v1968_v25, 16  ;;  %v9316_v60 = vld [vmem:[#allocation3 + $0x18] sm:$0xf]  ;;  %v510_v2 = vadd.f32 %v494_v56, %v361_v30  ;;  %v1593_v56 = vld [vmem:[#allocation3 + $0x4c] sm:$0x1] }
 0x1c6   :  { %v1423_v11 = vmul.f32 %v9002_v27, %v1358_v63  ;;  %869 = vperm.xlu1 %7976, %v9238_v50   ;;  %v574_v22 = vpop.permute.xlu0 %573  ;;  %11904 = vst [vmem:[#allocation37_spill] sm:$0xff] %v9316_v60  ;;  %v892_v8 = vmul.f32 %v8970_v57, %v835_v24  ;;  %v7387_v42 = vrot.slane %v2211_v49, 9  ;;  %v2751_v17 = vsel %vm9131_vm0, %v2746_v10, %v2750_v36 }
 0x1c7   :  { %v1872_v18 = vsel %vm9053_vm10, %v1720_v58, %v1871_v41  ;;  %v1875_v44 = vsel %vm8854_vm6, %v1721_v55, %v1874_v33  ;;  %1392 = vperm.xlu0 %7975, %v9196_v7   ;;  %v2273_v33 = vrot.slane %v1968_v25, 5  ;;  %v9319_v7 = vld [vmem:[#allocation3 + $0x1c] sm:$0x1]  ;;  %v2025_v51 = vsel %vm9131_vm0, %v9303_v48, %v2024_v45  ;;  %v9333_v25 = vld [vmem:[#allocation2 + $0x111] sm:$0xff]  ;;  %v2581_v45 = vld [vmem:[#allocation3 + $0x18] sm:$0xe] }
 0x1c8   :  { %1873 = vst [vmem:[#allocation3 + $0x20] sm:$0xf] %v1872_v18  ;;  %1876 = vst [vmem:[#allocation3 + $0x24] sm:$0x1] %v1875_v44  ;;  %v1439_v4 = vadd.f32 %v1423_v11, %v1306_v38  ;;  %v2034_v30 = vrot.slane %v2033_v9, 4  ;;  %v1040_v34 = vadd.f32 %v1024_v47, %v9269_v40  ;;  %v627_v24 = vmul.f32 %v8964_v53, %v574_v22 }
 0x1c9   :  { %v1097_v41 = vpop.permute.xlu1 %1096  ;;  %v2384_v58 = vshrl.u32 %v9316_v60, 16  ;;  %v2387_v55 = vshll.u32 %v9316_v60, 16  ;;  %v2038_v11 = vrot.slane %v2036_v35, 5  ;;  %v11905_v10 = vrot.slane %v9278_v37, 9 }
 0x1ca   :  { %v1462_v0 = vadd.f32 %v9013_v39, %v1439_v4  ;;  %741 = vperm.xlu1 %7976, %v9311_v1   ;;  %v968_v38 = vpop.permute.xlu0 %967  ;;  %v2393_v40 = vshll.u32 %v9319_v7, 16  ;;  %v908_v53 = vadd.f32 %v892_v8, %v775_v43  ;;  %v9343_v9 = vcombine.low %v2737_v29, %v2751_v17 }
 0x1cb   :  { %1264 = vperm.xlu0 %7975, %v9238_v50   ;;  %v9339_v48 = vsel %vm9077_vm13, %v11905_v10, %v2269_v19  ;;  %v1158_v50 = vmul.f32 %v8981_v6, %v1097_v41  ;;  %v9347_v49 = vsel %vm9077_vm13, %v7387_v42, %v2273_v33  ;;  %v1025_v44 = vmul.f32 %v8976_v62, %v968_v38  ;;  %v1877_v42 = vld [vmem:[#allocation3 + $0x28] sm:$0xf] }
 0x1cc   :  { %v1478_v63 = vmax.f32 %v1462_v0, 0.0  ;;  %11906 = vst [vmem:[#allocation38_spill] sm:$0xff] %v9339_v48  ;;  %11907 = vst [vmem:[#allocation39_spill] sm:$0xff] %v9343_v9  ;;  %v2039_v19 = vsel %vm9131_vm0, %v2034_v30, %v2038_v11  ;;  %v1594_v43 = vsel %vm8878_vm8, 0, %v1593_v56  ;;  %v9355_v36 = vadd.f32 %v627_v24, %v510_v2 }
 0x1cd   :  { %v707_v22 = vpop.permute.xlu1 %706  ;;  %11908 = vst [vmem:[#allocation40_spill] sm:$0xff] %v9347_v49  ;;  %v2386_v4 = vrot.slane %v2384_v58, 4  ;;  %v2389_v29 = vrot.slane %v2387_v55, 5  ;;  %1595 = vst [vmem:[#allocation3 + $0x4c] sm:$0x1] %v1594_v43  ;;  %v9364_v41 = vrot.slane %v2393_v40, 5  ;;  %v1174_v33 = vadd.f32 %v1158_v50, %v1040_v34 }
 0x1ce   :  { %v7818_v18 = vpack.c.bf16 %v1478_v63, %v1478_v63  ;;  %347 = vperm.xlu1 %7976, %v9311_v1   ;;  %v1230_v37 = vpop.permute.xlu0 %1229  ;;  %v2637_v2 = vrot.slane %v9319_v7, 5  ;;  %v9367_v38 = vcombine.low %v2025_v51, %v2039_v19  ;;  %v9373_v63 = vadd.f32 %v1025_v44, %v908_v53  ;;  %v1880_v34 = vld [vmem:[#allocation3 + $0x2c] sm:$0x1]  ;;  %v9378_v43 = vld [vmem:[#allocation3 + $0x48] sm:$0xf] }
 0x1cf   :  { %480 = vperm.xlu0 %7975, %v9333_v25   ;;  %v9358_v47 = vld [vmem:[#allocation3 + $0x20] sm:$0xf]  ;;  %v2342_v24 = vld [vmem:[#allocation3 + $0x24] sm:$0x1]  ;;  %v7402_v10 = vrot.slane %v2581_v45, 9  ;;  %v1291_v51 = vmul.f32 %v8988_v12, %v1230_v37  ;;  %v2390_v40 = vor.u32 %v2389_v29, %v2386_v4 }
 0x1d0   :  { %11909 = vst [vmem:[#allocation41_spill] sm:$0xff] %v9358_v47  ;;  %v1723_v35 = vshrl.u32 %v7818_v18, 16  ;;  %11910 = vst [vmem:[#allocation42_spill] sm:$0xff] %v9367_v38  ;;  %v2398_v17 = vshrl.u32 %v9358_v47, 16  ;;  %v2401_v30 = vshll.u32 %v9358_v47, 16  ;;  %v1726_v56 = vshll.u32 %v7818_v18, 16 }
 0x1d1   :  { %v313_v0 = vpop.permute.xlu1 %312  ;;  %v9371_v58 = vld [vmem:[#allocation3 + $0x20] sm:$0xf]  ;;  %v9380_v18 = vld [vmem:[#allocation2 + $0x112] sm:$0xff]  ;;  %v2407_v53 = vshll.u32 %v2342_v24, 16  ;;  %v2641_v45 = vrot.slane %v2342_v24, 5  ;;  %v760_v24 = vmul.f32 %v8966_v54, %v707_v22 }
 0x1d2   :  { %v1725_v55 = vrot.slane %v1723_v35, 7  ;;  %1002 = vperm.xlu1 %7976, %v9283_v23   ;;  %v446_v11 = vpop.permute.xlu0 %445  ;;  %v2582_v7 = vld [vmem:[#allocation3 + $0x20] sm:$0xe]  ;;  %v2400_v50 = vrot.slane %v2398_v17, 4  ;;  %v2403_v19 = vrot.slane %v2401_v30, 5  ;;  %v2753_v44 = vshrl.u32 %v9371_v58, 16 }
 0x1d3   :  { %874 = vperm.xlu0 %7975, %v9333_v25   ;;  %v7403_v21 = vrot.slane %v2582_v7, 9  ;;  %v2756_v12 = vshll.u32 %v9371_v58, 16  ;;  %v2823_v17 = vshrl.u32 %v9378_v43, 16 }
 0x1d4   :  { %v1728_v62 = vor.u32 %v1726_v56, %v1725_v55  ;;  %v1729_v35 = vrot.slane %v1725_v55, 4  ;;  %v2404_v16 = vor.u32 %v2403_v19, %v2400_v50  ;;  %v1307_v55 = vadd.f32 %v1291_v51, %v1174_v33 }
 0x1d5   :  { %v1102_v8 = vpop.permute.xlu1 %1101  ;;  %v2391_v56 = vrot.slane %v2390_v40, 4  ;;  %v2755_v50 = vrot.slane %v2753_v44, 4  ;;  %v2758_v19 = vrot.slane %v2756_v12, 5  ;;  %v2409_v51 = vrot.slane %v2407_v53, 5  ;;  %v9413_v40 = vld [vmem:[#allocation3 + $0x24] sm:$0x1] }
 0x1d6   :  { %v1878_v37 = vsel %vm9053_vm10, %v1728_v62, %v1877_v42  ;;  %v1881_v4 = vsel %vm8854_vm6, %v1729_v35, %v1880_v34  ;;  %1397 = vperm.xlu1 %7976, %v9283_v23   ;;  %v840_v29 = vpop.permute.xlu0 %839  ;;  %v9395_v62 = vsel %vm9077_vm13, %v7402_v10, %v2637_v2  ;;  %v9397_v42 = vld [vmem:[#allocation3 + $0x20] sm:$0xf]  ;;  %v2405_v34 = vrot.slane %v2404_v16, 4  ;;  %v2710_v35 = vld [vmem:[#allocation3 + $0x24] sm:$0x1] }
 0x1d7   :  { %1879 = vst [vmem:[#allocation3 + $0x28] sm:$0xf] %v1878_v37  ;;  %1882 = vst [vmem:[#allocation3 + $0x2c] sm:$0x1] %v1881_v4  ;;  %613 = vperm.xlu0 %7975, %v9380_v18   ;;  %v9399_v23 = vld [vmem:[#allocation9] ss:$0 sm:$0xff]  ;;  %v1159_v22 = vmul.f32 %v8981_v6, %v1102_v8  ;;  %v9408_v2 = vsel %vm9077_vm13, %v7403_v21, %v2641_v45  ;;  %v893_v10 = vmul.f32 %v8970_v57, %v840_v29 }
 0x1d8   :  { %11911 = vst [vmem:[#allocation43_spill] sm:$0xff] %v9395_v62  ;;  %11912 = vst [vmem:[#allocation44_spill] sm:$0xff] %v9397_v42  ;;  %v362_v7 = vmul.f32 %v9399_v23, %v313_v0  ;;  %v9402_v37 = vld [vmem:[#allocation9 + $0x1] ss:$0 sm:$0xff]  ;;  %v2041_v44 = vshrl.u32 %v9397_v42, 16  ;;  %v776_v6 = vadd.f32 %v760_v24, %v9355_v36  ;;  %v2762_v57 = vshll.u32 %v2710_v35, 16 }
 0x1d9   :  { %v495_v54 = vmul.f32 %v9402_v37, %v446_v11  ;;  %v1363_v33 = vpop.permute.xlu1 %1362  ;;  %11913 = vst [vmem:[#allocation45_spill] sm:$0xff] %v9408_v2  ;;  %v2044_v11 = vshll.u32 %v9397_v42, 16  ;;  %v667_v8 = vld [vmem:[#allocation2 + $0x120] sm:$0xff]  ;;  %v9421_v53 = vrot.slane %v2823_v17, 4  ;;  %v2410_v45 = vsel %vm9131_vm0, %v2405_v34, %v2409_v51 }
 0x1da   :  { %v1424_v0 = vmul.f32 %v9002_v27, %v1363_v33  ;;  %1136 = vperm.xlu1 %7976, %v9311_v1   ;;  %v579_v16 = vpop.permute.xlu0 %578  ;;  %v2396_v1 = vsel %vm9131_vm0, %v2391_v56, %v9364_v41  ;;  %v2759_v12 = vor.u32 %v2758_v19, %v2755_v50  ;;  %v1175_v36 = vadd.f32 %v1159_v22, %v9373_v63  ;;  %v9446_v22 = vld [vmem:[#allocation3 + $0x20] sm:$0xe] }
 0x1db   :  { %1007 = vperm.xlu0 %7975, %v9380_v18   ;;  %v511_v4 = vadd.f32 %v495_v54, %v362_v7  ;;  %v2050_v35 = vshll.u32 %v9413_v40, 16  ;;  %v9432_v17 = vadd.f32 %v893_v10, %v776_v6  ;;  %v2043_v34 = vrot.slane %v2041_v44, 4  ;;  %v9448_v51 = vld [vmem:[#allocation9 + $0x2] ss:$0 sm:$0xff] }
 0x1dc   :  { %v1440_v27 = vadd.f32 %v1424_v0, %v1307_v55  ;;  %v2046_v7 = vrot.slane %v2044_v11, 5  ;;  %v9440_v63 = vcombine.low %v2396_v1, %v2410_v45  ;;  %v9444_v54 = vrot.slane %v2762_v57, 5  ;;  %v9451_v0 = vld [vmem:[#allocation9 + $0x7] ss:$0 sm:$0xff] }
 0x1dd   :  { %v1235_v29 = vpop.permute.xlu1 %1234  ;;  %v628_v10 = vmul.f32 %v9448_v51, %v579_v16  ;;  %v9456_v6 = vrot.slane %v2759_v12, 4  ;;  %v9460_v30 = vrot.slane %v2050_v35, 5  ;;  %v1883_v35 = vld [vmem:[#allocation3 + $0x30] sm:$0xf] }
 0x1de   :  { %v1463_v55 = vadd.f32 %v9013_v39, %v1440_v27  ;;  %746 = vperm.xlu1 %7976, %v667_v8   ;;  %v318_v33 = vpop.permute.xlu0 %317  ;;  %v9435_v41 = vld [vmem:[#allocation3 + $0x28] sm:$0xf]  ;;  %11915 = vst [vmem:[#allocation47_spill] sm:$0xff] %v9440_v63  ;;  %v1292_v44 = vmul.f32 %v9451_v0, %v1235_v29  ;;  %v9454_v11 = vld [vmem:[#allocation3 + $0x2c] sm:$0x1]  ;;  %v2047_v16 = vor.u32 %v2046_v7, %v2043_v34  ;;  %v7388_v29 = vrot.slane %v9446_v22, 9 }
 0x1df   :  { %v9437_v56 = vld [vmem:[#allocation3 + $0x28] sm:$0xf]  ;;  %1269 = vperm.xlu0 %7975, %v9333_v25   ;;  %v2767_v50 = vshrl.u32 %v9435_v41, 16  ;;  %v2770_v19 = vshll.u32 %v9435_v41, 16  ;;  %11916 = vst [vmem:[#allocation48_spill] sm:$0xff] %v9454_v11  ;;  %v2776_v5 = vshll.u32 %v9454_v11, 16  ;;  %v9465_v62 = vadd.f32 %v628_v10, %v511_v4 }
 0x1e0   :  { %11914 = vst [vmem:[#allocation46_spill] sm:$0xff] %v9437_v56  ;;  %v1479_v39 = vmax.f32 %v1463_v55, 0.0  ;;  %v800_v25 = vld [vmem:[#allocation2 + $0x121] sm:$0xff]  ;;  %v2055_v45 = vshrl.u32 %v9437_v56, 16  ;;  %v2058_v55 = vshll.u32 %v9437_v56, 16  ;;  %v1308_v7 = vadd.f32 %v1292_v44, %v1175_v36 }
 0x1e1   :  { %v451_v27 = vpop.permute.xlu1 %450  ;;  %v2769_v1 = vrot.slane %v2767_v50, 4  ;;  %v2772_v57 = vrot.slane %v2770_v19, 5  ;;  %v2277_v50 = vrot.slane %v9413_v40, 5  ;;  %v9467_v47 = vld [vmem:[#allocation3 + $0x2c] sm:$0x1]  ;;  %v363_v22 = vmul.f32 %v9399_v23, %v318_v33 }
 0x1e2   :  { %v7819_v24 = vpack.c.bf16 %v1479_v39, %v1479_v39  ;;  %1141 = vperm.xlu1 %7976, %v667_v8   ;;  %v973_v21 = vpop.permute.xlu0 %972  ;;  %v2057_v12 = vrot.slane %v2055_v45, 4  ;;  %v2060_v2 = vrot.slane %v2058_v55, 5  ;;  %v11917_v8 = vshll.u32 %v9378_v43, 16  ;;  %v9478_v4 = vld [vmem:[#allocation3 + $0x28] sm:$0xe] }
 0x1e3   :  { %879 = vperm.xlu0 %7975, %v800_v25   ;;  %v2773_v63 = vor.u32 %v2772_v57, %v2769_v1  ;;  %v496_v57 = vmul.f32 %v9402_v37, %v451_v27  ;;  %v9482_v55 = vrot.slane %v2047_v16, 4  ;;  %v9484_v36 = vld [vmem:[#allocation3 + $0x28] sm:$0xf]  ;;  %v1886_v33 = vld [vmem:[#allocation3 + $0x34] sm:$0x1]  ;;  %v2064_v27 = vshll.u32 %v9467_v47, 16 }
 0x1e4   :  { %v1731_v19 = vshrl.u32 %v7819_v24, 16  ;;  %v9471_v34 = vrot.slane %v11917_v8, 5  ;;  %v2061_v45 = vor.u32 %v2060_v2, %v2057_v12  ;;  %v1734_v1 = vshll.u32 %v7819_v24, 16  ;;  %v9486_v44 = vld [vmem:[#allocation9 + $0x5] ss:$0 sm:$0xff] }
 0x1e5   :  { %v712_v39 = vpop.permute.xlu1 %711  ;;  %v1026_v8 = vmul.f32 %v9486_v44, %v973_v21  ;;  %v9489_v40 = vld [vmem:[#allocation9 + $0x8] ss:$0 sm:$0xff]  ;;  %v2778_v12 = vrot.slane %v2776_v5, 5  ;;  %v2774_v11 = vrot.slane %v2773_v63, 4  ;;  %v7389_v60 = vrot.slane %v9478_v4, 9 }
 0x1e6   :  { %v1733_v10 = vrot.slane %v1731_v19, 7  ;;  %1402 = vperm.xlu1 %7976, %v9380_v18   ;;  %v1368_v43 = vpop.permute.xlu0 %1367  ;;  %v933_v24 = vld [vmem:[#allocation2 + $0x122] sm:$0xff]  ;;  %v8007_v18 = vld [vmem:[#allocation12] sm:$0xff]   ;;  %v2062_v38 = vrot.slane %v2061_v45, 4  ;;  %v2412_v21 = vshrl.u32 %v9484_v36, 16  ;;  %v2415_v9 = vshll.u32 %v9484_v36, 16 }
 0x1e7   :  { %v1425_v2 = vmul.f32 %v9489_v40, %v1368_v43  ;;  %1274 = vperm.xlu0 %7975, %v800_v25   ;;  %3675 = vmatpush1.bf16.msra.mxu0 %v8007_v18  ;;  %v8008_v43 = vld [vmem:[#allocation12 + $0x8] sm:$0xff]   ;;  %v2281_v45 = vrot.slane %v9467_v47, 5  ;;  %v9504_v4 = vld [vmem:[#allocation11] ss:$0 sm:$0xff]  ;;  %v2066_v18 = vrot.slane %v2064_v27, 5  ;;  %v9514_v47 = vadd.f32 %v496_v57, %v363_v22 }
 0x1e8   :  { %v1736_v19 = vor.u32 %v1734_v1, %v1733_v10  ;;  %v1737_v16 = vrot.slane %v1733_v10, 4  ;;  %v9500_v1 = vld [vmem:[#allocation9 + $0x3] ss:$0 sm:$0xff]  ;;  %11919 = vst [vmem:[#allocation50_spill] sm:$0xff] %v9504_v4  ;;  %v1534_v27 = vld [vmem:[#allocation3 + $0x50] sm:$0x1] }
 0x1e9   :  { %v1441_v49 = vadd.f32 %v1425_v2, %v1308_v7  ;;  %v584_v48 = vpop.permute.xlu1 %583  ;;  %11918 = vst [vmem:[#allocation49_spill] sm:$0xff] %v9500_v1  ;;  %v761_v63 = vmul.f32 %v9500_v1, %v712_v39  ;;  %v1067_v2 = vld [vmem:[#allocation2 + $0x130] sm:$0xff]  ;;  %v2829_v39 = vor.u32 %v9471_v34, %v9421_v53  ;;  %v2067_v34 = vsel %vm9131_vm0, %v2062_v38, %v2066_v18 }
 0x1ea   :  { %v1884_v5 = vsel %vm9053_vm10, %v1736_v19, %v1883_v35  ;;  %v1887_v25 = vsel %vm8854_vm6, %v1737_v16, %v1886_v33  ;;  %1012 = vperm.xlu1 %7976, %v933_v24   ;;  %v1107_v7 = vpop.permute.xlu0 %1106  ;;  %v1200_v35 = vld [vmem:[#allocation2 + $0x131] sm:$0xff]  ;;  %v9509_v33 = vsel %vm9077_vm13, %v7388_v29, %v2277_v50  ;;  %v11920_v19 = vmov 0   ;;  %v1543_v29 = vld [vmem:[#allocation3 + $0x68] sm:$0x1]  ;;  %v1605_v50 = vld [vmem:[#allocation3 + $0x6c] sm:$0x1] }
 0x1eb   :  { %1885 = vst [vmem:[#allocation3 + $0x30] sm:$0xf] %v1884_v5  ;;  %1888 = vst [vmem:[#allocation3 + $0x34] sm:$0x1] %v1887_v25  ;;  %v1464_v10 = vadd.f32 %v9504_v4, %v1441_v49  ;;  %1407 = vperm.xlu0 %7975, %v933_v24   ;;  %3676 = vmatprep.subr.bf16.mxu0 %v11920_v19  ;;  %v2779_v49 = vsel %vm9131_vm0, %v2774_v11, %v2778_v12  ;;  %v2414_v22 = vrot.slane %v2412_v21, 4  ;;  %v8010_v16 = vld [vmem:[#allocation12 + $0x10] sm:$0xff]  }
 0x1ec   :  { %v2053_v24 = vsel %vm9131_vm0, %v9482_v55, %v9460_v30  ;;  %v2417_v57 = vrot.slane %v2415_v9, 5  ;;  %v9526_v25 = vld [vmem:[#allocation3 + $0x4c] sm:$0x1]  ;;  %3677 = vmatpush1.bf16.msra.mxu0 %v8008_v43  ;;  %v1042_v11 = vadd.f32 %v1026_v8, %v9432_v17  ;;  %v9530_v12 = vadd.f32 %v761_v63, %v9465_v62  ;;  %v1596_v38 = vld [vmem:[#allocation3 + $0x54] sm:$0x1] }
 0x1ed   :  { %v1480_v5 = vmax.f32 %v1464_v10, 0.0  ;;  %v323_v53 = vpop.permute.xlu1 %322  ;;  %11921 = vst [vmem:[#allocation51_spill] sm:$0xff] %v9526_v25  ;;  %v9534_v55 = vsel %vm9077_vm13, %v7389_v60, %v2281_v45  ;;  %v2832_v10 = vshll.u32 %v9526_v25, 16  ;;  %3678 = vmatprep.subr.bf16.mxu0 %v11920_v19  ;;  %v629_v21 = vmul.f32 %v9448_v51, %v584_v48  ;;  %v1333_v43 = vld [vmem:[#allocation2 + $0x132] sm:$0xff]  ;;  %v2343_v8 = vld [vmem:[#allocation3 + $0x2c] sm:$0x1] }
 0x1ee   :  { %1146 = vperm.xlu1 %7976, %v1067_v2   ;;  %v456_v30 = vpop.permute.xlu0 %455  ;;  %v11922_v62 = vsel %vm9131_vm0, %v9456_v6, %v9444_v54  ;;  %v2583_v60 = vld [vmem:[#allocation3 + $0x28] sm:$0xe]  ;;  %v1544_v63 = vsel %vm8854_vm6, 0, %v1543_v29  ;;  %v9548_v45 = vld [vmem:[#allocation9 + $0x6] ss:$0 sm:$0xff]  ;;  %v9551_v18 = vcombine.low %v2053_v24, %v2067_v34  ;;  %v1606_v48 = vsel %vm8878_vm8, 0, %v1605_v50 }
 0x1ef   :  { %v7820_v9 = vpack.c.bf16 %v1480_v5, %v1480_v5  ;;  %1279 = vperm.xlu0 %7975, %v1200_v35   ;;  %v9544_v17 = vcombine.low %v11922_v62, %v2779_v49  ;;  %v1160_v2 = vmul.f32 %v9548_v45, %v1107_v7  ;;  %1545 = vst [vmem:[#allocation3 + $0x68] sm:$0x1] %v1544_v63  ;;  %v1535_v54 = vsel %vm8854_vm6, 0, %v1534_v27  ;;  %v1889_v24 = vld [vmem:[#allocation3 + $0x38] sm:$0xf] }
 0x1f0   :  { %v2418_v5 = vor.u32 %v2417_v57, %v2414_v22  ;;  %1607 = vst [vmem:[#allocation3 + $0x6c] sm:$0x1] %v1606_v48  ;;  %1536 = vst [vmem:[#allocation3 + $0x50] sm:$0x1] %v1535_v54  ;;  %v1597_v7 = vsel %vm8878_vm8, 0, %v1596_v38  ;;  %3679 = vmatpush1.bf16.msra.mxu0 %v8010_v16  ;;  %v2421_v62 = vshll.u32 %v2343_v8, 16  ;;  %v645_v56 = vadd.f32 %v629_v21, %v9514_v47 }
 0x1f1   :  { %v1739_v6 = vshrl.u32 %v7820_v9, 16  ;;  %v845_v35 = vpop.permute.xlu1 %844  ;;  %v1892_v29 = vld [vmem:[#allocation3 + $0x3c] sm:$0x1]  ;;  %v2645_v27 = vrot.slane %v2343_v8, 5  ;;  %v7404_v63 = vrot.slane %v2583_v60, 9  ;;  %3680 = vmatprep.subr.bf16.mxu0 %v11920_v19  ;;  %v1742_v48 = vshll.u32 %v7820_v9, 16 }
 0x1f2   :  { %1412 = vperm.xlu1 %7976, %v1333_v43   ;;  %v717_v34 = vpop.permute.xlu0 %716  ;;  %v9561_v50 = vld [vmem:[#allocation3 + $0x30] sm:$0xf]  ;;  %1598 = vst [vmem:[#allocation3 + $0x54] sm:$0x1] %v1597_v7  ;;  %v9569_v38 = vrot.slane %v2829_v39, 4  ;;  %v364_v43 = vmul.f32 %v9399_v23, %v323_v53  ;;  %v497_v8 = vmul.f32 %v9402_v37, %v456_v30  ;;  %v9576_v7 = vrot.slane %v2832_v10, 5 }
 0x1f3   :  { %v1741_v57 = vrot.slane %v1739_v6, 7  ;;  %3124 = vrot.lane.b32.xlu0 %v9210_v3, %s8573_s9  ;;  %v2426_v16 = vshrl.u32 %v9561_v50, 16  ;;  %v2429_v60 = vshll.u32 %v9561_v50, 16  ;;  %v9574_v54 = vld [vmem:[#allocation3 + $0x30] sm:$0xf]  ;;  %v9578_v49 = vrot.slane %v2418_v5, 4 }
 0x1f4   :  { %11923 = vst [vmem:[#allocation52_spill] sm:$0xff] %v9569_v38  ;;  %11924 = vst [vmem:[#allocation53_spill] sm:$0xff] %v9574_v54  ;;  %v1176_v39 = vadd.f32 %v1160_v2, %v1042_v11  ;;  %v11926_v53 = vcombine.low %v9100_v14, %v9172_v15  ;;  %v9585_v42 = vrot.slane %v2421_v62, 5  ;;  %v11927_v47 = vcombine.low %v9154_v52, %v9178_v31  ;;  %v2344_v11 = vld [vmem:[#allocation3 + $0x34] sm:$0x1]  ;;  %v8011_v2 = vld [vmem:[#allocation12 + $0x18] sm:$0xff]  }
 0x1f5   :  { %11925 = vst [vmem:[#allocation54_spill] sm:$0xff] %v9576_v7  ;;  %v1744_v6 = vor.u32 %v1742_v48, %v1741_v57  ;;  %v1745_v9 = vrot.slane %v1741_v57, 4  ;;  %v1240_v22 = vpop.permute.xlu1 %1239  ;;  %v2428_v3 = vrot.slane %v2426_v16, 4  ;;  %v2431_v10 = vrot.slane %v2429_v60, 5  ;;  %v2584_v21 = vld [vmem:[#allocation3 + $0x30] sm:$0xe]  ;;  %3681 = vmatpush1.bf16.msra.mxu0 %v8011_v2 }
 0x1f6   :  { %3164 = vrot.lane.b32.xlu1 %v11926_v53, %s8574_s16  ;;  %v589_v30 = vpop.permute.xlu0 %588  ;;  %v9597_v14 = vsel %vm9077_vm13, %v7404_v63, %v2645_v27  ;;  %v2781_v15 = vshrl.u32 %v9574_v54, 16  ;;  %v762_v62 = vmul.f32 %v9500_v1, %v717_v34  ;;  %v2784_v52 = vshll.u32 %v9574_v54, 16  ;;  %v9605_v31 = vld [vmem:[#allocation3 + $0x30] sm:$0xf]  ;;  %3682 = vmatprep.subr.bf16.mxu0 %v11920_v19  ;;  %v11930_v53 = vld [vmem:[#allocation35_spill] sm:$0xff]  ;;  %v11947_v54 = vld [vmem:[#allocation45_spill] sm:$0xff] }
 0x1f7   :  { %v1890_v57 = vsel %vm9053_vm10, %v1744_v6, %v1889_v24  ;;  %v1893_v5 = vsel %vm8854_vm6, %v1745_v9, %v1892_v29  ;;  %3220 = vrot.lane.b32.xlu0 %v11927_v47, %s8575_s0  ;;  %v9600_v24 = vld [vmem:[#allocation9 + $0x4] ss:$0 sm:$0xff]  ;;  %v2432_v48 = vor.u32 %v2431_v10, %v2428_v3  ;;  %v513_v16 = vadd.f32 %v497_v8, %v364_v43  ;;  %v9619_v9 = vld [vmem:[#allocation3 + $0x34] sm:$0x1] }
 0x1f8   :  { %1891 = vst [vmem:[#allocation3 + $0x38] sm:$0xf] %v1890_v57  ;;  %1894 = vst [vmem:[#allocation3 + $0x3c] sm:$0x1] %v1893_v5  ;;  %v894_v29 = vmul.f32 %v9600_v24, %v845_v35  ;;  %v1293_v27 = vmul.f32 %v9451_v0, %v1240_v22  ;;  %v630_v34 = vmul.f32 %v9448_v51, %v589_v30  ;;  %v2435_v8 = vshll.u32 %v2344_v11, 16  ;;  %v11929_v3 = vld [vmem:[#allocation33_spill] sm:$0xff] }
 0x1f9   :  { %v978_v63 = vpop.permute.xlu1 %977  ;;  %v2649_v22 = vrot.slane %v2344_v11, 5  ;;  %v7405_v6 = vrot.slane %v2584_v21, 9  ;;  %11928 = vst [vmem:[#allocation55_spill] sm:$0xff] %v9619_v9  ;;  %v11931_v10 = vcombine.low %v11929_v3, %v11930_v53  ;;  %v2783_v57 = vrot.slane %v2781_v15, 4  ;;  %v9631_v35 = vld [vmem:[#allocation3 + $0x34] sm:$0x1] }
 0x1fa   :  { %3260 = vrot.lane.b32.xlu1 %v9286_v61, %s8561_s1  ;;  %v850_v43 = vpop.permute.xlu0 %849  ;;  %v2786_v5 = vrot.slane %v2784_v52, 5  ;;  %v2069_v30 = vshrl.u32 %v9605_v31, 16  ;;  %v2072_v61 = vshll.u32 %v9605_v31, 16  ;;  %v910_v47 = vadd.f32 %v894_v29, %v9530_v12  ;;  %v8012_v60 = vld [vmem:[#allocation12 + $0x20] sm:$0xff]  }
 0x1fb   :  { %3300 = vrot.lane.b32.xlu0 %v11931_v10, %s8576_s4  ;;  %v778_v11 = vadd.f32 %v762_v62, %v645_v56  ;;  %v2433_v2 = vrot.slane %v2432_v48, 4  ;;  %v1309_v25 = vadd.f32 %v1293_v27, %v1176_v39  ;;  %v1027_v3 = vmul.f32 %v9486_v44, %v978_v63  ;;  %3683 = vmatpush1.bf16.msra.mxu0 %v8012_v60  ;;  %v8013_v62 = vld [vmem:[#allocation12 + $0x28] sm:$0xff]  }
 0x1fc   :  { %v895_v15 = vmul.f32 %v9600_v24, %v850_v43  ;;  %v2790_v53 = vshll.u32 %v9619_v9, 16  ;;  %v646_v10 = vadd.f32 %v630_v34, %v513_v16  ;;  %v11932_v56 = vcombine.low %v9221_v59, %v9254_v20  ;;  %v11934_v48 = vld [vmem:[#allocation39_spill] sm:$0xff]  ;;  %3684 = vmatprep.subr.bf16.mxu0 %v11920_v19  ;;  %v1895_v9 = vld [vmem:[#allocation3 + $0x40] sm:$0xf] }
 0x1fd   :  { %v1373_v52 = vpop.permute.xlu1 %1372  ;;  %v2437_v29 = vrot.slane %v2435_v8, 5  ;;  %v9643_v39 = vsel %vm9077_vm13, %v7405_v6, %v2649_v22  ;;  %v2787_v27 = vor.u32 %v2786_v5, %v2783_v57  ;;  %v2071_v63 = vrot.slane %v2069_v30, 4 }
 0x1fe   :  { %v1426_v7 = vmul.f32 %v9489_v40, %v1373_v52  ;;  %3356 = vrot.lane.b32.xlu1 %v11932_v56, %s8577_s30  ;;  %v722_v12 = vpop.permute.xlu0 %721  ;;  %11933 = vst [vmem:[#allocation33_spill] sm:$0xff] %v9643_v39  ;;  %v2074_v34 = vrot.slane %v2072_v61, 5  ;;  %v2078_v59 = vshll.u32 %v9631_v35, 16  ;;  %v9657_v6 = vadd.f32 %v1027_v3, %v910_v47  ;;  %v11936_v61 = vld [vmem:[#allocation42_spill] sm:$0xff] }
 0x1ff   :  { %3396 = vrot.lane.b32.xlu0 %v11934_v48, %s8578_s12  ;;  %v9647_v16 = vld [vmem:[#allocation3 + $0x38] sm:$0xf]  ;;  %v2438_v43 = vsel %vm9131_vm0, %v2433_v2, %v2437_v29  ;;  %v9659_v52 = vadd.f32 %v895_v15, %v778_v11  ;;  %v9663_v30 = vrot.slane %v2790_v53, 5  ;;  %v9669_v47 = vld [vmem:[#allocation3 + $0x3c] sm:$0x1]  ;;  %3685 = vmatpush1.bf16.msra.mxu0 %v8013_v62  ;;  %v11938_v3 = vld [vmem:[#allocation38_spill] sm:$0xff] }
 0x200   :  { %11935 = vst [vmem:[#allocation35_spill] sm:$0xff] %v9647_v16  ;;  %v1442_v20 = vadd.f32 %v1426_v7, %v1309_v25  ;;  %v2795_v60 = vshrl.u32 %v9647_v16, 16  ;;  %v2798_v8 = vshll.u32 %v9647_v16, 16  ;;  %v9655_v22 = vld [vmem:[#allocation3 + $0x38] sm:$0xf]  ;;  %v763_v7 = vmul.f32 %v9500_v1, %v722_v12  ;;  %11937 = vst [vmem:[#allocation39_spill] sm:$0xff] %v9669_v47  ;;  %3686 = vmatprep.subr.bf16.mxu0 %v11920_v19 }
 0x201   :  { %v1112_v57 = vpop.permute.xlu1 %1111  ;;  %v9671_v11 = vld [vmem:[#allocation3 + $0x30] sm:$0xe]  ;;  %v11939_v15 = vld [vmem:[#allocation40_spill] sm:$0xff]  ;;  %v11941_v12 = vsel %vm9131_vm0, %v9578_v49, %v9585_v42  ;;  %v1972_v21 = vld [vmem:[#allocation3 + $0x3c] sm:$0x1]  ;;  %v2804_v42 = vshll.u32 %v9669_v47, 16 }
 0x202   :  { %v1465_v25 = vadd.f32 %v9504_v4, %v1442_v20  ;;  %3126 = vrot.lane.b32.xlu1 %v11936_v61, %s8573_s9  ;;  %v328_v2 = vpop.permute.xlu0 %327  ;;  %v2797_v56 = vrot.slane %v2795_v60, 4  ;;  %v2800_v29 = vrot.slane %v2798_v8, 5  ;;  %v11940_v53 = vcombine.low %v11938_v3, %v11939_v15  ;;  %v8016_v62 = vld [vmem:[#allocation12 + $0x30] sm:$0xff]   ;;  %v9702_v47 = vld [vmem:[#allocation3 + $0x38] sm:$0xf] }
 0x203   :  { %v9682_v48 = vcombine.low %v11941_v12, %v2438_v43  ;;  %v9684_v20 = vrot.slane %v2787_v27, 4  ;;  %v2075_v60 = vor.u32 %v2074_v34, %v2071_v63  ;;  %v2083_v8 = vshrl.u32 %v9655_v22, 16  ;;  %v2215_v43 = vld [vmem:[#allocation3 + $0x38] sm:$0xe]  ;;  %3687 = vmatpush1.bf16.msra.mxu0 %v8016_v62 }
 0x204   :  { %3166 = vrot.lane.b32.xlu0 %v11940_v53, %s8574_s16  ;;  %v1481_v61 = vmax.f32 %v1465_v25, 0.0  ;;  %v2801_v5 = vor.u32 %v2800_v29, %v2797_v56  ;;  %v9688_v3 = vrot.slane %v2078_v59, 5  ;;  %v2086_v15 = vshll.u32 %v9655_v22, 16  ;;  %v11942_v25 = vld [vmem:[#allocation37_spill] sm:$0xff]  ;;  %v11945_v27 = vld [vmem:[#allocation47_spill] sm:$0xff]  ;;  %3688 = vmatprep.subr.bf16.mxu0 %v11920_v19 }
 0x205   :  { %v461_v53 = vpop.permute.xlu1 %460  ;;  %v2085_v49 = vrot.slane %v2083_v8, 4  ;;  %v9694_v12 = vadd.f32 %v763_v7, %v646_v10  ;;  %v11943_v56 = vld [vmem:[#allocation41_spill] sm:$0xff]  ;;  %v2793_v10 = vsel %vm9131_vm0, %v9684_v20, %v9663_v30  ;;  %v2289_v62 = vrot.slane %v1972_v21, 5 }
 0x206   :  { %v7821_v34 = vpack.c.bf16 %v1481_v61, %v1481_v61  ;;  %v11944_v29 = vcombine.low %v11942_v25, %v11943_v56  ;;  %v983_v59 = vpop.permute.xlu0 %982  ;;  %v2088_v38 = vrot.slane %v2086_v15, 5  ;;  %v8017_v8 = vld [vmem:[#allocation12 + $0x38] sm:$0xff]   ;;  %v2802_v7 = vrot.slane %v2801_v5, 4 }
 0x207   :  { %v9710_v61 = vrot.slane %v2075_v60, 4  ;;  %v2092_v25 = vshll.u32 %v1972_v21, 16  ;;  %v1161_v15 = vmul.f32 %v9548_v45, %v1112_v57  ;;  %v365_v63 = vmul.f32 %v9399_v23, %v328_v2  ;;  %v11946_v60 = vld [vmem:[#allocation43_spill] sm:$0xff]  ;;  %3689 = vmatpush1.bf16.msra.mxu0 %v8017_v8  ;;  %v1898_v2 = vld [vmem:[#allocation3 + $0x44] sm:$0x1] }
 0x208   :  { %3222 = vrot.lane.b32.xlu1 %v11944_v29, %s8575_s0  ;;  %3262 = vrot.lane.b32.xlu0 %v11945_v27, %s8561_s1  ;;  %v1747_v56 = vshrl.u32 %v7821_v34, 16  ;;  %v7391_v29 = vrot.slane %v2215_v43, 9  ;;  %v2806_v1 = vrot.slane %v2804_v42, 5  ;;  %v2089_v4 = vor.u32 %v2088_v38, %v2085_v49  ;;  %v9722_v43 = vld [vmem:[#allocation3 + $0x3c] sm:$0x1] }
 0x209   :  { %v855_v27 = vpop.permute.xlu1 %854  ;;  %v2440_v16 = vshrl.u32 %v9702_v47, 16  ;;  %v1750_v5 = vshll.u32 %v7821_v34, 16  ;;  %v498_v20 = vmul.f32 %v9402_v37, %v461_v53  ;;  %v11948_v39 = vcombine.low %v11946_v60, %v11947_v54  ;;  %3690 = vmatprep.subr.bf16.mxu0 %v11920_v19 }
 0x20a   :  { %v1749_v30 = vrot.slane %v1747_v56, 7  ;;  %v1245_v57 = vpop.permute.xlu0 %1244  ;;  %v2443_v21 = vshll.u32 %v9702_v47, 16  ;;  %v1028_v38 = vmul.f32 %v9486_v44, %v983_v59  ;;  %v11949_v42 = vcombine.low %v9371_v58, %v9435_v41 }
 0x20b   :  { %v2807_v53 = vsel %vm9131_vm0, %v2802_v7, %v2806_v1  ;;  %v2090_v49 = vrot.slane %v2089_v4, 4  ;;  %v2094_v54 = vrot.slane %v2092_v25, 5  ;;  %v896_v8 = vmul.f32 %v9600_v24, %v855_v27 }
 0x20c   :  { %3302 = vrot.lane.b32.xlu1 %v11948_v39, %s8576_s4  ;;  %3358 = vrot.lane.b32.xlu0 %v11949_v42, %s8577_s30  ;;  %v8018_v39 = vld [vmem:[#allocation12 + $0x40] sm:$0xff]   ;;  %v1752_v34 = vor.u32 %v1750_v5, %v1749_v30  ;;  %v1753_v56 = vrot.slane %v1749_v30, 4  ;;  %v9735_v59 = vsel %vm9077_vm13, %v7391_v29, %v2289_v62  ;;  %v1294_v60 = vmul.f32 %v9451_v0, %v1245_v57  ;;  %v1611_v57 = vld [vmem:[#allocation3 + $0x7c] sm:$0x1] }
 0x20d   :  { %v594_v58 = vpop.permute.xlu1 %593  ;;  %v2442_v41 = vrot.slane %v2440_v16, 4  ;;  %v2445_v42 = vrot.slane %v2443_v21, 5  ;;  %v2449_v1 = vshll.u32 %v9722_v43, 16  ;;  %v1177_v25 = vadd.f32 %v1161_v15, %v9657_v6  ;;  %v9750_v62 = vld [vmem:[#allocation3 + $0x50] sm:$0xe]  ;;  %3691 = vmatpush1.bf16.msra.mxu0 %v8018_v39 }
 0x20e   :  { %v1896_v4 = vsel %vm9053_vm10, %v1752_v34, %v1895_v9  ;;  %v1899_v7 = vsel %vm8854_vm6, %v1753_v56, %v1898_v2  ;;  %v1117_v29 = vpop.permute.xlu0 %1116  ;;  %v2081_v16 = vsel %vm9131_vm0, %v9710_v61, %v9688_v3  ;;  %v514_v27 = vadd.f32 %v498_v20, %v365_v63  ;;  %v9764_v3 = vld [vmem:[#allocation3 + $0x50] sm:$0xf]  ;;  %v1608_v30 = vld [vmem:[#allocation3 + $0x74] sm:$0x1]  ;;  %v1549_v20 = vld [vmem:[#allocation3 + $0x78] sm:$0x1] }
 0x20f   :  { %1897 = vst [vmem:[#allocation3 + $0x40] sm:$0xf] %v1896_v4  ;;  %1900 = vst [vmem:[#allocation3 + $0x44] sm:$0x1] %v1899_v7  ;;  %v2095_v9 = vsel %vm9131_vm0, %v2090_v49, %v2094_v54  ;;  %v11950_v6 = vrot.slane %v9631_v35, 5  ;;  %v1044_v63 = vadd.f32 %v1028_v38, %v9659_v52  ;;  %v9770_v5 = vcombine.low %v2793_v10, %v2807_v53 }
 0x210   :  { %3398 = vrot.lane.b32.xlu1 %v9544_v17, %s8578_s12  ;;  %3128 = vrot.lane.b32.xlu0 %v9551_v18, %s8573_s9  ;;  %v11951_v17 = vrot.slane %v9671_v11, 9  ;;  %v1546_v61 = vld [vmem:[#allocation3 + $0x70] sm:$0x1]  ;;  %v9768_v18 = vadd.f32 %v896_v8, %v9694_v12  ;;  %v2585_v11 = vld [vmem:[#allocation3 + $0x38] sm:$0xe]  ;;  %v1310_v21 = vadd.f32 %v1294_v60, %v1177_v25  ;;  %v2446_v49 = vor.u32 %v2445_v42, %v2442_v41 }
 0x211   :  { %v333_v2 = vpop.permute.xlu1 %332  ;;  %v9774_v54 = vrot.slane %v2449_v1, 5  ;;  %v2653_v39 = vrot.slane %v9722_v43, 5  ;;  %v9777_v34 = vld [vmem:[#allocation3 + $0x54] sm:$0x1]  ;;  %v1552_v52 = vld [vmem:[#allocation3 + $0x80] sm:$0x1]  ;;  %v631_v12 = vmul.f32 %v9448_v51, %v594_v58  ;;  %v1162_v10 = vmul.f32 %v9548_v45, %v1117_v29 }
 0x212   :  { %v9762_v15 = vsel %vm9077_vm13, %v11951_v17, %v11950_v6  ;;  %v11952_v38 = vcombine.low %v9509_v33, %v9534_v55  ;;  %v466_v53 = vpop.permute.xlu0 %465  ;;  %v9785_v56 = vcombine.low %v2081_v16, %v2095_v9  ;;  %v2097_v8 = vshrl.u32 %v9764_v3, 16  ;;  %v1614_v60 = vld [vmem:[#allocation3 + $0x84] sm:$0x1]  ;;  %v1555_v41 = vld [vmem:[#allocation3 + $0x88] sm:$0x1] }
 0x213   :  { %v7451_v35 = vcombine.low %v9762_v15, %v9735_v59  ;;  %v11953_v43 = vcombine.low %v9484_v36, %v9561_v50  ;;  %v7406_v58 = vrot.slane %v2585_v11, 9  ;;  %v7392_v42 = vrot.slane %v9750_v62, 9 }
 0x214   :  { %3168 = vrot.lane.b32.xlu1 %v11952_v38, %s8574_s16  ;;  %v2100_v1 = vshll.u32 %v9764_v3, 16  ;;  %v1547_v33 = vsel %vm8854_vm6, 0, %v1546_v61  ;;  %v2293_v55 = vrot.slane %v9777_v34, 5  ;;  %v1609_v4 = vsel %vm8878_vm8, 0, %v1608_v30 }
 0x215   :  { %3224 = vrot.lane.b32.xlu0 %v11953_v43, %s8575_s0  ;;  %1548 = vst [vmem:[#allocation3 + $0x70] sm:$0x1] %v1547_v33  ;;  %v1550_v7 = vsel %vm8854_vm6, 0, %v1549_v20  ;;  %v1612_v36 = vsel %vm8878_vm8, 0, %v1611_v57  ;;  %v9803_v50 = vpop.permute.xlu1 %987  ;;  %v9805_v25 = vrot.slane %v2446_v49, 4  ;;  %v1553_v29 = vsel %vm8854_vm6, 0, %v1552_v52 }
 0x216   :  { %1610 = vst [vmem:[#allocation3 + $0x74] sm:$0x1] %v1609_v4  ;;  %1551 = vst [vmem:[#allocation3 + $0x78] sm:$0x1] %v1550_v7  ;;  %v1615_v16 = vsel %vm8878_vm8, 0, %v1614_v60  ;;  %v1556_v62 = vsel %vm8854_vm6, 0, %v1555_v41  ;;  %v9813_v9 = vadd.f32 %v631_v12, %v514_v27  ;;  %v1378_v6 = vpop.permute.xlu0 %1377  ;;  %v1178_v38 = vadd.f32 %v1162_v10, %v1044_v63 }
 0x217   :  { %1613 = vst [vmem:[#allocation3 + $0x7c] sm:$0x1] %v1612_v36  ;;  %v9817_v17 = vld [vmem:[#allocation3 + $0x40] sm:$0xf]  ;;  %v9819_v61 = vld [vmem:[#allocation3 + $0x44] sm:$0x1]  ;;  %v1427_v27 = vmul.f32 %v9489_v40, %v1378_v6  ;;  %v9839_v41 = vsel %vm9077_vm13, %v7406_v58, %v2653_v39  ;;  %v9856_v58 = vsel %vm9077_vm13, %v7392_v42, %v2293_v55 }
 0x218   :  { %3264 = vrot.lane.b32.xlu1 %v9682_v48, %s8561_s1  ;;  %v9821_v30 = vrot.slane %v2097_v8, 4  ;;  %v2106_v11 = vshll.u32 %v9777_v34, 16  ;;  %1554 = vst [vmem:[#allocation3 + $0x80] sm:$0x1] %v1553_v29  ;;  %1616 = vst [vmem:[#allocation3 + $0x84] sm:$0x1] %v1615_v16  ;;  %v366_v8 = vmul.f32 %v9399_v23, %v333_v2  ;;  %v499_v29 = vmul.f32 %v9402_v37, %v466_v53 }
 0x219   :  { %1557 = vst [vmem:[#allocation3 + $0x88] sm:$0x1] %v1556_v62  ;;  %v11954_v48 = vld [vmem:[#allocation33_spill] sm:$0xff]  ;;  %v2454_v49 = vshrl.u32 %v9817_v17, 16  ;;  %v2457_v52 = vshll.u32 %v9817_v17, 16  ;;  %v2102_v34 = vrot.slane %v2100_v1, 5  ;;  %v1443_v43 = vadd.f32 %v1427_v27, %v1310_v21  ;;  %v727_v33 = vpop.permute.xlu1 %726 }
 0x21a   :  { %v11955_v57 = vcombine.low %v9597_v14, %v11954_v48  ;;  %v9833_v12 = vld [vmem:[#allocation3 + $0x40] sm:$0xf]  ;;  %v2463_v60 = vshll.u32 %v9819_v61, 16  ;;  %v11956_v1 = vld [vmem:[#allocation53_spill] sm:$0xff]  ;;  %v11957_v63 = vld [vmem:[#allocation35_spill] sm:$0xff]  ;;  %v1250_v23 = vpop.permute.xlu0 %1249  ;;  %v2452_v2 = vsel %vm9131_vm0, %v9805_v25, %v9774_v54  ;;  %v9862_v6 = vrot.slane %v2106_v11, 5 }
 0x21b   :  { %v2456_v14 = vrot.slane %v2454_v49, 4  ;;  %v2459_v4 = vrot.slane %v2457_v52, 5  ;;  %v2586_v7 = vld [vmem:[#allocation3 + $0x40] sm:$0xe]  ;;  %v2809_v36 = vshrl.u32 %v9833_v12, 16  ;;  %v11958_v10 = vcombine.low %v11956_v1, %v11957_v63  ;;  %v11959_v37 = vld [vmem:[#allocation50_spill] sm:$0xff] }
 0x21c   :  { %3304 = vrot.lane.b32.xlu0 %v11955_v57, %s8576_s4  ;;  %v2812_v21 = vshll.u32 %v9833_v12, 16  ;;  %v9852_v39 = vld [vmem:[#allocation3 + $0x44] sm:$0x1]  ;;  %v1466_v53 = vadd.f32 %v11959_v37, %v1443_v43  ;;  %v2103_v62 = vor.u32 %v2102_v34, %v9821_v30  ;;  %v1617_v27 = vld [vmem:[#allocation3 + $0x8c] sm:$0x1]  ;;  %v2657_v54 = vrot.slane %v9819_v61, 5 }
 0x21d   :  { %3360 = vrot.lane.b32.xlu1 %v11958_v10, %s8577_s30  ;;  %v2460_v16 = vor.u32 %v2459_v4, %v2456_v14  ;;  %v7407_v25 = vrot.slane %v2586_v7, 9  ;;  %v2811_v48 = vrot.slane %v2809_v36, 4  ;;  %v599_v52 = vpop.permute.xlu1 %598  ;;  %v2465_v55 = vrot.slane %v2463_v60, 5  ;;  %v1558_v34 = vld [vmem:[#allocation3 + $0x90] sm:$0x1]  ;;  %v11960_v7 = vld [vmem:[#allocation49_spill] sm:$0xff] }
 0x21e   :  { %v2814_v57 = vrot.slane %v2812_v21, 5  ;;  %v1482_v49 = vmax.f32 %v1466_v53, 0.0  ;;  %v2818_v43 = vshll.u32 %v9852_v39, 16  ;;  %v515_v1 = vadd.f32 %v499_v29, %v366_v8  ;;  %v1122_v30 = vpop.permute.xlu0 %1121  ;;  %v1620_v60 = vld [vmem:[#allocation3 + $0x94] sm:$0x1] }
 0x21f   :  { %v2461_v42 = vrot.slane %v2460_v16, 4  ;;  %v1618_v61 = vsel %vm8878_vm8, 0, %v1617_v27  ;;  %v1029_v14 = vmul.f32 %v9486_v44, %v9803_v50  ;;  %v7459_v8 = vcombine.low %v9702_v47, %v9817_v17 }
 0x220   :  { %3400 = vrot.lane.b32.xlu0 %v9770_v5, %s8578_s12  ;;  %v1295_v5 = vmul.f32 %v9451_v0, %v1250_v23  ;;  %v2815_v11 = vor.u32 %v2814_v57, %v2811_v48  ;;  %v7822_v4 = vpack.c.bf16 %v1482_v49, %v1482_v49  ;;  %1619 = vst [vmem:[#allocation3 + $0x8c] sm:$0x1] %v1618_v61  ;;  %v2820_v15 = vrot.slane %v2818_v43, 5  ;;  %v8274_v57 = vld [vmem:[#allocation3 + $0x48] sm:$0xf] }
 0x221   :  { %3130 = vrot.lane.b32.xlu1 %v9785_v56, %s8573_s9  ;;  %v2466_v56 = vsel %vm9131_vm0, %v2461_v42, %v2465_v55  ;;  %v764_v36 = vmul.f32 %v11960_v7, %v727_v33  ;;  %v2658_v50 = vsel %vm9077_vm13, %v7407_v25, %v2657_v54  ;;  %v632_v23 = vmul.f32 %v9448_v51, %v599_v52  ;;  %v860_v59 = vpop.permute.xlu1 %859  ;;  %v1901_v54 = vld [vmem:[#allocation3 + $0x58] sm:$0xf]  ;;  %v1904_v25 = vld [vmem:[#allocation3 + $0x5c] sm:$0x1]  ;;  %v2951_v52 = vld [vmem:[#allocation3 + $0x28] sm:$0xe] }
 0x222   :  { %v7467_v29 = vcombine.low %v2452_v2, %v2466_v56  ;;  %v2816_v63 = vrot.slane %v2815_v11, 4  ;;  %v1755_v10 = vshrl.u32 %v7822_v4, 16  ;;  %v1559_v47 = vsel %vm8854_vm6, 0, %v1558_v34  ;;  %v1383_v21 = vpop.permute.xlu0 %1382  ;;  %v2950_v11 = vld [vmem:[#allocation3 + $0x20] sm:$0xe] }
 0x223   :  { %v1163_v17 = vmul.f32 %v9548_v45, %v1122_v30  ;;  %v9889_v33 = vrot.slane %v2103_v62, 4  ;;  %1560 = vst [vmem:[#allocation3 + $0x90] sm:$0x1] %v1559_v47  ;;  %v1621_v2 = vsel %vm8878_vm8, 0, %v1620_v60  ;;  %v1758_v16 = vshll.u32 %v7822_v4, 16 }
 0x224   :  { %3170 = vrot.lane.b32.xlu0 %v7451_v35, %s8574_s16  ;;  %v1311_v35 = vadd.f32 %v1295_v5, %v1178_v38  ;;  %v1757_v53 = vrot.slane %v1755_v10, 7  ;;  %v1428_v51 = vmul.f32 %v9489_v40, %v1383_v21  ;;  %v2821_v38 = vsel %vm9131_vm0, %v2816_v63, %v2820_v15  ;;  %1622 = vst [vmem:[#allocation3 + $0x94] sm:$0x1] %v1621_v2  ;;  %v2952_v61 = vld [vmem:[#allocation3 + $0x30] sm:$0xe]  ;;  %v11965_v2 = vld [vmem:[#allocation55_spill] sm:$0xff] }
 0x225   :  { %3226 = vrot.lane.b32.xlu1 %v7459_v8, %s8575_s0  ;;  %v1045_v27 = vadd.f32 %v1029_v14, %v9768_v18  ;;  %v780_v62 = vadd.f32 %v764_v36, %v9813_v9  ;;  %v7475_v48 = vcombine.low %v9839_v41, %v2658_v50  ;;  %v7483_v49 = vcombine.low %v9833_v12, %v8274_v57  ;;  %v732_v30 = vpop.permute.xlu1 %731  ;;  %v11961_v9 = vld [vmem:[#allocation52_spill] sm:$0xff]  ;;  %v11962_v41 = vld [vmem:[#allocation54_spill] sm:$0xff]  ;;  %v2953_v8 = vld [vmem:[#allocation3 + $0x38] sm:$0xe] }
 0x226   :  { %v1760_v42 = vor.u32 %v1758_v16, %v1757_v53  ;;  %v1761_v55 = vrot.slane %v1757_v53, 4  ;;  %v648_v43 = vadd.f32 %v632_v23, %v515_v1  ;;  %v1444_v5 = vadd.f32 %v1428_v51, %v1311_v35  ;;  %v1255_v14 = vpop.permute.xlu0 %1254  ;;  %v1561_v50 = vld [vmem:[#allocation3 + $0x98] sm:$0x1]  ;;  %v11964_v23 = vld [vmem:[#allocation48_spill] sm:$0xff] }
 0x227   :  { %v1179_v34 = vadd.f32 %v1163_v17, %v1045_v27  ;;  %v897_v18 = vmul.f32 %v9600_v24, %v860_v59  ;;  %v11963_v4 = vsel %vm9131_vm0, %v11961_v9, %v11962_v41  ;;  %v2109_v1 = vsel %vm9131_vm0, %v9889_v33, %v9862_v6  ;;  %v8275_v17 = vld [vmem:[#allocation3 + $0x24] sm:$0x1]  ;;  %v2954_v51 = vld [vmem:[#allocation3 + $0x40] sm:$0xe] }
 0x228   :  { %3266 = vrot.lane.b32.xlu0 %v7467_v29, %s8561_s1  ;;  %v7491_v12 = vcombine.low %v2821_v38, %v11963_v4  ;;  %v1902_v56 = vsel %vm9053_vm10, %v1760_v42, %v1901_v54  ;;  %v1905_v60 = vsel %vm8854_vm6, %v1761_v55, %v1904_v25  ;;  %v1467_v36 = vadd.f32 %v11959_v37, %v1444_v5  ;;  %v9931_v42 = vld [vmem:[#allocation9 + $0x1] ss:$0 sm:$0xff]  ;;  %v9938_v55 = vld [vmem:[#allocation3 + $0x48] sm:$0xe]  ;;  %v1623_v5 = vld [vmem:[#allocation3 + $0x9c] sm:$0x1] }
 0x229   :  { %3306 = vrot.lane.b32.xlu1 %v7475_v48, %s8576_s4  ;;  %v7419_v29 = vrot.slane %v2951_v52, 9  ;;  %1903 = vst [vmem:[#allocation3 + $0x58] sm:$0xf] %v1902_v56  ;;  %1906 = vst [vmem:[#allocation3 + $0x5c] sm:$0x1] %v1905_v60  ;;  %v765_v63 = vmul.f32 %v11960_v7, %v732_v30  ;;  %v7418_v10 = vrot.slane %v2950_v11, 9  ;;  %v338_v35 = vpop.permute.xlu1 %337  ;;  %v9921_v38 = vadd.f32 %v897_v18, %v780_v62 }
 0x22a   :  { %v3010_v59 = vrot.slane %v11964_v23, 5  ;;  %v7420_v15 = vrot.slane %v2952_v61, 9  ;;  %v1483_v47 = vmax.f32 %v1467_v36, 0.0  ;;  %v3006_v21 = vrot.slane %v8275_v17, 5  ;;  %v471_v54 = vpop.permute.xlu0 %470  ;;  %v11966_v7 = vld [vmem:[#allocation39_spill] sm:$0xff] }
 0x22b   :  { %v3014_v53 = vrot.slane %v11965_v2, 5  ;;  %v7421_v16 = vrot.slane %v2953_v8, 9  ;;  %v1296_v27 = vmul.f32 %v9451_v0, %v1255_v14  ;;  %v3018_v25 = vrot.slane %v11966_v7, 5  ;;  %v1907_v8 = vld [vmem:[#allocation3 + $0x60] sm:$0xf] }
 0x22c   :  { %3362 = vrot.lane.b32.xlu0 %v7483_v49, %s8577_s30  ;;  %v1562_v48 = vsel %vm8854_vm6, 0, %v1561_v50  ;;  %v7823_v57 = vpack.c.bf16 %v1483_v47, %v1483_v47  ;;  %v9928_v49 = vld [vmem:[#allocation9] ss:$0 sm:$0xff]  ;;  %v500_v62 = vmul.f32 %v9931_v42, %v471_v54  ;;  %v9936_v0 = vsel %vm9077_vm13, %v7419_v29, %v3010_v59  ;;  %v1910_v56 = vld [vmem:[#allocation3 + $0x64] sm:$0x1] }
 0x22d   :  { %3402 = vrot.lane.b32.xlu1 %v7491_v12, %s8578_s12  ;;  %v367_v52 = vmul.f32 %v9928_v49, %v338_v35  ;;  %1563 = vst [vmem:[#allocation3 + $0x98] sm:$0x1] %v1562_v48  ;;  %v9942_v30 = vsel %vm9077_vm13, %v7420_v15, %v3014_v53  ;;  %v9946_v11 = vsel %vm9077_vm13, %v7421_v16, %v3018_v25  ;;  %v7422_v61 = vrot.slane %v2954_v51, 9  ;;  %v993_v41 = vpop.permute.xlu1 %992  ;;  %v1922_v29 = vld [vmem:[#allocation3 + $0x74] sm:$0x1] }
 0x22e   :  { %v3022_v18 = vrot.slane %v9852_v39, 5  ;;  %v1763_v14 = vshrl.u32 %v7823_v57, 16  ;;  %v781_v9 = vadd.f32 %v765_v63, %v648_v43  ;;  %v9951_v4 = vsel %vm9077_vm13, %v7418_v10, %v3006_v21  ;;  %v865_v36 = vpop.permute.xlu0 %864  ;;  %v11967_v21 = vld [vmem:[#allocation51_spill] sm:$0xff] }
 0x22f   :  { %v1312_v60 = vadd.f32 %v1296_v27, %v1179_v34  ;;  %v7423_v50 = vrot.slane %v9938_v55, 9  ;;  %v1624_v39 = vsel %vm8878_vm8, 0, %v1623_v5  ;;  %v1766_v63 = vshll.u32 %v7823_v57, 16 }
 0x230   :  { %v1765_v43 = vrot.slane %v1763_v14, 7  ;;  %v516_v23 = vadd.f32 %v500_v62, %v367_v52  ;;  %v1030_v10 = vmul.f32 %v9486_v44, %v993_v41  ;;  %v1974_v59 = vld [vmem:[#allocation3 + $0x5c] sm:$0x1]  ;;  %v2217_v15 = vld [vmem:[#allocation3 + $0x58] sm:$0xe]  ;;  %v9965_v17 = vsel %vm9077_vm13, %v7422_v61, %v3022_v18 }
 0x231   :  { %1625 = vst [vmem:[#allocation3 + $0x9c] sm:$0x1] %v1624_v39  ;;  %v7393_v47 = vrot.slane %v2217_v15, 9  ;;  %v2297_v35 = vrot.slane %v1974_v59, 5  ;;  %v9961_v34 = vld [vmem:[#allocation3 + $0x58] sm:$0xf]  ;;  %v898_v16 = vmul.f32 %v9600_v24, %v865_v36  ;;  %v1388_v51 = vpop.permute.xlu1 %1387 }
 0x232   :  { %v3026_v2 = vrot.slane %v11967_v21, 5  ;;  %v1768_v32 = vor.u32 %v1766_v63, %v1765_v43  ;;  %v1769_v53 = vrot.slane %v1765_v43, 4  ;;  %v2111_v44 = vshrl.u32 %v9961_v34, 16  ;;  %v9970_v27 = vld [vmem:[#allocation3 + $0x58] sm:$0xf]  ;;  %v604_v7 = vpop.permute.xlu0 %603 }
 0x233   :  { %v1429_v54 = vmul.f32 %v9489_v40, %v1388_v51  ;;  %v2298_v25 = vsel %vm9077_vm13, %v7393_v47, %v2297_v35  ;;  %v2114_v48 = vshll.u32 %v9961_v34, 16  ;;  %v2120_v57 = vshll.u32 %v1974_v59, 16  ;;  %v2347_v52 = vld [vmem:[#allocation3 + $0x5c] sm:$0x1]  ;;  %v2587_v62 = vld [vmem:[#allocation3 + $0x58] sm:$0xe] }
 0x234   :  { %v1908_v5 = vsel %vm9053_vm10, %v1768_v32, %v1907_v8  ;;  %v1911_v61 = vsel %vm8854_vm6, %v1769_v53, %v1910_v56  ;;  %v9980_v18 = vld [vmem:[#allocation9 + $0x2] ss:$0 sm:$0xff]  ;;  %v7452_v40 = vcombine.low %v9856_v58, %v2298_v25  ;;  %v2113_v36 = vrot.slane %v2111_v44, 4  ;;  %v9988_v47 = vld [vmem:[#allocation3 + $0x98] sm:$0xf] }
 0x235   :  { %v633_v14 = vmul.f32 %v9980_v18, %v604_v7  ;;  %1909 = vst [vmem:[#allocation3 + $0x60] sm:$0xf] %v1908_v5  ;;  %1912 = vst [vmem:[#allocation3 + $0x64] sm:$0x1] %v1911_v61  ;;  %v1445_v41 = vadd.f32 %v1429_v54, %v1312_v60  ;;  %v2116_v39 = vrot.slane %v2114_v48, 5  ;;  %v2468_v43 = vshrl.u32 %v9970_v27, 16  ;;  %v1127_v59 = vpop.permute.xlu1 %1126 }
 0x236   :  { %v1046_v63 = vadd.f32 %v1030_v10, %v9921_v38  ;;  %3172 = vrot.lane.b32.xlu1 %v7452_v40, %s8574_s16  ;;  %v2471_v8 = vshll.u32 %v9970_v27, 16  ;;  %v7408_v56 = vrot.slane %v2587_v62, 9  ;;  %v2661_v15 = vrot.slane %v2347_v52, 5  ;;  %v343_v60 = vpop.permute.xlu0 %342 }
 0x237   :  { %v1468_v58 = vadd.f32 %v11959_v37, %v1445_v41  ;;  %v1164_v35 = vmul.f32 %v9548_v45, %v1127_v59  ;;  %v2117_v21 = vor.u32 %v2116_v39, %v2113_v36  ;;  %v2470_v32 = vrot.slane %v2468_v43, 4 }
 0x238   :  { %v914_v53 = vadd.f32 %v898_v16, %v781_v9  ;;  %v2122_v51 = vrot.slane %v2120_v57, 5  ;;  %v2473_v44 = vrot.slane %v2471_v8, 5  ;;  %v2477_v38 = vshll.u32 %v2347_v52, 16  ;;  %v10019_v8 = vld [vmem:[#allocation9 + $0x5] ss:$0 sm:$0xff] }
 0x239   :  { %v1484_v10 = vmax.f32 %v1468_v58, 0.0  ;;  %v649_v54 = vadd.f32 %v633_v14, %v516_v23  ;;  %v2118_v7 = vrot.slane %v2117_v21, 4  ;;  %v2935_v25 = vshrl.u32 %v9988_v47, 16  ;;  %v476_v5 = vpop.permute.xlu1 %475 }
 0x23a   :  { %v9993_v48 = vadd.f32 %v1164_v35, %v1046_v63  ;;  %v368_v62 = vmul.f32 %v9928_v49, %v343_v60  ;;  %v9998_v45 = vsel %vm9077_vm13, %v7408_v56, %v2661_v15  ;;  %v2474_v37 = vor.u32 %v2473_v44, %v2470_v32  ;;  %v998_v9 = vpop.permute.xlu0 %997  ;;  %v10026_v35 = vld [vmem:[#allocation9 + $0x3] ss:$0 sm:$0xff]  ;;  %v1916_v44 = vld [vmem:[#allocation3 + $0x6c] sm:$0x1] }
 0x23b   :  { %v7824_v61 = vpack.c.bf16 %v1484_v10, %v1484_v10  ;;  %v2123_v16 = vsel %vm9131_vm0, %v2118_v7, %v2122_v51  ;;  %v10002_v57 = vrot.slane %v2477_v38, 5  ;;  %v2938_v23 = vshll.u32 %v9988_v47, 16  ;;  %v10082_v47 = vld [vmem:[#allocation11] ss:$0 sm:$0xff] }
 0x23c   :  { %v501_v52 = vmul.f32 %v9931_v42, %v476_v5  ;;  %v7444_v14 = vcombine.low %v2109_v1, %v2123_v16  ;;  %v2332_v40 = vld [vmem:[#allocation3 + $0x60] sm:$0xf]  ;;  %v2348_v41 = vld [vmem:[#allocation3 + $0x64] sm:$0x1]  ;;  %v10015_v39 = vsel %vm9077_vm13, %v7423_v50, %v3026_v2  ;;  %v1031_v56 = vmul.f32 %v10019_v8, %v998_v9  ;;  %v1913_v2 = vld [vmem:[#allocation3 + $0x68] sm:$0xf] }
 0x23d   :  { %v2588_v36 = vld [vmem:[#allocation3 + $0x60] sm:$0xe]  ;;  %v1771_v63 = vshrl.u32 %v7824_v61, 16  ;;  %v1774_v59 = vshll.u32 %v7824_v61, 16  ;;  %v10022_v6 = vrot.slane %v2935_v25, 4  ;;  %v737_v33 = vpop.permute.xlu1 %736  ;;  %v7460_v1 = vcombine.low %v9970_v27, %v2332_v40 }
 0x23e   :  { %3132 = vrot.lane.b32.xlu0 %v7444_v14, %s8573_s9  ;;  %v2482_v55 = vshrl.u32 %v2332_v40, 16  ;;  %v2485_v15 = vshll.u32 %v2332_v40, 16  ;;  %v7409_v50 = vrot.slane %v2588_v36, 9  ;;  %v766_v60 = vmul.f32 %v10026_v35, %v737_v33  ;;  %v1260_v21 = vpop.permute.xlu0 %1259  ;;  %v10033_v16 = vld [vmem:[#allocation3 + $0x60] sm:$0xf] }
 0x23f   :  { %v1773_v58 = vrot.slane %v1771_v63, 7  ;;  %v2665_v32 = vrot.slane %v2348_v41, 5  ;;  %v2475_v51 = vrot.slane %v2474_v37, 4  ;;  %v2491_v7 = vshll.u32 %v2348_v41, 16  ;;  %v10035_v36 = vld [vmem:[#allocation9 + $0x7] ss:$0 sm:$0xff] }
 0x240   :  { %v2484_v38 = vrot.slane %v2482_v55, 4  ;;  %v2487_v10 = vrot.slane %v2485_v15, 5  ;;  %v517_v61 = vadd.f32 %v501_v52, %v368_v62  ;;  %v1047_v14 = vadd.f32 %v1031_v56, %v914_v53  ;;  %v10039_v33 = vld [vmem:[#allocation3 + $0x60] sm:$0xf]  ;;  %v10049_v56 = vld [vmem:[#allocation3 + $0x64] sm:$0x1] }
 0x241   :  { %v1776_v27 = vor.u32 %v1774_v59, %v1773_v58  ;;  %v1777_v5 = vrot.slane %v1773_v58, 4  ;;  %v2666_v9 = vsel %vm9077_vm13, %v7409_v50, %v2665_v32  ;;  %v782_v40 = vadd.f32 %v766_v60, %v649_v54  ;;  %v609_v41 = vpop.permute.xlu1 %608  ;;  %v10054_v58 = vld [vmem:[#allocation9 + $0x6] ss:$0 sm:$0xff]  ;;  %v1975_v60 = vld [vmem:[#allocation3 + $0x64] sm:$0x1] }
 0x242   :  { %v1297_v37 = vmul.f32 %v10035_v36, %v1260_v21  ;;  %3228 = vrot.lane.b32.xlu0 %v7460_v1, %s8575_s0  ;;  %v2488_v63 = vor.u32 %v2487_v10, %v2484_v38  ;;  %v1132_v59 = vpop.permute.xlu0 %1131  ;;  %v7476_v53 = vcombine.low %v9998_v45, %v2666_v9  ;;  %v2480_v54 = vsel %vm9131_vm0, %v2475_v51, %v10002_v57 }
 0x243   :  { %v1914_v62 = vsel %vm9053_vm10, %v1776_v27, %v1913_v2  ;;  %v1917_v52 = vsel %vm8854_vm6, %v1777_v5, %v1916_v44  ;;  %v2493_v55 = vrot.slane %v2491_v7, 5  ;;  %v2837_v15 = vshrl.u32 %v10033_v16, 16  ;;  %v2218_v7 = vld [vmem:[#allocation3 + $0x60] sm:$0xe] }
 0x244   :  { %1915 = vst [vmem:[#allocation3 + $0x68] sm:$0xf] %v1914_v62  ;;  %1918 = vst [vmem:[#allocation3 + $0x6c] sm:$0x1] %v1917_v52  ;;  %v2489_v1 = vrot.slane %v2488_v63, 4  ;;  %v2840_v50 = vshll.u32 %v10033_v16, 16  ;;  %v634_v2 = vmul.f32 %v9980_v18, %v609_v41  ;;  %v1165_v45 = vmul.f32 %v10054_v58, %v1132_v59 }
 0x245   :  { %v2125_v21 = vshrl.u32 %v10039_v33, 16  ;;  %v2128_v57 = vshll.u32 %v10039_v33, 16  ;;  %v870_v32 = vpop.permute.xlu1 %869  ;;  %v2839_v44 = vrot.slane %v2837_v15, 4  ;;  %v2846_v10 = vshll.u32 %v10049_v56, 16  ;;  %v10065_v62 = vld [vmem:[#allocation9 + $0x8] ss:$0 sm:$0xff] }
 0x246   :  { %3308 = vrot.lane.b32.xlu0 %v7476_v53, %s8576_s4  ;;  %v2494_v51 = vsel %vm9131_vm0, %v2489_v1, %v2493_v55  ;;  %v2842_v38 = vrot.slane %v2840_v50, 5  ;;  %v1313_v27 = vadd.f32 %v1297_v37, %v9993_v48  ;;  %v899_v5 = vmul.f32 %v9600_v24, %v870_v32  ;;  %v1393_v9 = vpop.permute.xlu0 %1392 }
 0x247   :  { %v7468_v41 = vcombine.low %v2480_v54, %v2494_v51  ;;  %v2127_v63 = vrot.slane %v2125_v21, 4  ;;  %v1430_v52 = vmul.f32 %v10065_v62, %v1393_v9  ;;  %v2130_v53 = vrot.slane %v2128_v57, 5 }
 0x248   :  { %v2843_v59 = vor.u32 %v2842_v38, %v2839_v44  ;;  %v2134_v43 = vshll.u32 %v1975_v60, 16  ;;  %v650_v1 = vadd.f32 %v634_v2, %v517_v61  ;;  %v7394_v55 = vrot.slane %v2218_v7, 9 }
 0x249   :  { %3268 = vrot.lane.b32.xlu1 %v7468_v41, %s8561_s1  ;;  %v2301_v15 = vrot.slane %v1975_v60, 5  ;;  %v10071_v48 = vrot.slane %v2938_v23, 5  ;;  %v1181_v24 = vadd.f32 %v1165_v45, %v1047_v14  ;;  %v1446_v37 = vadd.f32 %v1430_v52, %v1313_v27  ;;  %v742_v54 = vpop.permute.xlu1 %741 }
 0x24a   :  { %v10073_v50 = vrot.slane %v2846_v10, 5  ;;  %v2131_v21 = vor.u32 %v2130_v53, %v2127_v63  ;;  %v10075_v32 = vadd.f32 %v899_v5, %v782_v40  ;;  %v767_v57 = vmul.f32 %v10026_v35, %v742_v54  ;;  %v1265_v51 = vpop.permute.xlu0 %1264 }
 0x24b   :  { %v2701_v61 = vld [vmem:[#allocation3 + $0x68] sm:$0xf]  ;;  %v10078_v2 = vld [vmem:[#allocation3 + $0x6c] sm:$0x1]  ;;  %v2844_v44 = vrot.slane %v2843_v59, 4  ;;  %v10080_v60 = vrot.slane %v2134_v43, 5  ;;  %v1469_v23 = vadd.f32 %v10082_v47, %v1446_v37  ;;  %v1298_v14 = vmul.f32 %v10035_v36, %v1265_v51 }
 0x24c   :  { %v7484_v45 = vcombine.low %v10033_v16, %v2701_v61  ;;  %v2851_v38 = vshrl.u32 %v2701_v61, 16  ;;  %v10087_v40 = vld [vmem:[#allocation3 + $0x68] sm:$0xf]  ;;  %v2854_v10 = vshll.u32 %v2701_v61, 16  ;;  %v2860_v7 = vshll.u32 %v10078_v2, 16 }
 0x24d   :  { %v10092_v27 = vsel %vm9077_vm13, %v7394_v55, %v2301_v15  ;;  %v1485_v5 = vmax.f32 %v1469_v23, 0.0  ;;  %v10096_v9 = vadd.f32 %v767_v57, %v650_v1  ;;  %v348_v41 = vpop.permute.xlu1 %347  ;;  %v1976_v63 = vld [vmem:[#allocation3 + $0x6c] sm:$0x1]  ;;  %v10099_v52 = vrot.slane %v2131_v21, 4  ;;  %v2219_v54 = vld [vmem:[#allocation3 + $0x68] sm:$0xe] }
 0x24e   :  { %3364 = vrot.lane.b32.xlu1 %v7484_v45, %s8577_s30  ;;  %v2853_v16 = vrot.slane %v2851_v38, 4  ;;  %v1314_v59 = vadd.f32 %v1298_v14, %v1181_v24  ;;  %v2856_v53 = vrot.slane %v2854_v10, 5  ;;  %v481_v37 = vpop.permute.xlu0 %480  ;;  %v2849_v55 = vsel %vm9131_vm0, %v2844_v44, %v10073_v50  ;;  %v2589_v12 = vld [vmem:[#allocation3 + $0x68] sm:$0xe]  ;;  %v10115_v43 = vld [vmem:[#allocation9 + $0x4] ss:$0 sm:$0xff] }
 0x24f   :  { %v2139_v15 = vshrl.u32 %v10087_v40, 16  ;;  %v7825_v51 = vpack.c.bf16 %v1485_v5, %v1485_v5  ;;  %v369_v1 = vmul.f32 %v9928_v49, %v348_v41  ;;  %v502_v57 = vmul.f32 %v9931_v42, %v481_v37  ;;  %v10112_v5 = vld [vmem:[#allocation3 + $0x68] sm:$0xf] }
 0x250   :  { %v2142_v61 = vshll.u32 %v10087_v40, 16  ;;  %v2857_v23 = vor.u32 %v2856_v53, %v2853_v16  ;;  %v2862_v21 = vrot.slane %v2860_v7, 5  ;;  %v2148_v24 = vshll.u32 %v1976_v63, 16  ;;  %v1919_v7 = vld [vmem:[#allocation3 + $0x70] sm:$0xf] }
 0x251   :  { %v2141_v45 = vrot.slane %v2139_v15, 4  ;;  %v1779_v14 = vshrl.u32 %v7825_v51, 16  ;;  %v1003_v38 = vpop.permute.xlu1 %1002  ;;  %v2137_v50 = vsel %vm9131_vm0, %v10099_v52, %v10080_v60  ;;  %v7395_v10 = vrot.slane %v2219_v54, 9 }
 0x252   :  { %v2144_v44 = vrot.slane %v2142_v61, 5  ;;  %v1782_v49 = vshll.u32 %v7825_v51, 16  ;;  %v1032_v42 = vmul.f32 %v10019_v8, %v1003_v38  ;;  %v875_v41 = vpop.permute.xlu0 %874  ;;  %v2858_v37 = vrot.slane %v2857_v23, 4  ;;  %v2349_v61 = vld [vmem:[#allocation3 + $0x6c] sm:$0x1] }
 0x253   :  { %v2305_v16 = vrot.slane %v1976_v63, 5  ;;  %v1781_v53 = vrot.slane %v1779_v14, 7  ;;  %v518_v15 = vadd.f32 %v502_v57, %v369_v1  ;;  %v2150_v20 = vrot.slane %v2148_v24, 5 }
 0x254   :  { %v2145_v25 = vor.u32 %v2144_v44, %v2141_v45  ;;  %v900_v60 = vmul.f32 %v10115_v43, %v875_v41  ;;  %v2863_v52 = vsel %vm9131_vm0, %v2858_v37, %v2862_v21  ;;  %v2496_v54 = vshrl.u32 %v10112_v5, 16 }
 0x255   :  { %v2499_v51 = vshll.u32 %v10112_v5, 16  ;;  %v1784_v63 = vor.u32 %v1782_v49, %v1781_v53  ;;  %v1785_v23 = vrot.slane %v1781_v53, 4  ;;  %v1048_v1 = vadd.f32 %v1032_v42, %v10075_v32  ;;  %v1398_v57 = vpop.permute.xlu1 %1397 }
 0x256   :  { %v7492_v45 = vcombine.low %v2849_v55, %v2863_v52  ;;  %v1431_v24 = vmul.f32 %v10065_v62, %v1398_v57  ;;  %v2146_v14 = vrot.slane %v2145_v25, 4  ;;  %v614_v38 = vpop.permute.xlu0 %613  ;;  %v2306_v44 = vsel %vm9077_vm13, %v7395_v10, %v2305_v16 }
 0x257   :  { %v7410_v41 = vrot.slane %v2589_v12, 9  ;;  %v1920_v21 = vsel %vm9053_vm10, %v1784_v63, %v1919_v7  ;;  %v1923_v37 = vsel %vm8854_vm6, %v1785_v23, %v1922_v29  ;;  %v635_v32 = vmul.f32 %v9980_v18, %v614_v38  ;;  %v2956_v12 = vld [vmem:[#allocation3 + $0x60] sm:$0xe] }
 0x258   :  { %3404 = vrot.lane.b32.xlu0 %v7492_v45, %s8578_s12  ;;  %v2669_v49 = vrot.slane %v2349_v61, 5  ;;  %1921 = vst [vmem:[#allocation3 + $0x70] sm:$0xf] %v1920_v21  ;;  %1924 = vst [vmem:[#allocation3 + $0x74] sm:$0x1] %v1923_v37  ;;  %v1447_v55 = vadd.f32 %v1431_v24, %v1314_v59  ;;  %v2151_v25 = vsel %vm9131_vm0, %v2146_v14, %v2150_v20  ;;  %v2498_v42 = vrot.slane %v2496_v54, 4 }
 0x259   :  { %v2501_v10 = vrot.slane %v2499_v51, 5  ;;  %v916_v16 = vadd.f32 %v900_v60, %v10096_v9  ;;  %v7445_v7 = vcombine.low %v2137_v50, %v2151_v25  ;;  %v1137_v53 = vpop.permute.xlu1 %1136  ;;  %v7453_v29 = vcombine.low %v10092_v27, %v2306_v44  ;;  %v10138_v45 = vld [vmem:[#allocation3 + $0x9c] sm:$0x1]  ;;  %v2957_v20 = vld [vmem:[#allocation3 + $0x68] sm:$0xe] }
 0x25a   :  { %v2505_v52 = vshll.u32 %v2349_v61, 16  ;;  %v1470_v63 = vadd.f32 %v10082_v47, %v1447_v55  ;;  %v651_v18 = vadd.f32 %v635_v32, %v518_v15  ;;  %v1166_v23 = vmul.f32 %v10054_v58, %v1137_v53  ;;  %v1008_v57 = vpop.permute.xlu0 %1007 }
 0x25b   :  { %v2502_v59 = vor.u32 %v2501_v10, %v2498_v42  ;;  %3134 = vrot.lane.b32.xlu1 %v7445_v7, %s8573_s9  ;;  %v1033_v9 = vmul.f32 %v10019_v8, %v1008_v57  ;;  %v10145_v27 = vsel %vm9077_vm13, %v7410_v41, %v2669_v49  ;;  %v2944_v50 = vshll.u32 %v10138_v45, 16 }
 0x25c   :  { %3174 = vrot.lane.b32.xlu0 %v7453_v29, %s8574_s16  ;;  %v7424_v15 = vrot.slane %v2956_v12, 9  ;;  %v1486_v60 = vmax.f32 %v1470_v63, 0.0  ;;  %v11968_v51 = vor.u32 %v10071_v48, %v10022_v6  ;;  %v3030_v24 = vrot.slane %v10049_v56, 5 }
 0x25d   :  { %v10148_v54 = vrot.slane %v2502_v59, 4  ;;  %v747_v14 = vpop.permute.xlu1 %746  ;;  %v10156_v38 = vrot.slane %v2505_v52, 5  ;;  %v10158_v44 = vrot.slane %v2944_v50, 5  ;;  %v7425_v41 = vrot.slane %v2957_v20, 9  ;;  %v1925_v59 = vld [vmem:[#allocation3 + $0x78] sm:$0xf] }
 0x25e   :  { %v10153_v61 = vrot.slane %v11968_v51, 4  ;;  %v3034_v21 = vrot.slane %v10078_v2, 5  ;;  %v7826_v37 = vpack.c.bf16 %v1486_v60, %v1486_v60  ;;  %v1182_v32 = vadd.f32 %v1166_v23, %v1048_v1  ;;  %v1270_v25 = vpop.permute.xlu0 %1269  ;;  %v1928_v60 = vld [vmem:[#allocation3 + $0x7c] sm:$0x1] }
 0x25f   :  { %v1049_v49 = vadd.f32 %v1033_v9, %v916_v16  ;;  %v768_v55 = vmul.f32 %v10026_v35, %v747_v14  ;;  %v1299_v6 = vmul.f32 %v10035_v36, %v1270_v25  ;;  %v2334_v48 = vld [vmem:[#allocation3 + $0x70] sm:$0xf]  ;;  %v2350_v42 = vld [vmem:[#allocation3 + $0x74] sm:$0x1]  ;;  %v2508_v56 = vsel %vm9131_vm0, %v10148_v54, %v10156_v38 }
 0x260   :  { %v2590_v10 = vld [vmem:[#allocation3 + $0x70] sm:$0xe]  ;;  %v10169_v12 = vsel %vm9077_vm13, %v7424_v15, %v3030_v24  ;;  %v7437_v2 = vcombine.low %v10039_v33, %v10087_v40  ;;  %v1787_v1 = vshrl.u32 %v7826_v37, 16  ;;  %v7461_v35 = vcombine.low %v10112_v5, %v2334_v48  ;;  %v3812_v40 = vld [vmem:[#allocation4 + $0x20] sm:$0x1] }
 0x261   :  { %v10174_v16 = vld [vmem:[#allocation3 + $0x70] sm:$0xf]  ;;  %v2947_v7 = vsel %vm9131_vm0, %v10153_v61, %v10158_v44  ;;  %v10182_v53 = vsel %vm9077_vm13, %v7425_v41, %v3034_v21  ;;  %v1790_v29 = vshll.u32 %v7826_v37, 16  ;;  %v1142_v52 = vpop.permute.xlu1 %1141  ;;  %v2510_v63 = vshrl.u32 %v2334_v48, 16 }
 0x262   :  { %v2513_v23 = vshll.u32 %v2334_v48, 16  ;;  %v7411_v57 = vrot.slane %v2590_v10, 9  ;;  %v1789_v20 = vrot.slane %v1787_v1, 7  ;;  %v1167_v5 = vmul.f32 %v10054_v58, %v1142_v52  ;;  %3230 = vrot.lane.b32.xlu1 %v7461_v35, %s8575_s0  ;;  %v880_v9 = vpop.permute.xlu0 %879  ;;  %v1977_v52 = vld [vmem:[#allocation3 + $0x74] sm:$0x1] }
 0x263   :  { %v2673_v50 = vrot.slane %v2350_v42, 5  ;;  %v2519_v15 = vshll.u32 %v2350_v42, 16  ;;  %v784_v54 = vadd.f32 %v768_v55, %v651_v18  ;;  %v2512_v51 = vrot.slane %v2510_v63, 4  ;;  %v10191_v42 = vld [vmem:[#allocation3 + $0x74] sm:$0x1] }
 0x264   :  { %v2515_v24 = vrot.slane %v2513_v23, 5  ;;  %v2865_v14 = vshrl.u32 %v10174_v16, 16  ;;  %v1792_v38 = vor.u32 %v1790_v29, %v1789_v20  ;;  %v1793_v41 = vrot.slane %v1789_v20, 4  ;;  %v10193_v18 = vld [vmem:[#allocation3 + $0x70] sm:$0xf] }
 0x265   :  { %v1315_v21 = vadd.f32 %v1299_v6, %v1182_v32  ;;  %v2674_v37 = vsel %vm9077_vm13, %v7411_v57, %v2673_v50  ;;  %v1183_v25 = vadd.f32 %v1167_v5, %v1049_v49  ;;  %v901_v48 = vmul.f32 %v10115_v43, %v880_v9  ;;  %v1403_v10 = vpop.permute.xlu1 %1402 }
 0x266   :  { %v7477_v1 = vcombine.low %v10145_v27, %v2674_v37  ;;  %v2516_v35 = vor.u32 %v2515_v24, %v2512_v51  ;;  %v1926_v55 = vsel %vm9053_vm10, %v1792_v38, %v1925_v59  ;;  %v1929_v32 = vsel %vm8854_vm6, %v1793_v41, %v1928_v60  ;;  %v1275_v29 = vpop.permute.xlu0 %1274  ;;  %v2220_v24 = vld [vmem:[#allocation3 + $0x70] sm:$0xe] }
 0x267   :  { %v1432_v6 = vmul.f32 %v10065_v62, %v1403_v10  ;;  %v2521_v49 = vrot.slane %v2519_v15, 5  ;;  %1927 = vst [vmem:[#allocation3 + $0x78] sm:$0xf] %v1926_v55  ;;  %1930 = vst [vmem:[#allocation3 + $0x7c] sm:$0x1] %v1929_v32  ;;  %v1300_v43 = vmul.f32 %v10035_v36, %v1275_v29  ;;  %v2867_v63 = vrot.slane %v2865_v14, 4 }
 0x268   :  { %3310 = vrot.lane.b32.xlu1 %v7477_v1, %s8576_s4  ;;  %v2517_v27 = vrot.slane %v2516_v35, 4  ;;  %v2868_v23 = vshll.u32 %v10174_v16, 16  ;;  %v2874_v59 = vshll.u32 %v10191_v42, 16  ;;  %v2153_v20 = vshrl.u32 %v10193_v18, 16 }
 0x269   :  { %v1448_v57 = vadd.f32 %v1432_v6, %v1315_v21  ;;  %v2156_v5 = vshll.u32 %v10193_v18, 16  ;;  %v917_v9 = vadd.f32 %v901_v48, %v784_v54  ;;  %v1013_v50 = vpop.permute.xlu1 %1012  ;;  %v2162_v51 = vshll.u32 %v1977_v52, 16 }
 0x26a   :  { %v2522_v15 = vsel %vm9131_vm0, %v2517_v27, %v2521_v49  ;;  %v2870_v60 = vrot.slane %v2868_v23, 5  ;;  %v1034_v14 = vmul.f32 %v10019_v8, %v1013_v50  ;;  %v1408_v41 = vpop.permute.xlu0 %1407  ;;  %v2155_v37 = vrot.slane %v2153_v20, 4 }
 0x26b   :  { %v1471_v38 = vadd.f32 %v10082_v47, %v1448_v57  ;;  %v7469_v21 = vcombine.low %v2508_v56, %v2522_v15  ;;  %v1316_v10 = vadd.f32 %v1300_v43, %v1183_v25  ;;  %v1433_v1 = vmul.f32 %v10065_v62, %v1408_v41 }
 0x26c   :  { %v2871_v35 = vor.u32 %v2870_v60, %v2867_v63  ;;  %v2158_v54 = vrot.slane %v2156_v5, 5  ;;  %v10212_v55 = vrot.slane %v2874_v59, 5  ;;  %v7396_v32 = vrot.slane %v2220_v24, 9 }
 0x26d   :  { %v1487_v48 = vmax.f32 %v1471_v38, 0.0  ;;  %3270 = vrot.lane.b32.xlu0 %v7469_v21, %s8561_s1  ;;  %v2309_v6 = vrot.slane %v1977_v52, 5  ;;  %v1050_v29 = vadd.f32 %v1034_v14, %v917_v9  ;;  %v1449_v49 = vadd.f32 %v1433_v1, %v1316_v10  ;;  %v1147_v8 = vpop.permute.xlu1 %1146 }
 0x26e   :  { %v10214_v27 = vrot.slane %v2162_v51, 5  ;;  %v7500_v56 = vcombine.low %v10169_v12, %v10182_v53  ;;  %v1168_v43 = vmul.f32 %v10054_v58, %v1147_v8  ;;  %v1280_v63 = vpop.permute.xlu0 %1279  ;;  %v2703_v23 = vld [vmem:[#allocation3 + $0x78] sm:$0xf]  ;;  %v10219_v57 = vld [vmem:[#allocation3 + $0x7c] sm:$0x1]  ;;  %v10221_v20 = vrot.slane %v2871_v35, 4 }
 0x26f   :  { %v7827_v25 = vpack.c.bf16 %v1487_v48, %v1487_v48  ;;  %v2159_v59 = vor.u32 %v2158_v54, %v2155_v37  ;;  %v1472_v52 = vadd.f32 %v10082_v47, %v1449_v49  ;;  %v1301_v5 = vmul.f32 %v10035_v36, %v1280_v63  ;;  %v10233_v35 = vld [vmem:[#allocation3 + $0x78] sm:$0xf]  ;;  %v1931_v54 = vld [vmem:[#allocation3 + $0x80] sm:$0xf]  ;;  %v1934_v48 = vld [vmem:[#allocation3 + $0x84] sm:$0x1] }
 0x270   :  { %v7485_v9 = vcombine.low %v10174_v16, %v2703_v23  ;;  %v2879_v50 = vshrl.u32 %v2703_v23, 16  ;;  %vm3495_vm8 = vcmask 523264   ;;  %v1184_v60 = vadd.f32 %v1168_v43, %v1050_v29  ;;  %v11970_v29 = vld [vmem:[#allocation32_spill] sm:$0xff] }
 0x271   :  { %v1795_v15 = vshrl.u32 %v7827_v25, 16  ;;  %v2882_v51 = vshll.u32 %v2703_v23, 16  ;;  %v10228_v58 = vsel %vm9077_vm13, %v7396_v32, %v2309_v6  ;;  %v1798_v24 = vshll.u32 %v7827_v25, 16  ;;  %v1413_v14 = vpop.permute.xlu1 %1412  ;;  %v11969_v6 = vld [vmem:[#allocation31_spill] sm:$0xff] }
 0x272   :  { %v1488_v38 = vmax.f32 %v1472_v52, 0.0  ;;  %3366 = vrot.lane.b32.xlu0 %v7485_v9, %s8577_s30  ;;  %v2881_v41 = vrot.slane %v2879_v50, 4  ;;  %v2888_v21 = vshll.u32 %v10219_v57, 16  ;;  %v1317_v16 = vadd.f32 %v1301_v5, %v1184_v60  ;;  %v3125_v1 = vpop.permute.xlu0 %3124  ;;  %v1978_v5 = vld [vmem:[#allocation3 + $0x7c] sm:$0x1] }
 0x273   :  { %v1797_v36 = vrot.slane %v1795_v15, 7  ;;  %v1434_v37 = vmul.f32 %v10065_v62, %v1413_v14  ;;  %v2884_v10 = vrot.slane %v2882_v51, 5  ;;  %v11971_v49 = vcombine.low %v11969_v6, %v11970_v29 }
 0x274   :  { %v7828_v32 = vpack.c.bf16 %v1488_v38, %v1488_v38  ;;  %v2877_v25 = vsel %vm9131_vm0, %v10221_v20, %v10212_v55  ;;  %v2890_v43 = vrot.slane %v2888_v21, 5  ;;  %v10243_v60 = vrot.slane %v2159_v59, 4  ;;  %v2221_v38 = vld [vmem:[#allocation3 + $0x78] sm:$0xe]  ;;  %v1937_v21 = vld [vmem:[#allocation3 + $0x88] sm:$0xf] }
 0x275   :  { %v3439_v8 = vsel %vm3436_vm2, %v11971_v49, %v3125_v1  ;;  %v1800_v62 = vor.u32 %v1798_v24, %v1797_v36  ;;  %v1801_v63 = vrot.slane %v1797_v36, 4  ;;  %v1450_v23 = vadd.f32 %v1434_v37, %v1317_v16  ;;  %v3165_v15 = vpop.permute.xlu1 %3164 }
 0x276   :  { %v2885_v52 = vor.u32 %v2884_v10, %v2881_v41  ;;  %v1803_v9 = vshrl.u32 %v7828_v32, 16  ;;  %v1806_v50 = vshll.u32 %v7828_v32, 16  ;;  %v2167_v51 = vshrl.u32 %v10233_v35, 16  ;;  %v3221_v41 = vpop.permute.xlu0 %3220  ;;  %v1940_v10 = vld [vmem:[#allocation3 + $0x8c] sm:$0x1] }
 0x277   :  { %v1932_v14 = vsel %vm9053_vm10, %v1800_v62, %v1931_v54  ;;  %v1935_v55 = vsel %vm8854_vm6, %v1801_v63, %v1934_v48  ;;  %v1473_v20 = vadd.f32 %v10082_v47, %v1450_v23  ;;  %v3463_v24 = vsel %vm3461_vm3, %v3439_v8, %v3165_v15  ;;  %v10257_v15 = vld [vmem:[#allocation3 + $0x78] sm:$0xf] }
 0x278   :  { %1933 = vst [vmem:[#allocation3 + $0x80] sm:$0xf] %v1932_v14  ;;  %1936 = vst [vmem:[#allocation3 + $0x84] sm:$0x1] %v1935_v55  ;;  %v1805_v36 = vrot.slane %v1803_v9, 7  ;;  %v3480_v59 = vsel %vm3478_vm4, %v3463_v24, %v3221_v41  ;;  %v2886_v16 = vrot.slane %v2885_v52, 4 }
 0x279   :  { %v2169_v37 = vrot.slane %v2167_v51, 4  ;;  %v1489_v1 = vmax.f32 %v1473_v20, 0.0  ;;  %v2170_v54 = vshll.u32 %v10233_v35, 16  ;;  %v2176_v32 = vshll.u32 %v1978_v5, 16  ;;  %v3261_v47 = vpop.permute.xlu1 %3260  ;;  %v2591_v20 = vld [vmem:[#allocation3 + $0x78] sm:$0xe] }
 0x27a   :  { %v7397_v6 = vrot.slane %v2221_v38, 9  ;;  %v1808_v48 = vor.u32 %v1806_v50, %v1805_v36  ;;  %v1809_v29 = vrot.slane %v1805_v36, 4  ;;  %v2891_v49 = vsel %vm9131_vm0, %v2886_v16, %v2890_v43  ;;  %v3301_v52 = vpop.permute.xlu0 %3300  ;;  %v1943_v24 = vld [vmem:[#allocation3 + $0x90] sm:$0xf]  ;;  %v1946_v41 = vld [vmem:[#allocation3 + $0x94] sm:$0x1] }
 0x27b   :  { %v2313_v8 = vrot.slane %v1978_v5, 5  ;;  %v7829_v62 = vpack.c.bf16 %v1489_v1, %v1489_v1  ;;  %v3497_v63 = vsel %vm3495_vm8, %v3480_v59, %v3261_v47  ;;  %v7493_v23 = vcombine.low %v2877_v25, %v2891_v49  ;;  %v2351_v16 = vld [vmem:[#allocation3 + $0x7c] sm:$0x1] }
 0x27c   :  { %v2172_v9 = vrot.slane %v2170_v54, 5  ;;  %v1938_v51 = vsel %vm9053_vm10, %v1808_v48, %v1937_v21  ;;  %v1941_v50 = vsel %vm8854_vm6, %v1809_v29, %v1940_v10  ;;  %v2165_v43 = vsel %vm9131_vm0, %v10243_v60, %v10214_v27 }
 0x27d   :  { %v2178_v5 = vrot.slane %v2176_v32, 5  ;;  %1939 = vst [vmem:[#allocation3 + $0x88] sm:$0xf] %v1938_v51  ;;  %1942 = vst [vmem:[#allocation3 + $0x8c] sm:$0x1] %v1941_v50  ;;  %v1811_v38 = vshrl.u32 %v7829_v62, 16  ;;  %3406 = vrot.lane.b32.xlu1 %v7493_v23, %s8578_s12  ;;  %v3514_v14 = vsel %vm3512_vm11, %v3497_v63, %v3301_v52  ;;  %v2314_v55 = vsel %vm9077_vm13, %v7397_v6, %v2313_v8  ;;  %v3357_v36 = vpop.permute.xlu1 %3356 }
 0x27e   :  { %v2173_v25 = vor.u32 %v2172_v9, %v2169_v37  ;;  %v1814_v21 = vshll.u32 %v7829_v62, 16  ;;  %v7454_v59 = vcombine.low %v10228_v58, %v2314_v55  ;;  %v2524_v27 = vshrl.u32 %v10257_v15, 16  ;;  %v3397_v54 = vpop.permute.xlu0 %3396 }
 0x27f   :  { %v2527_v60 = vshll.u32 %v10257_v15, 16  ;;  %v1813_v10 = vrot.slane %v1811_v38, 7  ;;  %v3531_v37 = vsel %vm3529_vm12, %v3514_v14, %v3357_v36  ;;  %v2336_v32 = vld [vmem:[#allocation3 + $0x80] sm:$0xf]  ;;  %v2352_v48 = vld [vmem:[#allocation3 + $0x84] sm:$0x1]  ;;  %v7438_v6 = vcombine.low %v10193_v18, %v10233_v35 }
 0x280   :  { %v2174_v1 = vrot.slane %v2173_v25, 4  ;;  %v3548_v29 = vsel %vm3546_vm14, %v3531_v37, %v3397_v54  ;;  %v2538_v47 = vshrl.u32 %v2336_v32, 16  ;;  %v2541_v49 = vshll.u32 %v2336_v32, 16  ;;  %v2592_v58 = vld [vmem:[#allocation3 + $0x80] sm:$0xe] }
 0x281   :  { %v7412_v8 = vrot.slane %v2591_v20, 9  ;;  %v1816_v62 = vor.u32 %v1814_v21, %v1813_v10  ;;  %v1817_v63 = vrot.slane %v1813_v10, 4  ;;  %3176 = vrot.lane.b32.xlu1 %v7454_v59, %s8574_s16  ;;  %3707 = vmatmul.mubr.bf16.vlgmr.msra.gmra.mrb[0].mxu0 %v3548_v29  ;;  %v2677_v9 = vrot.slane %v2351_v16, 5  ;;  %v3127_v51 = vpop.permute.xlu1 %3126  ;;  %v11973_v20 = vld [vmem:[#allocation34_spill] sm:$0xff]  ;;  %v11974_v21 = vld [vmem:[#allocation36_spill] sm:$0xff] }
 0x282   :  { %v2179_v23 = vsel %vm9131_vm0, %v2174_v1, %v2178_v5  ;;  %v11972_v50 = vcombine.low %v9951_v4, %v9936_v0  ;;  %v7413_v38 = vrot.slane %v2592_v58, 9  ;;  %v2681_v25 = vrot.slane %v2352_v48, 5  ;;  %v3167_v10 = vpop.permute.xlu0 %3166  ;;  %v10294_v0 = vld [vmem:[#allocation3 + $0x80] sm:$0xf] }
 0x283   :  { %v7446_v52 = vcombine.low %v2165_v43, %v2179_v23  ;;  %v2526_v14 = vrot.slane %v2524_v27, 4  ;;  %v1944_v55 = vsel %vm9053_vm10, %v1816_v62, %v1943_v24  ;;  %v1947_v5 = vsel %vm8854_vm6, %v1817_v63, %v1946_v41  ;;  %vm10450_vm6 = vmand %vm3789_vm9, %vm1564_vm7 }
 0x284   :  { %7515 = vmatprep.mubr.msk.bf16.mxu0 %vm3436_vm2, %v11972_v50  ;;  %v11975_v36 = vcombine.low %v11973_v20, %v11974_v21  ;;  %v7462_v59 = vcombine.low %v10257_v15, %v2336_v32  ;;  %1945 = vst [vmem:[#allocation3 + $0x90] sm:$0xf] %v1944_v55  ;;  %1948 = vst [vmem:[#allocation3 + $0x94] sm:$0x1] %v1947_v5  ;;  %v2678_v26 = vsel %vm9077_vm13, %v7412_v8, %v2677_v9  ;;  %v10302_v29 = vld [vmem:[#allocation3 + $0x88] sm:$0xf] }
 0x285   :  { %3136 = vrot.lane.b32.xlu0 %v7446_v52, %s8573_s9  ;;  %v2682_v28 = vsel %vm9077_vm13, %v7413_v38, %v2681_v25  ;;  %v2529_v4 = vrot.slane %v2527_v60, 5  ;;  %v2533_v24 = vshll.u32 %v2351_v16, 16  ;;  %v2540_v27 = vrot.slane %v2538_v47, 4  ;;  %v3223_v37 = vpop.permute.xlu1 %3222  ;;  %v10306_v8 = vld [vmem:[#allocation3 + $0x84] sm:$0x1] }
 0x286   :  { %v3442_v43 = vsel %vm3436_vm2, %v11975_v36, %v3127_v51  ;;  %v2543_v1 = vrot.slane %v2541_v49, 5  ;;  %v2547_v15 = vshll.u32 %v2352_v48, 16  ;;  %v7478_v54 = vcombine.low %v2678_v26, %v2682_v28  ;;  %v3263_v60 = vpop.permute.xlu0 %3262  ;;  %v10309_v47 = vld [vmem:[#allocation3 + $0x8c] sm:$0x1]  ;;  %v10311_v48 = vld [vmem:[#allocation3 + $0x80] sm:$0xf] }
 0x287   :  { %v3465_v41 = vsel %vm3461_vm3, %v3442_v43, %v3167_v10  ;;  %v2530_v32 = vor.u32 %v2529_v4, %v2526_v14  ;;  %v2893_v58 = vshrl.u32 %v10294_v0, 16  ;;  %v2896_v62 = vshll.u32 %v10294_v0, 16 }
 0x288   :  { %v3482_v63 = vsel %vm3478_vm4, %v3465_v41, %v3223_v37  ;;  %v2535_v16 = vrot.slane %v2533_v24, 5  ;;  %v2544_v23 = vor.u32 %v2543_v1, %v2540_v27  ;;  %v2549_v9 = vrot.slane %v2547_v15, 5  ;;  %v10325_v24 = vld [vmem:[#allocation3 + $0x88] sm:$0xf]  ;;  %v1979_v41 = vld [vmem:[#allocation3 + $0x84] sm:$0x1] }
 0x289   :  { %3232 = vrot.lane.b32.xlu0 %v7462_v59, %s8575_s0  ;;  %v3499_v49 = vsel %vm3495_vm8, %v3482_v63, %v3263_v60  ;;  %v2531_v52 = vrot.slane %v2530_v32, 4  ;;  %v2895_v51 = vrot.slane %v2893_v58, 4  ;;  %v2898_v50 = vrot.slane %v2896_v62, 5  ;;  %v3303_v5 = vpop.permute.xlu1 %3302  ;;  %v1980_v62 = vld [vmem:[#allocation3 + $0x8c] sm:$0x1] }
 0x28a   :  { %v2545_v38 = vrot.slane %v2544_v23, 4  ;;  %v2907_v25 = vshrl.u32 %v10302_v29, 16  ;;  %v2910_v14 = vshll.u32 %v10302_v29, 16  ;;  %v2902_v55 = vshll.u32 %v10306_v8, 16  ;;  %v3359_v26 = vpop.permute.xlu0 %3358 }
 0x28b   :  { %v2536_v20 = vsel %vm9131_vm0, %v2531_v52, %v2535_v16  ;;  %v2899_v21 = vor.u32 %v2898_v50, %v2895_v51  ;;  %v2916_v36 = vshll.u32 %v10309_v47, 16  ;;  %v2181_v43 = vshrl.u32 %v10311_v48, 16  ;;  %v2222_v52 = vld [vmem:[#allocation3 + $0x80] sm:$0xe] }
 0x28c   :  { %v3516_v59 = vsel %vm3512_vm11, %v3499_v49, %v3303_v5  ;;  %v2550_v10 = vsel %vm9131_vm0, %v2545_v38, %v2549_v9  ;;  %v2909_v28 = vrot.slane %v2907_v25, 4  ;;  %v2912_v4 = vrot.slane %v2910_v14, 5  ;;  %v2223_v25 = vld [vmem:[#allocation3 + $0x88] sm:$0xe]  ;;  %v11976_v14 = vld [vmem:[#allocation44_spill] sm:$0xff] }
 0x28d   :  { %3312 = vrot.lane.b32.xlu0 %v7478_v54, %s8576_s4  ;;  %v7470_v27 = vcombine.low %v2536_v20, %v2550_v10  ;;  %v3533_v1 = vsel %vm3529_vm12, %v3516_v59, %v3359_v26  ;;  %v7486_v15 = vcombine.low %v10294_v0, %v10302_v29  ;;  %v2900_v37 = vrot.slane %v2899_v21, 4  ;;  %v3399_v16 = vpop.permute.xlu1 %3398  ;;  %v10342_v59 = vld [vmem:[#allocation3 + $0x88] sm:$0xf] }
 0x28e   :  { %v2904_v32 = vrot.slane %v2902_v55, 5  ;;  %v2913_v58 = vor.u32 %v2912_v4, %v2909_v28  ;;  %v2183_v63 = vrot.slane %v2181_v43, 4  ;;  %v2184_v60 = vshll.u32 %v10311_v48, 16  ;;  %v3129_v51 = vpop.permute.xlu0 %3128  ;;  %v11977_v55 = vld [vmem:[#allocation46_spill] sm:$0xff] }
 0x28f   :  { %3272 = vrot.lane.b32.xlu1 %v7470_v27, %s8561_s1  ;;  %v2918_v23 = vrot.slane %v2916_v36, 5  ;;  %v2190_v9 = vshll.u32 %v1979_v41, 16  ;;  %v2195_v54 = vshrl.u32 %v10325_v24, 16  ;;  %v2198_v49 = vshll.u32 %v10325_v24, 16 }
 0x290   :  { %v2905_v0 = vsel %vm9131_vm0, %v2900_v37, %v2904_v32  ;;  %v2914_v29 = vrot.slane %v2913_v58, 4  ;;  %v3551_v50 = vsel %vm3546_vm14, %v3533_v1, %v3399_v16  ;;  %v2186_v38 = vrot.slane %v2184_v60, 5  ;;  %v2338_v16 = vld [vmem:[#allocation3 + $0x90] sm:$0xf] }
 0x291   :  { %v11978_v5 = vcombine.low %v11976_v14, %v11977_v55  ;;  %3715 = vmatmul.mubr.bf16.gmra.mrb[4].mxu0 %v3551_v50  ;;  %v2197_v21 = vrot.slane %v2195_v54, 4  ;;  %v2200_v36 = vrot.slane %v2198_v49, 5  ;;  %v2204_v43 = vshll.u32 %v1980_v62, 16  ;;  %v3169_v37 = vpop.permute.xlu1 %3168  ;;  %v2354_v50 = vld [vmem:[#allocation3 + $0x94] sm:$0x1] }
 0x292   :  { %v2919_v10 = vsel %vm9131_vm0, %v2914_v29, %v2918_v23  ;;  %v11979_v26 = vcombine.low %v9942_v30, %v9946_v11  ;;  %v2187_v28 = vor.u32 %v2186_v38, %v2183_v63  ;;  %v2192_v4 = vrot.slane %v2190_v9, 5  ;;  %v3225_v23 = vpop.permute.xlu0 %3224 }
 0x293   :  { %v3445_v20 = vsel %vm3436_vm2, %v11978_v5, %v3129_v51  ;;  %v7398_v27 = vrot.slane %v2222_v52, 9  ;;  %3368 = vrot.lane.b32.xlu1 %v7486_v15, %s8577_s30  ;;  %v7494_v1 = vcombine.low %v2905_v0, %v2919_v10  ;;  %v2201_v32 = vor.u32 %v2200_v36, %v2197_v21  ;;  %v2353_v52 = vld [vmem:[#allocation3 + $0x8c] sm:$0x1] }
 0x294   :  { %7516 = vmatprep.mubr.msk.bf16.mxu0 %vm3436_vm2, %v11979_v26  ;;  %v2317_v58 = vrot.slane %v1979_v41, 5  ;;  %v7399_v60 = vrot.slane %v2223_v25, 9  ;;  %v3467_v54 = vsel %vm3461_vm3, %v3445_v20, %v3169_v37  ;;  %v2188_v49 = vrot.slane %v2187_v28, 4  ;;  %v2593_v26 = vld [vmem:[#allocation3 + $0x88] sm:$0xe] }
 0x295   :  { %v2321_v51 = vrot.slane %v1980_v62, 5  ;;  %v2552_v30 = vshrl.u32 %v10342_v59, 16  ;;  %3408 = vrot.lane.b32.xlu0 %v7494_v1, %s8578_s12  ;;  %v2202_v11 = vrot.slane %v2201_v32, 4  ;;  %v2206_v63 = vrot.slane %v2204_v43, 5  ;;  %v3265_v14 = vpop.permute.xlu1 %3264  ;;  %v2594_v28 = vld [vmem:[#allocation3 + $0x90] sm:$0xe] }
 0x296   :  { %v3484_v9 = vsel %vm3478_vm4, %v3467_v54, %v3225_v23  ;;  %v2555_v15 = vshll.u32 %v10342_v59, 16  ;;  %v2193_v41 = vsel %vm9131_vm0, %v2188_v49, %v2192_v4  ;;  %v2318_v0 = vsel %vm9077_vm13, %v7398_v27, %v2317_v58  ;;  %v3305_v36 = vpop.permute.xlu0 %3304  ;;  %v10367_v32 = vld [vmem:[#allocation3 + $0x90] sm:$0xf] }
 0x297   :  { %v2322_v62 = vsel %vm9077_vm13, %v7399_v60, %v2321_v51  ;;  %v2566_v29 = vshrl.u32 %v2338_v16, 16  ;;  %v2207_v38 = vsel %vm9131_vm0, %v2202_v11, %v2206_v63  ;;  %v2569_v55 = vshll.u32 %v2338_v16, 16 }
 0x298   :  { %v7455_v25 = vcombine.low %v2318_v0, %v2322_v62  ;;  %v2554_v5 = vrot.slane %v2552_v30, 4  ;;  %v7447_v20 = vcombine.low %v2193_v41, %v2207_v38  ;;  %v3501_v21 = vsel %vm3495_vm8, %v3484_v9, %v3265_v14  ;;  %v2958_v9 = vld [vmem:[#allocation3 + $0x70] sm:$0xe]  ;;  %v10374_v62 = vld [vmem:[#allocation3 + $0x94] sm:$0x1] }
 0x299   :  { %v2557_v43 = vrot.slane %v2555_v15, 5  ;;  %v2561_v10 = vshll.u32 %v2353_v52, 16  ;;  %v7463_v4 = vcombine.low %v10342_v59, %v2338_v16  ;;  %v2568_v27 = vrot.slane %v2566_v29, 4  ;;  %v3361_v30 = vpop.permute.xlu1 %3360 }
 0x29a   :  { %3178 = vrot.lane.b32.xlu0 %v7455_v25, %s8574_s16  ;;  %v2571_v1 = vrot.slane %v2569_v55, 5  ;;  %v2575_v37 = vshll.u32 %v2354_v50, 16  ;;  %3138 = vrot.lane.b32.xlu1 %v7447_v20, %s8573_s9  ;;  %v3518_v58 = vsel %vm3512_vm11, %v3501_v21, %v3305_v36  ;;  %v2685_v54 = vrot.slane %v2353_v52, 5  ;;  %v3401_v16 = vpop.permute.xlu0 %3400  ;;  %v2959_v20 = vld [vmem:[#allocation3 + $0x78] sm:$0xe] }
 0x29b   :  { %v2558_v60 = vor.u32 %v2557_v43, %v2554_v5  ;;  %v2689_v49 = vrot.slane %v2354_v50, 5  ;;  %v2563_v23 = vrot.slane %v2561_v10, 5  ;;  %v7414_v11 = vrot.slane %v2593_v26, 9 }
 0x29c   :  { %v2572_v51 = vor.u32 %v2571_v1, %v2568_v27  ;;  %v7415_v63 = vrot.slane %v2594_v28, 9  ;;  %v3535_v59 = vsel %vm3529_vm12, %v3518_v58, %v3361_v30  ;;  %v2921_v41 = vshrl.u32 %v10367_v32, 16  ;;  %v2960_v28 = vld [vmem:[#allocation3 + $0x80] sm:$0xe] }
 0x29d   :  { %v2559_v15 = vrot.slane %v2558_v60, 4  ;;  %v2924_v0 = vshll.u32 %v10367_v32, 16  ;;  %v2577_v38 = vrot.slane %v2575_v37, 5  ;;  %v2686_v52 = vsel %vm9077_vm13, %v7414_v11, %v2685_v54  ;;  %v3131_v43 = vpop.permute.xlu1 %3130  ;;  %v2961_v54 = vld [vmem:[#allocation3 + $0x88] sm:$0xe] }
 0x29e   :  { %v2573_v29 = vrot.slane %v2572_v51, 4  ;;  %v2690_v50 = vsel %vm9077_vm13, %v7415_v63, %v2689_v49  ;;  %3234 = vrot.lane.b32.xlu1 %v7463_v4, %s8575_s0  ;;  %v2923_v55 = vrot.slane %v2921_v41, 4  ;;  %v3554_v36 = vsel %vm3546_vm14, %v3535_v59, %v3401_v16  ;;  %v3171_v58 = vpop.permute.xlu0 %3170  ;;  %v8286_v59 = vld [vmem:[#allocation3 + $0x98] sm:$0xf] }
 0x29f   :  { %v2564_v25 = vsel %vm9131_vm0, %v2559_v15, %v2563_v23  ;;  %v7479_v14 = vcombine.low %v2686_v52, %v2690_v50  ;;  %v2926_v5 = vrot.slane %v2924_v0, 5  ;;  %v2930_v10 = vshll.u32 %v10374_v62, 16  ;;  %3723 = vmatmul.mubr.bf16.gmra.mrb[8].mxu0 %v3554_v36 }
 0x2a0   :  { %v2578_v21 = vsel %vm9131_vm0, %v2573_v29, %v2577_v38  ;;  %v7426_v26 = vrot.slane %v2958_v9, 9  ;;  %v11980_v4 = vcombine.low %v9605_v31, %v9655_v22  ;;  %v3038_v60 = vrot.slane %v10191_v42, 5 }
 0x2a1   :  { %v7471_v27 = vcombine.low %v2564_v25, %v2578_v21  ;;  %v2927_v37 = vor.u32 %v2926_v5, %v2923_v55  ;;  %v11981_v49 = vcombine.low %v9965_v17, %v10015_v39  ;;  %v2932_v23 = vrot.slane %v2930_v10, 5  ;;  %v3227_v17 = vpop.permute.xlu1 %3226 }
 0x2a2   :  { %v3448_v1 = vsel %vm3436_vm2, %v11980_v4, %v3131_v43  ;;  %v7427_v30 = vrot.slane %v2959_v20, 9  ;;  %v3042_v11 = vrot.slane %v10219_v57, 5  ;;  %3314 = vrot.lane.b32.xlu1 %v7479_v14, %s8576_s4  ;;  %v3039_v22 = vsel %vm9077_vm13, %v7426_v26, %v3038_v60  ;;  %v3267_v29 = vpop.permute.xlu0 %3266  ;;  %v3864_v60 = vld [vmem:[#allocation4 + $0xc] sm:$0x1] }
 0x2a3   :  { %7517 = vmatprep.mubr.msk.bf16.mxu0 %vm3436_vm2, %v11981_v49  ;;  %v3469_v51 = vsel %vm3461_vm3, %v3448_v1, %v3171_v58  ;;  %3274 = vrot.lane.b32.xlu0 %v7471_v27, %s8561_s1  ;;  %v2928_v31 = vrot.slane %v2927_v37, 4  ;;  %v7428_v42 = vrot.slane %v2960_v28, 9  ;;  %v3046_v63 = vrot.slane %v10306_v8, 5  ;;  %v3803_v58 = vld [vmem:[#allocation4 + $0x8] sm:$0x1] }
 0x2a4   :  { %v3043_v39 = vsel %vm9077_vm13, %v7427_v30, %v3042_v11  ;;  %v7429_v9 = vrot.slane %v2961_v54, 9  ;;  %v3050_v15 = vrot.slane %v10309_v47, 5  ;;  %v7439_v57 = vcombine.low %v10311_v48, %v10325_v24  ;;  %v3867_v30 = vld [vmem:[#allocation4 + $0x14] sm:$0x1] }
 0x2a5   :  { %v7487_v16 = vcombine.low %v10367_v32, %v8286_v59  ;;  %v2933_v41 = vsel %vm9131_vm0, %v2928_v31, %v2932_v23  ;;  %v3486_v0 = vsel %vm3478_vm4, %v3469_v51, %v3227_v17  ;;  %v7501_v8 = vcombine.low %v3039_v22, %v3043_v39  ;;  %v3307_v25 = vpop.permute.xlu1 %3306  ;;  %v3806_v51 = vld [vmem:[#allocation4 + $0x10] sm:$0x1]  ;;  %v3870_v17 = vld [vmem:[#allocation4 + $0x1c] sm:$0x1] }
 0x2a6   :  { %v7495_v38 = vcombine.low %v2933_v41, %v2947_v7  ;;  %v10419_v47 = vsel %vm9077_vm13, %v7428_v42, %v3046_v63  ;;  %v10423_v32 = vsel %vm9077_vm13, %v7429_v9, %v3050_v15  ;;  %v3503_v50 = vsel %vm3495_vm8, %v3486_v0, %v3267_v29  ;;  %v3363_v44 = vpop.permute.xlu0 %3362  ;;  %v3809_v63 = vld [vmem:[#allocation4 + $0x18] sm:$0x1] }
 0x2a7   :  { %3370 = vrot.lane.b32.xlu0 %v7487_v16, %s8577_s30  ;;  %v7502_v52 = vcombine.low %v10419_v47, %v10423_v32  ;;  %v3520_v61 = vsel %vm3512_vm11, %v3503_v50, %v3307_v25  ;;  %v11982_v36 = vcombine.low %v9764_v3, %v9961_v34  ;;  %vm3787_vm10 = vcmask 257024  }
 0x2a8   :  { %3410 = vrot.lane.b32.xlu1 %v7495_v38, %s8578_s12  ;;  %v3537_v7 = vsel %vm3529_vm12, %v3520_v61, %v3363_v44  ;;  %v3804_v54 = vsel %vm10456_vm15, 0, %v3803_v58  ;;  %v3865_v49 = vsel %vm10450_vm6, 0, %v3864_v60  ;;  %3788 = vst.msk [vmem:[#allocation4] sm:$0xf] %vm3787_vm10, %v11920_v19  ;;  %3791 = vst.msk [vmem:[#allocation4 + $0x50] sm:$0xf] %vm3787_vm10, %v11920_v19 }
 0x2a9   :  { %v3403_v14 = vpop.permute.xlu1 %3402  ;;  %3794 = vst.msk [vmem:[#allocation4 + $0x48] sm:$0xf] %vm3787_vm10, %v11920_v19  ;;  %3796 = vst.msk [vmem:[#allocation4 + $0x98] sm:$0xf] %vm3787_vm10, %v11920_v19  ;;  %v3807_v11 = vsel %vm10456_vm15, 0, %v3806_v51  ;;  %v3868_v31 = vsel %vm10450_vm6, 0, %v3867_v30 }
 0x2aa   :  { %v3557_v55 = vsel %vm3546_vm14, %v3537_v7, %v3403_v14  ;;  %3805 = vst [vmem:[#allocation4 + $0x8] sm:$0x1] %v3804_v54  ;;  %3866 = vst [vmem:[#allocation4 + $0xc] sm:$0x1] %v3865_v49  ;;  %v3810_v19 = vsel %vm10456_vm15, 0, %v3809_v63  ;;  %v3871_v39 = vsel %vm10450_vm6, 0, %v3870_v17 }
 0x2ab   :  { %3731 = vmatmul.mubr.bf16.gmra.mrb[12].mxu0 %v3557_v55  ;;  %3808 = vst [vmem:[#allocation4 + $0x10] sm:$0x1] %v3807_v11  ;;  %3869 = vst [vmem:[#allocation4 + $0x14] sm:$0x1] %v3868_v31  ;;  %v3813_v25 = vsel %vm10456_vm15, 0, %v3812_v40  ;;  %vm7323_vm9 = vcmask 1041408  }
 0x2ac   :  { %7518 = vmatprep.mubr.msk.bf16.mxu0 %vm3436_vm2, %v7500_v56  ;;  %3811 = vst [vmem:[#allocation4 + $0x18] sm:$0x1] %v3810_v19  ;;  %3872 = vst [vmem:[#allocation4 + $0x1c] sm:$0x1] %v3871_v39  ;;  %v3815_v44 = vld [vmem:[#allocation4 + $0x28] sm:$0x1] }
 0x2ad   :  { %v3173_v20 = vpop.permute.xlu1 %3172  ;;  %3814 = vst [vmem:[#allocation4 + $0x20] sm:$0x1] %v3813_v25  ;;  %v3876_v7 = vld [vmem:[#allocation4 + $0x2c] sm:$0x1]  ;;  %v3816_v14 = vsel %vm10456_vm15, 0, %v3815_v44  ;;  %vm10579_vm5 = vmand %vm3787_vm10, %vm1564_vm7  ;;  %vm6265_vm7 = vcmask 1041409  }
 0x2ae   :  { %v3877_v55 = vsel %vm10450_vm6, 0, %v3876_v7  ;;  %3817 = vst [vmem:[#allocation4 + $0x28] sm:$0x1] %v3816_v14  ;;  %v3821_v60 = vld [vmem:[#allocation4 + $0x38] sm:$0x1] }
 0x2af   :  { %3878 = vst [vmem:[#allocation4 + $0x2c] sm:$0x1] %v3877_v55  ;;  %v3882_v54 = vld [vmem:[#allocation4 + $0x3c] sm:$0x1]  ;;  %v3822_v30 = vsel %vm10456_vm15, 0, %v3821_v60 }
 0x2b0   :  { %v3133_v5 = vpop.permute.xlu0 %3132  ;;  %v3883_v11 = vsel %vm10450_vm6, 0, %v3882_v54  ;;  %3823 = vst [vmem:[#allocation4 + $0x38] sm:$0x1] %v3822_v30  ;;  %v3894_v25 = vld [vmem:[#allocation4 + $0x5c] sm:$0x1] }
 0x2b1   :  { %v3451_v43 = vsel %vm3436_vm2, %v11982_v36, %v3133_v5  ;;  %v2962_v5 = vld [vmem:[#allocation3 + $0x90] sm:$0xe]  ;;  %3884 = vst [vmem:[#allocation4 + $0x3c] sm:$0x1] %v3883_v11  ;;  %v3895_v44 = vsel %vm10450_vm6, 0, %v3894_v25 }
 0x2b2   :  { %v3471_v26 = vsel %vm3461_vm3, %v3451_v43, %v3173_v20  ;;  %v2963_v20 = vld [vmem:[#allocation3 + $0x98] sm:$0xe]  ;;  %v7430_v43 = vrot.slane %v2962_v5, 9  ;;  %3896 = vst [vmem:[#allocation4 + $0x5c] sm:$0x1] %v3895_v44 }
 0x2b3   :  { %v3827_v7 = vld [vmem:[#allocation4 + $0x48] sm:$0x1]  ;;  %v3836_v14 = vld [vmem:[#allocation4 + $0x60] sm:$0x1]  ;;  %v3897_v55 = vld [vmem:[#allocation4 + $0x64] sm:$0x1] }
 0x2b4   :  { %v3229_v21 = vpop.permute.xlu0 %3228  ;;  %v3888_v5 = vld [vmem:[#allocation4 + $0x4c] sm:$0x1] }
 0x2b5   :  { %v3488_v28 = vsel %vm3478_vm4, %v3471_v26, %v3229_v21 }
 0x2b8   :  { %v3309_v27 = vpop.permute.xlu0 %3308 }
 0x2bb   :  { %v3269_v10 = vpop.permute.xlu1 %3268 }
 0x2bc   :  { %v3505_v4 = vsel %vm3495_vm8, %v3488_v28, %v3269_v10  ;;  %v3054_v10 = vrot.slane %v10374_v62, 5 }
 0x2bd   :  { %v3522_v12 = vsel %vm3512_vm11, %v3505_v4, %v3309_v27  ;;  %v7431_v27 = vrot.slane %v2963_v20, 9  ;;  %v3058_v4 = vrot.slane %v10138_v45, 5  ;;  %v3889_v20 = vsel %vm10450_vm6, 0, %v3888_v5 }
 0x2be   :  { %v3055_v45 = vsel %vm9077_vm13, %v7430_v43, %v3054_v10  ;;  %3890 = vst [vmem:[#allocation4 + $0x4c] sm:$0x1] %v3889_v20 }
 0x2bf   :  { %v3059_v51 = vsel %vm9077_vm13, %v7431_v27, %v3058_v4 }
 0x2c0   :  { %v3365_v1 = vpop.permute.xlu1 %3364  ;;  %v7503_v63 = vcombine.low %v3055_v45, %v3059_v51 }
 0x2c1   :  { %v3539_v53 = vsel %vm3529_vm12, %v3522_v12, %v3365_v1  ;;  %v3800_v1 = vld [vmem:[#allocation4] sm:$0x1]  ;;  %v3861_v12 = vld [vmem:[#allocation4 + $0x4] sm:$0x1] }
 0x2c2   :  { %v3801_v18 = vsel %vm10456_vm15, 0, %v3800_v1  ;;  %v3862_v35 = vsel %vm10450_vm6, 0, %v3861_v12  ;;  %v10565_v1 = vld [vmem:[#allocation14] ss:$0 sm:$0xff]  ;;  %v3842_v12 = vld [vmem:[#allocation4 + $0x70] sm:$0x1] }
 0x2c3   :  { %3802 = vst [vmem:[#allocation4] sm:$0x1] %v3801_v18  ;;  %3863 = vst [vmem:[#allocation4 + $0x4] sm:$0x1] %v3862_v35  ;;  %v3843_v18 = vsel %vm10456_vm15, 0, %v3842_v12 }
 0x2c4   :  { %3844 = vst [vmem:[#allocation4 + $0x70] sm:$0x1] %v3843_v18 }
 0x2ca   :  { %v3405_v56 = vpop.permute.xlu0 %3404 }
 0x2cb   :  { %v3560_v37 = vsel %vm3546_vm14, %v3539_v53, %v3405_v56 }
 0x2cc   :  { %3739 = vmatmul.mubr.bf16.gmra.mrb[16].mxu0 %v3560_v37  ;;  %v3879_v37 = vld [vmem:[#allocation4 + $0x34] sm:$0x1] }
 0x2cd   :  { %7519 = vmatprep.mubr.msk.bf16.mxu0 %vm3436_vm2, %v7501_v8  ;;  %v3135_v23 = vpop.permute.xlu1 %3134  ;;  %v3880_v58 = vsel %vm10450_vm6, 0, %v3879_v37  ;;  %v4244_v37 = vld [vmem:[#allocation4] sm:$0xf] }
 0x2ce   :  { %v3175_v22 = vpop.permute.xlu0 %3174  ;;  %v3454_v9 = vsel %vm3436_vm2, %v7437_v2, %v3135_v23  ;;  %v3873_v2 = vld [vmem:[#allocation4 + $0x24] sm:$0x1]  ;;  %3881 = vst [vmem:[#allocation4 + $0x34] sm:$0x1] %v3880_v58  ;;  %v4280_v11 = vshll.u32 %v4244_v37, 16 }
 0x2cf   :  { %v3473_v59 = vsel %vm3461_vm3, %v3454_v9, %v3175_v22  ;;  %v3874_v61 = vsel %vm10450_vm6, 0, %v3873_v2  ;;  %v3824_v9 = vld [vmem:[#allocation4 + $0x40] sm:$0x1]  ;;  %v3833_v2 = vld [vmem:[#allocation4 + $0x58] sm:$0x1] }
 0x2d0   :  { %3875 = vst [vmem:[#allocation4 + $0x24] sm:$0x1] %v3874_v61  ;;  %v3834_v61 = vsel %vm10456_vm15, 0, %v3833_v2  ;;  %v4157_v2 = vld [vmem:[#allocation4 + $0x14] sm:$0x1] }
 0x2d1   :  { %3835 = vst [vmem:[#allocation4 + $0x58] sm:$0x1] %v3834_v61 }
 0x2d4   :  { %v3231_v42 = vpop.permute.xlu1 %3230 }
 0x2d5   :  { %v3490_v16 = vsel %vm3478_vm4, %v3473_v59, %v3231_v42  ;;  %v3885_v59 = vld [vmem:[#allocation4 + $0x44] sm:$0x1] }
 0x2da   :  { %v3311_v41 = vpop.permute.xlu1 %3310 }
 0x2df   :  { %v3271_v15 = vpop.permute.xlu0 %3270 }
 0x2e0   :  { %v3507_v0 = vsel %vm3495_vm8, %v3490_v16, %v3271_v15  ;;  %v3825_v15 = vsel %vm10456_vm15, 0, %v3824_v9 }
 0x2e1   :  { %v3524_v8 = vsel %vm3512_vm11, %v3507_v0, %v3311_v41  ;;  %3826 = vst [vmem:[#allocation4 + $0x40] sm:$0x1] %v3825_v15  ;;  %v3886_v41 = vsel %vm10450_vm6, 0, %v3885_v59 }
 0x2e2   :  { %3887 = vst [vmem:[#allocation4 + $0x44] sm:$0x1] %v3886_v41 }
 0x2e4   :  { %v3367_v29 = vpop.permute.xlu0 %3366 }
 0x2e5   :  { %v3541_v38 = vsel %vm3529_vm12, %v3524_v8, %v3367_v29 }
 0x2ef   :  { %v3407_v50 = vpop.permute.xlu1 %3406 }
 0x2f0   :  { %v3563_v33 = vsel %vm3546_vm14, %v3541_v38, %v3407_v50 }
 0x2f1   :  { %3747 = vmatmul.mubr.bf16.gmra.mrb[20].mxu0 %v3563_v33 }
 0x2f2   :  { %7520 = vmatprep.mubr.msk.bf16.mxu0 %vm3436_vm2, %v7502_v52 }
 0x2f3   :  { %v3177_v32 = vpop.permute.xlu1 %3176 }
 0x2f7   :  { %v3137_v47 = vpop.permute.xlu0 %3136 }
 0x2f8   :  { %v3457_v21 = vsel %vm3436_vm2, %v7438_v6, %v3137_v47  ;;  %v3818_v6 = vld [vmem:[#allocation4 + $0x30] sm:$0x1]  ;;  %v3828_v47 = vsel %vm10456_vm15, 0, %v3827_v7 }
 0x2f9   :  { %v3475_v36 = vsel %vm3461_vm3, %v3457_v21, %v3177_v32  ;;  %v3819_v62 = vsel %vm10456_vm15, 0, %v3818_v6  ;;  %v3837_v32 = vsel %vm10456_vm15, 0, %v3836_v14  ;;  %3829 = vst [vmem:[#allocation4 + $0x48] sm:$0x1] %v3828_v47  ;;  %v3830_v21 = vld [vmem:[#allocation4 + $0x50] sm:$0x1] }
 0x2fa   :  { %3820 = vst [vmem:[#allocation4 + $0x30] sm:$0x1] %v3819_v62  ;;  %3838 = vst [vmem:[#allocation4 + $0x60] sm:$0x1] %v3837_v32  ;;  %v3831_v43 = vsel %vm10456_vm15, 0, %v3830_v21 }
 0x2fb   :  { %v3233_v52 = vpop.permute.xlu0 %3232  ;;  %3832 = vst [vmem:[#allocation4 + $0x50] sm:$0x1] %v3831_v43  ;;  %v4260_v21 = vld [vmem:[#allocation4 + $0x4] sm:$0x1] }
 0x2fc   :  { %v3492_v26 = vsel %vm3478_vm4, %v3475_v36, %v3233_v52  ;;  %v3898_v52 = vsel %vm10450_vm6, 0, %v3897_v55  ;;  %v3891_v36 = vld [vmem:[#allocation4 + $0x54] sm:$0x1] }
 0x2fd   :  { %3899 = vst [vmem:[#allocation4 + $0x64] sm:$0x1] %v3898_v52  ;;  %v3892_v10 = vsel %vm10450_vm6, 0, %v3891_v36 }
 0x2fe   :  { %3893 = vst [vmem:[#allocation4 + $0x54] sm:$0x1] %v3892_v10  ;;  %v4286_v10 = vshll.u32 %v4260_v21, 16 }
 0x2ff   :  { %v3313_v56 = vpop.permute.xlu0 %3312 }
 0x301   :  { %v3273_v28 = vpop.permute.xlu1 %3272 }
 0x302   :  { %v3509_v53 = vsel %vm3495_vm8, %v3492_v26, %v3273_v28  ;;  %v3839_v26 = vld [vmem:[#allocation4 + $0x68] sm:$0x1]  ;;  %v3900_v28 = vld [vmem:[#allocation4 + $0x6c] sm:$0x1]  ;;  %v4252_v41 = vld [vmem:[#allocation4 + $0x50] sm:$0xf] }
 0x303   :  { %v3526_v23 = vsel %vm3512_vm11, %v3509_v53, %v3313_v56  ;;  %v3840_v27 = vsel %vm10456_vm15, 0, %v3839_v26  ;;  %v3901_v4 = vsel %vm10450_vm6, 0, %v3900_v28  ;;  %v3903_v53 = vld [vmem:[#allocation4 + $0x74] sm:$0x1]  ;;  %v4389_v61 = vshrl.u32 %v4252_v41, 16 }
 0x304   :  { %3841 = vst [vmem:[#allocation4 + $0x68] sm:$0x1] %v3840_v27  ;;  %3902 = vst [vmem:[#allocation4 + $0x6c] sm:$0x1] %v3901_v4  ;;  %v3904_v35 = vsel %vm10450_vm6, 0, %v3903_v53  ;;  %v4392_v44 = vshll.u32 %v4252_v41, 16 }
 0x305   :  { %v3369_v49 = vpop.permute.xlu1 %3368  ;;  %3905 = vst [vmem:[#allocation4 + $0x74] sm:$0x1] %v3904_v35  ;;  %v4500_v26 = vld [vmem:[#allocation4] sm:$0xe]  ;;  %v5004_v27 = vld [vmem:[#allocation4 + $0x4c] sm:$0x1] }
 0x306   :  { %v3543_v31 = vsel %vm3529_vm12, %v3526_v23, %v3369_v49  ;;  %v10573_v49 = vld [vmem:[#allocation4 + $0x48] sm:$0xf]  ;;  %v4277_v23 = vshrl.u32 %v4244_v37, 16  ;;  %v5121_v53 = vshll.u32 %v5004_v27, 16  ;;  %v4391_v18 = vrot.slane %v4389_v61, 4 }
 0x307   :  { %v3409_v22 = vpop.permute.xlu0 %3408  ;;  %v4394_v35 = vrot.slane %v4392_v44, 5  ;;  %v10597_v37 = vld [vmem:[#allocation4 + $0x54] sm:$0x1]  ;;  %v4163_v41 = vld [vmem:[#allocation4 + $0x1c] sm:$0x1] }
 0x308   :  { %v3566_v42 = vsel %vm3546_vm14, %v3543_v31, %v3409_v22  ;;  %v5112_v31 = vshrl.u32 %v10573_v49, 16 }
 0x309   :  { %3755 = vmatmul.mubr.bf16.gmra.mrb[24].mxu0 %v3566_v42 }
 0x30a   :  { %7521 = vmatprep.mubr.msk.bf16.mxu0 %vm3436_vm2, %v7503_v63  ;;  %v4148_v63 = vld [vmem:[#allocation4 + $0x8] sm:$0xf] }
 0x30c   :  { %v3139_v17 = vpop.permute.xlu1 %3138  ;;  %v3179_v39 = vpop.permute.xlu0 %3178 }
 0x30d   :  { %v3460_v19 = vsel %vm3436_vm2, %v7439_v57, %v3139_v17  ;;  %v4151_v17 = vld [vmem:[#allocation4 + $0xc] sm:$0x1] }
 0x30e   :  { %v3477_v0 = vsel %vm3461_vm3, %v3460_v19, %v3179_v39  ;;  %v4279_v19 = vrot.slane %v4277_v23, 4  ;;  %v5115_v39 = vshll.u32 %v10573_v49, 16 }
 0x310   :  { %v3235_v16 = vpop.permute.xlu1 %3234  ;;  %v5117_v25 = vrot.slane %v5115_v39, 5 }
 0x311   :  { %v3494_v29 = vsel %vm3478_vm4, %v3477_v0, %v3235_v16  ;;  %v4282_v16 = vrot.slane %v4280_v11, 5 }
 0x313   :  { %v4283_v28 = vor.u32 %v4282_v16, %v4279_v19  ;;  %v4160_v16 = vld [vmem:[#allocation4 + $0x18] sm:$0xf] }
 0x314   :  { %v3315_v48 = vpop.permute.xlu1 %3314 }
 0x315   :  { %v3275_v8 = vpop.permute.xlu0 %3274  ;;  %v10604_v11 = vrot.slane %v4283_v28, 4 }
 0x316   :  { %v3511_v24 = vsel %vm3495_vm8, %v3494_v29, %v3275_v8  ;;  %v5114_v8 = vrot.slane %v5112_v31, 4 }
 0x317   :  { %v3528_v57 = vsel %vm3512_vm11, %v3511_v24, %v3315_v48  ;;  %v3845_v48 = vld [vmem:[#allocation4 + $0x78] sm:$0x1]  ;;  %v3906_v24 = vld [vmem:[#allocation4 + $0x7c] sm:$0x1] }
 0x318   :  { %v3907_v7 = vsel %vm10450_vm6, 0, %v3906_v24  ;;  %v5118_v12 = vor.u32 %v5117_v25, %v5114_v8 }
 0x319   :  { %v3371_v38 = vpop.permute.xlu0 %3370  ;;  %3908 = vst [vmem:[#allocation4 + $0x7c] sm:$0x1] %v3907_v7 }
 0x31a   :  { %v3545_v50 = vsel %vm3529_vm12, %v3528_v57, %v3371_v38  ;;  %v3411_v33 = vpop.permute.xlu1 %3410  ;;  %v10606_v31 = vrot.slane %v5118_v12, 4 }
 0x31b   :  { %v3569_v40 = vsel %vm3546_vm14, %v3545_v50, %v3411_v33  ;;  %v4154_v33 = vld [vmem:[#allocation4 + $0x10] sm:$0xf] }
 0x31c   :  { %3763 = vmatmul.mubr.bf16.gmra.mrb[28].mxu0 %v3569_v40  ;;  %v3846_v40 = vsel %vm10456_vm15, 0, %v3845_v48 }
 0x31d   :  { %3847 = vst [vmem:[#allocation4 + $0x78] sm:$0x1] %v3846_v40  ;;  %v4166_v40 = vld [vmem:[#allocation4 + $0x20] sm:$0xf] }
 0x354   :  { %v3708_v6 = vpop.f32.mrb[0].mxu0 }
 0x355   :  { %v3709_v56 = vadd.f32 %v10565_v1, %v3708_v6  ;;  %v3710_v62 = vpop.f32.mrb[1].mxu0 }
 0x356   :  { %v3711_v45 = vpop.f32.mrb[2].mxu0 }
 0x357   :  { %v3771_v58 = vmax.f32 %v3709_v56, 0.0  ;;  %v3712_v60 = vadd.f32 %v10565_v1, %v3711_v45  ;;  %v3713_v54 = vpop.f32.mrb[3].mxu0  ;;  %v10599_v45 = vld [vmem:[#allocation4 + $0x50] sm:$0xe] }
 0x358   :  { %v4398_v54 = vshll.u32 %v10597_v37, 16 }
 0x359   :  { %v7830_v51 = vpack.c.bf16 %v3771_v58, %v3771_v58  ;;  %v3772_v30 = vmax.f32 %v3712_v60, 0.0  ;;  %v7538_v58 = vrot.slane %v4500_v26, 9  ;;  %v4550_v60 = vrot.slane %v4260_v21, 5 }
 0x35a   :  { %v10618_v48 = vrot.slane %v4398_v54, 5 }
 0x35b   :  { %v3986_v22 = vshrl.u32 %v7830_v51, 16  ;;  %v7831_v42 = vpack.c.bf16 %v3772_v30, %v3772_v30  ;;  %v3989_v15 = vshll.u32 %v7830_v51, 16  ;;  %v10602_v30 = vrot.slane %v4286_v10, 5 }
 0x35d   :  { %v3988_v9 = vrot.slane %v3986_v22, 7  ;;  %v3994_v59 = vshrl.u32 %v7831_v42, 16  ;;  %v3997_v29 = vshll.u32 %v7831_v42, 16  ;;  %v10608_v22 = vrot.slane %v5121_v53, 5 }
 0x35f   :  { %v3991_v57 = vor.u32 %v3989_v15, %v3988_v9  ;;  %v3992_v38 = vrot.slane %v3988_v9, 4  ;;  %v3996_v50 = vrot.slane %v3994_v59, 7 }
 0x361   :  { %v4149_v14 = vsel %vm10579_vm5, %v3991_v57, %v4148_v63  ;;  %v4152_v55 = vsel %vm10456_vm15, %v3992_v38, %v4151_v17  ;;  %v3999_v47 = vor.u32 %v3997_v29, %v3996_v50  ;;  %v4000_v32 = vrot.slane %v3996_v50, 4 }
 0x362   :  { %4150 = vst [vmem:[#allocation4 + $0x8] sm:$0xf] %v4149_v14  ;;  %4153 = vst [vmem:[#allocation4 + $0xc] sm:$0x1] %v4152_v55  ;;  %v4395_v63 = vor.u32 %v4394_v35, %v4391_v18  ;;  %v8041_v14 = vld [vmem:[#allocation15 + $0x40] sm:$0xff]   ;;  %v8043_v18 = vld [vmem:[#allocation15 + $0x48] sm:$0xff]  }
 0x363   :  { %v4155_v52 = vsel %vm10579_vm5, %v3999_v47, %v4154_v33  ;;  %v4158_v5 = vsel %vm10456_vm15, %v4000_v32, %v4157_v2  ;;  %v10624_v33 = vsel %vm9077_vm13, %v7538_v58, %v4550_v60  ;;  %v4169_v2 = vld [vmem:[#allocation4 + $0x24] sm:$0x1]  ;;  %7846 = vmatprep.subr.bf16.mxu1 %v8041_v14 }
 0x364   :  { %v3716_v20 = vpop.f32.mrb[4].mxu0  ;;  %4156 = vst [vmem:[#allocation4 + $0x10] sm:$0xf] %v4155_v52  ;;  %4159 = vst [vmem:[#allocation4 + $0x14] sm:$0x1] %v4158_v5  ;;  %v10629_v7 = vrot.slane %v4395_v63, 4 }
 0x365   :  { %v3717_v36 = vadd.f32 %v10565_v1, %v3716_v20  ;;  %v3718_v43 = vpop.f32.mrb[5].mxu0  ;;  %v8042_v20 = vld [vmem:[#allocation15] sm:$0xff]  }
 0x366   :  { %v3719_v4 = vpop.f32.mrb[6].mxu0  ;;  %7847 = vmatpush3.bf16.msra.mxu1 %v8042_v20 }
 0x367   :  { %v3773_v6 = vmax.f32 %v3717_v36, 0.0  ;;  %v3720_v56 = vadd.f32 %v10565_v1, %v3719_v4  ;;  %v3721_v62 = vpop.f32.mrb[7].mxu0  ;;  %7848 = vmatprep.subr.bf16.mxu1 %v8043_v18  ;;  %v4172_v18 = vld [vmem:[#allocation4 + $0x28] sm:$0xf] }
 0x369   :  { %v7832_v23 = vpack.c.bf16 %v3773_v6, %v3773_v6  ;;  %v3774_v51 = vmax.f32 %v3720_v56, 0.0  ;;  %v10611_v39 = vld [vmem:[#allocation4 + $0x8] sm:$0xf]  ;;  %v10616_v8 = vld [vmem:[#allocation4 + $0xc] sm:$0x1] }
 0x36a   :  { %v4868_v9 = vld [vmem:[#allocation4 + $0x8] sm:$0xe]  ;;  %v4645_v61 = vshrl.u32 %v10611_v39, 16  ;;  %v4648_v21 = vshll.u32 %v10611_v39, 16  ;;  %v4918_v36 = vrot.slane %v10616_v8, 5 }
 0x36b   :  { %v4002_v17 = vshrl.u32 %v7832_v23, 16  ;;  %v7833_v19 = vpack.c.bf16 %v3774_v51, %v3774_v51  ;;  %v4005_v59 = vshll.u32 %v7832_v23, 16  ;;  %v10614_v29 = vld [vmem:[#allocation4 + $0x10] sm:$0xf]  ;;  %v10620_v38 = vld [vmem:[#allocation4 + $0x14] sm:$0x1] }
 0x36c   :  { %v4869_v50 = vld [vmem:[#allocation4 + $0x10] sm:$0xe]  ;;  %v7610_v25 = vcombine.low %v10611_v39, %v10614_v29  ;;  %v7554_v44 = vrot.slane %v4868_v9, 9  ;;  %v4501_v5 = vld [vmem:[#allocation4 + $0x8] sm:$0xe]  ;;  %v4922_v10 = vrot.slane %v10620_v38, 5 }
 0x36d   :  { %v4004_v24 = vrot.slane %v4002_v17, 7  ;;  %v4010_v57 = vshrl.u32 %v7833_v19, 16  ;;  %v4013_v52 = vshll.u32 %v7833_v19, 16  ;;  %v7555_v43 = vrot.slane %v4869_v50, 9  ;;  %v4261_v26 = vld [vmem:[#allocation4 + $0xc] sm:$0x1] }
 0x36e   :  { %5509 = vrot.lane.b32.xlu1 %v7610_v25, %s8577_s30  ;;  %v4245_v53 = vld [vmem:[#allocation4 + $0x8] sm:$0xf]  ;;  %v4659_v35 = vshrl.u32 %v10614_v29, 16  ;;  %v4919_v6 = vsel %vm9077_vm13, %v7554_v44, %v4918_v36  ;;  %v7539_v62 = vrot.slane %v4501_v5, 9  ;;  %v4981_v58 = vld [vmem:[#allocation4 + $0x10] sm:$0xf] }
 0x36f   :  { %v4007_v55 = vor.u32 %v4005_v59, %v4004_v24  ;;  %v4008_v47 = vrot.slane %v4004_v24, 4  ;;  %v4012_v32 = vrot.slane %v4010_v57, 7  ;;  %v4923_v56 = vsel %vm9077_vm13, %v7555_v43, %v4922_v10 }
 0x370   :  { %v7626_v51 = vcombine.low %v4919_v6, %v4923_v56  ;;  %v4554_v63 = vrot.slane %v4261_v26, 5  ;;  %v4662_v17 = vshll.u32 %v10614_v29, 16  ;;  %v4291_v9 = vshrl.u32 %v4245_v53, 16 }
 0x371   :  { %v4161_v28 = vsel %vm10579_vm5, %v4007_v55, %v4160_v16  ;;  %v4164_v27 = vsel %vm10456_vm15, %v4008_v47, %v4163_v41  ;;  %v4015_v4 = vor.u32 %v4013_v52, %v4012_v32  ;;  %v4016_v12 = vrot.slane %v4012_v32, 4  ;;  %v10650_v16 = vld [vmem:[#allocation4 + $0x14] sm:$0x1] }
 0x372   :  { %4162 = vst [vmem:[#allocation4 + $0x18] sm:$0xf] %v4161_v28  ;;  %4165 = vst [vmem:[#allocation4 + $0x1c] sm:$0x1] %v4164_v27  ;;  %v3724_v23 = vpop.f32.mrb[8].mxu0  ;;  %v4294_v59 = vshll.u32 %v4245_v53, 16  ;;  %5573 = vrot.lane.b32.xlu0 %v7626_v51, %s8574_s16  ;;  %v4555_v24 = vsel %vm9077_vm13, %v7539_v62, %v4554_v63 }
 0x373   :  { %v4167_v60 = vsel %vm10579_vm5, %v4015_v4, %v4166_v40  ;;  %v4170_v54 = vsel %vm10456_vm15, %v4016_v12, %v4169_v2  ;;  %v3725_v19 = vadd.f32 %v10565_v1, %v3724_v23  ;;  %v3726_v39 = vpop.f32.mrb[9].mxu0  ;;  %v4300_v41 = vshll.u32 %v4261_v26, 16  ;;  %v10671_v28 = vld [vmem:[#allocation4 + $0x10] sm:$0xe] }
 0x374   :  { %4168 = vst [vmem:[#allocation4 + $0x20] sm:$0xf] %v4167_v60  ;;  %4171 = vst [vmem:[#allocation4 + $0x24] sm:$0x1] %v4170_v54  ;;  %v3727_v57 = vpop.f32.mrb[10].mxu0  ;;  %v5014_v50 = vshrl.u32 %v4981_v58, 16  ;;  %v7602_v25 = vcombine.low %v10624_v33, %v4555_v24  ;;  %v4289_v33 = vsel %vm9131_vm0, %v10604_v11, %v10602_v30 }
 0x375   :  { %v5017_v40 = vshll.u32 %v4981_v58, 16  ;;  %v3775_v2 = vmax.f32 %v3725_v19, 0.0  ;;  %v3728_v29 = vadd.f32 %v10565_v1, %v3727_v57  ;;  %v3729_v44 = vpop.f32.mrb[11].mxu0  ;;  %v4293_v14 = vrot.slane %v4291_v9, 4  ;;  %v8044_v9 = vld [vmem:[#allocation15 + $0x8] sm:$0xff]  }
 0x376   :  { %v10657_v55 = vrot.slane %v4645_v61, 4  ;;  %v10659_v47 = vrot.slane %v4648_v21, 5  ;;  %v4296_v32 = vrot.slane %v4294_v59, 5  ;;  %v4314_v52 = vshll.u32 %v10650_v16, 16  ;;  %5453 = vrot.lane.b32.xlu1 %v7602_v25, %s8561_s1  ;;  %v4181_v57 = vld [vmem:[#allocation4 + $0x34] sm:$0x1]  ;;  %7849 = vmatpush3.bf16.msra.mxu1 %v8044_v9 }
 0x377   :  { %v10662_v5 = vrot.slane %v4659_v35, 4  ;;  %v10664_v20 = vrot.slane %v4662_v17, 5  ;;  %v7834_v36 = vpack.c.bf16 %v3775_v2, %v3775_v2  ;;  %v3776_v43 = vmax.f32 %v3728_v29, 0.0  ;;  %v4175_v35 = vld [vmem:[#allocation4 + $0x2c] sm:$0x1] }
 0x378   :  { %v4297_v61 = vor.u32 %v4296_v32, %v4293_v14  ;;  %v5016_v21 = vrot.slane %v5014_v50, 4  ;;  %v5019_v26 = vrot.slane %v5017_v40, 5  ;;  %v4302_v4 = vrot.slane %v4300_v41, 5  ;;  %v4178_v17 = vld [vmem:[#allocation4 + $0x30] sm:$0xf] }
 0x379   :  { %v4982_v10 = vld [vmem:[#allocation4 + $0x18] sm:$0xf]  ;;  %v4018_v27 = vshrl.u32 %v7834_v36, 16  ;;  %v7835_v12 = vpack.c.bf16 %v3776_v43, %v3776_v43  ;;  %v10673_v60 = vrot.slane %v4314_v52, 5  ;;  %v4021_v23 = vshll.u32 %v7834_v36, 16 }
 0x37a   :  { %v7634_v53 = vcombine.low %v4981_v58, %v4982_v10  ;;  %v4298_v6 = vrot.slane %v4297_v61, 4  ;;  %v5028_v56 = vshrl.u32 %v4982_v10, 16  ;;  %v5031_v62 = vshll.u32 %v4982_v10, 16  ;;  %v10682_v40 = vld [vmem:[#allocation4 + $0x18] sm:$0xf] }
 0x37b   :  { %v4020_v54 = vrot.slane %v4018_v27, 7  ;;  %v4026_v30 = vshrl.u32 %v7835_v12, 16  ;;  %v10676_v11 = vld [vmem:[#allocation4 + $0x20] sm:$0xf]  ;;  %v7540_v51 = vrot.slane %v10671_v28, 9  ;;  %v4029_v63 = vshll.u32 %v7835_v12, 16 }
 0x37c   :  { %5629 = vrot.lane.b32.xlu0 %v7634_v53, %s8561_s1  ;;  %v4303_v58 = vsel %vm9131_vm0, %v4298_v6, %v4302_v4  ;;  %v5020_v19 = vor.u32 %v5019_v26, %v5016_v21  ;;  %v4558_v39 = vrot.slane %v10650_v16, 5  ;;  %v10684_v2 = vrot.slane %v5028_v56, 4  ;;  %v10690_v44 = vld [vmem:[#allocation4 + $0x1c] sm:$0x1]  ;;  %v4870_v14 = vld [vmem:[#allocation4 + $0x18] sm:$0xe] }
 0x37d   :  { %v4023_v59 = vor.u32 %v4021_v23, %v4020_v54  ;;  %v4024_v41 = vrot.slane %v4020_v54, 4  ;;  %v4028_v24 = vrot.slane %v4026_v30, 7  ;;  %v7594_v50 = vcombine.low %v4289_v33, %v4303_v58  ;;  %v4871_v33 = vld [vmem:[#allocation4 + $0x20] sm:$0xe]  ;;  %v10700_v21 = vld [vmem:[#allocation4 + $0x24] sm:$0x1] }
 0x37e   :  { %v10686_v25 = vrot.slane %v5031_v62, 5  ;;  %v7611_v29 = vcombine.low %v10682_v40, %v10676_v11  ;;  %v3732_v43 = vpop.f32.mrb[12].mxu0  ;;  %v10697_v61 = vrot.slane %v5020_v19, 4  ;;  %11989 = vst [vmem:[#allocation42_spill] sm:$0xff] %v10700_v21  ;;  %v10702_v27 = vld [vmem:[#allocation4 + $0x1c] sm:$0x1] }
 0x37f   :  { %v4173_v16 = vsel %vm10579_vm5, %v4023_v59, %v4172_v18  ;;  %v4176_v32 = vsel %vm10456_vm15, %v4024_v41, %v4175_v35  ;;  %v4031_v52 = vor.u32 %v4029_v63, %v4028_v24  ;;  %v4032_v36 = vrot.slane %v4028_v24, 4  ;;  %5413 = vrot.lane.b32.xlu1 %v7594_v50, %s8574_s16  ;;  %v3734_v26 = vpop.f32.mrb[13].mxu0  ;;  %v10704_v4 = vld [vmem:[#allocation4 + $0x10] sm:$0xf]  ;;  %v4503_v6 = vld [vmem:[#allocation4 + $0x18] sm:$0xe] }
 0x380   :  { %4174 = vst [vmem:[#allocation4 + $0x28] sm:$0xf] %v4173_v16  ;;  %4177 = vst [vmem:[#allocation4 + $0x2c] sm:$0x1] %v4176_v32  ;;  %v3733_v10 = vadd.f32 %v10565_v1, %v3732_v43  ;;  %v7556_v18 = vrot.slane %v4870_v14, 9  ;;  %v4926_v35 = vrot.slane %v10690_v44, 5 }
 0x381   :  { %v4179_v12 = vsel %vm10579_vm5, %v4031_v52, %v4178_v17  ;;  %v4182_v53 = vsel %vm10456_vm15, %v4032_v36, %v4181_v57  ;;  %v3735_v56 = vpop.f32.mrb[14].mxu0  ;;  %v8046_v62 = vld [vmem:[#allocation15 + $0x50] sm:$0xff]   ;;  %v4687_v54 = vshrl.u32 %v10676_v11, 16  ;;  %v4690_v23 = vshll.u32 %v10676_v11, 16  ;;  %v10722_v16 = vld [vmem:[#allocation4 + $0x18] sm:$0xf] }
 0x382   :  { %4180 = vst [vmem:[#allocation4 + $0x30] sm:$0xf] %v4179_v12  ;;  %4183 = vst [vmem:[#allocation4 + $0x34] sm:$0x1] %v4182_v53  ;;  %v3777_v30 = vmax.f32 %v3733_v10, 0.0  ;;  %v7557_v63 = vrot.slane %v4871_v33, 9  ;;  %v5034_v17 = vor.u32 %v10686_v25, %v10684_v2  ;;  %v4927_v9 = vsel %vm9077_vm13, %v7556_v18, %v4926_v35  ;;  %7850 = vmatprep.subr.bf16.mxu1 %v8046_v62 }
 0x383   :  { %v3737_v58 = vpop.f32.mrb[15].mxu0  ;;  %v8047_v19 = vld [vmem:[#allocation15 + $0x10] sm:$0xff]   ;;  %5511 = vrot.lane.b32.xlu1 %v7611_v29, %s8577_s30  ;;  %v4930_v59 = vrot.slane %v10700_v21, 5  ;;  %v4328_v41 = vshll.u32 %v10702_v27, 16  ;;  %v7541_v57 = vrot.slane %v4503_v6, 9  ;;  %v4562_v50 = vrot.slane %v10702_v27, 5 }
 0x384   :  { %v7836_v24 = vpack.c.bf16 %v3777_v30, %v3777_v30  ;;  %v3736_v14 = vadd.f32 %v10565_v1, %v3735_v56  ;;  %7851 = vmatpush3.bf16.msra.mxu1 %v8047_v19  ;;  %v8048_v32 = vld [vmem:[#allocation15 + $0x58] sm:$0xff]   ;;  %v4559_v36 = vsel %vm9077_vm13, %v7540_v51, %v4558_v39  ;;  %v4305_v43 = vshrl.u32 %v10704_v4, 16  ;;  %v4983_v10 = vld [vmem:[#allocation4 + $0x20] sm:$0xf] }
 0x385   :  { %v8049_v52 = vld [vmem:[#allocation15 + $0x18] sm:$0xff]   ;;  %v4931_v29 = vsel %vm9077_vm13, %v7557_v63, %v4930_v59  ;;  %v4308_v33 = vshll.u32 %v10704_v4, 16  ;;  %v8051_v26 = vld [vmem:[#allocation15 + $0x60] sm:$0xff]   ;;  %v4563_v35 = vsel %vm9077_vm13, %v7541_v57, %v4562_v50  ;;  %7852 = vmatprep.subr.bf16.mxu1 %v8048_v32  ;;  %v4319_v39 = vshrl.u32 %v10722_v16, 16  ;;  %v8054_v32 = vld [vmem:[#allocation15 + $0x68] sm:$0xff]  }
 0x386   :  { %v4034_v12 = vshrl.u32 %v7836_v24, 16  ;;  %v4037_v53 = vshll.u32 %v7836_v24, 16  ;;  %v7627_v18 = vcombine.low %v4927_v9, %v4931_v29  ;;  %v7603_v6 = vcombine.low %v4559_v36, %v4563_v35  ;;  %v8053_v19 = vld [vmem:[#allocation15 + $0x20] sm:$0xff]   ;;  %v4184_v9 = vld [vmem:[#allocation4 + $0x38] sm:$0xf] }
 0x387   :  { %v3778_v56 = vmax.f32 %v3736_v14, 0.0  ;;  %v4307_v62 = vrot.slane %v4305_v43, 4  ;;  %v4310_v28 = vrot.slane %v4308_v33, 5  ;;  %v10734_v30 = vld [vmem:[#allocation4 + $0x28] sm:$0xf]  ;;  %v4322_v63 = vshll.u32 %v10722_v16, 16 }
 0x388   :  { %v4036_v51 = vrot.slane %v4034_v12, 7  ;;  %5575 = vrot.lane.b32.xlu0 %v7627_v18, %s8574_s16  ;;  %v5042_v58 = vshrl.u32 %v4983_v10, 16  ;;  %7853 = vmatpush3.bf16.msra.mxu1 %v8049_v52  ;;  %v4187_v59 = vld [vmem:[#allocation4 + $0x3c] sm:$0x1]  ;;  %v5045_v50 = vshll.u32 %v4983_v10, 16  ;;  %v7635_v14 = vcombine.low %v4983_v10, %v10734_v30 }
 0x389   :  { %5455 = vrot.lane.b32.xlu1 %v7603_v6, %s8561_s1  ;;  %v7837_v24 = vpack.c.bf16 %v3778_v56, %v3778_v56  ;;  %v4311_v57 = vor.u32 %v4310_v28, %v4307_v62  ;;  %7854 = vmatprep.subr.bf16.mxu1 %v8051_v26  ;;  %v4321_v43 = vrot.slane %v4319_v39, 4  ;;  %v4324_v33 = vrot.slane %v4322_v63, 5  ;;  %v4190_v56 = vld [vmem:[#allocation4 + $0x40] sm:$0xf]  ;;  %v4193_v62 = vld [vmem:[#allocation4 + $0x44] sm:$0x1] }
 0x38a   :  { %v4039_v29 = vor.u32 %v4037_v53, %v4036_v51  ;;  %v4040_v36 = vrot.slane %v4036_v51, 4  ;;  %v4673_v12 = vshrl.u32 %v10682_v40, 16  ;;  %v5044_v35 = vrot.slane %v5042_v58, 4  ;;  %v8055_v53 = vld [vmem:[#allocation15 + $0x28] sm:$0xff]   ;;  %v4997_v58 = vld [vmem:[#allocation4 + $0x14] sm:$0x1] }
 0x38b   :  { %v4042_v18 = vshrl.u32 %v7837_v24, 16  ;;  %v4312_v52 = vrot.slane %v4311_v57, 4  ;;  %v4325_v10 = vor.u32 %v4324_v33, %v4321_v43  ;;  %v5047_v26 = vrot.slane %v5045_v50, 5  ;;  %v10780_v33 = vld [vmem:[#allocation4 + $0x28] sm:$0xf] }
 0x38c   :  { %v4185_v42 = vsel %vm10579_vm5, %v4039_v29, %v4184_v9  ;;  %v4188_v6 = vsel %vm10456_vm15, %v4040_v36, %v4187_v59  ;;  %5631 = vrot.lane.b32.xlu0 %v7635_v14, %s8561_s1  ;;  %7855 = vmatpush3.bf16.msra.mxu1 %v8053_v19  ;;  %v10749_v28 = vrot.slane %v4687_v54, 4  ;;  %v10753_v51 = vrot.slane %v4690_v23, 5  ;;  %v8057_v9 = vld [vmem:[#allocation15 + $0x70] sm:$0xff]   ;;  %v4998_v14 = vld [vmem:[#allocation4 + $0x1c] sm:$0x1] }
 0x38d   :  { %4186 = vst [vmem:[#allocation4 + $0x38] sm:$0xf] %v4185_v42  ;;  %4189 = vst [vmem:[#allocation4 + $0x3c] sm:$0x1] %v4188_v6  ;;  %v4044_v39 = vrot.slane %v4042_v18, 7  ;;  %v4045_v63 = vshll.u32 %v7837_v24, 16  ;;  %7856 = vmatprep.subr.bf16.mxu1 %v8054_v32  ;;  %v4317_v2 = vsel %vm9131_vm0, %v4312_v52, %v10673_v60  ;;  %v5048_v25 = vor.u32 %v5047_v26, %v5044_v35 }
 0x38e   :  { %v10758_v19 = vrot.slane %v5034_v17, 4  ;;  %v4676_v59 = vshll.u32 %v10682_v40, 16  ;;  %v4330_v54 = vrot.slane %v4328_v41, 5  ;;  %v4326_v11 = vrot.slane %v4325_v10, 4  ;;  %v10763_v23 = vld [vmem:[#allocation4 + $0x30] sm:$0xf] }
 0x38f   :  { %v10765_v42 = vrot.slane %v4673_v12, 4  ;;  %v4047_v57 = vor.u32 %v4045_v63, %v4044_v39  ;;  %v4048_v24 = vrot.slane %v4044_v39, 4  ;;  %v5056_v50 = vshrl.u32 %v10734_v30, 16  ;;  %v10774_v17 = vld [vmem:[#allocation4 + $0x24] sm:$0x1]  ;;  %v8058_v32 = vld [vmem:[#allocation15 + $0x30] sm:$0xff]  }
 0x390   :  { %v4331_v40 = vsel %vm9131_vm0, %v4326_v11, %v4330_v54  ;;  %v5059_v27 = vshll.u32 %v10734_v30, 16  ;;  %v4504_v41 = vld [vmem:[#allocation4 + $0x20] sm:$0xe]  ;;  %7857 = vmatpush3.bf16.msra.mxu1 %v8055_v53  ;;  %v4715_v60 = vshrl.u32 %v10763_v23, 16  ;;  %v10783_v12 = vld [vmem:[#allocation4 + $0x2c] sm:$0x1]  ;;  %v7612_v53 = vcombine.low %v10780_v33, %v10763_v23 }
 0x391   :  { %v4191_v29 = vsel %vm10579_vm5, %v4047_v57, %v4190_v56  ;;  %v4194_v36 = vsel %vm10456_vm15, %v4048_v24, %v4193_v62  ;;  %v7595_v43 = vcombine.low %v4317_v2, %v4331_v40  ;;  %7858 = vmatprep.subr.bf16.mxu1 %v8057_v9  ;;  %v8059_v30 = vld [vmem:[#allocation15 + $0x78] sm:$0xff]   ;;  %v10785_v18 = vrot.slane %v4676_v59, 5  ;;  %v4505_v35 = vld [vmem:[#allocation4 + $0x28] sm:$0xe]  ;;  %v10787_v6 = vld [vmem:[#allocation4 + $0x2c] sm:$0x1] }
 0x392   :  { %4192 = vst [vmem:[#allocation4 + $0x40] sm:$0xf] %v4191_v29  ;;  %4195 = vst [vmem:[#allocation4 + $0x44] sm:$0x1] %v4194_v36  ;;  %v5023_v52 = vshll.u32 %v4997_v58, 16  ;;  %v10796_v10 = vrot.slane %v5056_v50, 4 }
 0x393   :  { %11990 = vst [vmem:[#allocation38_spill] sm:$0xff] %v10787_v6  ;;  %5415 = vrot.lane.b32.xlu1 %v7595_v43, %s8574_s16  ;;  %v5037_v39 = vshll.u32 %v4998_v14, 16  ;;  %v4872_v63 = vld [vmem:[#allocation4 + $0x28] sm:$0xe]  ;;  %v10801_v58 = vld [vmem:[#allocation4 + $0x20] sm:$0xf] }
 0x394   :  { %11991 = vst [vmem:[#allocation40_spill] sm:$0xff] %v10801_v58  ;;  %v8060_v9 = vld [vmem:[#allocation15 + $0x38] sm:$0xff]   ;;  %v10803_v59 = vrot.slane %v5048_v25, 4  ;;  %v10805_v54 = vrot.slane %v5059_v27, 5  ;;  %v5025_v11 = vrot.slane %v5023_v52, 5  ;;  %v7542_v57 = vrot.slane %v4504_v41, 9  ;;  %7859 = vmatpush3.bf16.msra.mxu1 %v8058_v32 }
 0x395   :  { %v4873_v24 = vld [vmem:[#allocation4 + $0x30] sm:$0xe]  ;;  %v10807_v50 = vrot.slane %v4715_v60, 4  ;;  %v5039_v2 = vrot.slane %v5037_v39, 5  ;;  %v4342_v40 = vshll.u32 %v10774_v17, 16  ;;  %v4566_v29 = vrot.slane %v10774_v17, 5  ;;  %7860 = vmatprep.subr.bf16.mxu1 %v8059_v30 }
 0x396   :  { %v10811_v14 = vld [vmem:[#allocation4 + $0x34] sm:$0x1]  ;;  %v5026_v25 = vsel %vm9131_vm0, %v10697_v61, %v5025_v11  ;;  %v7543_v27 = vrot.slane %v4505_v35, 9  ;;  %v4570_v36 = vrot.slane %v10783_v12, 5  ;;  %v7558_v41 = vrot.slane %v4872_v63, 9 }
 0x397   :  { %11992 = vst [vmem:[#allocation37_spill] sm:$0xff] %v10807_v50  ;;  %11993 = vst [vmem:[#allocation41_spill] sm:$0xff] %v10811_v14  ;;  %v10817_v43 = vld [vmem:[#allocation4 + $0x28] sm:$0xf]  ;;  %5513 = vrot.lane.b32.xlu1 %v7612_v53, %s8577_s30  ;;  %v5040_v32 = vsel %vm9131_vm0, %v10758_v19, %v5039_v2  ;;  %v4567_v17 = vsel %vm9077_vm13, %v7542_v57, %v4566_v29  ;;  %v4934_v60 = vrot.slane %v10787_v6, 5  ;;  %v7559_v30 = vrot.slane %v4873_v24, 9 }
 0x398   :  { %11994 = vst [vmem:[#allocation47_spill] sm:$0xff] %v10817_v43  ;;  %v4985_v52 = vld [vmem:[#allocation4 + $0x30] sm:$0xf]  ;;  %v7642_v61 = vcombine.low %v5026_v25, %v5040_v32  ;;  %v4571_v35 = vsel %vm9077_vm13, %v7543_v27, %v4570_v36  ;;  %v4938_v39 = vrot.slane %v10811_v14, 5  ;;  %v4333_v63 = vshrl.u32 %v10801_v58, 16  ;;  %7861 = vmatpush3.bf16.msra.mxu1 %v8060_v9 }
 0x399   :  { %v4356_v53 = vshll.u32 %v10783_v12, 16  ;;  %v7604_v11 = vcombine.low %v4567_v17, %v4571_v35  ;;  %v4336_v19 = vshll.u32 %v10801_v58, 16  ;;  %v4347_v57 = vshrl.u32 %v10817_v43, 16  ;;  %v4986_v2 = vld [vmem:[#allocation4 + $0x38] sm:$0xf] }
 0x39a   :  { %5669 = vrot.lane.b32.xlu0 %v7642_v61, %s8577_s30  ;;  %v4939_v24 = vsel %vm9077_vm13, %v7559_v30, %v4938_v39  ;;  %v4335_v29 = vrot.slane %v4333_v63, 4  ;;  %v4350_v25 = vshll.u32 %v10817_v43, 16  ;;  %v5070_v27 = vshrl.u32 %v4985_v52, 16  ;;  %v4999_v26 = vld [vmem:[#allocation4 + $0x24] sm:$0x1] }
 0x39b   :  { %5457 = vrot.lane.b32.xlu1 %v7604_v11, %s8561_s1  ;;  %v4935_v12 = vsel %vm9077_vm13, %v7558_v41, %v4934_v60  ;;  %v4338_v9 = vrot.slane %v4336_v19, 5  ;;  %v4349_v36 = vrot.slane %v4347_v57, 4  ;;  %v5073_v32 = vshll.u32 %v4985_v52, 16  ;;  %v10844_v19 = vld [vmem:[#allocation4 + $0x40] sm:$0xf] }
 0x39c   :  { %v7628_v17 = vcombine.low %v4935_v12, %v4939_v24  ;;  %v4352_v35 = vrot.slane %v4350_v25, 5  ;;  %v5072_v15 = vrot.slane %v5070_v27, 4  ;;  %v5084_v56 = vshrl.u32 %v4986_v2, 16  ;;  %v5000_v57 = vld [vmem:[#allocation4 + $0x2c] sm:$0x1] }
 0x39d   :  { %v5062_v61 = vor.u32 %v10805_v54, %v10796_v10  ;;  %v4339_v30 = vor.u32 %v4338_v9, %v4335_v29  ;;  %v5075_v39 = vrot.slane %v5073_v32, 5  ;;  %v5087_v63 = vshll.u32 %v4986_v2, 16  ;;  %v4266_v10 = vld [vmem:[#allocation4 + $0x34] sm:$0x1]  ;;  %v10847_v14 = vld [vmem:[#allocation4 + $0x38] sm:$0xf] }
 0x39e   :  { %5577 = vrot.lane.b32.xlu0 %v7628_v17, %s8574_s16  ;;  %v4353_v11 = vor.u32 %v4352_v35, %v4349_v36  ;;  %v7636_v41 = vcombine.low %v4985_v52, %v4986_v2  ;;  %v5086_v60 = vrot.slane %v5084_v56, 4  ;;  %v4344_v29 = vrot.slane %v4342_v40, 5  ;;  %v4506_v62 = vld [vmem:[#allocation4 + $0x30] sm:$0xe]  ;;  %v10895_v56 = vld [vmem:[#allocation4 + $0x44] sm:$0x1] }
 0x39f   :  { %v4340_v25 = vrot.slane %v4339_v30, 4  ;;  %v5076_v27 = vor.u32 %v5075_v39, %v5072_v15  ;;  %v5089_v12 = vrot.slane %v5087_v63, 5  ;;  %v3740_v54 = vpop.f32.mrb[16].mxu0  ;;  %v4358_v9 = vrot.slane %v4356_v53, 5  ;;  %v4267_v30 = vld [vmem:[#allocation4 + $0x3c] sm:$0x1] }
 0x3a0   :  { %v4354_v32 = vrot.slane %v4353_v11, 4  ;;  %v3742_v17 = vpop.f32.mrb[17].mxu0  ;;  %v5063_v52 = vrot.slane %v5062_v61, 4  ;;  %v5051_v35 = vshll.u32 %v4999_v26, 16  ;;  %v5065_v63 = vshll.u32 %v5000_v57, 16 }
 0x3a1   :  { %v5090_v2 = vor.u32 %v5089_v12, %v5086_v60  ;;  %v3743_v15 = vpop.f32.mrb[18].mxu0  ;;  %v4345_v39 = vsel %vm9131_vm0, %v4340_v25, %v4344_v29  ;;  %v4507_v11 = vld [vmem:[#allocation4 + $0x38] sm:$0xe]  ;;  %v10858_v60 = vrot.slane %v5076_v27, 4  ;;  %v7613_v26 = vcombine.low %v10847_v14, %v10844_v19  ;;  %v4202_v21 = vld [vmem:[#allocation4 + $0x60] sm:$0xf] }
 0x3a2   :  { %v4359_v40 = vsel %vm9131_vm0, %v4354_v32, %v4358_v9  ;;  %5633 = vrot.lane.b32.xlu0 %v7636_v41, %s8561_s1  ;;  %v3745_v17 = vpop.f32.mrb[19].mxu0  ;;  %v5053_v12 = vrot.slane %v5051_v35, 5  ;;  %v5067_v25 = vrot.slane %v5065_v63, 5  ;;  %v4370_v29 = vshll.u32 %v4266_v10, 16  ;;  %v4987_v9 = vld [vmem:[#allocation4 + $0x40] sm:$0xf] }
 0x3a3   :  { %v7596_v61 = vcombine.low %v4345_v39, %v4359_v40  ;;  %v10862_v36 = vrot.slane %v5090_v2, 4  ;;  %v4384_v24 = vshll.u32 %v4267_v30, 16  ;;  %v7544_v57 = vrot.slane %v4506_v62, 9  ;;  %v10874_v63 = vld [vmem:[#allocation4 + $0x30] sm:$0xf] }
 0x3a4   :  { %v5054_v41 = vsel %vm9131_vm0, %v10803_v59, %v5053_v12  ;;  %v4574_v32 = vrot.slane %v4266_v10, 5  ;;  %v7545_v27 = vrot.slane %v4507_v11, 9  ;;  %v5068_v39 = vsel %vm9131_vm0, %v5063_v52, %v5067_v25  ;;  %11995 = vst [vmem:[#allocation43_spill] sm:$0xff] %v10874_v63  ;;  %v10879_v62 = vld [vmem:[#allocation4 + $0x38] sm:$0xf] }
 0x3a5   :  { %5417 = vrot.lane.b32.xlu1 %v7596_v61, %s8574_s16  ;;  %v10870_v40 = vrot.slane %v4370_v29, 5  ;;  %v10872_v2 = vrot.slane %v4384_v24, 5  ;;  %v4578_v35 = vrot.slane %v4267_v30, 5  ;;  %v7643_v17 = vcombine.low %v5054_v41, %v5068_v39  ;;  %11996 = vst [vmem:[#allocation45_spill] sm:$0xff] %v10879_v62  ;;  %v4874_v30 = vld [vmem:[#allocation4 + $0x38] sm:$0xe] }
 0x3a6   :  { %v4575_v61 = vsel %vm9077_vm13, %v7544_v57, %v4574_v32  ;;  %v3741_v53 = vadd.f32 %v10565_v1, %v3740_v54  ;;  %v5098_v59 = vshrl.u32 %v4987_v9, 16  ;;  %v5101_v52 = vshll.u32 %v4987_v9, 16  ;;  %v10890_v39 = vld [vmem:[#allocation4 + $0x3c] sm:$0x1]  ;;  %v4205_v50 = vld [vmem:[#allocation4 + $0x64] sm:$0x1] }
 0x3a7   :  { %v4579_v10 = vsel %vm9077_vm13, %v7545_v27, %v4578_v35  ;;  %v7637_v11 = vcombine.low %v4987_v9, %v10573_v49  ;;  %v3744_v24 = vadd.f32 %v10565_v1, %v3743_v15  ;;  %5671 = vrot.lane.b32.xlu0 %v7643_v17, %s8577_s30  ;;  %v4361_v54 = vshrl.u32 %v10874_v63, 16  ;;  %11997 = vst [vmem:[#allocation33_spill] sm:$0xff] %v10890_v39 }
 0x3a8   :  { %v7605_v12 = vcombine.low %v4575_v61, %v4579_v10  ;;  %v3779_v25 = vmax.f32 %v3741_v53, 0.0  ;;  %v5100_v29 = vrot.slane %v5098_v59, 4  ;;  %v5103_v41 = vrot.slane %v5101_v52, 5  ;;  %v4875_v61 = vld [vmem:[#allocation4 + $0x40] sm:$0xe] }
 0x3a9   :  { %5515 = vrot.lane.b32.xlu1 %v7613_v26, %s8577_s30  ;;  %v3780_v57 = vmax.f32 %v3744_v24, 0.0  ;;  %v4364_v32 = vshll.u32 %v10874_v63, 16  ;;  %v4375_v27 = vshrl.u32 %v10879_v62, 16  ;;  %v4363_v1 = vrot.slane %v4361_v54, 4  ;;  %v5001_v59 = vld [vmem:[#allocation4 + $0x34] sm:$0x1] }
 0x3aa   :  { %v7838_v49 = vpack.c.bf16 %v3779_v25, %v3779_v25  ;;  %v4378_v15 = vshll.u32 %v10879_v62, 16  ;;  %v7560_v26 = vrot.slane %v4874_v30, 9  ;;  %v5104_v9 = vor.u32 %v5103_v41, %v5100_v29  ;;  %v4196_v54 = vld [vmem:[#allocation4 + $0x58] sm:$0xf] }
 0x3ab   :  { %v7839_v35 = vpack.c.bf16 %v3780_v57, %v3780_v57  ;;  %v4366_v17 = vrot.slane %v4364_v32, 5  ;;  %v4377_v53 = vrot.slane %v4375_v27, 4  ;;  %5635 = vrot.lane.b32.xlu0 %v7637_v11, %s8561_s1  ;;  %v4942_v25 = vrot.slane %v10890_v39, 5  ;;  %v5002_v57 = vld [vmem:[#allocation4 + $0x3c] sm:$0x1] }
 0x3ac   :  { %v4050_v10 = vshrl.u32 %v7838_v49, 16  ;;  %v4053_v52 = vshll.u32 %v7838_v49, 16  ;;  %v4380_v24 = vrot.slane %v4378_v15, 5  ;;  %v10898_v6 = vrot.slane %v5104_v9, 4  ;;  %v4199_v27 = vld [vmem:[#allocation4 + $0x5c] sm:$0x1] }
 0x3ad   :  { %5459 = vrot.lane.b32.xlu1 %v7605_v12, %s8561_s1  ;;  %v4058_v30 = vshrl.u32 %v7839_v35, 16  ;;  %v4061_v29 = vshll.u32 %v7839_v35, 16  ;;  %v4367_v41 = vor.u32 %v4366_v17, %v4363_v1  ;;  %v4943_v49 = vsel %vm9077_vm13, %v7560_v26, %v4942_v25  ;;  %v3848_v1 = vld [vmem:[#allocation4 + $0x80] sm:$0x1] }
 0x3ae   :  { %v4052_v32 = vrot.slane %v4050_v10, 7  ;;  %v4381_v12 = vor.u32 %v4380_v24, %v4377_v53  ;;  %v7561_v11 = vrot.slane %v4875_v61, 9  ;;  %v4946_v39 = vrot.slane %v10895_v56, 5  ;;  %v5003_v61 = vld [vmem:[#allocation4 + $0x44] sm:$0x1] }
 0x3af   :  { %v4060_v15 = vrot.slane %v4058_v30, 7  ;;  %v4368_v63 = vrot.slane %v4367_v41, 4  ;;  %v5079_v62 = vshll.u32 %v5001_v59, 16  ;;  %v5093_v35 = vshll.u32 %v5002_v57, 16  ;;  %v3909_v24 = vld [vmem:[#allocation4 + $0x84] sm:$0x1] }
 0x3b0   :  { %v4055_v9 = vor.u32 %v4053_v52, %v4052_v32  ;;  %v4056_v58 = vrot.slane %v4052_v32, 4  ;;  %v4382_v43 = vrot.slane %v4381_v12, 4  ;;  %v4947_v26 = vsel %vm9077_vm13, %v7561_v11, %v4946_v39  ;;  %v3851_v41 = vld [vmem:[#allocation4 + $0x88] sm:$0x1]  ;;  %v3915_v11 = vld [vmem:[#allocation4 + $0x94] sm:$0x1] }
 0x3b1   :  { %v4063_v17 = vor.u32 %v4061_v29, %v4060_v15  ;;  %v4064_v10 = vrot.slane %v4060_v15, 4  ;;  %v4373_v53 = vsel %vm9131_vm0, %v4368_v63, %v10870_v40  ;;  %v7629_v30 = vcombine.low %v4943_v49, %v4947_v26 }
 0x3b2   :  { %v4197_v25 = vsel %vm10579_vm5, %v4055_v9, %v4196_v54  ;;  %v4200_v59 = vsel %vm10456_vm15, %v4056_v58, %v4199_v27  ;;  %v4387_v52 = vsel %vm9131_vm0, %v4382_v43, %v10872_v2  ;;  %v5081_v29 = vrot.slane %v5079_v62, 5  ;;  %v3912_v54 = vld [vmem:[#allocation4 + $0x8c] sm:$0x1] }
 0x3b3   :  { %4198 = vst [vmem:[#allocation4 + $0x58] sm:$0xf] %v4197_v25  ;;  %4201 = vst [vmem:[#allocation4 + $0x5c] sm:$0x1] %v4200_v59  ;;  %v4203_v40 = vsel %vm10579_vm5, %v4063_v17, %v4202_v21  ;;  %v4206_v63 = vsel %vm10456_vm15, %v4064_v10, %v4205_v50  ;;  %v7597_v39 = vcombine.low %v4373_v53, %v4387_v52  ;;  %5579 = vrot.lane.b32.xlu0 %v7629_v30, %s8574_s16  ;;  %v3854_v21 = vld [vmem:[#allocation4 + $0x90] sm:$0x1] }
 0x3b4   :  { %4204 = vst [vmem:[#allocation4 + $0x60] sm:$0xf] %v4203_v40  ;;  %4207 = vst [vmem:[#allocation4 + $0x64] sm:$0x1] %v4206_v63  ;;  %v5095_v58 = vrot.slane %v5093_v35, 5  ;;  %v5107_v57 = vshll.u32 %v5003_v61, 16  ;;  %v5082_v50 = vsel %vm9131_vm0, %v10858_v60, %v5081_v29  ;;  %v11998_v62 = vor.u32 %v10659_v47, %v10657_v55 }
 0x3b5   :  { %v3849_v43 = vsel %vm10456_vm15, 0, %v3848_v1  ;;  %v3910_v2 = vsel %vm10450_vm6, 0, %v3909_v24  ;;  %5419 = vrot.lane.b32.xlu1 %v7597_v39, %s8574_s16  ;;  %v4654_v27 = vshll.u32 %v10616_v8, 16  ;;  %v11999_v12 = vor.u32 %v10664_v20, %v10662_v5 }
 0x3b6   :  { %3850 = vst [vmem:[#allocation4 + $0x80] sm:$0x1] %v3849_v43  ;;  %3911 = vst [vmem:[#allocation4 + $0x84] sm:$0x1] %v3910_v2  ;;  %v4652_v32 = vrot.slane %v11998_v62, 4  ;;  %v5096_v15 = vsel %vm9131_vm0, %v10862_v36, %v5095_v58  ;;  %v5109_v9 = vrot.slane %v5107_v57, 5  ;;  %v12004_v40 = vsel %vm9131_vm0, %v10606_v31, %v10608_v22 }
 0x3b7   :  { %v4666_v49 = vrot.slane %v11999_v12, 4  ;;  %v4668_v60 = vshll.u32 %v10620_v38, 16  ;;  %v3852_v35 = vsel %vm10456_vm15, 0, %v3851_v41  ;;  %v4729_v55 = vshrl.u32 %v10847_v14, 16 }
 0x3b8   :  { %v7644_v47 = vcombine.low %v5082_v50, %v5096_v15  ;;  %v4656_v1 = vrot.slane %v4654_v27, 5  ;;  %3853 = vst [vmem:[#allocation4 + $0x88] sm:$0x1] %v3852_v35  ;;  %v3913_v8 = vsel %vm10450_vm6, 0, %v3912_v54  ;;  %v5110_v5 = vsel %vm9131_vm0, %v10898_v6, %v5109_v9 }
 0x3b9   :  { %v4670_v20 = vrot.slane %v4668_v60, 5  ;;  %3914 = vst [vmem:[#allocation4 + $0x8c] sm:$0x1] %v3913_v8  ;;  %v3855_v38 = vsel %vm10456_vm15, 0, %v3854_v21  ;;  %v3916_v36 = vsel %vm10450_vm6, 0, %v3915_v11  ;;  %v12000_v17 = vshll.u32 %v10763_v23, 16 }
 0x3ba   :  { %v12001_v53 = vshrl.u32 %v10780_v33, 16  ;;  %v12002_v61 = vshll.u32 %v10780_v33, 16  ;;  %v4732_v6 = vshll.u32 %v10847_v14, 16  ;;  %5673 = vrot.lane.b32.xlu0 %v7644_v47, %s8577_s30  ;;  %3856 = vst [vmem:[#allocation4 + $0x90] sm:$0x1] %v3855_v38  ;;  %v12003_v25 = vshrl.u32 %v10844_v19, 16 }
 0x3bb   :  { %v10953_v10 = vrot.slane %v12000_v17, 5  ;;  %3917 = vst [vmem:[#allocation4 + $0x94] sm:$0x1] %v3916_v36  ;;  %v10969_v23 = vld [vmem:[#allocation4 + $0x5c] sm:$0x1]  ;;  %v4657_v30 = vsel %vm9131_vm0, %v4652_v32, %v4656_v1  ;;  %v4671_v33 = vsel %vm9131_vm0, %v4666_v49, %v4670_v20  ;;  %v7645_v63 = vcombine.low %v5110_v5, %v12004_v40 }
 0x3bc   :  { %v10957_v26 = vrot.slane %v12001_v53, 4  ;;  %v10961_v24 = vrot.slane %v12002_v61, 5  ;;  %v10967_v59 = vrot.slane %v12003_v25, 4  ;;  %v4876_v52 = vld [vmem:[#allocation4 + $0x58] sm:$0xe]  ;;  %v12005_v54 = vrot.slane %v10597_v37, 5 }
 0x3bd   :  { %v4620_v39 = vld [vmem:[#allocation4 + $0x58] sm:$0xf]  ;;  %v10982_v29 = vld [vmem:[#allocation4 + $0x60] sm:$0xf]  ;;  %v10984_v41 = vld [vmem:[#allocation4 + $0x64] sm:$0x1]  ;;  %v4401_v43 = vsel %vm9131_vm0, %v10629_v7, %v10618_v48  ;;  %v10996_v2 = vcombine.low %v4657_v30, %v4671_v33  ;;  %v4679_v49 = vor.u32 %v10785_v18, %v10765_v42  ;;  %v4693_v60 = vor.u32 %v10753_v51, %v10749_v28 }
 0x3be   :  { %v12006_v58 = vrot.slane %v10599_v45, 9  ;;  %v12007_v31 = vshll.u32 %v10844_v19, 16  ;;  %v11002_v21 = vrot.slane %v4729_v55, 4  ;;  %v7614_v37 = vcombine.low %v4620_v39, %v10982_v29  ;;  %v4877_v50 = vld [vmem:[#allocation4 + $0x60] sm:$0xe]  ;;  %5675 = vrot.lane.b32.xlu0 %v7645_v63, %s8577_s30 }
 0x3bf   :  { %v7562_v45 = vrot.slane %v4876_v52, 9  ;;  %v11005_v62 = vrot.slane %v4732_v6, 5  ;;  %v4950_v32 = vrot.slane %v10969_v23, 5  ;;  %v7563_v27 = vrot.slane %v4877_v50, 9  ;;  %v4269_v12 = vld [vmem:[#allocation4 + $0x5c] sm:$0x1] }
 0x3c0   :  { %v4583_v57 = vsel %vm9077_vm13, %v12006_v58, %v12005_v54  ;;  %v11000_v22 = vrot.slane %v12007_v31, 5  ;;  %5517 = vrot.lane.b32.xlu1 %v7614_v37, %s8577_s30  ;;  %v4757_v19 = vshrl.u32 %v4620_v39, 16  ;;  %v4954_v11 = vrot.slane %v10984_v41, 5  ;;  %v4509_v15 = vld [vmem:[#allocation4 + $0x58] sm:$0xe]  ;;  %v12013_v31 = vld [vmem:[#allocation37_spill] sm:$0xff] }
 0x3c1   :  { %v4682_v9 = vshll.u32 %v10690_v44, 16  ;;  %v4760_v35 = vshll.u32 %v4620_v39, 16  ;;  %v7547_v55 = vrot.slane %v4509_v15, 9  ;;  %v4586_v47 = vrot.slane %v4269_v12, 5  ;;  %v4253_v1 = vld [vmem:[#allocation4 + $0x58] sm:$0xf] }
 0x3c2   :  { %v4951_v42 = vsel %vm9077_vm13, %v7562_v45, %v4950_v32  ;;  %v4955_v18 = vsel %vm9077_vm13, %v7563_v27, %v4954_v11  ;;  %v4403_v38 = vshrl.u32 %v4253_v1, 16  ;;  %v4406_v36 = vshll.u32 %v4253_v1, 16  ;;  %v11025_v51 = vld [vmem:[#allocation4 + $0x60] sm:$0xf]  ;;  %v11041_v45 = vld [vmem:[#allocation14] ss:$0 sm:$0xff] }
 0x3c3   :  { %v4771_v44 = vshrl.u32 %v10982_v29, 16  ;;  %v7630_v17 = vcombine.low %v4951_v42, %v4955_v18  ;;  %v4587_v28 = vsel %vm9077_vm13, %v7547_v55, %v4586_v47  ;;  %v4412_v25 = vshll.u32 %v4269_v12, 16  ;;  %v11029_v40 = vld [vmem:[#allocation4 + $0x60] sm:$0xf]  ;;  %v4220_v6 = vld [vmem:[#allocation4 + $0x78] sm:$0xf] }
 0x3c4   :  { %v7606_v52 = vcombine.low %v4583_v57, %v4587_v28  ;;  %v4405_v30 = vrot.slane %v4403_v38, 4  ;;  %v4408_v33 = vrot.slane %v4406_v36, 5  ;;  %12012 = vst [vmem:[#allocation53_spill] sm:$0xff] %v11029_v40  ;;  %v4774_v63 = vshll.u32 %v10982_v29, 16  ;;  %v3748_v39 = vpop.f32.mrb[20].mxu0 }
 0x3c5   :  { %5581 = vrot.lane.b32.xlu0 %v7630_v17, %s8574_s16  ;;  %v5126_v54 = vshrl.u32 %v11025_v51, 16  ;;  %v4707_v58 = vor.u32 %v10961_v24, %v10957_v26  ;;  %v4721_v37 = vor.u32 %v10953_v10, %v12013_v31  ;;  %v11038_v50 = vrot.slane %v4757_v19, 4  ;;  %v3750_v32 = vpop.f32.mrb[21].mxu0 }
 0x3c6   :  { %5461 = vrot.lane.b32.xlu1 %v7606_v52, %s8561_s1  ;;  %v4409_v57 = vor.u32 %v4408_v33, %v4405_v30  ;;  %v3749_v29 = vadd.f32 %v11041_v45, %v3748_v39  ;;  %v5129_v27 = vshll.u32 %v11025_v51, 16  ;;  %v11045_v12 = vrot.slane %v4771_v44, 4  ;;  %v3751_v26 = vpop.f32.mrb[22].mxu0  ;;  %v11060_v52 = vld [vmem:[#allocation4 + $0x64] sm:$0x1]  ;;  %v12015_v32 = vld [vmem:[#allocation38_spill] sm:$0xff] }
 0x3c7   :  { %v11047_v11 = vrot.slane %v4760_v35, 5  ;;  %v4417_v24 = vshrl.u32 %v11029_v40, 16  ;;  %v4420_v10 = vshll.u32 %v11029_v40, 16  ;;  %v4414_v19 = vrot.slane %v4412_v25, 5  ;;  %v3753_v1 = vpop.f32.mrb[23].mxu0 }
 0x3c8   :  { %v4410_v15 = vrot.slane %v4409_v57, 4  ;;  %v3781_v55 = vmax.f32 %v3749_v29, 0.0  ;;  %v3752_v47 = vadd.f32 %v11041_v45, %v3751_v26  ;;  %v11052_v42 = vrot.slane %v4774_v63, 5  ;;  %v4208_v26 = vld [vmem:[#allocation4 + $0x68] sm:$0xf] }
 0x3c9   :  { %v11054_v18 = vrot.slane %v5126_v54, 4  ;;  %v4680_v38 = vrot.slane %v4679_v49, 4  ;;  %v4684_v36 = vrot.slane %v4682_v9, 5  ;;  %v11058_v28 = vrot.slane %v5129_v27, 5  ;;  %v12014_v54 = vld [vmem:[#allocation42_spill] sm:$0xff] }
 0x3ca   :  { %v4415_v35 = vsel %vm9131_vm0, %v4410_v15, %v4414_v19  ;;  %v7840_v44 = vpack.c.bf16 %v3781_v55, %v3781_v55  ;;  %v3782_v17 = vmax.f32 %v3752_v47, 0.0  ;;  %v11067_v30 = vrot.slane %v4417_v24, 4  ;;  %v4211_v19 = vld [vmem:[#allocation4 + $0x6c] sm:$0x1] }
 0x3cb   :  { %v7598_v25 = vcombine.low %v4401_v43, %v4415_v35  ;;  %v11069_v33 = vrot.slane %v4420_v10, 5  ;;  %v4685_v49 = vsel %vm9131_vm0, %v4680_v38, %v4684_v36  ;;  %v4694_v39 = vrot.slane %v4693_v60, 4  ;;  %v11085_v35 = vld [vmem:[#allocation15 + $0x80] sm:$0xff]  }
 0x3cc   :  { %v4066_v9 = vshrl.u32 %v7840_v44, 16  ;;  %v7841_v63 = vpack.c.bf16 %v3782_v17, %v3782_v17  ;;  %v4696_v31 = vshll.u32 %v12014_v54, 16  ;;  %v4426_v57 = vshll.u32 %v11060_v52, 16  ;;  %v4217_v17 = vld [vmem:[#allocation4 + $0x74] sm:$0x1]  ;;  %7920 = vmatprep.subr.bf16.mxu1 %v11085_v35 }
 0x3cd   :  { %5421 = vrot.lane.b32.xlu1 %v7598_v25, %s8574_s16  ;;  %v4708_v29 = vrot.slane %v4707_v58, 4  ;;  %v4710_v48 = vshll.u32 %v12015_v32, 16  ;;  %v4735_v7 = vor.u32 %v11005_v62, %v11002_v21  ;;  %v4069_v27 = vshll.u32 %v7840_v44, 16  ;;  %v3857_v58 = vld [vmem:[#allocation4 + $0x98] sm:$0x1] }
 0x3ce   :  { %v4068_v43 = vrot.slane %v4066_v9, 7  ;;  %v4074_v24 = vshrl.u32 %v7841_v63, 16  ;;  %v4698_v10 = vrot.slane %v4696_v31, 5  ;;  %v4077_v15 = vshll.u32 %v7841_v63, 16  ;;  %v3918_v62 = vld [vmem:[#allocation4 + $0x9c] sm:$0x1] }
 0x3cf   :  { %v5132_v60 = vor.u32 %v11058_v28, %v11054_v18  ;;  %v4423_v55 = vor.u32 %v11069_v33, %v11067_v30  ;;  %v4712_v47 = vrot.slane %v4710_v48, 5  ;;  %v4214_v44 = vld [vmem:[#allocation4 + $0x70] sm:$0xf]  ;;  %v4722_v28 = vrot.slane %v4721_v37, 4  ;;  %v12016_v30 = vld [vmem:[#allocation41_spill] sm:$0xff] }
 0x3d0   :  { %v4071_v1 = vor.u32 %v4069_v27, %v4068_v43  ;;  %v4072_v38 = vrot.slane %v4068_v43, 4  ;;  %v4076_v36 = vrot.slane %v4074_v24, 7  ;;  %v4699_v21 = vsel %vm9131_vm0, %v4694_v39, %v4698_v10  ;;  %v12017_v43 = vld [vmem:[#allocation33_spill] sm:$0xff]  ;;  %v4510_v24 = vld [vmem:[#allocation4 + $0x60] sm:$0xe] }
 0x3d1   :  { %v11087_v25 = vcombine.low %v4685_v49, %v4699_v21  ;;  %v4713_v18 = vsel %vm9131_vm0, %v4708_v29, %v4712_v47  ;;  %v4724_v33 = vshll.u32 %v12016_v30, 16  ;;  %v3858_v31 = vsel %vm10456_vm15, 0, %v3857_v58 }
 0x3d2   :  { %v4209_v9 = vsel %vm10579_vm5, %v4071_v1, %v4208_v26  ;;  %v4212_v63 = vsel %vm10456_vm15, %v4072_v38, %v4211_v19  ;;  %v4079_v39 = vor.u32 %v4077_v15, %v4076_v36  ;;  %v4080_v54 = vrot.slane %v4076_v36, 4  ;;  %3859 = vst [vmem:[#allocation4 + $0x98] sm:$0x1] %v3858_v31  ;;  %v5005_v15 = vld [vmem:[#allocation4 + $0x64] sm:$0x1] }
 0x3d3   :  { %4210 = vst [vmem:[#allocation4 + $0x68] sm:$0xf] %v4209_v9  ;;  %4213 = vst [vmem:[#allocation4 + $0x6c] sm:$0x1] %v4212_v63  ;;  %v4726_v49 = vrot.slane %v4724_v33, 5  ;;  %v3919_v37 = vsel %vm10450_vm6, 0, %v3918_v62  ;;  %v4749_v26 = vor.u32 %v11000_v22, %v10967_v59  ;;  %v4763_v10 = vor.u32 %v11047_v11, %v11038_v50 }
 0x3d4   :  { %v4736_v29 = vrot.slane %v4735_v7, 4  ;;  %v4215_v32 = vsel %vm10579_vm5, %v4079_v39, %v4214_v44  ;;  %v4218_v48 = vsel %vm10456_vm15, %v4080_v54, %v4217_v17  ;;  %3920 = vst [vmem:[#allocation4 + $0x9c] sm:$0x1] %v3919_v37  ;;  %v4738_v27 = vshll.u32 %v12017_v43, 16  ;;  %v11157_v37 = vld [vmem:[#allocation4] sm:$0xf] }
 0x3d5   :  { %4216 = vst [vmem:[#allocation4 + $0x70] sm:$0xf] %v4215_v32  ;;  %4219 = vst [vmem:[#allocation4 + $0x74] sm:$0x1] %v4218_v48  ;;  %v4727_v3 = vsel %vm9131_vm0, %v4722_v28, %v4726_v49  ;;  %v4752_v7 = vshll.u32 %v10895_v56, 16  ;;  %v4766_v19 = vshll.u32 %v10969_v23, 16  ;;  %v4777_v59 = vor.u32 %v11052_v42, %v11045_v12 }
 0x3d6   :  { %v11114_v47 = vcombine.low %v4713_v18, %v4727_v3  ;;  %v4740_v58 = vrot.slane %v4738_v27, 5  ;;  %v4750_v1 = vrot.slane %v4749_v26, 4  ;;  %v11118_v38 = vrot.slane %v4763_v10, 4 }
 0x3d7   :  { %v4754_v22 = vrot.slane %v4752_v7, 5  ;;  %v11120_v36 = vrot.slane %v4766_v19, 5  ;;  %v4780_v56 = vshll.u32 %v10984_v41, 16  ;;  %v7548_v21 = vrot.slane %v4510_v24, 9 }
 0x3d8   :  { %v4590_v50 = vrot.slane %v11060_v52, 5  ;;  %v4741_v23 = vsel %vm9131_vm0, %v4736_v29, %v4740_v58  ;;  %v11126_v11 = vrot.slane %v4777_v59, 4  ;;  %v5135_v62 = vshll.u32 %v5005_v15, 16 }
 0x3d9   :  { %v4755_v44 = vsel %vm9131_vm0, %v4750_v1, %v4754_v22  ;;  %v11134_v17 = vrot.slane %v5132_v60, 4  ;;  %v11136_v41 = vrot.slane %v4423_v55, 4  ;;  %v11140_v28 = vrot.slane %v4780_v56, 5 }
 0x3da   :  { %v4990_v42 = vld [vmem:[#allocation4 + $0x68] sm:$0xf]  ;;  %v11138_v18 = vcombine.low %v4741_v23, %v4755_v44  ;;  %v11145_v39 = vld [vmem:[#allocation4 + $0x6c] sm:$0x1]  ;;  %v11151_v60 = vrot.slane %v4426_v57, 5  ;;  %v11155_v55 = vsel %vm9077_vm13, %v7548_v21, %v4590_v50  ;;  %v11169_v26 = vrot.slane %v5135_v62, 5 }
 0x3db   :  { %v7638_v30 = vcombine.low %v11025_v51, %v4990_v42  ;;  %v5140_v33 = vshrl.u32 %v4990_v42, 16  ;;  %v5143_v9 = vshll.u32 %v4990_v42, 16  ;;  %v11143_v63 = vld [vmem:[#allocation4 + $0x68] sm:$0xf]  ;;  %v11182_v56 = vld [vmem:[#allocation4 + $0x6c] sm:$0x1] }
 0x3dc   :  { %12018 = vst [vmem:[#allocation35_spill] sm:$0xff] %v11138_v18  ;;  %v3756_v54 = vpop.f32.mrb[24].mxu0  ;;  %v11147_v49 = vld [vmem:[#allocation4 + $0x70] sm:$0xf]  ;;  %v4878_v31 = vld [vmem:[#allocation4 + $0x68] sm:$0xe] }
 0x3dd   :  { %v11159_v51 = vld [vmem:[#allocation4 + $0x8] sm:$0xf]  ;;  %v3757_v52 = vadd.f32 %v11041_v45, %v3756_v54  ;;  %v3758_v57 = vpop.f32.mrb[25].mxu0  ;;  %5637 = vrot.lane.b32.xlu0 %v7638_v30, %s8561_s1  ;;  %v5142_v48 = vrot.slane %v5140_v33, 4  ;;  %v5145_v43 = vrot.slane %v5143_v9, 5  ;;  %v7615_v3 = vcombine.low %v11143_v63, %v11147_v49 }
 0x3de   :  { %v4879_v27 = vld [vmem:[#allocation4 + $0x70] sm:$0xe]  ;;  %v3759_v24 = vpop.f32.mrb[26].mxu0  ;;  %v4785_v7 = vshrl.u32 %v11143_v63, 16  ;;  %v4788_v10 = vshll.u32 %v11143_v63, 16  ;;  %v7564_v62 = vrot.slane %v4878_v31, 9 }
 0x3df   :  { %v11175_v19 = vld [vmem:[#allocation4 + $0x74] sm:$0x1]  ;;  %v3783_v58 = vmax.f32 %v3757_v52, 0.0  ;;  %v3760_v1 = vadd.f32 %v11041_v45, %v3759_v24  ;;  %v5146_v59 = vor.u32 %v5145_v43, %v5142_v48  ;;  %v3761_v22 = vpop.f32.mrb[27].mxu0  ;;  %v4511_v21 = vld [vmem:[#allocation4 + $0x68] sm:$0xe]  ;;  %5519 = vrot.lane.b32.xlu1 %v7615_v3, %s8577_s30 }
 0x3e0   :  { %v4958_v44 = vrot.slane %v11145_v39, 5  ;;  %v7565_v42 = vrot.slane %v4879_v27, 9  ;;  %v4962_v54 = vrot.slane %v11175_v19, 5  ;;  %v11193_v52 = vld [vmem:[#allocation4 + $0x68] sm:$0xf]  ;;  %v11197_v48 = vrot.slane %v4785_v7, 4  ;;  %v11216_v32 = vpop.permute.xlu1 %5509 }
 0x3e1   :  { %v7842_v30 = vpack.c.bf16 %v3783_v58, %v3783_v58  ;;  %v3784_v33 = vmax.f32 %v3760_v1, 0.0  ;;  %12019 = vst [vmem:[#allocation50_spill] sm:$0xff] %v11193_v52  ;;  %v11195_v57 = vrot.slane %v5146_v59, 4  ;;  %v7549_v43 = vrot.slane %v4511_v21, 9  ;;  %v11204_v1 = vld [vmem:[#allocation4 + $0x70] sm:$0xf] }
 0x3e2   :  { %v4594_v24 = vrot.slane %v11182_v56, 5  ;;  %v4959_v27 = vsel %vm9077_vm13, %v7564_v62, %v4958_v44  ;;  %v4963_v58 = vsel %vm9077_vm13, %v7565_v42, %v4962_v54  ;;  %v4431_v59 = vshrl.u32 %v11193_v52, 16  ;;  %v11209_v21 = vld [vmem:[#allocation4 + $0x6c] sm:$0x1]  ;;  %v4226_v44 = vld [vmem:[#allocation4 + $0x80] sm:$0xf] }
 0x3e3   :  { %v4082_v3 = vshrl.u32 %v7842_v30, 16  ;;  %v7843_v31 = vpack.c.bf16 %v3784_v33, %v3784_v33  ;;  %v4085_v22 = vshll.u32 %v7842_v30, 16  ;;  %v7631_v20 = vcombine.low %v4959_v27, %v4963_v58  ;;  %12020 = vst [vmem:[#allocation49_spill] sm:$0xff] %v11209_v21  ;;  %v4223_v33 = vld [vmem:[#allocation4 + $0x7c] sm:$0x1] }
 0x3e4   :  { %v4595_v7 = vsel %vm9077_vm13, %v7549_v43, %v4594_v24  ;;  %v4433_v42 = vrot.slane %v4431_v59, 4  ;;  %v4434_v30 = vshll.u32 %v11193_v52, 16  ;;  %v5154_v54 = vshrl.u32 %v11204_v1, 16  ;;  %v4512_v9 = vld [vmem:[#allocation4 + $0x70] sm:$0xe]  ;;  %v5574_v23 = vpop.permute.xlu0 %5573 }
 0x3e5   :  { %v4084_v14 = vrot.slane %v4082_v3, 7  ;;  %v4090_v29 = vshrl.u32 %v7843_v31, 16  ;;  %v4093_v12 = vshll.u32 %v7843_v31, 16  ;;  %v7607_v62 = vcombine.low %v11155_v55, %v4595_v7  ;;  %5583 = vrot.lane.b32.xlu0 %v7631_v20, %s8574_s16  ;;  %v4272_v55 = vld [vmem:[#allocation4 + $0x74] sm:$0x1] }
 0x3e6   :  { %v5157_v43 = vshll.u32 %v11204_v1, 16  ;;  %v5149_v3 = vshll.u32 %v11209_v21, 16  ;;  %v4229_v31 = vld [vmem:[#allocation4 + $0x84] sm:$0x1]  ;;  %v4440_v20 = vshll.u32 %v11182_v56, 16  ;;  %v4436_v7 = vrot.slane %v4434_v30, 5 }
 0x3e7   :  { %v4087_v24 = vor.u32 %v4085_v22, %v4084_v14  ;;  %v4088_v27 = vrot.slane %v4084_v14, 4  ;;  %v4092_v58 = vrot.slane %v4090_v29, 7  ;;  %5463 = vrot.lane.b32.xlu1 %v7607_v62, %s8561_s1  ;;  %v5156_v59 = vrot.slane %v5154_v54, 4  ;;  %v11239_v63 = vld [vmem:[#allocation4 + $0x74] sm:$0x1] }
 0x3e8   :  { %v5159_v50 = vrot.slane %v5157_v43, 5  ;;  %v11227_v62 = vrot.slane %v4788_v10, 5  ;;  %v4437_v56 = vor.u32 %v4436_v7, %v4433_v42  ;;  %v4454_v54 = vshll.u32 %v4272_v55, 16  ;;  %v11229_v43 = vld [vmem:[#allocation4 + $0x70] sm:$0xf] }
 0x3e9   :  { %v4221_v15 = vsel %vm10579_vm5, %v4087_v24, %v4220_v6  ;;  %v4224_v14 = vsel %vm10456_vm15, %v4088_v27, %v4223_v33  ;;  %v4095_v29 = vor.u32 %v4093_v12, %v4092_v58  ;;  %v4096_v22 = vrot.slane %v4092_v58, 4  ;;  %v11241_v58 = vld [vmem:[#allocation4 + $0x98] sm:$0xf] }
 0x3ea   :  { %4222 = vst [vmem:[#allocation4 + $0x78] sm:$0xf] %v4221_v15  ;;  %4225 = vst [vmem:[#allocation4 + $0x7c] sm:$0x1] %v4224_v14  ;;  %v5160_v30 = vor.u32 %v5159_v50, %v5156_v59  ;;  %v12021_v33 = vshrl.u32 %v11147_v49, 16  ;;  %v5151_v24 = vrot.slane %v5149_v3, 5  ;;  %v11249_v59 = vpop.permute.xlu1 %5453 }
 0x3eb   :  { %v4227_v6 = vsel %vm10579_vm5, %v4095_v29, %v4226_v44  ;;  %v4230_v12 = vsel %vm10456_vm15, %v4096_v22, %v4229_v31  ;;  %v4442_v10 = vrot.slane %v4440_v20, 5  ;;  %v4438_v50 = vrot.slane %v4437_v56, 4 }
 0x3ec   :  { %v11237_v15 = vrot.slane %v12021_v33, 4  ;;  %4228 = vst [vmem:[#allocation4 + $0x80] sm:$0xf] %v4227_v6  ;;  %4231 = vst [vmem:[#allocation4 + $0x84] sm:$0x1] %v4230_v12  ;;  %v7550_v42 = vrot.slane %v4512_v9, 9  ;;  %v5775_v31 = vsel %vm3461_vm3, %v10996_v2, %v5574_v23  ;;  %v5152_v3 = vsel %vm9131_vm0, %v11195_v57, %v5151_v24 }
 0x3ed   :  { %v4598_v27 = vrot.slane %v4272_v55, 5  ;;  %v12022_v44 = vshll.u32 %v11147_v49, 16  ;;  %v4445_v20 = vshrl.u32 %v11229_v43, 16  ;;  %v4443_v9 = vsel %vm9131_vm0, %v4438_v50, %v4442_v10 }
 0x3ee   :  { %v5630_v14 = vpop.permute.xlu0 %5629  ;;  %v11257_v29 = vrot.slane %v5160_v30, 4  ;;  %v11259_v49 = vrot.slane %v4454_v54, 5  ;;  %v4448_v22 = vshll.u32 %v11229_v43, 16  ;;  %v12023_v2 = vsel %vm9131_vm0, %v11136_v41, %v11151_v60 }
 0x3ef   :  { %v11245_v7 = vrot.slane %v12022_v44, 5  ;;  %v3764_v55 = vpop.f32.mrb[28].mxu0  ;;  %v7599_v23 = vcombine.low %v12023_v2, %v4443_v9  ;;  %v5163_v6 = vshll.u32 %v11239_v63, 16  ;;  %v5224_v12 = vshrl.u32 %v11241_v58, 16 }
 0x3f0   :  { %v3765_v57 = vadd.f32 %v11041_v45, %v3764_v55  ;;  %v3766_v56 = vpop.f32.mrb[29].mxu0  ;;  %v11271_v30 = vsel %vm3495_vm8, %v5775_v31, %v5630_v14  ;;  %v12024_v54 = vsel %vm9131_vm0, %v11134_v17, %v11169_v26  ;;  %v11280_v41 = vsel %vm9077_vm13, %v7550_v42, %v4598_v27 }
 0x3f1   :  { %v3767_v33 = vpop.f32.mrb[30].mxu0  ;;  %v7646_v24 = vcombine.low %v12024_v54, %v5152_v3  ;;  %v5227_v60 = vshll.u32 %v11241_v58, 16  ;;  %5423 = vrot.lane.b32.xlu1 %v7599_v23, %s8574_s16  ;;  %v4992_v31 = vld [vmem:[#allocation4 + $0x78] sm:$0xf]  ;;  %v11285_v9 = vrot.slane %v4445_v20, 4  ;;  %v12025_v17 = vsel %vm9131_vm0, %v11126_v11, %v11140_v28  ;;  %v5414_v2 = vpop.permute.xlu1 %5413 }
 0x3f2   :  { %v3785_v10 = vmax.f32 %v3765_v57, 0.0  ;;  %v3768_v50 = vadd.f32 %v11041_v45, %v3767_v33  ;;  %v3769_v44 = vpop.f32.mrb[31].mxu0  ;;  %v12026_v26 = vsel %vm9131_vm0, %v11118_v38, %v11120_v36  ;;  %v7639_v27 = vcombine.low %v11204_v1, %v4992_v31  ;;  %v11300_v55 = vld [vmem:[#allocation4 + $0x78] sm:$0xf] }
 0x3f3   :  { %v11297_v42 = vcombine.low %v12026_v26, %v12025_v17  ;;  %v5168_v3 = vshrl.u32 %v4992_v31, 16  ;;  %v5171_v45 = vshll.u32 %v4992_v31, 16  ;;  %v11302_v20 = vrot.slane %v4448_v22, 5  ;;  %v4625_v57 = vld [vmem:[#allocation4 + $0x80] sm:$0xf] }
 0x3f4   :  { %v7844_v14 = vpack.c.bf16 %v3785_v10, %v3785_v10  ;;  %v3786_v23 = vmax.f32 %v3768_v50, 0.0  ;;  %v11304_v11 = vrot.slane %v5163_v6, 5  ;;  %v11306_v28 = vrot.slane %v5224_v12, 4  ;;  %5639 = vrot.lane.b32.xlu0 %v7639_v27, %s8561_s1  ;;  %v11317_v50 = vld [vmem:[#allocation4 + $0x7c] sm:$0x1] }
 0x3f5   :  { %12027 = vst [vmem:[#allocation52_spill] sm:$0xff] %v11297_v42  ;;  %v11309_v38 = vrot.slane %v5168_v3, 4  ;;  %v11311_v36 = vrot.slane %v5171_v45, 5  ;;  %v4827_v1 = vshrl.u32 %v4625_v57, 16  ;;  %v11313_v56 = vrot.slane %v5227_v60, 5 }
 0x3f6   :  { %v4098_v33 = vshrl.u32 %v7844_v14, 16  ;;  %v7845_v22 = vpack.c.bf16 %v3786_v23, %v3786_v23  ;;  %v7616_v54 = vcombine.low %v11300_v55, %v4625_v57  ;;  %v4513_v6 = vld [vmem:[#allocation4 + $0x78] sm:$0xe]  ;;  %v4232_v12 = vld [vmem:[#allocation4 + $0x88] sm:$0xf]  ;;  %v12028_v31 = vcombine.low %v11157_v37, %v11159_v51 }
 0x3f7   :  { %v4235_v44 = vld [vmem:[#allocation4 + $0x8c] sm:$0x1]  ;;  %v4830_v26 = vshll.u32 %v4625_v57, 16  ;;  %v4816_v60 = vshll.u32 %v11300_v55, 16  ;;  %v11326_v27 = vld [vmem:[#allocation4 + $0x7c] sm:$0x1]  ;;  %v5174_v42 = vor.u32 %v11311_v36, %v11309_v38 }
 0x3f8   :  { %v11323_v17 = vsel %vm3461_vm3, %v12028_v31, %v5414_v2  ;;  %v4880_v3 = vld [vmem:[#allocation4 + $0x78] sm:$0xe]  ;;  %v4100_v23 = vrot.slane %v4098_v33, 7  ;;  %v4101_v10 = vshll.u32 %v7844_v14, 16  ;;  %v4106_v21 = vshrl.u32 %v7845_v22, 16  ;;  %5521 = vrot.lane.b32.xlu1 %v7616_v54, %s8577_s30  ;;  %5677 = vrot.lane.b32.xlu0 %v7646_v24, %s8577_s30 }
 0x3f9   :  { %v4881_v37 = vld [vmem:[#allocation4 + $0x80] sm:$0xe]  ;;  %v4109_v51 = vshll.u32 %v7845_v22, 16  ;;  %v4238_v2 = vld [vmem:[#allocation4 + $0x90] sm:$0xf]  ;;  %v11333_v31 = vrot.slane %v4827_v1, 4 }
 0x3fa   :  { %v4241_v57 = vld [vmem:[#allocation4 + $0x94] sm:$0x1]  ;;  %v7551_v53 = vrot.slane %v4513_v6, 9  ;;  %v4602_v61 = vrot.slane %v11317_v50, 5  ;;  %v4103_v45 = vor.u32 %v4101_v10, %v4100_v23  ;;  %v4104_v33 = vrot.slane %v4100_v23, 4 }
 0x3fb   :  { %v4108_v14 = vrot.slane %v4106_v21, 7  ;;  %v11337_v18 = vld [vmem:[#allocation4 + $0x84] sm:$0x1]  ;;  %v7566_v8 = vrot.slane %v4880_v3, 9  ;;  %v11339_v38 = vrot.slane %v4830_v26, 5  ;;  %v4966_v22 = vrot.slane %v11326_v27, 5  ;;  %v5576_v26 = vpop.permute.xlu0 %5575 }
 0x3fc   :  { %v4603_v36 = vsel %vm9077_vm13, %v7551_v53, %v4602_v61  ;;  %v7567_v1 = vrot.slane %v4881_v37, 9  ;;  %v11344_v54 = vld [vmem:[#allocation4 + $0x78] sm:$0xf]  ;;  %v4233_v24 = vsel %vm10579_vm5, %v4103_v45, %v4232_v12  ;;  %v4236_v10 = vsel %vm10456_vm15, %v4104_v33, %v4235_v44  ;;  %v4993_v23 = vld [vmem:[#allocation4 + $0x80] sm:$0xf] }
 0x3fd   :  { %v4111_v21 = vor.u32 %v4109_v51, %v4108_v14  ;;  %v4112_v6 = vrot.slane %v4108_v14, 4  ;;  %4234 = vst [vmem:[#allocation4 + $0x88] sm:$0xf] %v4233_v24  ;;  %4237 = vst [vmem:[#allocation4 + $0x8c] sm:$0x1] %v4236_v10  ;;  %v4468_v3 = vshll.u32 %v11317_v50, 16  ;;  %v7608_v53 = vcombine.low %v11280_v41, %v4603_v36  ;;  %v11366_v36 = vpop.permute.xlu1 %5511 }
 0x3fe   :  { %v4967_v61 = vsel %vm9077_vm13, %v7566_v8, %v4966_v22  ;;  %v4970_v37 = vrot.slane %v11337_v18, 5  ;;  %v4274_v5 = vld [vmem:[#allocation4 + $0x84] sm:$0x1]  ;;  %v4451_v45 = vor.u32 %v11302_v20, %v11285_v9  ;;  %v4459_v51 = vshrl.u32 %v11344_v54, 16 }
 0x3ff   :  { %v4239_v12 = vsel %vm10579_vm5, %v4111_v21, %v4238_v2  ;;  %v4242_v44 = vsel %vm10456_vm15, %v4112_v6, %v4241_v57  ;;  %5465 = vrot.lane.b32.xlu1 %v7608_v53, %s8561_s1  ;;  %v4462_v41 = vshll.u32 %v11344_v54, 16  ;;  %v5182_v50 = vshrl.u32 %v4993_v23, 16  ;;  %v4514_v2 = vld [vmem:[#allocation4 + $0x80] sm:$0xe]  ;;  %v5632_v24 = vpop.permute.xlu0 %5631 }
 0x400   :  { %4240 = vst [vmem:[#allocation4 + $0x90] sm:$0xf] %v4239_v12  ;;  %4243 = vst [vmem:[#allocation4 + $0x94] sm:$0x1] %v4242_v44  ;;  %v4971_v8 = vsel %vm9077_vm13, %v7567_v1, %v4970_v37  ;;  %v5185_v0 = vshll.u32 %v4993_v23, 16  ;;  %v4452_v34 = vrot.slane %v4451_v45, 4  ;;  %v5778_v37 = vsel %vm3461_vm3, %v11087_v25, %v5576_v26 }
 0x401   :  { %v7632_v33 = vcombine.low %v4967_v61, %v4971_v8  ;;  %v4461_v57 = vrot.slane %v4459_v51, 4  ;;  %v4482_v14 = vshll.u32 %v4274_v5, 16  ;;  %v12029_v9 = vshrl.u32 %v11300_v55, 16  ;;  %v11379_v55 = vld [vmem:[#allocation4 + $0x7c] sm:$0x1] }
 0x402   :  { %v4464_v22 = vrot.slane %v4462_v41, 5  ;;  %v5184_v10 = vrot.slane %v5182_v50, 4  ;;  %v5187_v21 = vrot.slane %v5185_v0, 5  ;;  %v5175_v1 = vrot.slane %v5174_v42, 4 }
 0x403   :  { %v11370_v20 = vrot.slane %v12029_v9, 4  ;;  %v11372_v6 = vrot.slane %v4816_v60, 5  ;;  %5585 = vrot.lane.b32.xlu0 %v7632_v33, %s8574_s16  ;;  %v7552_v53 = vrot.slane %v4514_v2, 9  ;;  %v4606_v61 = vrot.slane %v4274_v5, 5 }
 0x404   :  { %v4470_v12 = vrot.slane %v4468_v3, 5  ;;  %v4465_v44 = vor.u32 %v4464_v22, %v4461_v57  ;;  %v11377_v45 = vrot.slane %v4482_v14, 5  ;;  %v4457_v51 = vsel %vm9131_vm0, %v4452_v34, %v11259_v49  ;;  %v4994_v60 = vld [vmem:[#allocation4 + $0x88] sm:$0xf]  ;;  %v11387_v41 = vld [vmem:[#allocation4 + $0x8c] sm:$0x1] }
 0x405   :  { %v11385_v42 = vsel %vm3495_vm8, %v5778_v37, %v5632_v24  ;;  %v5188_v8 = vor.u32 %v5187_v21, %v5184_v10  ;;  %v4515_v5 = vld [vmem:[#allocation4 + $0x88] sm:$0xe]  ;;  %v5734_v25 = vsel %vm3495_vm8, %v11323_v17, %v11249_v59  ;;  %v7640_v3 = vcombine.low %v4993_v23, %v4994_v60  ;;  %v11396_v0 = vld [vmem:[#allocation4 + $0x8c] sm:$0x1]  ;;  %v11403_v59 = vpop.permute.xlu1 %5455 }
 0x406   :  { %v4466_v26 = vrot.slane %v4465_v44, 4  ;;  %v5196_v50 = vshrl.u32 %v4994_v60, 16  ;;  %v5166_v49 = vsel %vm9131_vm0, %v11257_v29, %v11304_v11  ;;  %v5199_v2 = vshll.u32 %v4994_v60, 16  ;;  %v4882_v11 = vld [vmem:[#allocation4 + $0x88] sm:$0xe] }
 0x407   :  { %v4607_v33 = vsel %vm9077_vm13, %v7552_v53, %v4606_v61  ;;  %v7553_v34 = vrot.slane %v4515_v5, 9  ;;  %v4610_v57 = vrot.slane %v11387_v41, 5  ;;  %v11401_v14 = vld [vmem:[#allocation4 + $0x94] sm:$0x1]  ;;  %5641 = vrot.lane.b32.xlu0 %v7640_v3, %s8561_s1  ;;  %v5177_v29 = vshll.u32 %v11379_v55, 16 }
 0x408   :  { %v4471_v17 = vsel %vm9131_vm0, %v4466_v26, %v4470_v12  ;;  %v5198_v23 = vrot.slane %v5196_v50, 4  ;;  %v4883_v9 = vld [vmem:[#allocation4 + $0x90] sm:$0xe]  ;;  %v11411_v10 = vrot.slane %v5188_v8, 4  ;;  %v5201_v21 = vrot.slane %v5199_v2, 5 }
 0x409   :  { %v7600_v24 = vcombine.low %v4457_v51, %v4471_v17  ;;  %v4496_v53 = vshll.u32 %v11387_v41, 16  ;;  %v11414_v61 = vld [vmem:[#allocation4 + $0x80] sm:$0xf]  ;;  %v4611_v37 = vsel %vm9077_vm13, %v7553_v34, %v4610_v57  ;;  %v5179_v12 = vrot.slane %v5177_v29, 5  ;;  %v11419_v5 = vld [vmem:[#allocation4 + $0x88] sm:$0xf] }
 0x40a   :  { %v7568_v44 = vrot.slane %v4882_v11, 9  ;;  %v4974_v60 = vrot.slane %v11396_v0, 5  ;;  %v5202_v26 = vor.u32 %v5201_v21, %v5198_v23  ;;  %v7609_v51 = vcombine.low %v4607_v33, %v4611_v37  ;;  %v11423_v50 = vld [vmem:[#allocation4 + $0x84] sm:$0x1]  ;;  %v11431_v17 = vld [vmem:[#allocation4 + $0x8c] sm:$0x1] }
 0x40b   :  { %5425 = vrot.lane.b32.xlu1 %v7600_v24, %s8574_s16  ;;  %v7569_v8 = vrot.slane %v4883_v9, 9  ;;  %v4978_v3 = vrot.slane %v11401_v14, 5  ;;  %12030 = vst [vmem:[#allocation54_spill] sm:$0xff] %v11423_v50  ;;  %v5750_v41 = vsel %vm3529_vm12, %v5734_v25, %v11216_v32  ;;  %v5180_v2 = vsel %vm9131_vm0, %v5175_v1, %v5179_v12  ;;  %12031 = vst [vmem:[#allocation48_spill] sm:$0xff] %v11431_v17  ;;  %v11433_v29 = vld [vmem:[#allocation4 + $0x88] sm:$0xf]  ;;  %v5416_v24 = vpop.permute.xlu1 %5415 }
 0x40c   :  { %v4473_v34 = vshrl.u32 %v11414_v61, 16  ;;  %v4476_v57 = vshll.u32 %v11414_v61, 16  ;;  %v5203_v33 = vrot.slane %v5202_v26, 4  ;;  %v7647_v23 = vcombine.low %v5166_v49, %v5180_v2  ;;  %v11441_v37 = vld [vmem:[#allocation4 + $0x90] sm:$0xf]  ;;  %v5670_v12 = vpop.permute.xlu0 %5669 }
 0x40d   :  { %v4975_v11 = vsel %vm9077_vm13, %v7568_v44, %v4974_v60  ;;  %v4487_v9 = vshrl.u32 %v11419_v5, 16  ;;  %v4979_v32 = vsel %vm9077_vm13, %v7569_v8, %v4978_v3  ;;  %v4490_v21 = vshll.u32 %v11419_v5, 16 }
 0x40e   :  { %v4475_v1 = vrot.slane %v4473_v34, 4  ;;  %v4478_v25 = vrot.slane %v4476_v57, 5  ;;  %5679 = vrot.lane.b32.xlu0 %v7647_v23, %s8577_s30  ;;  %v5191_v44 = vshll.u32 %v11423_v50, 16  ;;  %v5205_v60 = vshll.u32 %v11431_v17, 16  ;;  %v8070_v57 = vld [vmem:[#allocation15 + $0x88] sm:$0xff]  }
 0x40f   :  { %5467 = vrot.lane.b32.xlu1 %v7609_v51, %s8561_s1  ;;  %v4489_v49 = vrot.slane %v4487_v9, 4  ;;  %v4841_v26 = vshrl.u32 %v11433_v29, 16  ;;  %v5814_v8 = vsel %vm3529_vm12, %v11271_v30, %v5670_v12  ;;  %v4492_v2 = vrot.slane %v4490_v21, 5  ;;  %v4995_v50 = vld [vmem:[#allocation4 + $0x90] sm:$0xf] }
 0x410   :  { %v4479_v3 = vor.u32 %v4478_v25, %v4475_v1  ;;  %v4844_v34 = vshll.u32 %v11433_v29, 16  ;;  %6044 = vmatprep.mubr.bf16.mxu1 %v5814_v8  ;;  %v7633_v22 = vcombine.low %v4975_v11, %v4979_v32  ;;  %v5207_v51 = vrot.slane %v5205_v60, 5  ;;  %v11488_v60 = vld [vmem:[#allocation4 + $0x9c] sm:$0x1] }
 0x411   :  { %v4855_v23 = vshrl.u32 %v11441_v37, 16  ;;  %v5230_v9 = vor.u32 %v11313_v56, %v11306_v28  ;;  %6045 = vmatmul.mubr.bf16.vlgmr.msra.gmra.mrb[0].mxu1 %v5750_v41  ;;  %v4493_v40 = vor.u32 %v4492_v2, %v4489_v49  ;;  %v5193_v17 = vrot.slane %v5191_v44, 5  ;;  %v11466_v56 = vpop.permute.xlu1 %5513  ;;  %v11468_v41 = vpop.permute.xlu0 %5577 }
 0x412   :  { %v4480_v52 = vrot.slane %v4479_v3, 4  ;;  %v4805_v30 = vor.u32 %v11245_v7, %v11237_v15  ;;  %v12032_v1 = vcombine.low %v10704_v4, %v10722_v16  ;;  %v4498_v11 = vrot.slane %v4496_v53, 5  ;;  %5587 = vrot.lane.b32.xlu0 %v7633_v22, %s8574_s16  ;;  %7921 = vmatpush3.bf16.msra.mxu1 %v11085_v35  ;;  %v11476_v22 = vld [vmem:[#allocation4 + $0x94] sm:$0x1] }
 0x413   :  { %v5208_v32 = vsel %vm9131_vm0, %v5203_v33, %v5207_v51  ;;  %v11463_v28 = vrot.slane %v4841_v26, 4  ;;  %v4494_v15 = vrot.slane %v4493_v40, 4  ;;  %v5194_v4 = vsel %vm9131_vm0, %v11411_v10, %v5193_v17  ;;  %7922 = vmatprep.subr.bf16.mxu1 %v8070_v57 }
 0x414   :  { %v5714_v25 = vsel %vm3461_vm3, %v12032_v1, %v5416_v24  ;;  %v11473_v16 = vrot.slane %v4844_v34, 5  ;;  %v4858_v7 = vshll.u32 %v11441_v37, 16  ;;  %v7648_v53 = vcombine.low %v5194_v4, %v5208_v32 }
 0x415   :  { %v11478_v33 = vrot.slane %v4855_v23, 4  ;;  %v5210_v35 = vshrl.u32 %v4995_v50, 16  ;;  %v5213_v24 = vshll.u32 %v4995_v50, 16  ;;  %v4485_v40 = vsel %vm9131_vm0, %v4480_v52, %v11377_v45  ;;  %v11491_v8 = vpop.permute.xlu0 %5633  ;;  %v11503_v23 = vpop.permute.xlu1 %5457 }
 0x416   :  { %v4499_v21 = vsel %vm9131_vm0, %v4494_v15, %v4498_v11  ;;  %v7617_v10 = vcombine.low %v11433_v29, %v11441_v37  ;;  %v5231_v17 = vrot.slane %v5230_v9, 4  ;;  %5681 = vrot.lane.b32.xlu0 %v7648_v53, %s8577_s30  ;;  %v5219_v26 = vshll.u32 %v11476_v22, 16  ;;  %7923 = vmatpush3.bf16.msra.mxu1 %v8070_v57 }
 0x417   :  { %v7601_v12 = vcombine.low %v4485_v40, %v4499_v21  ;;  %v5212_v49 = vrot.slane %v5210_v35, 4  ;;  %v5215_v44 = vrot.slane %v5213_v24, 5  ;;  %v7641_v52 = vcombine.low %v4995_v50, %v11241_v58  ;;  %v5239_v40 = vld [vmem:[#allocation4 + $0x20] sm:$0xe] }
 0x418   :  { %v5736_v45 = vsel %vm3495_vm8, %v5714_v25, %v11403_v59  ;;  %v5233_v29 = vshll.u32 %v11488_v60, 16  ;;  %v12033_v37 = vor.u32 %v11227_v62, %v11197_v48  ;;  %v4794_v34 = vshll.u32 %v11145_v39, 16 }
 0x419   :  { %5427 = vrot.lane.b32.xlu1 %v7601_v12, %s8574_s16  ;;  %v5216_v2 = vor.u32 %v5215_v44, %v5212_v49  ;;  %v4806_v51 = vrot.slane %v4805_v30, 4  ;;  %v4808_v57 = vshll.u32 %v11175_v19, 16  ;;  %v4819_v59 = vor.u32 %v11372_v6, %v11370_v20  ;;  %v5672_v6 = vpop.permute.xlu0 %5671  ;;  %v5418_v21 = vpop.permute.xlu1 %5417  ;;  %v8290_v49 = vld [vmem:[#allocation4 + $0x24] sm:$0x1] }
 0x41a   :  { %v4792_v3 = vrot.slane %v12033_v37, 4  ;;  %v5235_v58 = vrot.slane %v5233_v29, 5  ;;  %v4822_v50 = vshll.u32 %v11326_v27, 16  ;;  %v4833_v48 = vor.u32 %v11339_v38, %v11333_v31  ;;  %5643 = vrot.lane.b32.xlu0 %v7641_v52, %s8561_s1 }
 0x41b   :  { %v5217_v62 = vrot.slane %v5216_v2, 4  ;;  %v5221_v9 = vrot.slane %v5219_v26, 5  ;;  %v4796_v1 = vrot.slane %v4794_v34, 5  ;;  %v4810_v39 = vrot.slane %v4808_v57, 5  ;;  %v8291_v26 = vld [vmem:[#allocation4 + $0x2c] sm:$0x1] }
 0x41c   :  { %v4860_v30 = vrot.slane %v4858_v7, 5  ;;  %v5236_v19 = vsel %vm9131_vm0, %v5231_v17, %v5235_v58  ;;  %v4820_v25 = vrot.slane %v4819_v59, 4  ;;  %v4824_v11 = vrot.slane %v4822_v50, 5 }
 0x41d   :  { %5523 = vrot.lane.b32.xlu1 %v7617_v10, %s8577_s30  ;;  %v5753_v27 = vsel %vm3529_vm12, %v5736_v45, %v11366_v36  ;;  %v5222_v31 = vsel %vm9131_vm0, %v5217_v62, %v5221_v9  ;;  %v4797_v38 = vsel %vm9131_vm0, %v4792_v3, %v4796_v1  ;;  %v4811_v20 = vsel %vm9131_vm0, %v4806_v51, %v4810_v39  ;;  %v5636_v2 = vpop.permute.xlu0 %5635  ;;  %v5247_v62 = vld [vmem:[#allocation4 + $0x70] sm:$0xe]  ;;  %v5248_v9 = vld [vmem:[#allocation4 + $0x78] sm:$0xe] }
 0x41e   :  { %v7649_v32 = vcombine.low %v5222_v31, %v5236_v19  ;;  %v11522_v15 = vcombine.low %v4797_v38, %v4811_v20  ;;  %v4825_v4 = vsel %vm9131_vm0, %v4820_v25, %v4824_v11  ;;  %v4834_v7 = vrot.slane %v4833_v48, 4  ;;  %v5249_v19 = vld [vmem:[#allocation4 + $0x80] sm:$0xe] }
 0x41f   :  { %v5817_v36 = vsel %vm3529_vm12, %v11385_v42, %v5672_v6  ;;  %v4836_v53 = vshll.u32 %v11337_v18, 16  ;;  %v7592_v35 = vcombine.low %v11229_v43, %v11344_v54  ;;  %v4847_v24 = vor.u32 %v11473_v16, %v11463_v28  ;;  %v5240_v42 = vld [vmem:[#allocation4 + $0x28] sm:$0xe]  ;;  %v12034_v11 = vld [vmem:[#allocation40_spill] sm:$0xff]  ;;  %v5237_v43 = vld [vmem:[#allocation4 + $0x10] sm:$0xe] }
 0x420   :  { %6052 = vmatprep.mubr.bf16.mxu1 %v5817_v36  ;;  %5683 = vrot.lane.b32.xlu0 %v7649_v32, %s8577_s30  ;;  %v4850_v10 = vshll.u32 %v11396_v0, 16  ;;  %v4861_v17 = vor.u32 %v4860_v30, %v11478_v33  ;;  %v4864_v12 = vshll.u32 %v11401_v14, 16  ;;  %v7593_v18 = vcombine.low %v11414_v61, %v11419_v5  ;;  %v5516_v14 = vpop.permute.xlu1 %5515  ;;  %v5250_v32 = vld [vmem:[#allocation4 + $0x88] sm:$0xe]  ;;  %v5252_v36 = vld [vmem:[#allocation4 + $0x98] sm:$0xe] }
 0x421   :  { %v5295_v44 = vrot.slane %v8290_v49, 5  ;;  %v5299_v52 = vrot.slane %v8291_v26, 5  ;;  %6053 = vmatmul.mubr.bf16.gmra.mrb[4].mxu1 %v5753_v27  ;;  %v4838_v28 = vrot.slane %v4836_v53, 5  ;;  %v4848_v16 = vrot.slane %v4847_v24, 4  ;;  %v12035_v27 = vld [vmem:[#allocation47_spill] sm:$0xff]  ;;  %v12037_v53 = vld [vmem:[#allocation54_spill] sm:$0xff] }
 0x422   :  { %v4852_v45 = vrot.slane %v4850_v10, 5  ;;  %v4862_v29 = vrot.slane %v4861_v17, 4  ;;  %v4866_v37 = vrot.slane %v4864_v12, 5  ;;  %v7572_v3 = vrot.slane %v5239_v40, 9  ;;  %v12039_v17 = vld [vmem:[#allocation35_spill] sm:$0xff] }
 0x423   :  { %v4839_v0 = vsel %vm9131_vm0, %v4834_v7, %v4838_v28  ;;  %v7573_v33 = vrot.slane %v5240_v42, 9  ;;  %v7580_v30 = vrot.slane %v5247_v62, 9  ;;  %v5327_v46 = vrot.slane %v11239_v63, 5  ;;  %v5251_v7 = vld [vmem:[#allocation4 + $0x90] sm:$0xe] }
 0x424   :  { %v11541_v34 = vcombine.low %v4825_v4, %v4839_v0  ;;  %v4853_v51 = vsel %vm9131_vm0, %v4848_v16, %v4852_v45  ;;  %v4867_v57 = vsel %vm9131_vm0, %v4862_v29, %v4866_v37  ;;  %v11551_v59 = vsel %vm9077_vm13, %v7572_v3, %v5295_v44  ;;  %v5460_v1 = vpop.permute.xlu1 %5459  ;;  %v12040_v0 = vld [vmem:[#allocation43_spill] sm:$0xff] }
 0x425   :  { %v11547_v58 = vcombine.low %v4853_v51, %v4867_v57  ;;  %v11555_v50 = vsel %vm9077_vm13, %v7573_v33, %v5299_v52  ;;  %v5580_v39 = vpop.permute.xlu0 %5579  ;;  %v5781_v25 = vsel %vm3461_vm3, %v11114_v47, %v11468_v41  ;;  %v12036_v31 = vcombine.low %v12034_v11, %v12035_v27  ;;  %v12041_v33 = vld [vmem:[#allocation45_spill] sm:$0xff] }
 0x426   :  { %v7651_v48 = vcombine.low %v11551_v59, %v11555_v50  ;;  %v7581_v20 = vrot.slane %v5248_v9, 9  ;;  %v5331_v6 = vrot.slane %v11379_v55, 5  ;;  %v5802_v4 = vsel %vm3495_vm8, %v5781_v25, %v11491_v8 }
 0x427   :  { %v5717_v38 = vsel %vm3461_vm3, %v12036_v31, %v5418_v21  ;;  %v11572_v63 = vsel %vm9077_vm13, %v7580_v30, %v5327_v46  ;;  %v7582_v41 = vrot.slane %v5249_v19, 9  ;;  %v5335_v24 = vrot.slane %v12037_v53, 5  ;;  %v12038_v21 = vld [vmem:[#allocation48_spill] sm:$0xff] }
 0x428   :  { %v11576_v47 = vsel %vm9077_vm13, %v7581_v20, %v5331_v6  ;;  %v5738_v55 = vsel %vm3495_vm8, %v5717_v38, %v11503_v23  ;;  %v7583_v8 = vrot.slane %v5250_v32, 9  ;;  %v5339_v10 = vrot.slane %v12038_v21, 5  ;;  %v5420_v52 = vpop.permute.xlu1 %5419  ;;  %v8292_v38 = vld [vmem:[#allocation4 + $0x50] sm:$0xf]  ;;  %v8293_v20 = vld [vmem:[#allocation4 + $0x58] sm:$0xf] }
 0x429   :  { %v7655_v40 = vcombine.low %v11572_v63, %v11576_v47  ;;  %v5784_v12 = vsel %vm3461_vm3, %v12039_v17, %v5580_v39  ;;  %v7584_v49 = vrot.slane %v5251_v7, 9  ;;  %v5343_v44 = vrot.slane %v11476_v22, 5  ;;  %v12043_v7 = vld [vmem:[#allocation52_spill] sm:$0xff] }
 0x42a   :  { %v7585_v26 = vrot.slane %v5252_v36, 9  ;;  %v11590_v23 = vsel %vm9077_vm13, %v7582_v41, %v5335_v24  ;;  %v11594_v16 = vsel %vm9077_vm13, %v7583_v8, %v5339_v10  ;;  %v5347_v45 = vrot.slane %v11488_v60, 5 }
 0x42b   :  { %v5756_v29 = vsel %vm3529_vm12, %v5738_v55, %v11466_v56  ;;  %v7656_v22 = vcombine.low %v11590_v23, %v11594_v16  ;;  %v11603_v37 = vsel %vm9077_vm13, %v7584_v49, %v5343_v44  ;;  %v12042_v51 = vcombine.low %v12040_v0, %v12041_v33  ;;  %v12045_v49 = vld [vmem:[#allocation50_spill] sm:$0xff] }
 0x42c   :  { %v5674_v42 = vpop.permute.xlu0 %5673  ;;  %v11607_v3 = vsel %vm9077_vm13, %v7585_v26, %v5347_v45  ;;  %v5804_v56 = vsel %vm3495_vm8, %v5784_v12, %v5636_v2  ;;  %v7590_v2 = vcombine.low %v8292_v38, %v8293_v20  ;;  %v7570_v38 = vrot.slane %v5237_v43, 9 }
 0x42d   :  { %v5820_v28 = vsel %vm3529_vm12, %v5802_v4, %v5674_v42  ;;  %v5720_v60 = vsel %vm3461_vm3, %v12042_v51, %v5420_v52  ;;  %v7657_v62 = vcombine.low %v11603_v37, %v11607_v3  ;;  %v12044_v42 = vld [vmem:[#allocation53_spill] sm:$0xff] }
 0x42e   :  { %6060 = vmatprep.mubr.bf16.mxu1 %v5820_v28  ;;  %v5740_v39 = vsel %vm3495_vm8, %v5720_v60, %v5460_v1  ;;  %v12046_v44 = vcombine.low %v12044_v42, %v12045_v49  ;;  %v5244_v42 = vld [vmem:[#allocation4 + $0x48] sm:$0xe] }
 0x42f   :  { %6061 = vmatmul.mubr.bf16.gmra.mrb[8].mxu1 %v5756_v29  ;;  %v5759_v30 = vsel %vm3529_vm12, %v5740_v39, %v5516_v14  ;;  %v5246_v49 = vld [vmem:[#allocation4 + $0x68] sm:$0xe] }
 0x430   :  { %v5676_v57 = vpop.permute.xlu0 %5675 }
 0x431   :  { %v5823_v9 = vsel %vm3529_vm12, %v5804_v56, %v5676_v57 }
 0x432   :  { %6068 = vmatprep.mubr.bf16.mxu1 %v5823_v9  ;;  %v5518_v46 = vpop.permute.xlu1 %5517 }
 0x437   :  { %6069 = vmatmul.mubr.bf16.gmra.mrb[12].mxu1 %v5759_v30  ;;  %v5582_v19 = vpop.permute.xlu0 %5581 }
 0x438   :  { %v5462_v25 = vpop.permute.xlu1 %5461  ;;  %v5787_v36 = vsel %vm3461_vm3, %v12043_v7, %v5582_v19  ;;  %v5238_v19 = vld [vmem:[#allocation4 + $0x18] sm:$0xe] }
 0x43f   :  { %v5422_v27 = vpop.permute.xlu1 %5421 }
 0x440   :  { %v5723_v32 = vsel %vm3461_vm3, %v7590_v2, %v5422_v27  ;;  %v8294_v27 = vld [vmem:[#allocation4 + $0x1c] sm:$0x1] }
 0x441   :  { %v5742_v1 = vsel %vm3495_vm8, %v5723_v32, %v5462_v25 }
 0x442   :  { %v5762_v55 = vsel %vm3529_vm12, %v5742_v1, %v5518_v46  ;;  %v5242_v1 = vld [vmem:[#allocation4 + $0x38] sm:$0xe] }
 0x44f   :  { %v5638_v11 = vpop.permute.xlu0 %5637 }
 0x450   :  { %v5806_v14 = vsel %vm3495_vm8, %v5787_v36, %v5638_v11 }
 0x451   :  { %v5520_v6 = vpop.permute.xlu1 %5519 }
 0x457   :  { %v5584_v31 = vpop.permute.xlu0 %5583 }
 0x458   :  { %v5790_v52 = vsel %vm3461_vm3, %v11522_v15, %v5584_v31  ;;  %v5291_v31 = vrot.slane %v8294_v27, 5 }
 0x459   :  { %v5464_v41 = vpop.permute.xlu1 %5463 }
 0x463   :  { %v5424_v8 = vpop.permute.xlu1 %5423 }
 0x464   :  { %v5726_v26 = vsel %vm3461_vm3, %v12046_v44, %v5424_v8 }
 0x465   :  { %v5744_v28 = vsel %vm3495_vm8, %v5726_v26, %v5464_v41 }
 0x466   :  { %v5640_v4 = vpop.permute.xlu0 %5639  ;;  %v5765_v51 = vsel %vm3529_vm12, %v5744_v28, %v5520_v6  ;;  %v8298_v28 = vld [vmem:[#allocation4 + $0x44] sm:$0x1] }
 0x467   :  { %v5808_v45 = vsel %vm3495_vm8, %v5790_v52, %v5640_v4 }
 0x46a   :  { %v5678_v53 = vpop.permute.xlu0 %5677  ;;  %v5522_v21 = vpop.permute.xlu1 %5521 }
 0x46b   :  { %v5826_v24 = vsel %vm3529_vm12, %v5806_v14, %v5678_v53  ;;  %v7575_v53 = vrot.slane %v5242_v1, 9  ;;  %v8077_v1 = vld [vmem:[#allocation18 + $0x14] ss:$8 sps:$4 sm:$0xff]  }
 0x46c   :  { %6076 = vmatprep.mubr.bf16.mxu1 %v5826_v24  ;;  %v8296_v24 = vld [vmem:[#allocation4 + $0x3c] sm:$0x1] }
 0x46d   :  { %6077 = vmatmul.mubr.bf16.gmra.mrb[16].mxu1 %v5762_v55  ;;  %v5307_v55 = vrot.slane %v8296_v24, 5  ;;  %v8078_v24 = vld [vmem:[#allocation18 + $0x20] ss:$8 sps:$4 sm:$0xff]  }
 0x471   :  { %v5466_v12 = vpop.permute.xlu1 %5465 }
 0x475   :  { %v5586_v10 = vpop.permute.xlu0 %5585 }
 0x476   :  { %v5793_v15 = vsel %vm3461_vm3, %v11541_v34, %v5586_v10  ;;  %v8295_v34 = vld [vmem:[#allocation4 + $0x14] sm:$0x1] }
 0x477   :  { %v5287_v20 = vrot.slane %v8295_v34, 5 }
 0x479   :  { %v5642_v17 = vpop.permute.xlu0 %5641  ;;  %v5288_v61 = vsel %vm9077_vm13, %v7570_v38, %v5287_v20 }
 0x47a   :  { %v5810_v39 = vsel %vm3495_vm8, %v5793_v15, %v5642_v17  ;;  %v5243_v17 = vld [vmem:[#allocation4 + $0x40] sm:$0xe] }
 0x47b   :  { %v7576_v26 = vrot.slane %v5243_v17, 9  ;;  %v8092_v17 = vld [vmem:[#allocation18 + $0x44] ss:$8 sps:$4 sm:$0xff]  }
 0x47d   :  { %v5426_v0 = vpop.permute.xlu1 %5425 }
 0x47e   :  { %v5729_v60 = vsel %vm3461_vm3, %v7592_v35, %v5426_v0  ;;  %v7571_v35 = vrot.slane %v5238_v19, 9  ;;  %v8299_v0 = vld [vmem:[#allocation4 + $0x4c] sm:$0x1] }
 0x47f   :  { %v5746_v9 = vsel %vm3495_vm8, %v5729_v60, %v5466_v12  ;;  %v5308_v12 = vsel %vm9077_vm13, %v7575_v53, %v5307_v55  ;;  %v7579_v60 = vrot.slane %v5246_v49, 9  ;;  %v8095_v53 = vld [vmem:[#allocation18 + $0x224] ss:$8 sps:$4 sm:$0xff]   ;;  %v8086_v55 = vld [vmem:[#allocation18 + $0x34] ss:$8 sps:$4 sm:$0xff]  }
 0x480   :  { %v5680_v29 = vpop.permute.xlu0 %5679  ;;  %v5768_v11 = vsel %vm3529_vm12, %v5746_v9, %v5522_v21  ;;  %v5292_v4 = vsel %vm9077_vm13, %v7571_v35, %v5291_v31  ;;  %v8297_v21 = vld [vmem:[#allocation4 + $0x34] sm:$0x1]  ;;  %v8300_v9 = vld [vmem:[#allocation4 + $0x64] sm:$0x1]  ;;  %v8090_v49 = vld [vmem:[#allocation18 + $0x40] ss:$8 sps:$4 sm:$0xff]  }
 0x481   :  { %v5829_v33 = vsel %vm3529_vm12, %v5808_v45, %v5680_v29  ;;  %v5468_v56 = vpop.permute.xlu1 %5467  ;;  %v5303_v10 = vrot.slane %v8297_v21, 5  ;;  %v5311_v45 = vrot.slane %v8298_v28, 5  ;;  %v7577_v29 = vrot.slane %v5244_v42, 9  ;;  %v8101_v21 = vld [vmem:[#allocation18 + $0x234] ss:$8 sps:$4 sm:$0xff]  }
 0x482   :  { %6084 = vmatprep.mubr.bf16.mxu1 %v5829_v33  ;;  %v5315_v33 = vrot.slane %v8299_v0, 5  ;;  %v8107_v42 = vld [vmem:[#allocation18 + $0x244] ss:$8 sps:$4 sm:$0xff]   ;;  %v8096_v28 = vld [vmem:[#allocation18 + $0x50] ss:$8 sps:$4 sm:$0xff]  }
 0x483   :  { %6085 = vmatmul.mubr.bf16.gmra.mrb[20].mxu1 %v5765_v51  ;;  %v5245_v51 = vld [vmem:[#allocation4 + $0x60] sm:$0xe]  ;;  %v8119_v0 = vld [vmem:[#allocation18 + $0x264] ss:$8 sps:$4 sm:$0xff]  }
 0x484   :  { %v5588_v57 = vpop.permute.xlu0 %5587  ;;  %v7578_v15 = vrot.slane %v5245_v51, 9  ;;  %v8110_v51 = vld [vmem:[#allocation18 + $0x74] ss:$8 sps:$4 sm:$0xff]  }
 0x485   :  { %v5796_v6 = vsel %vm3461_vm3, %v11547_v58, %v5588_v57  ;;  %v5241_v58 = vld [vmem:[#allocation4 + $0x30] sm:$0xe]  ;;  %v12047_v57 = vld [vmem:[#allocation49_spill] sm:$0xff] }
 0x486   :  { %v7574_v8 = vrot.slane %v5241_v58, 9  ;;  %v8087_v58 = vld [vmem:[#allocation18 + $0x210] ss:$8 sps:$4 sm:$0xff]  }
 0x488   :  { %v5682_v30 = vpop.permute.xlu0 %5681  ;;  %v5304_v44 = vsel %vm9077_vm13, %v7574_v8, %v5303_v10  ;;  %v8093_v8 = vld [vmem:[#allocation18 + $0x220] ss:$8 sps:$4 sm:$0xff]   ;;  %v8084_v10 = vld [vmem:[#allocation18 + $0x30] ss:$8 sps:$4 sm:$0xff]  }
 0x489   :  { %v5832_v46 = vsel %vm3529_vm12, %v5810_v39, %v5682_v30  ;;  %v7652_v52 = vcombine.low %v5304_v44, %v5308_v12  ;;  %v5319_v39 = vrot.slane %v8300_v9, 5  ;;  %v5312_v30 = vsel %vm9077_vm13, %v7576_v26, %v5311_v45  ;;  %v8099_v12 = vld [vmem:[#allocation18 + $0x230] ss:$8 sps:$4 sm:$0xff]   ;;  %v8098_v44 = vld [vmem:[#allocation18 + $0x54] ss:$8 sps:$4 sm:$0xff]  }
 0x48a   :  { %6092 = vmatprep.mubr.bf16.mxu1 %v5832_v46  ;;  %v5316_v46 = vsel %vm9077_vm13, %v7577_v29, %v5315_v33  ;;  %v8105_v26 = vld [vmem:[#allocation18 + $0x240] ss:$8 sps:$4 sm:$0xff]   ;;  %v8104_v45 = vld [vmem:[#allocation18 + $0x64] ss:$8 sps:$4 sm:$0xff]   ;;  %v8111_v29 = vld [vmem:[#allocation18 + $0x250] ss:$8 sps:$4 sm:$0xff]  }
 0x48b   :  { %v5428_v25 = vpop.permute.xlu1 %5427  ;;  %6093 = vmatmul.mubr.bf16.gmra.mrb[24].mxu1 %v5768_v11  ;;  %v7653_v59 = vcombine.low %v5312_v30, %v5316_v46  ;;  %v5320_v50 = vsel %vm9077_vm13, %v7578_v15, %v5319_v39  ;;  %v8102_v33 = vld [vmem:[#allocation18 + $0x60] ss:$8 sps:$4 sm:$0xff]   ;;  %v8116_v15 = vld [vmem:[#allocation18 + $0x84] ss:$8 sps:$4 sm:$0xff]   ;;  %v8123_v9 = vld [vmem:[#allocation18 + $0x270] ss:$8 sps:$4 sm:$0xff]  }
 0x48c   :  { %v5644_v54 = vpop.permute.xlu0 %5643  ;;  %v5732_v2 = vsel %vm3461_vm3, %v7593_v18, %v5428_v25  ;;  %v7650_v18 = vcombine.low %v5288_v61, %v5292_v4  ;;  %v8075_v61 = vld [vmem:[#allocation18 + $0x10] ss:$8 sps:$4 sm:$0xff]   ;;  %v8131_v39 = vld [vmem:[#allocation18 + $0x284] ss:$8 sps:$4 sm:$0xff]   ;;  %v8114_v30 = vld [vmem:[#allocation18 + $0x80] ss:$8 sps:$4 sm:$0xff]  }
 0x48d   :  { %v5812_v7 = vsel %vm3495_vm8, %v5796_v6, %v5644_v54  ;;  %v5748_v41 = vsel %vm3495_vm8, %v5732_v2, %v5468_v56  ;;  %v5323_v56 = vrot.slane %v12047_v57, 5  ;;  %v8125_v57 = vld [vmem:[#allocation18 + $0x274] ss:$8 sps:$4 sm:$0xff]  }
 0x48e   :  { %v8122_v46 = vld [vmem:[#allocation18 + $0x94] ss:$8 sps:$4 sm:$0xff]  }
 0x48f   :  { %v5524_v32 = vpop.permute.xlu1 %5523  ;;  %v5324_v19 = vsel %vm9077_vm13, %v7579_v60, %v5323_v56  ;;  %v8117_v60 = vld [vmem:[#allocation18 + $0x260] ss:$8 sps:$4 sm:$0xff]   ;;  %v8108_v56 = vld [vmem:[#allocation18 + $0x70] ss:$8 sps:$4 sm:$0xff]  }
 0x490   :  { %v5771_v5 = vsel %vm3529_vm12, %v5748_v41, %v5524_v32  ;;  %v8083_v41 = vld [vmem:[#allocation18 + $0x204] ss:$8 sps:$4 sm:$0xff]  }
 0x491   :  { %7225 = vmatprep.subr.bf16.mxu0 %v8083_v41  ;;  %v8152_v41 = vld [vmem:[#allocation18 + $0xe4] ss:$8 sps:$4 sm:$0xff]  }
 0x492   :  { %v5684_v36 = vpop.permute.xlu0 %5683 }
 0x493   :  { %v5835_v14 = vsel %vm3529_vm12, %v5812_v7, %v5684_v36  ;;  %v8072_v7 = vld [vmem:[#allocation18] ss:$8 sps:$4 sm:$0xff]   ;;  %v8074_v36 = vld [vmem:[#allocation18 + $0x4] ss:$8 sps:$4 sm:$0xff]  }
 0x494   :  { %6100 = vmatprep.mubr.bf16.mxu1 %v5835_v14  ;;  %7143 = vmatprep.subr.bf16.mxu1 %v8074_v36  ;;  %v8081_v14 = vld [vmem:[#allocation18 + $0x200] ss:$8 sps:$4 sm:$0xff]   ;;  %v8146_v36 = vld [vmem:[#allocation18 + $0xd4] ss:$8 sps:$4 sm:$0xff]  }
 0x495   :  { %6101 = vmatmul.mubr.bf16.gmra.mrb[28].mxu1 %v5771_v5  ;;  %v8089_v5 = vld [vmem:[#allocation18 + $0x214] ss:$8 sps:$4 sm:$0xff]   ;;  %7226 = vmatpush1.bf16.msra.mxu0 %v8081_v14  ;;  %v8144_v14 = vld [vmem:[#allocation18 + $0xd0] ss:$8 sps:$4 sm:$0xff]  }
 0x496   :  { %7924 = vmatprep.mubr.msk.bf16.mxu1 %vm3461_vm3, %v7650_v18  ;;  %v8080_v18 = vld [vmem:[#allocation18 + $0x24] ss:$8 sps:$4 sm:$0xff]   ;;  %7227 = vmatprep.subr.bf16.mxu0 %v8089_v5 }
 0x499   :  { %7228 = vmatpush1.bf16.msra.mxu0 %v8087_v58 }
 0x49a   :  { %7229 = vmatprep.subr.bf16.mxu0 %v8095_v53 }
 0x49d   :  { %7925 = vmatmul.mubr.msk.bf16.vlgmr.msra.gmra.mrb[32].mxu1 %vm3461_vm3, %v7651_v48  ;;  %v7654_v48 = vcombine.low %v5320_v50, %v5324_v19  ;;  %7230 = vmatpush1.bf16.msra.mxu0 %v8093_v8  ;;  %v8129_v19 = vld [vmem:[#allocation18 + $0x280] ss:$8 sps:$4 sm:$0xff]  }
 0x49e   :  { %7928 = vmatprep.mubr.msk.bf16.mxu1 %vm3461_vm3, %v7652_v52  ;;  %7144 = vmatpush1.bf16.msra.mxu1 %v8072_v7  ;;  %v8113_v52 = vld [vmem:[#allocation18 + $0x254] ss:$8 sps:$4 sm:$0xff]   ;;  %v8138_v7 = vld [vmem:[#allocation18 + $0xc0] ss:$8 sps:$4 sm:$0xff]  }
 0x49f   :  { %7145 = vmatprep.subr.bf16.mxu1 %v8077_v1  ;;  %7231 = vmatprep.subr.bf16.mxu0 %v8101_v21  ;;  %v8153_v1 = vld [vmem:[#allocation18 + $0x2c0] ss:$8 sps:$4 sm:$0xff]  }
 0x4a1   :  { %7232 = vmatpush1.bf16.msra.mxu0 %v8099_v12 }
 0x4a2   :  { %7146 = vmatpush1.bf16.msra.mxu1 %v8075_v61  ;;  %7233 = vmatprep.subr.bf16.mxu0 %v8107_v42  ;;  %v8150_v61 = vld [vmem:[#allocation18 + $0xe0] ss:$8 sps:$4 sm:$0xff]  }
 0x4a3   :  { %7147 = vmatprep.subr.bf16.mxu1 %v8080_v18 }
 0x4a5   :  { %7929 = vmatmul.mubr.msk.bf16.gmra.mrb[36].mxu1 %vm3461_vm3, %v7653_v59  ;;  %7234 = vmatpush1.bf16.msra.mxu0 %v8105_v26  ;;  %v8137_v59 = vld [vmem:[#allocation18 + $0x294] ss:$8 sps:$4 sm:$0xff]  }
 0x4a6   :  { %7932 = vmatprep.mubr.msk.bf16.mxu1 %vm3461_vm3, %v7654_v48  ;;  %7148 = vmatpush1.bf16.msra.mxu1 %v8078_v24  ;;  %v8120_v48 = vld [vmem:[#allocation18 + $0x90] ss:$8 sps:$4 sm:$0xff]  }
 0x4a7   :  { %7149 = vmatprep.subr.bf16.mxu1 %v8086_v55  ;;  %7235 = vmatprep.subr.bf16.mxu0 %v8113_v52 }
 0x4a9   :  { %7236 = vmatpush1.bf16.msra.mxu0 %v8111_v29  ;;  %v11719_v29 = vld [vmem:[#allocation17] ss:$0 sm:$0xff] }
 0x4aa   :  { %7150 = vmatpush1.bf16.msra.mxu1 %v8084_v10  ;;  %7237 = vmatprep.subr.bf16.mxu0 %v8119_v0 }
 0x4ab   :  { %7151 = vmatprep.subr.bf16.mxu1 %v8092_v17 }
 0x4ad   :  { %7933 = vmatmul.mubr.msk.bf16.gmra.mrb[40].mxu1 %vm3461_vm3, %v7655_v40  ;;  %7238 = vmatpush1.bf16.msra.mxu0 %v8117_v60 }
 0x4ae   :  { %7936 = vmatprep.mubr.msk.bf16.mxu1 %vm3461_vm3, %v7656_v22  ;;  %7152 = vmatpush1.bf16.msra.mxu1 %v8090_v49 }
 0x4af   :  { %7153 = vmatprep.subr.bf16.mxu1 %v8098_v44  ;;  %7239 = vmatprep.subr.bf16.mxu0 %v8125_v57 }
 0x4b1   :  { %7240 = vmatpush1.bf16.msra.mxu0 %v8123_v9 }
 0x4b2   :  { %7154 = vmatpush1.bf16.msra.mxu1 %v8096_v28  ;;  %7241 = vmatprep.subr.bf16.mxu0 %v8131_v39 }
 0x4b3   :  { %7155 = vmatprep.subr.bf16.mxu1 %v8104_v45 }
 0x4b5   :  { %7937 = vmatmul.mubr.msk.bf16.gmra.mrb[44].mxu1 %vm3461_vm3, %v7657_v62  ;;  %7242 = vmatpush1.bf16.msra.mxu0 %v8129_v19 }
 0x4b6   :  { %7156 = vmatpush1.bf16.msra.mxu1 %v8102_v33  ;;  %7243 = vmatprep.subr.bf16.mxu0 %v8137_v59 }
 0x4b7   :  { %7157 = vmatprep.subr.bf16.mxu1 %v8110_v51 }
 0x4ba   :  { %7158 = vmatpush1.bf16.msra.mxu1 %v8108_v56 }
 0x4bb   :  { %7159 = vmatprep.subr.bf16.mxu1 %v8116_v15 }
 0x4be   :  { %7160 = vmatpush1.bf16.msra.mxu1 %v8114_v30 }
 0x4bf   :  { %7161 = vmatprep.subr.bf16.mxu1 %v8122_v46 }
 0x4c2   :  { %7162 = vmatpush1.bf16.msra.mxu1 %v8120_v48 }
 0x4e4   :  { %v7862_v13 = vpop.f32.mrb[0].mxu1 }
 0x4e5   :  { %v7863_v25 = vpop.f32.mrb[1].mxu1 }
 0x4e6   :  { %v11693_v11 = vadd.f32 %v7863_v25, %v7862_v13  ;;  %v7865_v43 = vpop.f32.mrb[2].mxu1  ;;  %v8128_v25 = vld [vmem:[#allocation18 + $0xa4] ss:$8 sps:$4 sm:$0xff]  }
 0x4e7   :  { %v7866_v54 = vpop.f32.mrb[3].mxu1  ;;  %7163 = vmatprep.subr.bf16.mxu1 %v8128_v25 }
 0x4e8   :  { %v11695_v35 = vadd.f32 %v7866_v54, %v7865_v43  ;;  %v6047_v51 = vadd.f32 %v11693_v11, %v11719_v29 }
 0x4ea   :  { %v6050_v39 = vadd.f32 %v11695_v35, %v11719_v29 }
 0x4f4   :  { %v7868_v63 = vpop.f32.mrb[4].mxu1 }
 0x4f5   :  { %v7869_v47 = vpop.f32.mrb[5].mxu1 }
 0x4f6   :  { %v11697_v40 = vadd.f32 %v7869_v47, %v7868_v63  ;;  %v7871_v23 = vpop.f32.mrb[6].mxu1  ;;  %v8135_v63 = vld [vmem:[#allocation18 + $0x290] ss:$8 sps:$4 sm:$0xff]  }
 0x4f7   :  { %v7872_v16 = vpop.f32.mrb[7].mxu1  ;;  %7244 = vmatpush1.bf16.msra.mxu0 %v8135_v63 }
 0x4f8   :  { %v11699_v22 = vadd.f32 %v7872_v16, %v7871_v23  ;;  %v8143_v23 = vld [vmem:[#allocation18 + $0x2a4] ss:$8 sps:$4 sm:$0xff]   ;;  %v6055_v0 = vadd.f32 %v11697_v40, %v11719_v29 }
 0x4f9   :  { %7245 = vmatprep.subr.bf16.mxu0 %v8143_v23 }
 0x4fa   :  { %v6058_v56 = vadd.f32 %v11699_v22, %v11719_v29 }
 0x502   :  { %v7874_v27 = vpop.f32.mrb[8].mxu1 }
 0x503   :  { %v7875_v37 = vpop.f32.mrb[9].mxu1 }
 0x504   :  { %v11701_v3 = vadd.f32 %v7875_v37, %v7874_v27  ;;  %v7877_v62 = vpop.f32.mrb[10].mxu1  ;;  %v8126_v27 = vld [vmem:[#allocation18 + $0xa0] ss:$8 sps:$4 sm:$0xff]   ;;  %v8134_v37 = vld [vmem:[#allocation18 + $0xb4] ss:$8 sps:$4 sm:$0xff]  }
 0x505   :  { %v7878_v31 = vpop.f32.mrb[11].mxu1  ;;  %7164 = vmatpush1.bf16.msra.mxu1 %v8126_v27 }
 0x506   :  { %v11703_v38 = vadd.f32 %v7878_v31, %v7877_v62  ;;  %v8141_v62 = vld [vmem:[#allocation18 + $0x2a0] ss:$8 sps:$4 sm:$0xff]   ;;  %v8149_v31 = vld [vmem:[#allocation18 + $0x2b4] ss:$8 sps:$4 sm:$0xff]   ;;  %7165 = vmatprep.subr.bf16.mxu1 %v8134_v37  ;;  %v6063_v22 = vadd.f32 %v11701_v3, %v11719_v29 }
 0x507   :  { %7246 = vmatpush1.bf16.msra.mxu0 %v8141_v62 }
 0x508   :  { %7247 = vmatprep.subr.bf16.mxu0 %v8149_v31  ;;  %v6066_v37 = vadd.f32 %v11703_v38, %v11719_v29 }
 0x50a   :  { %v7880_v34 = vpop.f32.mrb[12].mxu1 }
 0x50b   :  { %v7881_v20 = vpop.f32.mrb[13].mxu1 }
 0x50c   :  { %v11705_v2 = vadd.f32 %v7881_v20, %v7880_v34  ;;  %v7883_v6 = vpop.f32.mrb[14].mxu1  ;;  %v8132_v34 = vld [vmem:[#allocation18 + $0xb0] ss:$8 sps:$4 sm:$0xff]   ;;  %v8140_v20 = vld [vmem:[#allocation18 + $0xc4] ss:$8 sps:$4 sm:$0xff]  }
 0x50d   :  { %v7884_v32 = vpop.f32.mrb[15].mxu1  ;;  %7166 = vmatpush1.bf16.msra.mxu1 %v8132_v34 }
 0x50e   :  { %v11707_v4 = vadd.f32 %v7884_v32, %v7883_v6  ;;  %v8147_v6 = vld [vmem:[#allocation18 + $0x2b0] ss:$8 sps:$4 sm:$0xff]   ;;  %v8155_v32 = vld [vmem:[#allocation18 + $0x2c4] ss:$8 sps:$4 sm:$0xff]   ;;  %7167 = vmatprep.subr.bf16.mxu1 %v8140_v20  ;;  %v6071_v11 = vadd.f32 %v11705_v2, %v11719_v29 }
 0x50f   :  { %7248 = vmatpush1.bf16.msra.mxu0 %v8147_v6 }
 0x510   :  { %7249 = vmatprep.subr.bf16.mxu0 %v8155_v32  ;;  %v6074_v35 = vadd.f32 %v11707_v4, %v11719_v29 }
 0x511   :  { %7168 = vmatpush1.bf16.msra.mxu1 %v8138_v7 }
 0x512   :  { %7169 = vmatprep.subr.bf16.mxu1 %v8146_v36 }
 0x513   :  { %7250 = vmatpush1.bf16.msra.mxu0 %v8153_v1 }
 0x515   :  { %7170 = vmatpush1.bf16.msra.mxu1 %v8144_v14 }
 0x516   :  { %7171 = vmatprep.subr.bf16.mxu1 %v8152_v41 }
 0x519   :  { %7172 = vmatpush1.bf16.msra.mxu1 %v8150_v61 }
 0x540   :  { %v7886_v50 = vpop.f32.mrb[16].mxu1 }
 0x541   :  { %v7887_v13 = vpop.f32.mrb[17].mxu1 }
 0x542   :  { %v11709_v43 = vadd.f32 %v7887_v13, %v7886_v50  ;;  %v7889_v54 = vpop.f32.mrb[18].mxu1 }
 0x543   :  { %v7890_v47 = vpop.f32.mrb[19].mxu1 }
 0x544   :  { %v11711_v16 = vadd.f32 %v7890_v47, %v7889_v54  ;;  %v6079_v4 = vadd.f32 %v11709_v43, %v11719_v29 }
 0x556   :  { %v7892_v5 = vpop.f32.mrb[20].mxu1 }
 0x557   :  { %v7893_v18 = vpop.f32.mrb[21].mxu1 }
 0x558   :  { %v7894_v58 = vadd.f32 %v7893_v18, %v7892_v5  ;;  %v7895_v53 = vpop.f32.mrb[22].mxu1 }
 0x559   :  { %v7896_v24 = vpop.f32.mrb[23].mxu1 }
 0x55a   :  { %v7897_v55 = vadd.f32 %v7896_v24, %v7895_v53  ;;  %v6087_v3 = vadd.f32 %v7894_v58, %v11719_v29  ;;  %v6082_v24 = vadd.f32 %v11711_v16, %v11719_v29 }
 0x55c   :  { %v6090_v38 = vadd.f32 %v7897_v55, %v11719_v29 }
 0x55e   :  { %v7898_v8 = vpop.f32.mrb[24].mxu1 }
 0x55f   :  { %v7899_v21 = vpop.f32.mrb[25].mxu1 }
 0x560   :  { %v11713_v10 = vadd.f32 %v7899_v21, %v7898_v8  ;;  %v7901_v17 = vpop.f32.mrb[26].mxu1 }
 0x561   :  { %v7902_v12 = vpop.f32.mrb[27].mxu1 }
 0x562   :  { %v11715_v42 = vadd.f32 %v7902_v12, %v7901_v17  ;;  %v6095_v55 = vadd.f32 %v11713_v10, %v11719_v29  ;;  %v8156_v10 = vld [vmem:[#allocation18 + $0xf0] ss:$8 sps:$4 sm:$0xff]  }
 0x568   :  { %v7904_v49 = vpop.f32.mrb[28].mxu1 }
 0x569   :  { %v7905_v44 = vpop.f32.mrb[29].mxu1 }
 0x56a   :  { %v7906_v26 = vadd.f32 %v7905_v44, %v7904_v49  ;;  %v7907_v52 = vpop.f32.mrb[30].mxu1 }
 0x56b   :  { %v7908_v28 = vpop.f32.mrb[31].mxu1 }
 0x56c   :  { %v11717_v45 = vadd.f32 %v7908_v28, %v7907_v52  ;;  %v6103_v28 = vadd.f32 %v7906_v26, %v11719_v29 }
 0x56e   :  { %v6106_v26 = vadd.f32 %v11717_v45, %v11719_v29 }
 0x570   :  { %v7926_v33 = vpop.f32.mrb[32].mxu1 }
 0x571   :  { %v6152_v60 = vadd.f32 %v7926_v33, %v6055_v0  ;;  %v6143_v57 = vpop.f32.mrb[33].mxu1 }
 0x572   :  { %v6144_v15 = vadd.f32 %v6143_v57, %v6047_v51  ;;  %v7927_v9 = vpop.f32.mrb[34].mxu1 }
 0x573   :  { %v6155_v30 = vadd.f32 %v7927_v9, %v6058_v56  ;;  %v6146_v46 = vpop.f32.mrb[35].mxu1  ;;  %v6208_v59 = vmax.f32 %v6152_v60, 0.0 }
 0x574   :  { %v6147_v19 = vadd.f32 %v6146_v46, %v6050_v39  ;;  %v6206_v40 = vmax.f32 %v6144_v15, 0.0 }
 0x575   :  { %v6209_v50 = vmax.f32 %v6155_v30, 0.0 }
 0x576   :  { %v6207_v48 = vmax.f32 %v6147_v19, 0.0  ;;  %v8158_v19 = vld [vmem:[#allocation18 + $0xf4] ss:$8 sps:$4 sm:$0xff]  }
 0x577   :  { %v6223_v13 = vmax.f32 %v6208_v59, %v6209_v50  ;;  %7173 = vmatprep.subr.bf16.mxu1 %v8158_v19  ;;  %v8179_v19 = vld [vmem:[#allocation18 + $0x304] ss:$8 sps:$4 sm:$0xff]  }
 0x578   :  { %v6222_v25 = vmax.f32 %v6206_v40, %v6207_v48  ;;  %v7930_v54 = vpop.f32.mrb[36].mxu1  ;;  %v6098_v48 = vadd.f32 %v11715_v42, %v11719_v29  ;;  %7174 = vmatpush1.bf16.msra.mxu1 %v8156_v10 }
 0x579   :  { %v6168_v63 = vadd.f32 %v7930_v54, %v6071_v11  ;;  %v6159_v47 = vpop.f32.mrb[37].mxu1  ;;  %v6240_v7 = vrot.slane %v6223_v13, 1  ;;  %v8161_v11 = vld [vmem:[#allocation18 + $0x2d4] ss:$8 sps:$4 sm:$0xff]  }
 0x57a   :  { %v6160_v23 = vadd.f32 %v6159_v47, %v6063_v22  ;;  %v7931_v27 = vpop.f32.mrb[38].mxu1  ;;  %v6232_v1 = vrot.slane %v6222_v25, 1  ;;  %7251 = vmatprep.subr.bf16.mxu0 %v8161_v11 }
 0x57b   :  { %v6171_v62 = vadd.f32 %v7931_v27, %v6074_v35  ;;  %v6162_v31 = vpop.f32.mrb[39].mxu1  ;;  %v6212_v20 = vmax.f32 %v6168_v63, 0.0  ;;  %v11743_v8 = vmax.f32 %v6223_v13, %v6240_v7  ;;  %v8159_v13 = vld [vmem:[#allocation18 + $0x2d0] ss:$8 sps:$4 sm:$0xff]  }
 0x57c   :  { %v6163_v34 = vadd.f32 %v6162_v31, %v6066_v37  ;;  %v6210_v6 = vmax.f32 %v6160_v23, 0.0  ;;  %v11745_v58 = vmax.f32 %v6222_v25, %v6232_v1  ;;  %7252 = vmatpush1.bf16.msra.mxu0 %v8159_v13  ;;  %v8165_v1 = vld [vmem:[#allocation18 + $0x2e0] ss:$8 sps:$4 sm:$0xff]  }
 0x57d   :  { %v6213_v2 = vmax.f32 %v6171_v62, 0.0  ;;  %v6289_v51 = vrot.slane %v11743_v8, 2  ;;  %v6299_v9 = vrot.slane %v11743_v8, 6 }
 0x57e   :  { %v6211_v32 = vmax.f32 %v6163_v34, 0.0  ;;  %v6268_v56 = vrot.slane %v11745_v58, 2  ;;  %v6278_v15 = vrot.slane %v11745_v58, 6 }
 0x57f   :  { %v6225_v36 = vmax.f32 %v6212_v20, %v6213_v2 }
 0x580   :  { %v6224_v14 = vmax.f32 %v6210_v6, %v6211_v32  ;;  %v7934_v41 = vpop.f32.mrb[40].mxu1  ;;  %v8164_v6 = vld [vmem:[#allocation18 + $0x104] ss:$8 sps:$4 sm:$0xff]  }
 0x581   :  { %v6184_v61 = vadd.f32 %v7934_v41, %v6087_v3  ;;  %v6175_v5 = vpop.f32.mrb[41].mxu1  ;;  %v6256_v0 = vrot.slane %v6225_v36, 1  ;;  %7184 = vmatprep.subr.bf16.mxu1 %v8164_v6 }
 0x582   :  { %v6176_v18 = vadd.f32 %v6175_v5, %v6079_v4  ;;  %v7935_v53 = vpop.f32.mrb[42].mxu1  ;;  %v6248_v33 = vrot.slane %v6224_v14, 1 }
 0x583   :  { %v6187_v21 = vadd.f32 %v7935_v53, %v6090_v38  ;;  %v6178_v17 = vpop.f32.mrb[43].mxu1  ;;  %v6216_v49 = vmax.f32 %v6184_v61, 0.0  ;;  %v11758_v25 = vmax.f32 %v6225_v36, %v6256_v0 }
 0x584   :  { %v6179_v12 = vadd.f32 %v6178_v17, %v6082_v24  ;;  %v6214_v43 = vmax.f32 %v6176_v18, 0.0  ;;  %v11760_v54 = vmax.f32 %v6224_v14, %v6248_v33  ;;  %v8167_v14 = vld [vmem:[#allocation18 + $0x2e4] ss:$8 sps:$4 sm:$0xff]   ;;  %v6274_v24 = vrot.slane %v11745_v58, 4 }
 0x585   :  { %v6217_v44 = vmax.f32 %v6187_v21, 0.0  ;;  %7253 = vmatprep.subr.bf16.mxu0 %v8167_v14 }
 0x586   :  { %v6215_v52 = vmax.f32 %v6179_v12, 0.0  ;;  %7254 = vmatpush1.bf16.msra.mxu0 %v8165_v1  ;;  %v6295_v12 = vrot.slane %v11743_v8, 4  ;;  %v6310_v33 = vrot.slane %v11760_v54, 2  ;;  %v6316_v10 = vrot.slane %v11760_v54, 4 }
 0x587   :  { %v6227_v16 = vmax.f32 %v6216_v49, %v6217_v44  ;;  %v8171_v44 = vld [vmem:[#allocation18 + $0x2f0] ss:$8 sps:$4 sm:$0xff]  }
 0x588   :  { %v6226_v60 = vmax.f32 %v6214_v43, %v6215_v52  ;;  %v7938_v57 = vpop.f32.mrb[44].mxu1  ;;  %v6331_v52 = vrot.slane %v11758_v25, 2 }
 0x589   :  { %v6241_v39 = vrot.slane %v6227_v16, 1  ;;  %v6200_v30 = vadd.f32 %v7938_v57, %v6103_v28  ;;  %v6191_v46 = vpop.f32.mrb[45].mxu1  ;;  %v6341_v28 = vrot.slane %v11758_v25, 6 }
 0x58a   :  { %v6233_v59 = vrot.slane %v6226_v60, 1  ;;  %v6192_v50 = vadd.f32 %v6191_v46, %v6095_v55  ;;  %v7939_v40 = vpop.f32.mrb[46].mxu1  ;;  %v8173_v55 = vld [vmem:[#allocation18 + $0x2f4] ss:$8 sps:$4 sm:$0xff]  }
 0x58b   :  { %v6245_v22 = vmax.f32 %v6227_v16, %v6241_v39  ;;  %v6203_v63 = vadd.f32 %v7939_v40, %v6106_v26  ;;  %v6194_v47 = vpop.f32.mrb[47].mxu1  ;;  %v6220_v45 = vmax.f32 %v6200_v30, 0.0  ;;  %7255 = vmatprep.subr.bf16.mxu0 %v8173_v55  ;;  %v8194_v55 = vld [vmem:[#allocation18 + $0x154] ss:$8 sps:$4 sm:$0xff]  }
 0x58c   :  { %v6237_v35 = vmax.f32 %v6226_v60, %v6233_v59  ;;  %v6218_v23 = vmax.f32 %v6192_v50, 0.0  ;;  %v6195_v27 = vadd.f32 %v6194_v47, %v6098_v48  ;;  %7256 = vmatpush1.bf16.msra.mxu0 %v8171_v44  ;;  %v8188_v44 = vld [vmem:[#allocation18 + $0x144] ss:$8 sps:$4 sm:$0xff]  }
 0x58d   :  { %v6221_v37 = vmax.f32 %v6203_v63, 0.0  ;;  %v6290_v62 = vrot.slane %v6245_v22, 1  ;;  %v6300_v31 = vrot.slane %v6245_v22, 5  ;;  %v6286_v42 = vrot.slane %v6245_v22, 7  ;;  %7266 = vmatprep.subr.bf16.mxu0 %v8179_v19  ;;  %v8218_v19 = vld [vmem:[#allocation18 + $0x194] ss:$8 sps:$4 sm:$0xff]  }
 0x58e   :  { %v6219_v29 = vmax.f32 %v6195_v27, 0.0  ;;  %v6269_v34 = vrot.slane %v6237_v35, 1  ;;  %v6279_v20 = vrot.slane %v6237_v35, 5  ;;  %v6264_v2 = vrot.slane %v6237_v35, 7 }
 0x58f   :  { %v6229_v32 = vmax.f32 %v6220_v45, %v6221_v37  ;;  %v6291_v7 = vsel %vm6265_vm7, %v6290_v62, %v6289_v51  ;;  %v6301_v36 = vsel %vm6265_vm7, %v6300_v31, %v6299_v9  ;;  %v11766_v3 = vsel %vm6265_vm7, %v6286_v42, %v11743_v8  ;;  %v8162_v42 = vld [vmem:[#allocation18 + $0x100] ss:$8 sps:$4 sm:$0xff]  }
 0x590   :  { %v6228_v41 = vmax.f32 %v6218_v23, %v6219_v29  ;;  %v6270_v4 = vsel %vm6265_vm7, %v6269_v34, %v6268_v56  ;;  %v6280_v61 = vsel %vm6265_vm7, %v6279_v20, %v6278_v15  ;;  %v7987_v5 = vpack.i.bf16 %v6291_v7, %v6301_v36  ;;  %v8170_v29 = vld [vmem:[#allocation18 + $0x114] ss:$8 sps:$4 sm:$0xff]   ;;  %v8176_v36 = vld [vmem:[#allocation18 + $0x124] ss:$8 sps:$4 sm:$0xff]  }
 0x591   :  { %v6257_v38 = vrot.slane %v6229_v32, 1  ;;  %v7977_v18 = vpack.i.bf16 %v6270_v4, %v6280_v61  ;;  %v6266_v53 = vsel %vm6265_vm7, %v6264_v2, %v11745_v58  ;;  %v6275_v17 = vrot.slane %v6237_v35, 3  ;;  %v8168_v2 = vld [vmem:[#allocation18 + $0x110] ss:$8 sps:$4 sm:$0xff]   ;;  %v8174_v61 = vld [vmem:[#allocation18 + $0x120] ss:$8 sps:$4 sm:$0xff]  }
 0x592   :  { %v6249_v21 = vrot.slane %v6228_v41, 1  ;;  %v6296_v49 = vrot.slane %v6245_v22, 3  ;;  %v6320_v51 = vrot.slane %v11760_v54, 6  ;;  %v6337_v22 = vrot.slane %v11758_v25, 4 }
 0x593   :  { %v6261_v43 = vmax.f32 %v6229_v32, %v6257_v38  ;;  %7978 = vrot.lane.b32.xlu0 %v7977_v18, %s8561_s1  ;;  %v6276_v58 = vsel %vm6265_vm7, %v6275_v17, %v6274_v24  ;;  %v8177_v38 = vld [vmem:[#allocation18 + $0x300] ss:$8 sps:$4 sm:$0xff]   ;;  %v8185_v24 = vld [vmem:[#allocation18 + $0x314] ss:$8 sps:$4 sm:$0xff]   ;;  %v8180_v17 = vld [vmem:[#allocation18 + $0x130] ss:$8 sps:$4 sm:$0xff]  }
 0x594   :  { %v6253_v0 = vmax.f32 %v6228_v41, %v6249_v21  ;;  %v6297_v16 = vsel %vm6265_vm7, %v6296_v49, %v6295_v12  ;;  %v8183_v12 = vld [vmem:[#allocation18 + $0x310] ss:$8 sps:$4 sm:$0xff]  }
 0x595   :  { %v6332_v8 = vrot.slane %v6261_v43, 1  ;;  %v6342_v60 = vrot.slane %v6261_v43, 5  ;;  %v6328_v57 = vrot.slane %v6261_v43, 7  ;;  %v6338_v63 = vrot.slane %v6261_v43, 3  ;;  %v8191_v43 = vld [vmem:[#allocation18 + $0x324] ss:$8 sps:$4 sm:$0xff]  }
 0x596   :  { %v6311_v56 = vrot.slane %v6253_v0, 1  ;;  %v6321_v15 = vrot.slane %v6253_v0, 5  ;;  %v6307_v9 = vrot.slane %v6253_v0, 7  ;;  %v6317_v39 = vrot.slane %v6253_v0, 3  ;;  %v8197_v0 = vld [vmem:[#allocation18 + $0x334] ss:$8 sps:$4 sm:$0xff]  }
 0x597   :  { %7988 = vrot.lane.b32.xlu0 %v7987_v5, %s8561_s1  ;;  %v6333_v30 = vsel %vm6265_vm7, %v6332_v8, %v6331_v52  ;;  %v6343_v46 = vsel %vm6265_vm7, %v6342_v60, %v6341_v28  ;;  %v11786_v26 = vsel %vm6265_vm7, %v6328_v57, %v11758_v25  ;;  %v6339_v47 = vsel %vm6265_vm7, %v6338_v63, %v6337_v22  ;;  %v8186_v52 = vld [vmem:[#allocation18 + $0x140] ss:$8 sps:$4 sm:$0xff]   ;;  %v8206_v57 = vld [vmem:[#allocation18 + $0x174] ss:$8 sps:$4 sm:$0xff]  }
 0x598   :  { %v6312_v59 = vsel %vm6265_vm7, %v6311_v56, %v6310_v33  ;;  %v6322_v50 = vsel %vm6265_vm7, %v6321_v15, %v6320_v51  ;;  %v7992_v40 = vpack.i.bf16 %v6333_v30, %v6343_v46  ;;  %v6308_v48 = vsel %vm6265_vm7, %v6307_v9, %v11760_v54  ;;  %v8189_v28 = vld [vmem:[#allocation18 + $0x320] ss:$8 sps:$4 sm:$0xff]   ;;  %v8192_v33 = vld [vmem:[#allocation18 + $0x150] ss:$8 sps:$4 sm:$0xff]   ;;  %v8203_v51 = vld [vmem:[#allocation18 + $0x344] ss:$8 sps:$4 sm:$0xff]  }
 0x599   :  { %v7982_v13 = vpack.i.bf16 %v6312_v59, %v6322_v50  ;;  %v6318_v11 = vsel %vm6265_vm7, %v6317_v39, %v6316_v10  ;;  %v8198_v8 = vld [vmem:[#allocation18 + $0x160] ss:$8 sps:$4 sm:$0xff]   ;;  %v8209_v56 = vld [vmem:[#allocation18 + $0x354] ss:$8 sps:$4 sm:$0xff]   ;;  %v8204_v15 = vld [vmem:[#allocation18 + $0x170] ss:$8 sps:$4 sm:$0xff]  }
 0x59a   :  { %v8201_v60 = vld [vmem:[#allocation18 + $0x340] ss:$8 sps:$4 sm:$0xff]   ;;  %v8207_v9 = vld [vmem:[#allocation18 + $0x350] ss:$8 sps:$4 sm:$0xff]   ;;  %v8212_v39 = vld [vmem:[#allocation18 + $0x184] ss:$8 sps:$4 sm:$0xff]  }
 0x59b   :  { %7983 = vrot.lane.b32.xlu1 %v7982_v13, %s8561_s1  ;;  %v8215_v30 = vld [vmem:[#allocation18 + $0x364] ss:$8 sps:$4 sm:$0xff]   ;;  %v8210_v46 = vld [vmem:[#allocation18 + $0x180] ss:$8 sps:$4 sm:$0xff]   ;;  %v8221_v59 = vld [vmem:[#allocation18 + $0x374] ss:$8 sps:$4 sm:$0xff]  }
 0x59c   :  { %v8213_v10 = vld [vmem:[#allocation18 + $0x360] ss:$8 sps:$4 sm:$0xff]   ;;  %v8216_v50 = vld [vmem:[#allocation18 + $0x190] ss:$8 sps:$4 sm:$0xff]   ;;  %v8227_v13 = vld [vmem:[#allocation18 + $0x384] ss:$8 sps:$4 sm:$0xff]  }
 0x59d   :  { %v8225_v22 = vld [vmem:[#allocation18 + $0x380] ss:$8 sps:$4 sm:$0xff]   ;;  %v8230_v63 = vld [vmem:[#allocation18 + $0x1b4] ss:$8 sps:$4 sm:$0xff]  }
 0x59f   :  { %7993 = vrot.lane.b32.xlu1 %v7992_v40, %s8561_s1  ;;  %v8219_v40 = vld [vmem:[#allocation18 + $0x370] ss:$8 sps:$4 sm:$0xff]   ;;  %s8579_s1 = smov [#allocation23]  }
 0x5a0   :  { %s7344_s15 = sshll.u32 %s8579_s1, 4  ;;  %s7345_s15 = int_to_ptr.vmem [resolvable:$true] %s7344_s15 }
 0x5a1   :  { %s8521_s18 = scalar_lea.vmem %s7345_s15, 32  ;;  %p8526_p11 = scmp.lt.s32.totalorder %s7345_s15, %s7345_s15 }
 0x5a2   :  { %p8522_p10 = scmp.ne.s32.totalorder %s7345_s15, %s8521_s18  ;;  %p8527_p12 = scmp.lt.s32.totalorder %s8521_s18, %s8521_s18 }
 0x5a4   :  { %p8528_p13 = por %p8527_p12, %p8526_p11 }
 0x5a6   :  { %p8529_p0 = pnand %p8528_p13, %p8522_p10 }
 0x605   :  { %v7979_v35 = vpop.permute.xlu0 %7978 }
 0x606   :  { %v7981_v45 = vunpack.i.h.bf16 %v7979_v35  ;;  %v7980_v23 = vunpack.i.l.bf16 %v7979_v35  ;;  %v8228_v35 = vld [vmem:[#allocation18 + $0x1b0] ss:$8 sps:$4 sm:$0xff]  }
 0x608   :  { %v6347_v27 = vsel %vm3495_vm8, %v6266_v53, %v7981_v45  ;;  %v6348_v54 = vsel %vm3495_vm8, %v6276_v58, %v7980_v23  ;;  %v8182_v53 = vld [vmem:[#allocation18 + $0x134] ss:$8 sps:$4 sm:$0xff]   ;;  %v8195_v58 = vld [vmem:[#allocation18 + $0x330] ss:$8 sps:$4 sm:$0xff]   ;;  %v8236_v23 = vld [vmem:[#allocation18 + $0x1c4] ss:$8 sps:$4 sm:$0xff]  }
 0x609   :  { %v6355_v37 = vpack.c.bf16 %v6347_v27, %v6347_v27  ;;  %v11800_v62 = vpop.permute.xlu0 %7988  ;;  %v6356_v31 = vpack.c.bf16 %v6348_v54, %v6348_v54  ;;  %v8231_v45 = vld [vmem:[#allocation18 + $0x390] ss:$8 sps:$4 sm:$0xff]   ;;  %v8239_v27 = vld [vmem:[#allocation18 + $0x3a4] ss:$8 sps:$4 sm:$0xff]   ;;  %v8234_v54 = vld [vmem:[#allocation18 + $0x1c0] ss:$8 sps:$4 sm:$0xff]  }
 0x60a   :  { %v7990_v25 = vunpack.i.l.bf16 %v11800_v62 }
 0x60b   :  { %7175 = vmatprep.mubr.bf16.mxu1 %v6356_v31  ;;  %v8242_v31 = vld [vmem:[#allocation18 + $0x1d4] ss:$8 sps:$4 sm:$0xff]  }
 0x60c   :  { %7176 = vmatmul.mubr.bf16.vlgmr.msra.gmra.mrb[48].mxu1 %v6355_v37  ;;  %v6350_v34 = vsel %vm3495_vm8, %v6297_v16, %v7990_v25  ;;  %v8200_v16 = vld [vmem:[#allocation18 + $0x164] ss:$8 sps:$4 sm:$0xff]   ;;  %v8237_v37 = vld [vmem:[#allocation18 + $0x3a0] ss:$8 sps:$4 sm:$0xff]   ;;  %v8240_v25 = vld [vmem:[#allocation18 + $0x1d0] ss:$8 sps:$4 sm:$0xff]  }
 0x60d   :  { %7185 = vmatpush1.bf16.msra.mxu1 %v8162_v42  ;;  %v7984_v20 = vpop.permute.xlu1 %7983  ;;  %v6358_v6 = vpack.c.bf16 %v6350_v34, %v6350_v34  ;;  %v8245_v42 = vld [vmem:[#allocation18 + $0x3b4] ss:$8 sps:$4 sm:$0xff]   ;;  %v8248_v34 = vld [vmem:[#allocation18 + $0x1e4] ss:$8 sps:$4 sm:$0xff]  }
 0x60e   :  { %v7986_v32 = vunpack.i.h.bf16 %v7984_v20  ;;  %v7985_v7 = vunpack.i.l.bf16 %v7984_v20  ;;  %7186 = vmatprep.subr.bf16.mxu1 %v8170_v29  ;;  %v8243_v29 = vld [vmem:[#allocation18 + $0x3b0] ss:$8 sps:$4 sm:$0xff]   ;;  %v8251_v20 = vld [vmem:[#allocation18 + $0x3c4] ss:$8 sps:$4 sm:$0xff]  }
 0x60f   :  { %7216 = vmatprep.mubr.bf16.mxu1 %v6358_v6  ;;  %v8249_v6 = vld [vmem:[#allocation18 + $0x3c0] ss:$8 sps:$4 sm:$0xff]  }
 0x610   :  { %v6351_v1 = vsel %vm3495_vm8, %v6308_v48, %v7986_v32  ;;  %v6352_v14 = vsel %vm3495_vm8, %v6318_v11, %v7985_v7  ;;  %v8224_v48 = vld [vmem:[#allocation18 + $0x1a4] ss:$8 sps:$4 sm:$0xff]   ;;  %v8222_v11 = vld [vmem:[#allocation18 + $0x1a0] ss:$8 sps:$4 sm:$0xff]   ;;  %v8254_v32 = vld [vmem:[#allocation18 + $0x1f4] ss:$8 sps:$4 sm:$0xff]  }
 0x611   :  { %v6359_v41 = vpack.c.bf16 %v6351_v1, %v6351_v1  ;;  %7187 = vmatpush1.bf16.msra.mxu1 %v8168_v2  ;;  %v11806_v4 = vpop.permute.xlu1 %7993  ;;  %v6360_v5 = vpack.c.bf16 %v6352_v14, %v6352_v14  ;;  %v8246_v2 = vld [vmem:[#allocation18 + $0x1e0] ss:$8 sps:$4 sm:$0xff]   ;;  %v8257_v7 = vld [vmem:[#allocation18 + $0x3d4] ss:$8 sps:$4 sm:$0xff]   ;;  %v8252_v1 = vld [vmem:[#allocation18 + $0x1f0] ss:$8 sps:$4 sm:$0xff]  }
 0x612   :  { %v7995_v18 = vunpack.i.l.bf16 %v11806_v4  ;;  %7188 = vmatprep.subr.bf16.mxu1 %v8176_v36  ;;  %v7991_v36 = vunpack.i.h.bf16 %v11800_v62  ;;  %v8255_v14 = vld [vmem:[#allocation18 + $0x3d0] ss:$8 sps:$4 sm:$0xff]  }
 0x613   :  { %7257 = vmatprep.mubr.bf16.mxu0 %v6360_v5  ;;  %v8258_v5 = vld [vmem:[#allocation18 + $0x3e0] ss:$8 sps:$4 sm:$0xff]   ;;  %v8261_v62 = vld [vmem:[#allocation18 + $0x3f0] ss:$8 sps:$4 sm:$0xff]  }
 0x614   :  { %7258 = vmatmul.mubr.bf16.vlgmr.msra.gmra.mrb[32].mxu0 %v6359_v41  ;;  %v6354_v21 = vsel %vm3495_vm8, %v6339_v47, %v7995_v18  ;;  %v8233_v47 = vld [vmem:[#allocation18 + $0x394] ss:$8 sps:$4 sm:$0xff]   ;;  %v8260_v41 = vld [vmem:[#allocation18 + $0x3e4] ss:$8 sps:$4 sm:$0xff]  }
 0x615   :  { %7189 = vmatpush1.bf16.msra.mxu1 %v8174_v61  ;;  %7267 = vmatpush1.bf16.msra.mxu0 %v8177_v38  ;;  %v6362_v49 = vpack.c.bf16 %v6354_v21, %v6354_v21  ;;  %v6349_v61 = vsel %vm3495_vm8, %v11766_v3, %v7991_v36  ;;  %v8263_v18 = vld [vmem:[#allocation18 + $0x3f4] ss:$8 sps:$4 sm:$0xff]  }
 0x616   :  { %7190 = vmatprep.subr.bf16.mxu1 %v8182_v53  ;;  %7268 = vmatprep.subr.bf16.mxu0 %v8185_v24  ;;  %v6357_v38 = vpack.c.bf16 %v6349_v61, %v6349_v61  ;;  %v7996_v53 = vunpack.i.h.bf16 %v11806_v4 }
 0x617   :  { %7298 = vmatprep.mubr.bf16.mxu0 %v6362_v49  ;;  %v6491_v49 = vld [vmem:[#allocation20] sm:$0x3] }
 0x618   :  { %v6353_v24 = vsel %vm3495_vm8, %v11786_v26, %v7996_v53 }
 0x619   :  { %7191 = vmatpush1.bf16.msra.mxu1 %v8180_v17  ;;  %7269 = vmatpush1.bf16.msra.mxu0 %v8183_v12  ;;  %v6361_v21 = vpack.c.bf16 %v6353_v24, %v6353_v24  ;;  %v6493_v17 = vlaneseq }
 0x61a   :  { %7192 = vmatprep.subr.bf16.mxu1 %v8188_v44  ;;  %7270 = vmatprep.subr.bf16.mxu0 %v8191_v43 }
 0x61b   :  { %v6494_v3 = vshrl.u32 %v6493_v17, 7 }
 0x61d   :  { %7193 = vmatpush1.bf16.msra.mxu1 %v8186_v52  ;;  %7271 = vmatpush1.bf16.msra.mxu0 %v8189_v28  ;;  %v6495_v12 = vsub.s32 0, %v6494_v3  ;;  %v6499_v43 = vsub.s32 1, %v6494_v3 }
 0x61e   :  { %7194 = vmatprep.subr.bf16.mxu1 %v8194_v55  ;;  %7272 = vmatprep.subr.bf16.mxu0 %v8197_v0 }
 0x61f   :  { %v6496_v55 = vrot.slane %v6491_v49, %v6495_v12  ;;  %v6500_v0 = vrot.slane %v6491_v49, %v6499_v43 }
 0x621   :  { %7195 = vmatpush1.bf16.msra.mxu1 %v8192_v33  ;;  %7273 = vmatpush1.bf16.msra.mxu0 %v8195_v58  ;;  %v7309_v33 = vld [vmem:[#allocation21] sm:$0x3] }
 0x622   :  { %7196 = vmatprep.subr.bf16.mxu1 %v8200_v16  ;;  %7274 = vmatprep.subr.bf16.mxu0 %v8203_v51  ;;  %v7314_v26 = vrot.slane %v7309_v33, %v6495_v12 }
 0x625   :  { %7197 = vmatpush1.bf16.msra.mxu1 %v8198_v8  ;;  %7275 = vmatpush1.bf16.msra.mxu0 %v8201_v60 }
 0x626   :  { %7198 = vmatprep.subr.bf16.mxu1 %v8206_v57  ;;  %7276 = vmatprep.subr.bf16.mxu0 %v8209_v56  ;;  %v7318_v56 = vrot.slane %v7309_v33, %v6499_v43 }
 0x629   :  { %7199 = vmatpush1.bf16.msra.mxu1 %v8204_v15  ;;  %7277 = vmatpush1.bf16.msra.mxu0 %v8207_v9 }
 0x62a   :  { %7200 = vmatprep.subr.bf16.mxu1 %v8212_v39  ;;  %7278 = vmatprep.subr.bf16.mxu0 %v8215_v30 }
 0x62d   :  { %7201 = vmatpush1.bf16.msra.mxu1 %v8210_v46  ;;  %7279 = vmatpush1.bf16.msra.mxu0 %v8213_v10 }
 0x62e   :  { %7202 = vmatprep.subr.bf16.mxu1 %v8218_v19  ;;  %7280 = vmatprep.subr.bf16.mxu0 %v8221_v59 }
 0x631   :  { %7203 = vmatpush1.bf16.msra.mxu1 %v8216_v50  ;;  %7281 = vmatpush1.bf16.msra.mxu0 %v8219_v40  ;;  %v7813_v40 = vld [vmem:[#allocation5] ss:$0 sm:$0xff] }
 0x632   :  { %7204 = vmatprep.subr.bf16.mxu1 %v8224_v48  ;;  %7282 = vmatprep.subr.bf16.mxu0 %v8227_v13 }
 0x635   :  { %7205 = vmatpush1.bf16.msra.mxu1 %v8222_v11  ;;  %7283 = vmatpush1.bf16.msra.mxu0 %v8225_v22 }
 0x636   :  { %7206 = vmatprep.subr.bf16.mxu1 %v8230_v63  ;;  %7284 = vmatprep.subr.bf16.mxu0 %v8233_v47 }
 0x639   :  { %7207 = vmatpush1.bf16.msra.mxu1 %v8228_v35  ;;  %7285 = vmatpush1.bf16.msra.mxu0 %v8231_v45 }
 0x63a   :  { %7208 = vmatprep.subr.bf16.mxu1 %v8236_v23  ;;  %7286 = vmatprep.subr.bf16.mxu0 %v8239_v27 }
 0x63d   :  { %7209 = vmatpush1.bf16.msra.mxu1 %v8234_v54  ;;  %7287 = vmatpush1.bf16.msra.mxu0 %v8237_v37 }
 0x63e   :  { %7210 = vmatprep.subr.bf16.mxu1 %v8242_v31  ;;  %7288 = vmatprep.subr.bf16.mxu0 %v8245_v42 }
 0x641   :  { %7211 = vmatpush1.bf16.msra.mxu1 %v8240_v25  ;;  %7289 = vmatpush1.bf16.msra.mxu0 %v8243_v29 }
 0x642   :  { %7212 = vmatprep.subr.bf16.mxu1 %v8248_v34  ;;  %7290 = vmatprep.subr.bf16.mxu0 %v8251_v20 }
 0x645   :  { %7213 = vmatpush1.bf16.msra.mxu1 %v8246_v2  ;;  %7291 = vmatpush1.bf16.msra.mxu0 %v8249_v6 }
 0x646   :  { %7214 = vmatprep.subr.bf16.mxu1 %v8254_v32  ;;  %7292 = vmatprep.subr.bf16.mxu0 %v8257_v7 }
 0x649   :  { %7215 = vmatpush1.bf16.msra.mxu1 %v8252_v1  ;;  %7293 = vmatpush1.bf16.msra.mxu0 %v8255_v14 }
 0x64a   :  { %7294 = vmatprep.subr.bf16.mxu0 %v8260_v41 }
 0x64c   :  { %7217 = vmatmul.mubr.bf16.vlgmr.msra.gmra.mrb[48].mxu1 %v6357_v38 }
 0x64d   :  { %7295 = vmatpush1.bf16.msra.mxu0 %v8258_v5 }
 0x64e   :  { %7296 = vmatprep.subr.bf16.mxu0 %v8263_v18 }
 0x651   :  { %7297 = vmatpush1.bf16.msra.mxu0 %v8261_v62 }
 0x654   :  { %7299 = vmatmul.mubr.bf16.vlgmr.msra.gmra.mrb[32].mxu0 %v6361_v21 }
 0x71f   :  { %v7218_v44 = vpop.f32.mrb[48].mxu1 }
 0x720   :  { %v7220_v52 = vpop.f32.mrb[49].mxu1  ;;  %v7940_v58 = vadd.f32 %v7218_v44, %v6496_v55 }
 0x721   :  { %v7222_v28 = vpop.f32.mrb[50].mxu1  ;;  %v7942_v16 = vadd.f32 %v7220_v52, %v6500_v0 }
 0x722   :  { %v7223_v4 = vpop.f32.mrb[51].mxu1 }
 0x727   :  { %v7300_v51 = vpop.f32.mrb[32].mxu0 }
 0x728   :  { %v7941_v8 = vadd.f32 %v7940_v58, %v7300_v51  ;;  %v7302_v60 = vpop.f32.mrb[33].mxu0 }
 0x729   :  { %v7943_v57 = vadd.f32 %v7942_v16, %v7302_v60  ;;  %v7304_v15 = vpop.f32.mrb[34].mxu0 }
 0x72a   :  { %v7307_v9 = vmax.f32 %v7941_v8, 0.0  ;;  %v7305_v39 = vpop.f32.mrb[35].mxu0 }
 0x72b   :  { %v7308_v30 = vmax.f32 %v7943_v57, 0.0 }
 0x72c   :  { %v7321_v46 = vmul.f32 %v7314_v26, %v7307_v9 }
 0x72d   :  { %v7322_v10 = vmul.f32 %v7318_v56, %v7308_v30 }
 0x72e   :  { %v7324_v19 = vsel %vm7323_vm9, %v7321_v46, 0.0 }
 0x72f   :  { %v7325_v59 = vsel %vm7323_vm9, %v7322_v10, 0.0 }
 0x730   :  { %v7326_v50 = vadd.f32 %v7325_v59, %v7324_v19 }
 0x732   :  { %7327 = vadd.xlane.f32.xlu0 %v7326_v50 }
 0x7bf   :  { %v7328_v48 = vpop.xlane.xlu0 %7327 }
 0x7c0   :  { %v7336_v13 = vadd.f32 %v7813_v40, %v7328_v48 }
 0x7c2   :  { %7337 = vst.msk [vmem:[#allocation23] sm:$0x3] %vm170_vm1, %v7336_v13 }
 0x7c3   :  { %8532 = shalt.err (!%p8529_p0)
}
 0x7c4   :  { %s8533_s21 = scalar_lea.hbm %s11840_s11, 32 }
 0x7c5   :  { %p8534_p1 = scmp.ne.s32.totalorder %s11840_s11, %s8533_s21  ;;  %p8537_p2 = scmp.lt.u32.totalorder %s8533_s21, %s11840_s11 }
 0x7c7   :  { %p8539_p3 = pnand %p8537_p2, %p8534_p1 }
 0x7c9   :  { %8542 = shalt.err (!%p8539_p3)
}
 0x7ca   :  { %7347 = dma.vmem_to_hbm [thread:$0]  %s7345_s15, 32, %s11840_s11, [#allocation8]  }
 0x7cb   :  { %8555 = dma.done.wait [#allocation8], 32  }
 0x7cc   :  { %8556 = vsyncadd [#allocation8], 4294967264 }
 0x7cd   :  { %7351 = vsyncpa [#allocation7], 1 }
 0x7ce   :  { %7352 = vsyncpa [#allocation10], 1 }
 0x7cf   :  { %7353 = vsyncpa [#allocation13], 1 }
 0x7d0   :  { %7354 = vsyncpa [#allocation16], 1 }
 0x7d1   :  { %7355 = vsyncpa [#allocation19], 1 }
 0x7d2   :  { %7356 = vsyncpa [#allocation22], 1 }
 0x7d3   :  { %7357 = vsyncpa [#allocation8], 1 }

</bundles_post_ra>
